<compile_context>
chip_gen: v7x
topology: tpu7x:2x2x1
jax: 0.10.0
libtpu: 0.0.40
codegen_flags: <defaults>
</compile_context>

<pallas_src>
import functools
import math

import jax
import jax.numpy as jnp
from jax.experimental import pallas as pl
from jax.experimental.pallas import tpu as pltpu


_VMEM_LIMIT = 32 * 1024 * 1024   # ~50% of v7x's 64 MiB; ample headroom on v5e/v6e (128 MiB).
_TM_DEFAULT = 512                # ~85% of HBM roofline vs 86% at 1024, at half the VMEM.


# ----------------------------------------------------------------------------
# Pallas kernels
# ----------------------------------------------------------------------------

def _conv1_bn_kernel(x_ref, w1_ref, b1_ref, o_ref):
    """(tm, Cin) @ (Cin, Cmid) + shift (BN scale pre-folded into w1)."""
    o_ref[...] = (jnp.dot(x_ref[...], w1_ref[...],
                          preferred_element_type=jnp.float32)
                  + b1_ref[...]).astype(o_ref.dtype)


def _conv1_att_fuse_kernel(x_ref, y_ref, w1_ref, b1_ref, wax_ref, way_ref,
                           ba_ref, o_ref):
    """Fused conv1(1x1)+BN1, attention gates, and x*z0 + y*z1.

    x_ref:   (tm, Cin)    input pixels (MXU dtype)
    y_ref:   (tm, Cmid)   nearest-resized y pixels
    w1_ref:  (Cin, Cmid)  conv1 weight with BN1 scale folded in
    b1_ref:  (1, Cmid)    BN1 shift (f32)
    wax_ref: (2, Cmid)    att weights acting on x_mid (f32, VPU path)
    way_ref: (2, Cmid)    att weights acting on y     (f32, VPU path)
    ba_ref:  (1, 2)       att bias (f32)
    o_ref:   (tm, Cmid)
    """
    x_mid = (jnp.dot(x_ref[...], w1_ref[...],
                     preferred_element_type=jnp.float32) + b1_ref[...])
    y = y_ref[...].astype(jnp.float32)
    wax = wax_ref[...]
    way = way_ref[...]
    # Fused per-logit reduction: one cross-lane reduction per logit (2 XLU
    # reductions total instead of 4).  A (tm, Cmid) @ (Cmid, 2) matmul would
    # use <2% of the MXU output lanes, so this stays on the VPU/XLU.
    l0 = jnp.sum(x_mid * wax[0:1, :] + y * way[0:1, :], axis=-1,
                 keepdims=True) + ba_ref[0:1, 0:1]
    l1 = jnp.sum(x_mid * wax[1:2, :] + y * way[1:2, :], axis=-1,
                 keepdims=True) + ba_ref[0:1, 1:2]
    z0 = jax.nn.sigmoid(l0)
    z1 = jax.nn.sigmoid(l1)
    o_ref[...] = (x_mid * z0 + y * z1).astype(o_ref.dtype)


def _conv2_bn_kernel(xf_ref, w_ref, b2_ref, o_ref, *, wp, cout):
    """3x3 / pad=1 conv + folded BN2 for one image via per-kh packed matmuls.

    xf_ref: (P_in, Cmid)      spatially zero-padded image, rows flattened
                              row-major in padded coords (stride wp, wp % 8 == 0)
    w_ref:  (3, Cmid, 3*Cout) conv2 weight: kh on axis 0, kw packed on the lane
                              axis, BN2 scale folded (DMA'd once per call)
    b2_ref: (1, Cout)         BN2 shift (f32)
    o_ref:  (Q, Cout)         Q = H * wp flat output rows (junk columns per row
                              are dropped by the host wrapper)
    """
    q = o_ref.shape[0]
    rows = q + 8
    # 3 matmuls with sublane-aligned LHS row starts (0, wp, 2*wp) and a
    # lane-dense packed RHS (N = 3*Cout) accumulating into one f32 value.
    v = jnp.dot(xf_ref[0:rows, :], w_ref[0],
                preferred_element_type=jnp.float32)
    v = v + jnp.dot(xf_ref[wp:wp + rows, :], w_ref[1],
                    preferred_element_type=jnp.float32)
    v = v + jnp.dot(xf_ref[2 * wp:2 * wp + rows, :], w_ref[2],
                    preferred_element_type=jnp.float32)
    # The kw taps are 3 cheap shifted VPU adds on the small packed result.
    acc = (v[0:q, 0:cout]
           + v[1:q + 1, cout:2 * cout]
           + v[2:q + 2, 2 * cout:3 * cout]
           + b2_ref[...])
    # TODO(synk): pack k=ceil(128/Cout) pixels per lane row when Cout < 128 so
    # the store is unmasked (real ReviewKD Cout is usually >= 128 already).
    o_ref[...] = acc.astype(o_ref.dtype)


# ----------------------------------------------------------------------------
# Pallas wrappers
# ----------------------------------------------------------------------------

def _round_up(x, m):
    return ((x + m - 1) // m) * m


def _choose_tile(m, target=_TM_DEFAULT):
    """Return (tile, padded_m): tile is a multiple of 8, <= target."""
    target = max(8, target - target % 8)
    if m <= target:
        t = _round_up(m, 8)
        return t, t
    for t in range(target, 7, -8):
        if m % t == 0:
            return t, m
    # Awkward M: pad up to a tile multiple instead of one giant block.
    return target, _round_up(m, target)


def _nbytes(a):
    return a.size * a.dtype.itemsize


def conv1_bn(x2d, w1, b1, out_dtype, tm=_TM_DEFAULT):
    """x2d: (M, Cin); w1: (Cin, Cmid) scale-folded; b1: (1, Cmid) -> (M, Cmid)."""
    M, Cin = x2d.shape
    Cmid = w1.shape[1]
    tm, m_pad = _choose_tile(M, tm)
    if m_pad > M:
        x2d = jnp.pad(x2d, ((0, m_pad - M), (0, 0)))
    cost = pl.CostEstimate(
        flops=int(2 * m_pad * Cin * Cmid + m_pad * Cmid),
        transcendentals=0,
        bytes_accessed=int(_nbytes(x2d) + _nbytes(w1) + _nbytes(b1)
                           + m_pad * Cmid * jnp.dtype(out_dtype).itemsize))
    out = pl.pallas_call(
        _conv1_bn_kernel,
        out_shape=jax.ShapeDtypeStruct((m_pad, Cmid), out_dtype),
        grid_spec=pltpu.PrefetchScalarGridSpec(
            num_scalar_prefetch=0,
            grid=(m_pad // tm,),
            in_specs=[
                pl.BlockSpec((tm, Cin), lambda i: (i, 0)),
                # TODO(synk): pipeline_mode=pl.Buffered(1) on the constant
                # weight/bias operands to avoid double-buffering them in VMEM.
                pl.BlockSpec((Cin, Cmid), lambda i: (0, 0)),
                pl.BlockSpec((1, Cmid), lambda i: (0, 0)),
            ],
            out_specs=pl.BlockSpec((tm, Cmid), lambda i: (i, 0)),
        ),
        compiler_params=pltpu.CompilerParams(
            dimension_semantics=("parallel",),
            vmem_limit_bytes=_VMEM_LIMIT),
        cost_estimate=cost,
    )(x2d, w1, b1)
    return out[:M] if m_pad > M else out


def conv1_att_fuse(x2d, y2d, w1, b1, wax, way, ba, out_dtype, tm=_TM_DEFAULT):
    """Fused conv1+BN1+attention.  x2d: (M, Cin), y2d: (M, Cmid) -> (M, Cmid)."""
    M, Cin = x2d.shape
    Cmid = w1.shape[1]
    tm, m_pad = _choose_tile(M, tm)
    if m_pad > M:
        x2d = jnp.pad(x2d, ((0, m_pad - M), (0, 0)))
        y2d = jnp.pad(y2d, ((0, m_pad - M), (0, 0)))
    cost = pl.CostEstimate(
        flops=int(2 * m_pad * Cin * Cmid + 10 * m_pad * Cmid),
        transcendentals=int(2 * m_pad),
        bytes_accessed=int(_nbytes(x2d) + _nbytes(y2d) + _nbytes(w1)
                           + _nbytes(b1) + _nbytes(wax) + _nbytes(way)
                           + _nbytes(ba)
                           + m_pad * Cmid * jnp.dtype(out_dtype).itemsize))
    out = pl.pallas_call(
        _conv1_att_fuse_kernel,
        out_shape=jax.ShapeDtypeStruct((m_pad, Cmid), out_dtype),
        grid_spec=pltpu.PrefetchScalarGridSpec(
            num_scalar_prefetch=0,
            grid=(m_pad // tm,),
            in_specs=[
                pl.BlockSpec((tm, Cin), lambda i: (i, 0)),
                pl.BlockSpec((tm, Cmid), lambda i: (i, 0)),
                pl.BlockSpec((Cin, Cmid), lambda i: (0, 0)),
                pl.BlockSpec((1, Cmid), lambda i: (0, 0)),
                pl.BlockSpec((2, Cmid), lambda i: (0, 0)),
                pl.BlockSpec((2, Cmid), lambda i: (0, 0)),
                pl.BlockSpec((1, 2), lambda i: (0, 0)),
            ],
            out_specs=pl.BlockSpec((tm, Cmid), lambda i: (i, 0)),
        ),
        compiler_params=pltpu.CompilerParams(
            dimension_semantics=("parallel",),
            vmem_limit_bytes=_VMEM_LIMIT),
        cost_estimate=cost,
    )(x2d, y2d, w1, b1, wax, way, ba)
    return out[:M] if m_pad > M else out


def conv2_3x3_bn(x_nhwc, w_packed, b2, out_dtype=jnp.float32):
    """3x3 pad=1 conv + folded BN2.

    x_nhwc:   (N, H, W, Cmid)
    w_packed: (3, Cmid, 3*Cout) kh on axis 0, kw packed on the lane axis
    b2:       (1, Cout) f32
    """
    N, H, W, Cmid = x_nhwc.shape
    Cout = w_packed.shape[-1] // 3
    Wp_al = _round_up(W + 2, 8)            # padded width, sublane-aligned
    Hp = H + 2
    P = Hp * Wp_al
    Q = H * Wp_al                          # flat output rows per image
    P_in = _round_up(max(P, 2 * Wp_al + Q + 8), 8)

    # Zero-pad spatially (1 top/bottom/left, right up to the aligned width)
    # and flatten to rows with stride Wp_al.
    xp = jnp.pad(x_nhwc, ((0, 0), (1, 1), (1, Wp_al - W - 1), (0, 0)))
    xflat = xp.reshape(N, P, Cmid)
    if P_in > P:
        xflat = jnp.pad(xflat, ((0, 0), (0, P_in - P), (0, 0)))

    kernel = functools.partial(_conv2_bn_kernel, wp=Wp_al, cout=Cout)
    # TODO(synk): add an H-row-tiled grid axis (2-row halo) for very large
    # feature maps / v7x dual-core; whole-image blocks fit VMEM for typical
    # ReviewKD sizes with bf16 operands and the per-kh packed intermediate.
    cost = pl.CostEstimate(
        flops=int(2 * 3 * N * (Q + 8) * Cmid * 3 * Cout),
        transcendentals=0,
        bytes_accessed=int(_nbytes(xflat) + _nbytes(w_packed) + _nbytes(b2)
                           + N * Q * Cout * jnp.dtype(out_dtype).itemsize))
    out_flat = pl.pallas_call(
        kernel,
        out_shape=jax.ShapeDtypeStruct((N, Q, Cout), out_dtype),
        grid_spec=pltpu.PrefetchScalarGridSpec(
            num_scalar_prefetch=0,
            grid=(N,),
            in_specs=[
                pl.BlockSpec((None, P_in, Cmid), lambda n: (n, 0, 0)),
                # TODO(synk): pipeline_mode=pl.Buffered(1) for the constant
                # packed weight / bias to avoid a second VMEM copy of them.
                pl.BlockSpec((3, Cmid, 3 * Cout), lambda n: (0, 0, 0)),
                pl.BlockSpec((1, Cout), lambda n: (0, 0)),
            ],
            out_specs=pl.BlockSpec((None, Q, Cout), lambda n: (n, 0, 0)),
        ),
        compiler_params=pltpu.CompilerParams(
            dimension_semantics=("parallel",),
            vmem_limit_bytes=_VMEM_LIMIT),
        cost_estimate=cost,
    )(xflat, w_packed, b2)
    # Drop the junk columns per output row; XLA fuses this slice with the
    # caller's NHWC->NCHW transpose so the output is rewritten only once.
    return out_flat.reshape(N, H, Wp_al, Cout)[:, :, :W, :]


# ----------------------------------------------------------------------------
# JAX glue
# ----------------------------------------------------------------------------

def bn_affine(gamma, beta, mean, var, eps=1e-5):
    """Fold eval-mode BatchNorm into per-channel scale/shift."""
    scale = gamma * jax.lax.rsqrt(var + eps)
    shift = beta - mean * scale
    return scale, shift


def nearest_resize_nhwc(x, out_h, out_w):
    """Matches F.interpolate(mode='nearest'): src = floor(dst * in / out)."""
    n, h, w, c = x.shape
    rows = (jnp.arange(out_h) * h) // out_h
    cols = (jnp.arange(out_w) * w) // out_w
    return x[:, rows][:, :, cols]


@functools.partial(jax.jit,
                   static_argnames=("shape", "out_shape", "matmul_dtype"))
def abf_forward(x_nchw, y_nchw, params, shape, out_shape,
                matmul_dtype=jnp.bfloat16):
    """ABF.forward. Returns (y, x) in NCHW, matching the PyTorch module.

    matmul_dtype controls the dtype of MXU operands / HBM-resident
    intermediates (default bf16 per perf review; accumulation, biases and the
    sigmoid/VPU epilogues stay f32).
    """
    N, Cin, H, W = x_nchw.shape
    Cmid = params["w1"].shape[-1]
    store_dtype = jnp.dtype(matmul_dtype)

    # Fold BN1 scale into the conv1 weight on the host (free, eval mode).
    s1, b1 = bn_affine(params["bn1_gamma"], params["bn1_beta"],
                       params["bn1_mean"], params["bn1_var"])
    w1f = (params["w1"] * s1[None, :]).astype(store_dtype)
    b1 = b1.reshape(1, Cmid)

    x = jnp.transpose(x_nchw, (0, 2, 3, 1))                  # NCHW -> NHWC
    x2d = x.reshape(N * H * W, Cin).astype(store_dtype)

    if params.get("w_att") is not None:
        # Fused conv1 + BN1 + attention (x_mid never hits HBM on its own).
        y = jnp.transpose(y_nchw, (0, 2, 3, 1))
        y = nearest_resize_nhwc(y, shape, shape)             # (N, H, W, Cmid)
        y2d = y.reshape(N * H * W, Cmid).astype(store_dtype)
        wax = params["w_att"][:Cmid].T                       # (2, Cmid) f32
        way = params["w_att"][Cmid:].T                       # (2, Cmid) f32
        ba = params["b_att"].reshape(1, 2)
        fused2d = conv1_att_fuse(x2d, y2d, w1f, b1, wax, way, ba,
                                 out_dtype=store_dtype)
        x_mid = fused2d.reshape(N, H, W, Cmid)
    else:
        x_mid2d = conv1_bn(x2d, w1f, b1, out_dtype=store_dtype)
        x_mid = x_mid2d.reshape(N, H, W, Cmid)

    if x_mid.shape[2] != out_shape:
        # TODO(synk): fold the nearest upsample into conv2's input gather via
        # scalar-prefetched source-row indices so conv2 reads the smaller
        # pre-upsample x_mid from HBM.
        x_mid = nearest_resize_nhwc(x_mid, out_shape, out_shape)

    # conv2 (3x3, pad=1, bias=False) + folded BN2, kw taps packed on lanes.
    s2, b2 = bn_affine(params["bn2_gamma"], params["bn2_beta"],
                       params["bn2_mean"], params["bn2_var"])
    w2f = (params["w2"] * s2).astype(store_dtype)            # (3,3,Cmid,Cout)
    Cout = w2f.shape[-1]
    w_packed = jnp.transpose(w2f, (0, 2, 1, 3)).reshape(3, Cmid, 3 * Cout)
    y_out = conv2_3x3_bn(x_mid, w_packed, b2.reshape(1, -1),
                         out_dtype=jnp.float32)

    x_ret = x_mid.astype(jnp.float32)
    return (jnp.transpose(y_out, (0, 3, 1, 2)),
            jnp.transpose(x_ret, (0, 3, 1, 2)))


# ----------------------------------------------------------------------------
# Pure-JAX reference (for validation)
# ----------------------------------------------------------------------------

def reference_abf(x_nchw, y_nchw, params, shape, out_shape):
    dn = ("NHWC", "HWIO", "NHWC")

    def bn(v, g, b, m, var, eps=1e-5):
        return (v - m) * jax.lax.rsqrt(var + eps) * g + b

    x = jnp.transpose(x_nchw, (0, 2, 3, 1))
    Cin, Cmid = params["w1"].shape
    w1 = params["w1"].reshape(1, 1, Cin, Cmid)
    x = jax.lax.conv_general_dilated(x, w1, (1, 1), "VALID", dimension_numbers=dn)
    x = bn(x, params["bn1_gamma"], params["bn1_beta"],
           params["bn1_mean"], params["bn1_var"])

    if params.get("w_att") is not None:
        y = jnp.transpose(y_nchw, (0, 2, 3, 1))
        y = nearest_resize_nhwc(y, shape, shape)
        z = jnp.concatenate([x, y], axis=-1)
        watt = params["w_att"].reshape(1, 1, 2 * Cmid, 2)
        z = jax.lax.conv_general_dilated(z, watt, (1, 1), "VALID",
                                         dimension_numbers=dn) + params["b_att"]
        z = jax.nn.sigmoid(z)
        x = x * z[..., 0:1] + y * z[..., 1:2]

    if x.shape[2] != out_shape:
        x = nearest_resize_nhwc(x, out_shape, out_shape)

    yo = jax.lax.conv_general_dilated(x, params["w2"], (1, 1), "SAME",
                                      dimension_numbers=dn)
    yo = bn(yo, params["bn2_gamma"], params["bn2_beta"],
            params["bn2_mean"], params["bn2_var"])
    return jnp.transpose(yo, (0, 3, 1, 2)), jnp.transpose(x, (0, 3, 1, 2))


# ----------------------------------------------------------------------------
# Main
# ----------------------------------------------------------------------------

if __name__ == "__main__":
    N, Cin, Cmid, Cout = 2, 4, 8, 4
    H = W = 16
    shape = 16         # target spatial size for y (== H, as in ReviewKD usage)
    out_shape = 32     # exercises the nearest-upsample of x before conv2

    keys = jax.random.split(jax.random.PRNGKey(0), 12)

    def u(k, shp, bound):
        return jax.random.uniform(k, shp, jnp.float32, -bound, bound)

    params = dict(
        w1=u(keys[0], (Cin, Cmid), math.sqrt(3.0 / Cin)),                 # 1x1 conv, IO
        bn1_gamma=jax.random.uniform(keys[1], (Cmid,), jnp.float32, 0.5, 1.5),
        bn1_beta=u(keys[2], (Cmid,), 0.1),
        bn1_mean=u(keys[3], (Cmid,), 0.1),
        bn1_var=jax.random.uniform(keys[4], (Cmid,), jnp.float32, 0.5, 1.5),
        w_att=u(keys[5], (2 * Cmid, 2), math.sqrt(1.0 / (2 * Cmid))),     # 1x1 conv, IO
        b_att=u(keys[6], (2,), math.sqrt(1.0 / (2 * Cmid))),
        w2=u(keys[7], (3, 3, Cmid, Cout), math.sqrt(3.0 / (9 * Cmid))),   # 3x3 conv, HWIO
        bn2_gamma=jax.random.uniform(keys[8], (Cout,), jnp.float32, 0.5, 1.5),
        bn2_beta=u(keys[9], (Cout,), 0.1),
        bn2_mean=u(keys[10], (Cout,), 0.1),
        bn2_var=jax.random.uniform(keys[11], (Cout,), jnp.float32, 0.5, 1.5),
    )

    kx, ky = jax.random.split(jax.random.PRNGKey(42))
    x = jax.random.normal(kx, (N, Cin, H, W), jnp.float32)       # NCHW like PyTorch
    y = jax.random.normal(ky, (N, Cmid, 8, 8), jnp.float32)      # NCHW like PyTorch

    # --- fuse=True, f32 MXU operands (strict check) -------------------------
    y_out, x_out = abf_forward(x, y, params, shape=shape, out_shape=out_shape,
                               matmul_dtype=jnp.float32)
    jax.block_until_ready((y_out, x_out))
    y_ref, x_ref = reference_abf(x, y, params, shape, out_shape)
    assert y_out.shape == (N, Cout, out_shape, out_shape)
    assert x_out.shape == (N, Cmid, out_shape, out_shape)
    assert jnp.allclose(y_out, y_ref, atol=1e-4, rtol=1e-4), float(
        jnp.max(jnp.abs(y_out - y_ref)))
    assert jnp.allclose(x_out, x_ref, atol=1e-4, rtol=1e-4), float(
        jnp.max(jnp.abs(x_out - x_ref)))

    # --- fuse=False path, f32 (strict check) ---------------------------------
    params_nf = dict(params)
    params_nf["w_att"] = None
    params_nf["b_att"] = None
    y_out2, x_out2 = abf_forward(x, None, params_nf,
                                 shape=shape, out_shape=out_shape,
                                 matmul_dtype=jnp.float32)
    jax.block_until_ready((y_out2, x_out2))
    y_ref2, x_ref2 = reference_abf(x, None, params_nf, shape, out_shape)
    assert jnp.allclose(y_out2, y_ref2, atol=1e-4, rtol=1e-4), float(
        jnp.max(jnp.abs(y_out2 - y_ref2)))
    assert jnp.allclose(x_out2, x_ref2, atol=1e-4, rtol=1e-4), float(
        jnp.max(jnp.abs(x_out2 - x_ref2)))

    # --- fuse=True, default bf16 MXU operands (loose check vs f32 ref) ------
    y_bf, x_bf = abf_forward(x, y, params, shape=shape, out_shape=out_shape)
    jax.block_until_ready((y_bf, x_bf))
    assert jnp.allclose(y_bf, y_ref, atol=2e-1, rtol=2e-1), float(
        jnp.max(jnp.abs(y_bf - y_ref)))
    assert jnp.allclose(x_bf, x_ref, atol=2e-1, rtol=2e-1), float(
        jnp.max(jnp.abs(x_bf - x_ref)))

    print("KERNEL_OK")
</pallas_src>

<mosaic_0001>
module attributes {stable_mosaic.version = 11 : i64} {
  func.func @_conv1_att_fuse_kernel(%arg0: i32, %arg1: memref<512x4xf32, #tpu.memory_space<vmem>>, %arg2: memref<512x8xf32, #tpu.memory_space<vmem>>, %arg3: memref<4x8xf32, #tpu.memory_space<vmem>>, %arg4: memref<1x8xf32, #tpu.memory_space<vmem>>, %arg5: memref<2x8xf32, #tpu.memory_space<vmem>>, %arg6: memref<2x8xf32, #tpu.memory_space<vmem>>, %arg7: memref<1x2xf32, #tpu.memory_space<vmem>>, %arg8: memref<512x8xf32, #tpu.memory_space<vmem>>) attributes {dimension_semantics = [#tpu.dimension_semantics<parallel>], iteration_bounds = array<i64: 1>, scalar_prefetch = 0 : i64, scratch_operands = 0 : i64, tpu.core_type = #tpu.core_type<tc>, window_params = [{transform_indices = @transform_0, window_bounds = array<i64: 512, 4>}, {transform_indices = @transform_1, window_bounds = array<i64: 512, 8>}, {pipeline_mode = #tpu.pipeline_mode<synchronous>, transform_indices = @transform_2, window_bounds = array<i64: 4, 8>}, {pipeline_mode = #tpu.pipeline_mode<synchronous>, transform_indices = @transform_3, window_bounds = array<i64: 1, 8>}, {pipeline_mode = #tpu.pipeline_mode<synchronous>, transform_indices = @transform_4, window_bounds = array<i64: 2, 8>}, {pipeline_mode = #tpu.pipeline_mode<synchronous>, transform_indices = @transform_5, window_bounds = array<i64: 2, 8>}, {pipeline_mode = #tpu.pipeline_mode<synchronous>, transform_indices = @transform_6, window_bounds = array<i64: 1, 2>}, {transform_indices = @transform_7, window_bounds = array<i64: 512, 8>}]} {
    %c0 = arith.constant 0 : index
    %c0_0 = arith.constant 0 : index
    %0 = vector.load %arg1[%c0, %c0_0] : memref<512x4xf32, #tpu.memory_space<vmem>>, vector<512x4xf32>
    %c0_1 = arith.constant 0 : index
    %c0_2 = arith.constant 0 : index
    %1 = vector.load %arg3[%c0_1, %c0_2] : memref<4x8xf32, #tpu.memory_space<vmem>>, vector<4x8xf32>
    %cst = arith.constant dense<0.000000e+00> : vector<512x8xf32>
    %2 = tpu.matmul %0, %1, %cst {dimension_numbers = #tpu.dot_dimension_numbers<[1], [0], [0], [1], [0, 0, 1, 1], [], []>} : vector<512x4xf32>, vector<4x8xf32>, vector<512x8xf32> -> vector<512x8xf32>
    %c0_3 = arith.constant 0 : index
    %c0_4 = arith.constant 0 : index
    %3 = vector.load %arg4[%c0_3, %c0_4] : memref<1x8xf32, #tpu.memory_space<vmem>>, vector<1x8xf32>
    %4 = vector.broadcast %3 : vector<1x8xf32> to vector<512x8xf32>
    %5 = arith.addf %2, %4 : vector<512x8xf32>
    %c0_5 = arith.constant 0 : index
    %c0_6 = arith.constant 0 : index
    %6 = vector.load %arg2[%c0_5, %c0_6] : memref<512x8xf32, #tpu.memory_space<vmem>>, vector<512x8xf32>
    %c0_7 = arith.constant 0 : index
    %c0_8 = arith.constant 0 : index
    %7 = vector.load %arg5[%c0_7, %c0_8] : memref<2x8xf32, #tpu.memory_space<vmem>>, vector<2x8xf32>
    %c0_9 = arith.constant 0 : index
    %c0_10 = arith.constant 0 : index
    %8 = vector.load %arg6[%c0_9, %c0_10] : memref<2x8xf32, #tpu.memory_space<vmem>>, vector<2x8xf32>
    %9 = vector.extract_strided_slice %7 {offsets = [0, 0], sizes = [1, 8], strides = [1, 1]} : vector<2x8xf32> to vector<1x8xf32>
    %10 = vector.broadcast %9 : vector<1x8xf32> to vector<512x8xf32>
    %11 = arith.mulf %5, %10 : vector<512x8xf32>
    %12 = vector.extract_strided_slice %8 {offsets = [0, 0], sizes = [1, 8], strides = [1, 1]} : vector<2x8xf32> to vector<1x8xf32>
    %13 = vector.broadcast %12 : vector<1x8xf32> to vector<512x8xf32>
    %14 = arith.mulf %6, %13 : vector<512x8xf32>
    %15 = arith.addf %11, %14 : vector<512x8xf32>
    %cst_11 = arith.constant dense<0.000000e+00> : vector<512xf32>
    %16 = vector.multi_reduction <add>, %15, %cst_11 [1] : vector<512x8xf32> to vector<512xf32>
    %17 = vector.shape_cast %16 : vector<512xf32> to vector<512x1xf32>
    %c0_12 = arith.constant 0 : index
    %c0_13 = arith.constant 0 : index
    %18 = vector.load %arg7[%c0_12, %c0_13] : memref<1x2xf32, #tpu.memory_space<vmem>>, vector<1x1xf32>
    %19 = vector.broadcast %18 : vector<1x1xf32> to vector<512x1xf32>
    %20 = arith.addf %17, %19 : vector<512x1xf32>
    %21 = vector.extract_strided_slice %7 {offsets = [1, 0], sizes = [1, 8], strides = [1, 1]} : vector<2x8xf32> to vector<1x8xf32>
    %22 = vector.broadcast %21 : vector<1x8xf32> to vector<512x8xf32>
    %23 = arith.mulf %5, %22 : vector<512x8xf32>
    %24 = vector.extract_strided_slice %8 {offsets = [1, 0], sizes = [1, 8], strides = [1, 1]} : vector<2x8xf32> to vector<1x8xf32>
    %25 = vector.broadcast %24 : vector<1x8xf32> to vector<512x8xf32>
    %26 = arith.mulf %6, %25 : vector<512x8xf32>
    %27 = arith.addf %23, %26 : vector<512x8xf32>
    %cst_14 = arith.constant dense<0.000000e+00> : vector<512xf32>
    %28 = vector.multi_reduction <add>, %27, %cst_14 [1] : vector<512x8xf32> to vector<512xf32>
    %29 = vector.shape_cast %28 : vector<512xf32> to vector<512x1xf32>
    %c0_15 = arith.constant 0 : index
    %c1 = arith.constant 1 : index
    %30 = vector.load %arg7[%c0_15, %c1] : memref<1x2xf32, #tpu.memory_space<vmem>>, vector<1x1xf32>
    %31 = vector.broadcast %30 : vector<1x1xf32> to vector<512x1xf32>
    %32 = arith.addf %29, %31 : vector<512x1xf32>
    %33 = arith.negf %20 : vector<512x1xf32>
    %34 = math.exp %33 : vector<512x1xf32>
    %cst_16 = arith.constant 1.000000e+00 : f32
    %35 = vector.broadcast %cst_16 : f32 to vector<512x1xf32>
    %36 = arith.addf %35, %34 : vector<512x1xf32>
    %37 = arith.divf %35, %36 : vector<512x1xf32>
    %38 = arith.negf %32 : vector<512x1xf32>
    %39 = math.exp %38 : vector<512x1xf32>
    %cst_17 = arith.constant 1.000000e+00 : f32
    %40 = vector.broadcast %cst_17 : f32 to vector<512x1xf32>
    %41 = arith.addf %40, %39 : vector<512x1xf32>
    %42 = arith.divf %40, %41 : vector<512x1xf32>
    %43 = vector.broadcast %37 : vector<512x1xf32> to vector<512x8xf32>
    %44 = arith.mulf %5, %43 : vector<512x8xf32>
    %45 = vector.broadcast %42 : vector<512x1xf32> to vector<512x8xf32>
    %46 = arith.mulf %6, %45 : vector<512x8xf32>
    %47 = arith.addf %44, %46 : vector<512x8xf32>
    %c0_18 = arith.constant 0 : index
    %c0_19 = arith.constant 0 : index
    %48 = vector.load %arg8[%c0_18, %c0_19] : memref<512x8xf32, #tpu.memory_space<vmem>>, vector<512x8xf32>
    tpu.vector_store %arg8[%c0_18, %c0_19], %47 {strides = array<i32>} : memref<512x8xf32, #tpu.memory_space<vmem>>, vector<512x8xf32>,
    return
  }
  func.func @transform_0(%arg0: i32) -> (i32, i32) {
    %c0_i32 = arith.constant 0 : i32
    %c0_i32_0 = arith.constant 0 : i32
    return %arg0, %c0_i32 : i32, i32
  }
  func.func @transform_1(%arg0: i32) -> (i32, i32) {
    %c0_i32 = arith.constant 0 : i32
    %c0_i32_0 = arith.constant 0 : i32
    return %arg0, %c0_i32 : i32, i32
  }
  func.func @transform_2(%arg0: i32) -> (i32, i32) {
    %c0_i32 = arith.constant 0 : i32
    %c0_i32_0 = arith.constant 0 : i32
    %c0_i32_1 = arith.constant 0 : i32
    return %c0_i32, %c0_i32_0 : i32, i32
  }
  func.func @transform_3(%arg0: i32) -> (i32, i32) {
    %c0_i32 = arith.constant 0 : i32
    %c0_i32_0 = arith.constant 0 : i32
    %c0_i32_1 = arith.constant 0 : i32
    return %c0_i32, %c0_i32_0 : i32, i32
  }
  func.func @transform_4(%arg0: i32) -> (i32, i32) {
    %c0_i32 = arith.constant 0 : i32
    %c0_i32_0 = arith.constant 0 : i32
    %c0_i32_1 = arith.constant 0 : i32
    return %c0_i32, %c0_i32_0 : i32, i32
  }
  func.func @transform_5(%arg0: i32) -> (i32, i32) {
    %c0_i32 = arith.constant 0 : i32
    %c0_i32_0 = arith.constant 0 : i32
    %c0_i32_1 = arith.constant 0 : i32
    return %c0_i32, %c0_i32_0 : i32, i32
  }
  func.func @transform_6(%arg0: i32) -> (i32, i32) {
    %c0_i32 = arith.constant 0 : i32
    %c0_i32_0 = arith.constant 0 : i32
    %c0_i32_1 = arith.constant 0 : i32
    return %c0_i32, %c0_i32_0 : i32, i32
  }
  func.func @transform_7(%arg0: i32) -> (i32, i32) {
    %c0_i32 = arith.constant 0 : i32
    %c0_i32_0 = arith.constant 0 : i32
    return %arg0, %c0_i32 : i32, i32
  }
}

module attributes {stable_mosaic.version = 11 : i64} {
  func.func @_conv2_bn_kernel(%arg0: i32, %arg1: memref<1x1368x8xf32, #tpu.memory_space<vmem>>, %arg2: memref<3x8x12xf32, #tpu.memory_space<vmem>>, %arg3: memref<1x4xf32, #tpu.memory_space<vmem>>, %arg4: memref<1x1280x4xf32, #tpu.memory_space<vmem>>) attributes {dimension_semantics = [#tpu.dimension_semantics<parallel>], iteration_bounds = array<i64: 2>, scalar_prefetch = 0 : i64, scratch_operands = 0 : i64, tpu.core_type = #tpu.core_type<tc>, window_params = [{transform_indices = @transform_0, window_bounds = array<i64: 1, 1368, 8>}, {pipeline_mode = #tpu.pipeline_mode<synchronous>, transform_indices = @transform_1, window_bounds = array<i64: 3, 8, 12>}, {pipeline_mode = #tpu.pipeline_mode<synchronous>, transform_indices = @transform_2, window_bounds = array<i64: 1, 4>}, {transform_indices = @transform_3, window_bounds = array<i64: 1, 1280, 4>}]} {
    %c0 = arith.constant 0 : index
    %c0_0 = arith.constant 0 : index
    %c0_1 = arith.constant 0 : index
    %0 = vector.load %arg1[%c0, %c0_0, %c0_1] : memref<1x1368x8xf32, #tpu.memory_space<vmem>>, vector<1x1288x8xf32>
    %1 = vector.shape_cast %0 : vector<1x1288x8xf32> to vector<1288x8xf32>
    %c0_2 = arith.constant 0 : index
    %c0_3 = arith.constant 0 : index
    %c0_4 = arith.constant 0 : index
    %2 = vector.load %arg2[%c0_2, %c0_3, %c0_4] : memref<3x8x12xf32, #tpu.memory_space<vmem>>, vector<1x8x12xf32>
    %3 = vector.shape_cast %2 : vector<1x8x12xf32> to vector<8x12xf32>
    %cst = arith.constant dense<0.000000e+00> : vector<1288x12xf32>
    %4 = tpu.matmul %1, %3, %cst {dimension_numbers = #tpu.dot_dimension_numbers<[1], [0], [0], [1], [0, 0, 1, 1], [], []>} : vector<1288x8xf32>, vector<8x12xf32>, vector<1288x12xf32> -> vector<1288x12xf32>
    %c0_5 = arith.constant 0 : index
    %c40 = arith.constant 40 : index
    %c0_6 = arith.constant 0 : index
    %5 = vector.load %arg1[%c0_5, %c40, %c0_6] : memref<1x1368x8xf32, #tpu.memory_space<vmem>>, vector<1x1288x8xf32>
    %6 = vector.shape_cast %5 : vector<1x1288x8xf32> to vector<1288x8xf32>
    %c1 = arith.constant 1 : index
    %c0_7 = arith.constant 0 : index
    %c0_8 = arith.constant 0 : index
    %7 = vector.load %arg2[%c1, %c0_7, %c0_8] : memref<3x8x12xf32, #tpu.memory_space<vmem>>, vector<1x8x12xf32>
    %8 = vector.shape_cast %7 : vector<1x8x12xf32> to vector<8x12xf32>
    %cst_9 = arith.constant dense<0.000000e+00> : vector<1288x12xf32>
    %9 = tpu.matmul %6, %8, %cst_9 {dimension_numbers = #tpu.dot_dimension_numbers<[1], [0], [0], [1], [0, 0, 1, 1], [], []>} : vector<1288x8xf32>, vector<8x12xf32>, vector<1288x12xf32> -> vector<1288x12xf32>
    %10 = arith.addf %4, %9 : vector<1288x12xf32>
    %c0_10 = arith.constant 0 : index
    %c80 = arith.constant 80 : index
    %c0_11 = arith.constant 0 : index
    %11 = vector.load %arg1[%c0_10, %c80, %c0_11] : memref<1x1368x8xf32, #tpu.memory_space<vmem>>, vector<1x1288x8xf32>
    %12 = vector.shape_cast %11 : vector<1x1288x8xf32> to vector<1288x8xf32>
    %c2 = arith.constant 2 : index
    %c0_12 = arith.constant 0 : index
    %c0_13 = arith.constant 0 : index
    %13 = vector.load %arg2[%c2, %c0_12, %c0_13] : memref<3x8x12xf32, #tpu.memory_space<vmem>>, vector<1x8x12xf32>
    %14 = vector.shape_cast %13 : vector<1x8x12xf32> to vector<8x12xf32>
    %cst_14 = arith.constant dense<0.000000e+00> : vector<1288x12xf32>
    %15 = tpu.matmul %12, %14, %cst_14 {dimension_numbers = #tpu.dot_dimension_numbers<[1], [0], [0], [1], [0, 0, 1, 1], [], []>} : vector<1288x8xf32>, vector<8x12xf32>, vector<1288x12xf32> -> vector<1288x12xf32>
    %16 = arith.addf %10, %15 : vector<1288x12xf32>
    %17 = vector.extract_strided_slice %16 {offsets = [0, 0], sizes = [1280, 4], strides = [1, 1]} : vector<1288x12xf32> to vector<1280x4xf32>
    %18 = vector.extract_strided_slice %16 {offsets = [1, 4], sizes = [1280, 4], strides = [1, 1]} : vector<1288x12xf32> to vector<1280x4xf32>
    %19 = arith.addf %17, %18 : vector<1280x4xf32>
    %20 = vector.extract_strided_slice %16 {offsets = [2, 8], sizes = [1280, 4], strides = [1, 1]} : vector<1288x12xf32> to vector<1280x4xf32>
    %21 = arith.addf %19, %20 : vector<1280x4xf32>
    %c0_15 = arith.constant 0 : index
    %c0_16 = arith.constant 0 : index
    %22 = vector.load %arg3[%c0_15, %c0_16] : memref<1x4xf32, #tpu.memory_space<vmem>>, vector<1x4xf32>
    %23 = vector.broadcast %22 : vector<1x4xf32> to vector<1280x4xf32>
    %24 = arith.addf %21, %23 : vector<1280x4xf32>
    %c0_17 = arith.constant 0 : index
    %c0_18 = arith.constant 0 : index
    %c0_19 = arith.constant 0 : index
    %25 = vector.load %arg4[%c0_17, %c0_18, %c0_19] : memref<1x1280x4xf32, #tpu.memory_space<vmem>>, vector<1x1280x4xf32>
    %26 = vector.shape_cast %25 : vector<1x1280x4xf32> to vector<1280x4xf32>
    %27 = vector.shape_cast %24 : vector<1280x4xf32> to vector<1x1280x4xf32>
    tpu.vector_store %arg4[%c0_17, %c0_18, %c0_19], %27 {strides = array<i32>} : memref<1x1280x4xf32, #tpu.memory_space<vmem>>, vector<1x1280x4xf32>,
    return
  }
  func.func @transform_0(%arg0: i32) -> (i32, i32, i32) {
    %c0_i32 = arith.constant 0 : i32
    %c0_i32_0 = arith.constant 0 : i32
    %c0_i32_1 = arith.constant 0 : i32
    return %arg0, %c0_i32, %c0_i32_0 : i32, i32, i32
  }
  func.func @transform_1(%arg0: i32) -> (i32, i32, i32) {
    %c0_i32 = arith.constant 0 : i32
    %c0_i32_0 = arith.constant 0 : i32
    %c0_i32_1 = arith.constant 0 : i32
    %c0_i32_2 = arith.constant 0 : i32
    return %c0_i32, %c0_i32_0, %c0_i32_1 : i32, i32, i32
  }
  func.func @transform_2(%arg0: i32) -> (i32, i32) {
    %c0_i32 = arith.constant 0 : i32
    %c0_i32_0 = arith.constant 0 : i32
    %c0_i32_1 = arith.constant 0 : i32
    return %c0_i32, %c0_i32_0 : i32, i32
  }
  func.func @transform_3(%arg0: i32) -> (i32, i32, i32) {
    %c0_i32 = arith.constant 0 : i32
    %c0_i32_0 = arith.constant 0 : i32
    %c0_i32_1 = arith.constant 0 : i32
    return %arg0, %c0_i32, %c0_i32_0 : i32, i32, i32
  }
}

</mosaic_0001>

<bundles_post_ra>
// kernel: abf_forward.2
= control target key start
LH: loop header
LB: loop body
LE: loop exit
PB: predicated region body
PF: predicated region fallthrough
CT: control target
= control target key end

     0   :  { %vm291_vm0 = vcmask 1043456   ;;  %vm98_vm1 = vcmask 31744   ;;  %vm946_vm2 = vcmask 64512   ;;  %s6955_s2 = inlined_call_operand.vmem [shape: f32[4,8], index: 2, kind: input, shape index: {}]   ;;  %s6956_s0 = inlined_call_operand.vmem [shape: f32[512,4], index: 0, kind: input, shape index: {}]   ;;  %s6957_s5 = inlined_call_operand.vmem [shape: f32[2,8], index: 5, kind: input, shape index: {}]   ;;  %s6958_s4 = inlined_call_operand.vmem [shape: f32[2,8], index: 4, kind: input, shape index: {}]   ;;  %s6959_s1 = inlined_call_operand.vmem [shape: f32[512,8], index: 1, kind: input, shape index: {}]   ;;  %s6960_s3 = inlined_call_operand.vmem [shape: f32[1,8], index: 3, kind: input, shape index: {}]   ;;  %s6961_s6 = inlined_call_operand.vmem [shape: f32[1,2], index: 6, kind: input, shape index: {}]   ;;  %s6962_s7 = inlined_call_operand.vmem [shape: f32[512,8], index: 7, kind: output, shape index: {}]  }
   0x1   :  { %v90_v0 = vld [vmem:[%s6955_s2] sm:$0xf]  ;;  %v27_v3 = vld [vmem:[%s6956_s0 + $0x8] sm:$0xff]  ;;  %v28_v5 = vld [vmem:[%s6956_s0 + $0x10] sm:$0xff] }
   0x2   :  { %v26_v1 = vld [vmem:[%s6956_s0] sm:$0xff]  ;;  %3594 = vmatprep.subr.msk.mxu0 %vm291_vm0, %v90_v0  ;;  %3692 = vmatprep.subr.msk.mxu1 %vm291_vm0, %v90_v0  ;;  %v59_v4 = vld [vmem:[%s6956_s0 + $0x108] sm:$0xff]  ;;  %v60_v6 = vld [vmem:[%s6956_s0 + $0x110] sm:$0xff] }
   0x3   :  { %v58_v2 = vld [vmem:[%s6956_s0 + $0x100] sm:$0xff]  ;;  %3595 = vmatpush3.msk.msra.mxu0 %vm291_vm0, %v90_v0  ;;  %3693 = vmatpush3.msk.msra.mxu1 %vm291_vm0, %v90_v0  ;;  %v29_v7 = vld [vmem:[%s6956_s0 + $0x18] sm:$0xff]  ;;  %v31_v11 = vld [vmem:[%s6956_s0 + $0x28] sm:$0xff] }
   0x4   :  { %3596 = vmatprep.mubr.msk.f32.mxu0 %vm98_vm1, %v26_v1  ;;  %3644 = vmatprep.mubr.msk.f32.mxu1 %vm98_vm1, %v58_v2  ;;  %v61_v8 = vld [vmem:[%s6956_s0 + $0x118] sm:$0xff]  ;;  %v30_v9 = vld [vmem:[%s6956_s0 + $0x20] sm:$0xff]  ;;  %v63_v12 = vld [vmem:[%s6956_s0 + $0x128] sm:$0xff]  ;;  %v746_v1 = vlaneseq }
   0x5   :  { %3597 = vmatmul.mubr.msk.f32.vlgmr.msra.gmra.mrb[0].mxu0 %vm98_vm1, %v27_v3  ;;  %3645 = vmatmul.mubr.msk.f32.vlgmr.msra.gmra.mrb[0].mxu1 %vm98_vm1, %v59_v4  ;;  %v62_v10 = vld [vmem:[%s6956_s0 + $0x120] sm:$0xff]  ;;  %v32_v13 = vld [vmem:[%s6956_s0 + $0x30] sm:$0xff]  ;;  %v33_v15 = vld [vmem:[%s6956_s0 + $0x38] sm:$0xff] }
   0x6   :  { %3599 = vmatprep.mubr.msk.f32.mxu0 %vm98_vm1, %v28_v5  ;;  %3647 = vmatprep.mubr.msk.f32.mxu1 %vm98_vm1, %v60_v6  ;;  %v64_v14 = vld [vmem:[%s6956_s0 + $0x130] sm:$0xff]  ;;  %v65_v16 = vld [vmem:[%s6956_s0 + $0x138] sm:$0xff]  ;;  %v34_v17 = vld [vmem:[%s6956_s0 + $0x40] sm:$0xff]  ;;  %v747_v2 = vshrl.u32 %v746_v1, 7 }
   0x7   :  { %v66_v18 = vld [vmem:[%s6956_s0 + $0x140] sm:$0xff]  ;;  %v35_v19 = vld [vmem:[%s6956_s0 + $0x48] sm:$0xff]  ;;  %v36_v21 = vld [vmem:[%s6956_s0 + $0x50] sm:$0xff] }
   0x8   :  { %v67_v20 = vld [vmem:[%s6956_s0 + $0x148] sm:$0xff]  ;;  %v68_v22 = vld [vmem:[%s6956_s0 + $0x150] sm:$0xff]  ;;  %v37_v23 = vld [vmem:[%s6956_s0 + $0x58] sm:$0xff]  ;;  %v748_v3 = vsub.s32 0, %v747_v2  ;;  %v1212_v5 = vsub.s32 1, %v747_v2 }
   0x9   :  { %3600 = vmatmul.mubr.msk.f32.gmra.mrb[2].mxu0 %vm98_vm1, %v29_v7  ;;  %3648 = vmatmul.mubr.msk.f32.gmra.mrb[2].mxu1 %vm98_vm1, %v61_v8  ;;  %v69_v24 = vld [vmem:[%s6956_s0 + $0x158] sm:$0xff]  ;;  %v38_v25 = vld [vmem:[%s6956_s0 + $0x60] sm:$0xff]  ;;  %v39_v27 = vld [vmem:[%s6956_s0 + $0x68] sm:$0xff] }
   0xa   :  { %3602 = vmatprep.mubr.msk.f32.mxu0 %vm98_vm1, %v30_v9  ;;  %3650 = vmatprep.mubr.msk.f32.mxu1 %vm98_vm1, %v62_v10  ;;  %v70_v26 = vld [vmem:[%s6956_s0 + $0x160] sm:$0xff]  ;;  %v71_v28 = vld [vmem:[%s6956_s0 + $0x168] sm:$0xff]  ;;  %v40_v29 = vld [vmem:[%s6956_s0 + $0x70] sm:$0xff] }
   0xb   :  { %v72_v30 = vld [vmem:[%s6956_s0 + $0x170] sm:$0xff]  ;;  %v41_v31 = vld [vmem:[%s6956_s0 + $0x78] sm:$0xff]  ;;  %v42_v33 = vld [vmem:[%s6956_s0 + $0x80] sm:$0xff] }
   0xc   :  { %v73_v32 = vld [vmem:[%s6956_s0 + $0x178] sm:$0xff]  ;;  %v74_v34 = vld [vmem:[%s6956_s0 + $0x180] sm:$0xff]  ;;  %v43_v35 = vld [vmem:[%s6956_s0 + $0x88] sm:$0xff] }
   0xd   :  { %3603 = vmatmul.mubr.msk.f32.gmra.mrb[4].mxu0 %vm98_vm1, %v31_v11  ;;  %3651 = vmatmul.mubr.msk.f32.gmra.mrb[4].mxu1 %vm98_vm1, %v63_v12  ;;  %v75_v36 = vld [vmem:[%s6956_s0 + $0x188] sm:$0xff]  ;;  %v44_v37 = vld [vmem:[%s6956_s0 + $0x90] sm:$0xff]  ;;  %v45_v39 = vld [vmem:[%s6956_s0 + $0x98] sm:$0xff] }
   0xe   :  { %3605 = vmatprep.mubr.msk.f32.mxu0 %vm98_vm1, %v32_v13  ;;  %3653 = vmatprep.mubr.msk.f32.mxu1 %vm98_vm1, %v64_v14  ;;  %v76_v38 = vld [vmem:[%s6956_s0 + $0x190] sm:$0xff]  ;;  %v77_v40 = vld [vmem:[%s6956_s0 + $0x198] sm:$0xff]  ;;  %v46_v41 = vld [vmem:[%s6956_s0 + $0xa0] sm:$0xff] }
   0xf   :  { %v78_v42 = vld [vmem:[%s6956_s0 + $0x1a0] sm:$0xff]  ;;  %v47_v43 = vld [vmem:[%s6956_s0 + $0xa8] sm:$0xff]  ;;  %v48_v45 = vld [vmem:[%s6956_s0 + $0xb0] sm:$0xff] }
  0x10   :  { %v79_v44 = vld [vmem:[%s6956_s0 + $0x1a8] sm:$0xff]  ;;  %v80_v46 = vld [vmem:[%s6956_s0 + $0x1b0] sm:$0xff]  ;;  %v49_v47 = vld [vmem:[%s6956_s0 + $0xb8] sm:$0xff] }
  0x11   :  { %3606 = vmatmul.mubr.msk.f32.gmra.mrb[6].mxu0 %vm98_vm1, %v33_v15  ;;  %3654 = vmatmul.mubr.msk.f32.gmra.mrb[6].mxu1 %vm98_vm1, %v65_v16  ;;  %v81_v48 = vld [vmem:[%s6956_s0 + $0x1b8] sm:$0xff]  ;;  %v50_v49 = vld [vmem:[%s6956_s0 + $0xc0] sm:$0xff]  ;;  %v51_v51 = vld [vmem:[%s6956_s0 + $0xc8] sm:$0xff] }
  0x12   :  { %3608 = vmatprep.mubr.msk.f32.mxu0 %vm98_vm1, %v34_v17  ;;  %3656 = vmatprep.mubr.msk.f32.mxu1 %vm98_vm1, %v66_v18  ;;  %v82_v50 = vld [vmem:[%s6956_s0 + $0x1c0] sm:$0xff]  ;;  %v83_v52 = vld [vmem:[%s6956_s0 + $0x1c8] sm:$0xff]  ;;  %v52_v53 = vld [vmem:[%s6956_s0 + $0xd0] sm:$0xff] }
  0x13   :  { %v84_v54 = vld [vmem:[%s6956_s0 + $0x1d0] sm:$0xff]  ;;  %v53_v55 = vld [vmem:[%s6956_s0 + $0xd8] sm:$0xff]  ;;  %v54_v57 = vld [vmem:[%s6956_s0 + $0xe0] sm:$0xff] }
  0x14   :  { %v85_v56 = vld [vmem:[%s6956_s0 + $0x1d8] sm:$0xff]  ;;  %v55_v58 = vld [vmem:[%s6956_s0 + $0xe8] sm:$0xff]  ;;  %v86_v59 = vld [vmem:[%s6956_s0 + $0x1e0] sm:$0xff] }
  0x15   :  { %3609 = vmatmul.mubr.msk.f32.gmra.mrb[8].mxu0 %vm98_vm1, %v35_v19  ;;  %3657 = vmatmul.mubr.msk.f32.gmra.mrb[8].mxu1 %vm98_vm1, %v67_v20  ;;  %v87_v60 = vld [vmem:[%s6956_s0 + $0x1e8] sm:$0xff]  ;;  %v56_v61 = vld [vmem:[%s6956_s0 + $0xf0] sm:$0xff]  ;;  %v57_v62 = vld [vmem:[%s6956_s0 + $0xf8] sm:$0xff] }
  0x16   :  { %3611 = vmatprep.mubr.msk.f32.mxu0 %vm98_vm1, %v36_v21  ;;  %3659 = vmatprep.mubr.msk.f32.mxu1 %vm98_vm1, %v68_v22  ;;  %v88_v63 = vld [vmem:[%s6956_s0 + $0x1f0] sm:$0xff]  ;;  %v89_v0 = vld [vmem:[%s6956_s0 + $0x1f8] sm:$0xff]  ;;  %v745_v4 = vld [vmem:[%s6957_s5] sm:$0x3] }
  0x17   :  { %v744_v6 = vld [vmem:[%s6958_s4] sm:$0x3]  ;;  %v4630_v7 = vrot.slane %v745_v4, %v748_v3  ;;  %v713_v8 = vld [vmem:[%s6959_s1 + $0x108] sm:$0xff]  ;;  %v4645_v12 = vrot.slane %v745_v4, %v1212_v5 }
  0x18   :  { %v4638_v9 = vld [vmem:[%s6960_s3] ss:$0 sm:$0xff]  ;;  %v681_v10 = vld [vmem:[%s6959_s1 + $0x8] sm:$0xff]  ;;  %v4643_v11 = vrot.slane %v744_v6, %v748_v3  ;;  %v4651_v17 = vrot.slane %v744_v6, %v1212_v5 }
  0x19   :  { %3612 = vmatmul.mubr.msk.f32.gmra.mrb[10].mxu0 %vm98_vm1, %v37_v23  ;;  %3660 = vmatmul.mubr.msk.f32.gmra.mrb[10].mxu1 %vm98_vm1, %v69_v24  ;;  %v680_v13 = vld [vmem:[%s6959_s1] sm:$0xff]  ;;  %v851_v16 = vmul.f32 %v4630_v7, %v713_v8  ;;  %v819_v22 = vmul.f32 %v4630_v7, %v681_v10  ;;  %v1283_v23 = vmul.f32 %v4645_v12, %v681_v10 }
  0x1a   :  { %3614 = vmatprep.mubr.msk.f32.mxu0 %vm98_vm1, %v38_v25  ;;  %3662 = vmatprep.mubr.msk.f32.mxu1 %vm98_vm1, %v70_v26  ;;  %v818_v25 = vmul.f32 %v4630_v7, %v680_v13 }
  0x1d   :  { %3615 = vmatmul.mubr.msk.f32.gmra.mrb[12].mxu0 %vm98_vm1, %v39_v27  ;;  %3663 = vmatmul.mubr.msk.f32.gmra.mrb[12].mxu1 %vm98_vm1, %v71_v28 }
  0x1e   :  { %3617 = vmatprep.mubr.msk.f32.mxu0 %vm98_vm1, %v40_v29  ;;  %3665 = vmatprep.mubr.msk.f32.mxu1 %vm98_vm1, %v72_v30  ;;  %v712_v30 = vld [vmem:[%s6959_s1 + $0x100] sm:$0xff] }
  0x1f   :  { %v1314_v6 = vmul.f32 %v4645_v12, %v712_v30 }
  0x21   :  { %3618 = vmatmul.mubr.msk.f32.gmra.mrb[14].mxu0 %vm98_vm1, %v41_v31  ;;  %3666 = vmatmul.mubr.msk.f32.gmra.mrb[14].mxu1 %vm98_vm1, %v73_v32 }
  0x22   :  { %3620 = vmatprep.mubr.msk.f32.mxu0 %vm98_vm1, %v42_v33  ;;  %3668 = vmatprep.mubr.msk.f32.mxu1 %vm98_vm1, %v74_v34 }
  0x25   :  { %3621 = vmatmul.mubr.msk.f32.gmra.mrb[16].mxu0 %vm98_vm1, %v43_v35  ;;  %3669 = vmatmul.mubr.msk.f32.gmra.mrb[16].mxu1 %vm98_vm1, %v75_v36 }
  0x26   :  { %3623 = vmatprep.mubr.msk.f32.mxu0 %vm98_vm1, %v44_v37  ;;  %3671 = vmatprep.mubr.msk.f32.mxu1 %vm98_vm1, %v76_v38 }
  0x29   :  { %3624 = vmatmul.mubr.msk.f32.gmra.mrb[18].mxu0 %vm98_vm1, %v45_v39  ;;  %3672 = vmatmul.mubr.msk.f32.gmra.mrb[18].mxu1 %vm98_vm1, %v77_v40  ;;  %v683_v40 = vld [vmem:[%s6959_s1 + $0x18] sm:$0xff] }
  0x2a   :  { %3626 = vmatprep.mubr.msk.f32.mxu0 %vm98_vm1, %v46_v41  ;;  %3674 = vmatprep.mubr.msk.f32.mxu1 %vm98_vm1, %v78_v42  ;;  %v1315_v42 = vmul.f32 %v4645_v12, %v713_v8 }
  0x2d   :  { %3627 = vmatmul.mubr.msk.f32.gmra.mrb[20].mxu0 %vm98_vm1, %v47_v43  ;;  %3675 = vmatmul.mubr.msk.f32.gmra.mrb[20].mxu1 %vm98_vm1, %v79_v44  ;;  %v850_v43 = vmul.f32 %v4630_v7, %v712_v30 }
  0x2e   :  { %3629 = vmatprep.mubr.msk.f32.mxu0 %vm98_vm1, %v48_v45  ;;  %3677 = vmatprep.mubr.msk.f32.mxu1 %vm98_vm1, %v80_v46 }
  0x31   :  { %3630 = vmatmul.mubr.msk.f32.gmra.mrb[22].mxu0 %vm98_vm1, %v49_v47  ;;  %3678 = vmatmul.mubr.msk.f32.gmra.mrb[22].mxu1 %vm98_vm1, %v81_v48  ;;  %v821_v48 = vmul.f32 %v4630_v7, %v683_v40 }
  0x32   :  { %3632 = vmatprep.mubr.msk.f32.mxu0 %vm98_vm1, %v50_v49  ;;  %3680 = vmatprep.mubr.msk.f32.mxu1 %vm98_vm1, %v82_v50 }
  0x35   :  { %3633 = vmatmul.mubr.msk.f32.gmra.mrb[24].mxu0 %vm98_vm1, %v51_v51  ;;  %3681 = vmatmul.mubr.msk.f32.gmra.mrb[24].mxu1 %vm98_vm1, %v83_v52 }
  0x36   :  { %3635 = vmatprep.mubr.msk.f32.mxu0 %vm98_vm1, %v52_v53  ;;  %3683 = vmatprep.mubr.msk.f32.mxu1 %vm98_vm1, %v84_v54 }
  0x39   :  { %3636 = vmatmul.mubr.msk.f32.gmra.mrb[26].mxu0 %vm98_vm1, %v53_v55  ;;  %3684 = vmatmul.mubr.msk.f32.gmra.mrb[26].mxu1 %vm98_vm1, %v85_v56 }
  0x3a   :  { %3638 = vmatprep.mubr.msk.f32.mxu0 %vm98_vm1, %v54_v57  ;;  %3686 = vmatprep.mubr.msk.f32.mxu1 %vm98_vm1, %v86_v59  ;;  %v715_v57 = vld [vmem:[%s6959_s1 + $0x118] sm:$0xff] }
  0x3b   :  { %v853_v2 = vmul.f32 %v4630_v7, %v715_v57 }
  0x3d   :  { %3639 = vmatmul.mubr.msk.f32.gmra.mrb[28].mxu0 %vm98_vm1, %v55_v58  ;;  %3687 = vmatmul.mubr.msk.f32.gmra.mrb[28].mxu1 %vm98_vm1, %v87_v60 }
  0x3e   :  { %3641 = vmatprep.mubr.msk.f32.mxu0 %vm98_vm1, %v56_v61  ;;  %3689 = vmatprep.mubr.msk.f32.mxu1 %vm98_vm1, %v88_v63  ;;  %v1282_v61 = vmul.f32 %v4645_v12, %v680_v13 }
  0x41   :  { %3642 = vmatmul.mubr.msk.f32.gmra.mrb[30].mxu0 %vm98_vm1, %v57_v62  ;;  %3690 = vmatmul.mubr.msk.f32.gmra.mrb[30].mxu1 %vm98_vm1, %v89_v0 }
  0xd8   :  { %v3598_v14 = vpop.f32.mrb[0].mxu0  ;;  %v3646_v15 = vpop.f32.mrb[0].mxu1 }
  0xd9   :  { %v4654_v18 = vadd.f32 %v3598_v14, %v4638_v9  ;;  %v4657_v19 = vadd.f32 %v3646_v15, %v4638_v9  ;;  %v521_v20 = vpop.f32.mrb[1].mxu1  ;;  %v361_v21 = vpop.f32.mrb[1].mxu0  ;;  %v714_v15 = vld [vmem:[%s6959_s1 + $0x110] sm:$0xff] }
  0xda   :  { %v4662_v24 = vadd.f32 %v4638_v9, %v361_v21  ;;  %v4666_v26 = vadd.f32 %v4638_v9, %v521_v20  ;;  %v852_v30 = vmul.f32 %v4630_v7, %v714_v15 }
  0xdb   :  { %7031 = vst [vmem:[#allocation2_spill] sm:$0xff] %v4654_v18  ;;  %7032 = vst [vmem:[#allocation3_spill] sm:$0xff] %v4657_v19  ;;  %v783_v27 = vmul.f32 %v4643_v11, %v4657_v19  ;;  %v751_v28 = vmul.f32 %v4643_v11, %v4654_v18  ;;  %v1215_v29 = vmul.f32 %v4651_v17, %v4654_v18 }
  0xdc   :  { %7033 = vst [vmem:[#allocation4_spill] sm:$0xff] %v4662_v24  ;;  %7034 = vst [vmem:[#allocation5_spill] sm:$0xff] %v4666_v26  ;;  %v3601_v31 = vpop.f32.mrb[2].mxu0  ;;  %v750_v32 = vmul.f32 %v4643_v11, %v4662_v24  ;;  %v3649_v33 = vpop.f32.mrb[2].mxu1  ;;  %v1247_v46 = vmul.f32 %v4651_v17, %v4657_v19  ;;  %v782_v47 = vmul.f32 %v4643_v11, %v4666_v26 }
  0xdd   :  { %v915_v34 = vadd.f32 %v851_v16, %v783_v27  ;;  %v883_v35 = vadd.f32 %v819_v22, %v751_v28  ;;  %v4680_v36 = vadd.f32 %v3601_v31, %v4638_v9  ;;  %v1347_v37 = vadd.f32 %v1283_v23, %v1215_v29  ;;  %v371_v38 = vpop.f32.mrb[3].mxu0  ;;  %v531_v39 = vpop.f32.mrb[3].mxu1 }
  0xde   :  { %v882_v41 = vadd.f32 %v818_v25, %v750_v32  ;;  %v4701_v53 = vadd.f32 %v3649_v33, %v4638_v9  ;;  %v1379_v58 = vadd.f32 %v1315_v42, %v1247_v46  ;;  %v914_v59 = vadd.f32 %v850_v43, %v782_v47 }
  0xdf   :  { %7035 = vst [vmem:[#allocation6_spill] sm:$0xff] %v4680_v36  ;;  %v1046_v44 = vsel %vm946_vm2, %v915_v34, 0.0  ;;  %v950_v45 = vsel %vm946_vm2, %v883_v35, 0.0  ;;  %v1413_v51 = vsel %vm946_vm2, %v1347_v37, 0.0  ;;  %v753_v54 = vmul.f32 %v4643_v11, %v4680_v36  ;;  %v682_v34 = vld [vmem:[%s6959_s1 + $0x10] sm:$0xff] }
  0xe0   :  { %1047 = vadd.xlane.f32.xlu1 %v1046_v44  ;;  %951 = vadd.xlane.f32.xlu0 %v950_v45  ;;  %v4694_v49 = vpop.f32.mrb[4].mxu0  ;;  %v4696_v50 = vpop.f32.mrb[4].mxu1  ;;  %v947_v52 = vsel %vm946_vm2, %v882_v41, 0.0  ;;  %7036 = vst [vmem:[#allocation7_spill] sm:$0xff] %v4701_v53  ;;  %v1214_v60 = vmul.f32 %v4651_v17, %v4662_v24  ;;  %v785_v1 = vmul.f32 %v4643_v11, %v4701_v53  ;;  %v1509_v8 = vsel %vm946_vm2, %v1379_v58, 0.0  ;;  %v684_v58 = vld [vmem:[%s6959_s1 + $0x20] sm:$0xff] }
  0xe1   :  { %v381_v55 = vpop.f32.mrb[5].mxu0  ;;  %v4705_v56 = vpop.f32.mrb[5].mxu1  ;;  %v885_v0 = vadd.f32 %v821_v48, %v753_v54  ;;  %v4725_v5 = vadd.f32 %v4638_v9, %v531_v39  ;;  %v1043_v10 = vsel %vm946_vm2, %v914_v59, 0.0  ;;  %v1246_v14 = vmul.f32 %v4651_v17, %v4666_v26 }
  0xe2   :  { %v1346_v13 = vadd.f32 %v1282_v61, %v1214_v60  ;;  %v917_v22 = vadd.f32 %v853_v2, %v785_v1  ;;  %v1217_v27 = vmul.f32 %v4651_v17, %v4680_v36  ;;  %v1285_v28 = vmul.f32 %v4645_v12, %v683_v40 }
  0xe3   :  { %7037 = vst [vmem:[#allocation8_spill] sm:$0xff] %v4725_v5  ;;  %v956_v21 = vsel %vm946_vm2, %v885_v0, 0.0  ;;  %v784_v29 = vmul.f32 %v4643_v11, %v4725_v5  ;;  %v4751_v31 = vadd.f32 %v4638_v9, %v371_v38  ;;  %v1378_v33 = vadd.f32 %v1314_v6, %v1246_v14 }
  0xe4   :  { %1414 = vadd.xlane.f32.xlu1 %v1413_v51  ;;  %948 = vadd.xlane.f32.xlu0 %v947_v52  ;;  %v4713_v62 = vpop.f32.mrb[6].mxu0  ;;  %v4715_v63 = vpop.f32.mrb[6].mxu1  ;;  %v1410_v32 = vsel %vm946_vm2, %v1346_v13, 0.0  ;;  %v1052_v39 = vsel %vm946_vm2, %v917_v22, 0.0  ;;  %v1349_v38 = vadd.f32 %v1285_v28, %v1217_v27  ;;  %v1284_v43 = vmul.f32 %v4645_v12, %v682_v34 }
  0xe5   :  { %v4720_v3 = vpop.f32.mrb[7].mxu0  ;;  %v4722_v4 = vpop.f32.mrb[7].mxu1  ;;  %7038 = vst [vmem:[#allocation9_spill] sm:$0xff] %v4751_v31  ;;  %v916_v42 = vadd.f32 %v852_v30, %v784_v29  ;;  %v1506_v44 = vsel %vm946_vm2, %v1378_v33, 0.0  ;;  %v1249_v45 = vmul.f32 %v4651_v17, %v4701_v53  ;;  %v1317_v46 = vmul.f32 %v4645_v12, %v715_v57  ;;  %v685_v57 = vld [vmem:[%s6959_s1 + $0x28] sm:$0xff]  ;;  %v716_v30 = vld [vmem:[%s6959_s1 + $0x120] sm:$0xff] }
  0xe6   :  { %v1216_v47 = vmul.f32 %v4651_v17, %v4751_v31  ;;  %v4779_v52 = vadd.f32 %v4694_v49, %v4638_v9  ;;  %v4782_v54 = vadd.f32 %v4638_v9, %v381_v55  ;;  %v1419_v61 = vsel %vm946_vm2, %v1349_v38, 0.0  ;;  %v717_v29 = vld [vmem:[%s6959_s1 + $0x128] sm:$0xff] }
  0xe7   :  { %v1049_v49 = vsel %vm946_vm2, %v916_v42, 0.0  ;;  %v820_v0 = vmul.f32 %v4630_v7, %v682_v34  ;;  %v1316_v55 = vmul.f32 %v4645_v12, %v714_v15  ;;  %v1381_v1 = vadd.f32 %v1317_v46, %v1249_v45 }
  0xe8   :  { %1510 = vadd.xlane.f32.xlu1 %v1509_v8  ;;  %1044 = vadd.xlane.f32.xlu0 %v1043_v10  ;;  %v4735_v16 = vpop.f32.mrb[8].mxu0  ;;  %v4737_v20 = vpop.f32.mrb[8].mxu1  ;;  %7039 = vst [vmem:[#allocation10_spill] sm:$0xff] %v4779_v52  ;;  %7040 = vst [vmem:[#allocation11_spill] sm:$0xff] %v4782_v54  ;;  %v1348_v2 = vadd.f32 %v1284_v43, %v1216_v47  ;;  %v752_v6 = vmul.f32 %v4643_v11, %v4751_v31 }
  0xe9   :  { %v4740_v23 = vpop.f32.mrb[9].mxu0  ;;  %v4742_v25 = vpop.f32.mrb[9].mxu1  ;;  %v1248_v8 = vmul.f32 %v4651_v17, %v4725_v5  ;;  %v823_v10 = vmul.f32 %v4630_v7, %v685_v57  ;;  %v822_v13 = vmul.f32 %v4630_v7, %v684_v58  ;;  %v4810_v15 = vadd.f32 %v4696_v50, %v4638_v9 }
  0xea   :  { %v4814_v22 = vadd.f32 %v4638_v9, %v4705_v56  ;;  %v755_v27 = vmul.f32 %v4643_v11, %v4779_v52  ;;  %v754_v28 = vmul.f32 %v4643_v11, %v4782_v54  ;;  %v1515_v56 = vsel %vm946_vm2, %v1381_v1, 0.0 }
  0xeb   :  { %7041 = vst [vmem:[#allocation12_spill] sm:$0xff] %v4810_v15  ;;  %v1416_v33 = vsel %vm946_vm2, %v1348_v2, 0.0  ;;  %v884_v34 = vadd.f32 %v820_v0, %v752_v6  ;;  %v855_v38 = vmul.f32 %v4630_v7, %v717_v29  ;;  %v854_v42 = vmul.f32 %v4630_v7, %v716_v30 }
  0xec   :  { %957 = vadd.xlane.f32.xlu1 %v956_v21  ;;  %1411 = vadd.xlane.f32.xlu0 %v1410_v32  ;;  %v4757_v35 = vpop.f32.mrb[10].mxu0  ;;  %v4759_v37 = vpop.f32.mrb[10].mxu1  ;;  %7042 = vst [vmem:[#allocation13_spill] sm:$0xff] %v4814_v22  ;;  %v887_v45 = vadd.f32 %v823_v10, %v755_v27  ;;  %v886_v46 = vadd.f32 %v822_v13, %v754_v28 }
  0xed   :  { %v4762_v40 = vpop.f32.mrb[11].mxu0  ;;  %v4764_v41 = vpop.f32.mrb[11].mxu1  ;;  %v787_v47 = vmul.f32 %v4643_v11, %v4810_v15  ;;  %v1250_v53 = vmul.f32 %v4651_v17, %v4814_v22  ;;  %v4898_v26 = vadd.f32 %v4715_v63, %v4638_v9 }
  0xee   :  { %v959_v10 = vsel %vm946_vm2, %v886_v46, 0.0 }
  0xef   :  { %v919_v13 = vadd.f32 %v855_v38, %v787_v47  ;;  %v4872_v47 = vadd.f32 %v4713_v62, %v4638_v9  ;;  %v1318_v62 = vmul.f32 %v4645_v12, %v716_v30  ;;  %7045 = vst [vmem:[#allocation16_spill] sm:$0xff] %v4898_v26 }
  0xf0   :  { %1053 = vadd.xlane.f32.xlu1 %v1052_v39  ;;  %1507 = vadd.xlane.f32.xlu0 %v1506_v44  ;;  %v4773_v48 = vpop.f32.mrb[12].mxu0  ;;  %v4775_v51 = vpop.f32.mrb[12].mxu1  ;;  %v1380_v39 = vadd.f32 %v1316_v55, %v1248_v8  ;;  %v953_v55 = vsel %vm946_vm2, %v884_v34, 0.0  ;;  %v962_v8 = vsel %vm946_vm2, %v887_v45, 0.0  ;;  %v1287_v34 = vmul.f32 %v4645_v12, %v685_v57 }
  0xf1   :  { %v4790_v59 = vpop.f32.mrb[13].mxu0  ;;  %v4792_v60 = vpop.f32.mrb[13].mxu1  ;;  %7043 = vst [vmem:[#allocation14_spill] sm:$0xff] %v4872_v47  ;;  %v4876_v57 = vadd.f32 %v4638_v9, %v4720_v3  ;;  %v1251_v3 = vmul.f32 %v4651_v17, %v4810_v15  ;;  %v757_v30 = vmul.f32 %v4643_v11, %v4872_v47 }
  0xf2   :  { %v1512_v1 = vsel %vm946_vm2, %v1380_v39, 0.0  ;;  %v1218_v39 = vmul.f32 %v4651_v17, %v4782_v54 }
  0xf3   :  { %7044 = vst [vmem:[#allocation15_spill] sm:$0xff] %v4876_v57 }
  0xf4   :  { %1420 = vadd.xlane.f32.xlu1 %v1419_v61  ;;  %1050 = vadd.xlane.f32.xlu0 %v1049_v49  ;;  %v4804_v14 = vpop.f32.mrb[14].mxu0  ;;  %v4806_v21 = vpop.f32.mrb[14].mxu1  ;;  %v786_v61 = vmul.f32 %v4643_v11, %v4814_v22 }
  0xf5   :  { %v4826_v50 = vpop.f32.mrb[15].mxu0  ;;  %v4828_v32 = vpop.f32.mrb[15].mxu1 }
  0xf6   :  { %v918_v27 = vadd.f32 %v854_v42, %v786_v61  ;;  %v1058_v42 = vsel %vm946_vm2, %v919_v13, 0.0  ;;  %v686_v61 = vld [vmem:[%s6959_s1 + $0x30] sm:$0xff] }
  0xf7   :  { %v824_v5 = vmul.f32 %v4630_v7, %v686_v61 }
  0xf8   :  { %1516 = vadd.xlane.f32.xlu1 %v1515_v56  ;;  %1417 = vadd.xlane.f32.xlu0 %v1416_v33  ;;  %v4834_v43 = vpop.f32.mrb[16].mxu0  ;;  %v4836_v44 = vpop.f32.mrb[16].mxu1  ;;  %v1219_v33 = vmul.f32 %v4651_v17, %v4779_v52  ;;  %v1055_v46 = vsel %vm946_vm2, %v918_v27, 0.0  ;;  %v789_v52 = vmul.f32 %v4643_v11, %v4898_v26 }
  0xf9   :  { %v4842_v49 = vpop.f32.mrb[17].mxu0  ;;  %v4844_v0 = vpop.f32.mrb[17].mxu1 }
  0xfa   :  { %v1351_v13 = vadd.f32 %v1287_v34, %v1219_v33  ;;  %v756_v33 = vmul.f32 %v4643_v11, %v4876_v57  ;;  %v719_v34 = vld [vmem:[%s6959_s1 + $0x138] sm:$0xff] }
  0xfc   :  { %954 = vadd.xlane.f32.xlu1 %v953_v55  ;;  %1513 = vadd.xlane.f32.xlu0 %v1512_v1  ;;  %v4848_v2 = vpop.f32.mrb[18].mxu0  ;;  %v4850_v6 = vpop.f32.mrb[18].mxu1  ;;  %v1286_v55 = vmul.f32 %v4645_v12, %v684_v58  ;;  %v687_v58 = vld [vmem:[%s6959_s1 + $0x38] sm:$0xff]  ;;  %v1425_v63 = vsel %vm946_vm2, %v1351_v13, 0.0  ;;  %v888_v54 = vadd.f32 %v824_v5, %v756_v33 }
  0xfd   :  { %v4854_v28 = vpop.f32.mrb[19].mxu0  ;;  %v4856_v56 = vpop.f32.mrb[19].mxu1  ;;  %v825_v19 = vmul.f32 %v4630_v7, %v687_v58  ;;  %v1289_v33 = vmul.f32 %v4645_v12, %v687_v58  ;;  %v688_v58 = vld [vmem:[%s6959_s1 + $0x40] sm:$0xff] }
  0xfe   :  { %v1350_v27 = vadd.f32 %v1286_v55, %v1218_v39  ;;  %v718_v39 = vld [vmem:[%s6959_s1 + $0x130] sm:$0xff] }
  0xff   :  { %v856_v15 = vmul.f32 %v4630_v7, %v718_v39  ;;  %v889_v22 = vadd.f32 %v825_v19, %v757_v30  ;;  %v965_v19 = vsel %vm946_vm2, %v888_v54, 0.0  ;;  %v1221_v30 = vmul.f32 %v4651_v17, %v4872_v47 }
 0x100   :  { %963 = vadd.xlane.f32.xlu1 %v962_v8  ;;  %960 = vadd.xlane.f32.xlu0 %v959_v10  ;;  %v4864_v45 = vpop.f32.mrb[20].mxu0  ;;  %v4866_v38 = vpop.f32.mrb[20].mxu1  ;;  %v1319_v10 = vmul.f32 %v4645_v12, %v717_v29  ;;  %v4902_v29 = vadd.f32 %v4638_v9, %v4722_v4  ;;  %v1422_v55 = vsel %vm946_vm2, %v1350_v27, 0.0 }
 0x101   :  { %v4884_v1 = vpop.f32.mrb[21].mxu0  ;;  %v4886_v8 = vpop.f32.mrb[21].mxu1 }
 0x102   :  { %7046 = vst [vmem:[#allocation17_spill] sm:$0xff] %v4902_v29  ;;  %v1383_v4 = vadd.f32 %v1319_v10, %v1251_v3  ;;  %v788_v31 = vmul.f32 %v4643_v11, %v4902_v29 }
 0x104   :  { %1059 = vadd.xlane.f32.xlu1 %v1058_v42  ;;  %1056 = vadd.xlane.f32.xlu0 %v1055_v46  ;;  %v1382_v42 = vadd.f32 %v1318_v62, %v1250_v53  ;;  %v857_v46 = vmul.f32 %v4630_v7, %v719_v34  ;;  %v4922_v36 = vpop.f32.mrb[22].mxu0  ;;  %v1521_v13 = vsel %vm946_vm2, %v1383_v4, 0.0  ;;  %v968_v62 = vsel %vm946_vm2, %v889_v22, 0.0  ;;  %v4930_v3 = vpop.f32.mrb[22].mxu1  ;;  %v689_v22 = vld [vmem:[%s6959_s1 + $0x48] sm:$0xff] }
 0x105   :  { %v4926_v10 = vpop.f32.mrb[23].mxu0  ;;  %v920_v27 = vadd.f32 %v856_v15, %v788_v31  ;;  %v4938_v4 = vpop.f32.mrb[23].mxu1  ;;  %v4948_v15 = vadd.f32 %v4638_v9, %v4740_v23  ;;  %v1252_v23 = vmul.f32 %v4651_v17, %v4902_v29 }
 0x106   :  { %v1518_v53 = vsel %vm946_vm2, %v1382_v42, 0.0  ;;  %v921_v5 = vadd.f32 %v857_v46, %v789_v52  ;;  %v4944_v52 = vadd.f32 %v4735_v16, %v4638_v9  ;;  %v1320_v42 = vmul.f32 %v4645_v12, %v718_v39 }
 0x107   :  { %v1061_v31 = vsel %vm946_vm2, %v920_v27, 0.0  ;;  %7048 = vst [vmem:[#allocation19_spill] sm:$0xff] %v4948_v15  ;;  %v1353_v46 = vadd.f32 %v1289_v33, %v1221_v30  ;;  %v1253_v16 = vmul.f32 %v4651_v17, %v4898_v26  ;;  %v721_v27 = vld [vmem:[%s6959_s1 + $0x148] sm:$0xff]  ;;  %v720_v30 = vld [vmem:[%s6959_s1 + $0x140] sm:$0xff] }
 0x108   :  { %1426 = vadd.xlane.f32.xlu1 %v1425_v63  ;;  %1423 = vadd.xlane.f32.xlu0 %v1422_v55  ;;  %v1220_v63 = vmul.f32 %v4651_v17, %v4876_v57  ;;  %v1288_v55 = vmul.f32 %v4645_v12, %v686_v61  ;;  %v1064_v54 = vsel %vm946_vm2, %v921_v5, 0.0  ;;  %7047 = vst [vmem:[#allocation18_spill] sm:$0xff] %v4944_v52 }
 0x109   :  { %v1321_v61 = vmul.f32 %v4645_v12, %v719_v34  ;;  %v4970_v34 = vadd.f32 %v4638_v9, %v4742_v25  ;;  %v759_v39 = vmul.f32 %v4643_v11, %v4944_v52  ;;  %v758_v5 = vmul.f32 %v4643_v11, %v4948_v15 }
 0x10b   :  { %7050 = vst [vmem:[#allocation21_spill] sm:$0xff] %v4970_v34  ;;  %v1385_v25 = vadd.f32 %v1321_v61, %v1253_v16  ;;  %v790_v57 = vmul.f32 %v4643_v11, %v4970_v34  ;;  %v4992_v61 = vpop.f32.mrb[24].mxu0 }
 0x10c   :  { %1522 = vadd.xlane.f32.xlu1 %v1521_v13  ;;  %1519 = vadd.xlane.f32.xlu0 %v1518_v53  ;;  %v1352_v13 = vadd.f32 %v1288_v55, %v1220_v63  ;;  %v827_v53 = vmul.f32 %v4630_v7, %v689_v22  ;;  %v1384_v63 = vadd.f32 %v1320_v42, %v1252_v23  ;;  %v4994_v42 = vpop.f32.mrb[25].mxu0 }
 0x10d   :  { %v859_v55 = vmul.f32 %v4630_v7, %v721_v27 }
 0x10e   :  { %v1428_v33 = vsel %vm946_vm2, %v1352_v13, 0.0  ;;  %v1524_v13 = vsel %vm946_vm2, %v1384_v63, 0.0 }
 0x110   :  { %969 = vadd.xlane.f32.xlu1 %v968_v62  ;;  %966 = vadd.xlane.f32.xlu0 %v965_v19  ;;  %v826_v62 = vmul.f32 %v4630_v7, %v688_v58  ;;  %v4966_v19 = vadd.f32 %v4737_v20, %v4638_v9  ;;  %v1431_v20 = vsel %vm946_vm2, %v1353_v46, 0.0  ;;  %v1527_v46 = vsel %vm946_vm2, %v1385_v25, 0.0  ;;  %v5004_v25 = vpop.f32.mrb[24].mxu1 }
 0x111   :  { %v5006_v63 = vpop.f32.mrb[25].mxu1 }
 0x112   :  { %7049 = vst [vmem:[#allocation20_spill] sm:$0xff] %v4966_v19  ;;  %v890_v26 = vadd.f32 %v826_v62, %v758_v5  ;;  %v791_v29 = vmul.f32 %v4643_v11, %v4966_v19  ;;  %v1291_v5 = vmul.f32 %v4645_v12, %v689_v22  ;;  %v5016_v22 = vadd.f32 %v4638_v9, %v4762_v40 }
 0x113   :  { %v1254_v40 = vmul.f32 %v4651_v17, %v4970_v34 }
 0x114   :  { %1065 = vadd.xlane.f32.xlu1 %v1064_v54  ;;  %1062 = vadd.xlane.f32.xlu0 %v1061_v31  ;;  %v858_v54 = vmul.f32 %v4630_v7, %v720_v30  ;;  %v891_v31 = vadd.f32 %v827_v53, %v759_v39  ;;  %v971_v23 = vsel %vm946_vm2, %v890_v26, 0.0  ;;  %v923_v53 = vadd.f32 %v859_v55, %v791_v29  ;;  %v690_v55 = vld [vmem:[%s6959_s1 + $0x50] sm:$0xff] }
 0x115   :  { %v1223_v39 = vmul.f32 %v4651_v17, %v4944_v52  ;;  %v5012_v29 = vadd.f32 %v4757_v35, %v4638_v9  ;;  %7052 = vst [vmem:[#allocation23_spill] sm:$0xff] %v5016_v22  ;;  %v1255_v35 = vmul.f32 %v4651_v17, %v4966_v19 }
 0x116   :  { %v974_v16 = vsel %vm946_vm2, %v891_v31, 0.0  ;;  %v922_v62 = vadd.f32 %v858_v54, %v790_v57  ;;  %v1070_v26 = vsel %vm946_vm2, %v923_v53, 0.0  ;;  %v1323_v54 = vmul.f32 %v4645_v12, %v721_v27 }
 0x117   :  { %7051 = vst [vmem:[#allocation22_spill] sm:$0xff] %v5012_v29  ;;  %v1322_v31 = vmul.f32 %v4645_v12, %v720_v30  ;;  %v5034_v53 = vadd.f32 %v4759_v37, %v4638_v9  ;;  %v5038_v27 = vadd.f32 %v4638_v9, %v4764_v41  ;;  %v761_v30 = vmul.f32 %v4643_v11, %v5012_v29 }
 0x118   :  { %1432 = vadd.xlane.f32.xlu1 %v1431_v20  ;;  %1429 = vadd.xlane.f32.xlu0 %v1428_v33  ;;  %v1222_v20 = vmul.f32 %v4651_v17, %v4948_v15  ;;  %v1290_v33 = vmul.f32 %v4645_v12, %v688_v58  ;;  %v1067_v57 = vsel %vm946_vm2, %v922_v62, 0.0  ;;  %v691_v58 = vld [vmem:[%s6959_s1 + $0x58] sm:$0xff]  ;;  %v760_v62 = vmul.f32 %v4643_v11, %v5016_v22 }
 0x119   :  { %7053 = vst [vmem:[#allocation24_spill] sm:$0xff] %v5034_v53  ;;  %7054 = vst [vmem:[#allocation25_spill] sm:$0xff] %v5038_v27  ;;  %v1387_v41 = vadd.f32 %v1323_v54, %v1255_v35  ;;  %v793_v15 = vmul.f32 %v4643_v11, %v5034_v53  ;;  %v792_v52 = vmul.f32 %v4643_v11, %v5038_v27  ;;  %v5060_v54 = vpop.f32.mrb[26].mxu0 }
 0x11c   :  { %1528 = vadd.xlane.f32.xlu1 %v1527_v46  ;;  %1525 = vadd.xlane.f32.xlu0 %v1524_v13  ;;  %v1355_v46 = vadd.f32 %v1291_v5, %v1223_v39  ;;  %v1354_v13 = vadd.f32 %v1290_v33, %v1222_v20  ;;  %v723_v39 = vld [vmem:[%s6959_s1 + $0x158] sm:$0xff]  ;;  %v722_v5 = vld [vmem:[%s6959_s1 + $0x150] sm:$0xff]  ;;  %v1386_v33 = vadd.f32 %v1322_v31, %v1254_v40  ;;  %v5062_v31 = vpop.f32.mrb[27].mxu0 }
 0x11e   :  { %v1437_v37 = vsel %vm946_vm2, %v1355_v46, 0.0  ;;  %v1434_v20 = vsel %vm946_vm2, %v1354_v13, 0.0  ;;  %v1533_v46 = vsel %vm946_vm2, %v1387_v41, 0.0  ;;  %v1530_v13 = vsel %vm946_vm2, %v1386_v33, 0.0  ;;  %v5072_v41 = vpop.f32.mrb[26].mxu1 }
 0x11f   :  { %v5074_v33 = vpop.f32.mrb[27].mxu1 }
 0x120   :  { %975 = vadd.xlane.f32.xlu1 %v974_v16  ;;  %972 = vadd.xlane.f32.xlu0 %v971_v23  ;;  %v829_v16 = vmul.f32 %v4630_v7, %v691_v58  ;;  %v828_v23 = vmul.f32 %v4630_v7, %v690_v55 }
 0x122   :  { %v893_v19 = vadd.f32 %v829_v16, %v761_v30  ;;  %v892_v34 = vadd.f32 %v828_v23, %v760_v62  ;;  %v1225_v30 = vmul.f32 %v4651_v17, %v5012_v29  ;;  %v1293_v62 = vmul.f32 %v4645_v12, %v691_v58  ;;  %v693_v58 = vld [vmem:[%s6959_s1 + $0x68] sm:$0xff] }
 0x124   :  { %1071 = vadd.xlane.f32.xlu1 %v1070_v26  ;;  %1068 = vadd.xlane.f32.xlu0 %v1067_v57  ;;  %v861_v26 = vmul.f32 %v4630_v7, %v723_v39  ;;  %v860_v57 = vmul.f32 %v4630_v7, %v722_v5  ;;  %v980_v35 = vsel %vm946_vm2, %v893_v19, 0.0  ;;  %v977_v40 = vsel %vm946_vm2, %v892_v34, 0.0 }
 0x125   :  { %v5084_v34 = vadd.f32 %v4638_v9, %v4790_v59  ;;  %v1256_v59 = vmul.f32 %v4651_v17, %v5038_v27 }
 0x126   :  { %v925_v16 = vadd.f32 %v861_v26, %v793_v15  ;;  %v924_v23 = vadd.f32 %v860_v57, %v792_v52  ;;  %v5080_v15 = vadd.f32 %v4773_v48, %v4638_v9  ;;  %v1325_v26 = vmul.f32 %v4645_v12, %v723_v39 }
 0x127   :  { %7056 = vst [vmem:[#allocation27_spill] sm:$0xff] %v5084_v34  ;;  %v1324_v57 = vmul.f32 %v4645_v12, %v722_v5  ;;  %v1257_v48 = vmul.f32 %v4651_v17, %v5034_v53  ;;  %v5106_v39 = vadd.f32 %v4638_v9, %v4792_v60 }
 0x128   :  { %1438 = vadd.xlane.f32.xlu1 %v1437_v37  ;;  %1435 = vadd.xlane.f32.xlu0 %v1434_v20  ;;  %v1224_v37 = vmul.f32 %v4651_v17, %v5016_v22  ;;  %v1292_v20 = vmul.f32 %v4645_v12, %v690_v55  ;;  %v1076_v19 = vsel %vm946_vm2, %v925_v16, 0.0  ;;  %v1073_v52 = vsel %vm946_vm2, %v924_v23, 0.0  ;;  %7055 = vst [vmem:[#allocation26_spill] sm:$0xff] %v5080_v15  ;;  %v692_v55 = vld [vmem:[%s6959_s1 + $0x60] sm:$0xff] }
 0x129   :  { %v5102_v16 = vadd.f32 %v4775_v51, %v4638_v9  ;;  %7058 = vst [vmem:[#allocation29_spill] sm:$0xff] %v5106_v39  ;;  %v763_v5 = vmul.f32 %v4643_v11, %v5080_v15  ;;  %v762_v23 = vmul.f32 %v4643_v11, %v5084_v34  ;;  %v1389_v60 = vadd.f32 %v1325_v26, %v1257_v48  ;;  %v5128_v26 = vpop.f32.mrb[28].mxu0 }
 0x12a   :  { %v794_v29 = vmul.f32 %v4643_v11, %v5106_v39 }
 0x12b   :  { %7057 = vst [vmem:[#allocation28_spill] sm:$0xff] %v5102_v16  ;;  %v795_v22 = vmul.f32 %v4643_v11, %v5102_v16 }
 0x12c   :  { %1534 = vadd.xlane.f32.xlu1 %v1533_v46  ;;  %1531 = vadd.xlane.f32.xlu0 %v1530_v13  ;;  %v1357_v46 = vadd.f32 %v1293_v62, %v1225_v30  ;;  %v1356_v13 = vadd.f32 %v1292_v20, %v1224_v37  ;;  %v725_v30 = vld [vmem:[%s6959_s1 + $0x168] sm:$0xff]  ;;  %v724_v62 = vld [vmem:[%s6959_s1 + $0x160] sm:$0xff]  ;;  %v1388_v20 = vadd.f32 %v1324_v57, %v1256_v59  ;;  %v5130_v57 = vpop.f32.mrb[29].mxu0 }
 0x12e   :  { %v1443_v51 = vsel %vm946_vm2, %v1357_v46, 0.0  ;;  %v1440_v37 = vsel %vm946_vm2, %v1356_v13, 0.0  ;;  %v1539_v46 = vsel %vm946_vm2, %v1389_v60, 0.0  ;;  %v1536_v13 = vsel %vm946_vm2, %v1388_v20, 0.0  ;;  %v5140_v60 = vpop.f32.mrb[28].mxu1 }
 0x12f   :  { %v5142_v20 = vpop.f32.mrb[29].mxu1 }
 0x130   :  { %981 = vadd.xlane.f32.xlu1 %v980_v35  ;;  %978 = vadd.xlane.f32.xlu0 %v977_v40  ;;  %v831_v35 = vmul.f32 %v4630_v7, %v693_v58  ;;  %v830_v40 = vmul.f32 %v4630_v7, %v692_v55 }
 0x132   :  { %v895_v53 = vadd.f32 %v831_v35, %v763_v5  ;;  %v894_v27 = vadd.f32 %v830_v40, %v762_v23  ;;  %v1227_v5 = vmul.f32 %v4651_v17, %v5080_v15  ;;  %v1295_v23 = vmul.f32 %v4645_v12, %v693_v58  ;;  %v695_v58 = vld [vmem:[%s6959_s1 + $0x78] sm:$0xff] }
 0x134   :  { %1077 = vadd.xlane.f32.xlu1 %v1076_v19  ;;  %1074 = vadd.xlane.f32.xlu0 %v1073_v52  ;;  %v863_v19 = vmul.f32 %v4630_v7, %v725_v30  ;;  %v862_v52 = vmul.f32 %v4630_v7, %v724_v62  ;;  %v986_v48 = vsel %vm946_vm2, %v895_v53, 0.0  ;;  %v983_v59 = vsel %vm946_vm2, %v894_v27, 0.0 }
 0x135   :  { %v5152_v27 = vadd.f32 %v4638_v9, %v4826_v50  ;;  %v1258_v50 = vmul.f32 %v4651_v17, %v5106_v39 }
 0x136   :  { %v927_v35 = vadd.f32 %v863_v19, %v795_v22  ;;  %v926_v40 = vadd.f32 %v862_v52, %v794_v29  ;;  %v5148_v22 = vadd.f32 %v4804_v14, %v4638_v9  ;;  %v1327_v19 = vmul.f32 %v4645_v12, %v725_v30 }
 0x137   :  { %7060 = vst [vmem:[#allocation31_spill] sm:$0xff] %v5152_v27  ;;  %v1326_v52 = vmul.f32 %v4645_v12, %v724_v62  ;;  %v1259_v14 = vmul.f32 %v4651_v17, %v5102_v16  ;;  %v5174_v30 = vadd.f32 %v4638_v9, %v4828_v32 }
 0x138   :  { %1444 = vadd.xlane.f32.xlu1 %v1443_v51  ;;  %1441 = vadd.xlane.f32.xlu0 %v1440_v37  ;;  %v1226_v51 = vmul.f32 %v4651_v17, %v5084_v34  ;;  %v1294_v37 = vmul.f32 %v4645_v12, %v692_v55  ;;  %v1082_v53 = vsel %vm946_vm2, %v927_v35, 0.0  ;;  %v1079_v29 = vsel %vm946_vm2, %v926_v40, 0.0  ;;  %7059 = vst [vmem:[#allocation30_spill] sm:$0xff] %v5148_v22  ;;  %v694_v55 = vld [vmem:[%s6959_s1 + $0x70] sm:$0xff] }
 0x139   :  { %v5170_v35 = vadd.f32 %v4806_v21, %v4638_v9  ;;  %7062 = vst [vmem:[#allocation33_spill] sm:$0xff] %v5174_v30  ;;  %v765_v62 = vmul.f32 %v4643_v11, %v5148_v22  ;;  %v764_v40 = vmul.f32 %v4643_v11, %v5152_v27  ;;  %v1391_v32 = vadd.f32 %v1327_v19, %v1259_v14  ;;  %v5196_v19 = vpop.f32.mrb[30].mxu0 }
 0x13a   :  { %v796_v15 = vmul.f32 %v4643_v11, %v5174_v30 }
 0x13b   :  { %7061 = vst [vmem:[#allocation32_spill] sm:$0xff] %v5170_v35  ;;  %v797_v34 = vmul.f32 %v4643_v11, %v5170_v35 }
 0x13c   :  { %1540 = vadd.xlane.f32.xlu1 %v1539_v46  ;;  %1537 = vadd.xlane.f32.xlu0 %v1536_v13  ;;  %v1359_v46 = vadd.f32 %v1295_v23, %v1227_v5  ;;  %v1358_v13 = vadd.f32 %v1294_v37, %v1226_v51  ;;  %v727_v5 = vld [vmem:[%s6959_s1 + $0x178] sm:$0xff]  ;;  %v726_v23 = vld [vmem:[%s6959_s1 + $0x170] sm:$0xff]  ;;  %v1390_v37 = vadd.f32 %v1326_v52, %v1258_v50  ;;  %v5198_v52 = vpop.f32.mrb[31].mxu0 }
 0x13e   :  { %v1449_v21 = vsel %vm946_vm2, %v1359_v46, 0.0  ;;  %v1446_v51 = vsel %vm946_vm2, %v1358_v13, 0.0  ;;  %v1545_v46 = vsel %vm946_vm2, %v1391_v32, 0.0  ;;  %v1542_v13 = vsel %vm946_vm2, %v1390_v37, 0.0  ;;  %v5208_v32 = vpop.f32.mrb[30].mxu1 }
 0x13f   :  { %v1329_v37 = vmul.f32 %v4645_v12, %v727_v5 }
 0x140   :  { %987 = vadd.xlane.f32.xlu1 %v986_v48  ;;  %984 = vadd.xlane.f32.xlu0 %v983_v59  ;;  %v833_v48 = vmul.f32 %v4630_v7, %v695_v58  ;;  %v832_v59 = vmul.f32 %v4630_v7, %v694_v55 }
 0x142   :  { %v897_v16 = vadd.f32 %v833_v48, %v765_v62  ;;  %v896_v39 = vadd.f32 %v832_v59, %v764_v40  ;;  %v1229_v62 = vmul.f32 %v4651_v17, %v5148_v22  ;;  %v1297_v40 = vmul.f32 %v4645_v12, %v695_v58 }
 0x143   :  { %v5220_v58 = vadd.f32 %v4638_v9, %v4842_v49  ;;  %v1260_v49 = vmul.f32 %v4651_v17, %v5174_v30 }
 0x144   :  { %1083 = vadd.xlane.f32.xlu1 %v1082_v53  ;;  %1080 = vadd.xlane.f32.xlu0 %v1079_v29  ;;  %v865_v53 = vmul.f32 %v4630_v7, %v727_v5  ;;  %v864_v29 = vmul.f32 %v4630_v7, %v726_v23  ;;  %v992_v14 = vsel %vm946_vm2, %v897_v16, 0.0  ;;  %v989_v50 = vsel %vm946_vm2, %v896_v39, 0.0 }
 0x145   :  { %v5212_v16 = vadd.f32 %v4834_v43, %v4638_v9  ;;  %7064 = vst [vmem:[#allocation35_spill] sm:$0xff] %v5220_v58  ;;  %v696_v43 = vld [vmem:[%s6959_s1 + $0x80] sm:$0xff] }
 0x146   :  { %v929_v48 = vadd.f32 %v865_v53, %v797_v34  ;;  %v928_v59 = vadd.f32 %v864_v29, %v796_v15  ;;  %v5214_v34 = vpop.f32.mrb[31].mxu1  ;;  %v1328_v53 = vmul.f32 %v4645_v12, %v726_v23  ;;  %v1361_v29 = vadd.f32 %v1297_v40, %v1229_v62  ;;  %v729_v62 = vld [vmem:[%s6959_s1 + $0x188] sm:$0xff] }
 0x147   :  { %7063 = vst [vmem:[#allocation34_spill] sm:$0xff] %v5212_v16  ;;  %v767_v5 = vmul.f32 %v4643_v11, %v5212_v16  ;;  %v867_v30 = vmul.f32 %v4630_v7, %v729_v62 }
 0x148   :  { %1450 = vadd.xlane.f32.xlu1 %v1449_v21  ;;  %1447 = vadd.xlane.f32.xlu0 %v1446_v51  ;;  %v1228_v21 = vmul.f32 %v4651_v17, %v5152_v27  ;;  %v1296_v51 = vmul.f32 %v4645_v12, %v694_v55  ;;  %v1088_v15 = vsel %vm946_vm2, %v929_v48, 0.0  ;;  %v1085_v39 = vsel %vm946_vm2, %v928_v59, 0.0  ;;  %v697_v55 = vld [vmem:[%s6959_s1 + $0x88] sm:$0xff] }
 0x149   :  { %v835_v23 = vmul.f32 %v4630_v7, %v697_v55  ;;  %v766_v48 = vmul.f32 %v4643_v11, %v5220_v58  ;;  %v834_v59 = vmul.f32 %v4630_v7, %v696_v43  ;;  %v1455_v40 = vsel %vm946_vm2, %v1361_v29, 0.0 }
 0x14c   :  { %1546 = vadd.xlane.f32.xlu1 %v1545_v46  ;;  %1543 = vadd.xlane.f32.xlu0 %v1542_v13  ;;  %v1360_v46 = vadd.f32 %v1296_v51, %v1228_v21  ;;  %v1261_v13 = vmul.f32 %v4651_v17, %v5170_v35  ;;  %v898_v35 = vadd.f32 %v834_v59, %v766_v48 }
 0x14d   :  { %v1230_v48 = vmul.f32 %v4651_v17, %v5220_v58  ;;  %v1298_v59 = vmul.f32 %v4645_v12, %v696_v43 }
 0x14e   :  { %v1452_v21 = vsel %vm946_vm2, %v1360_v46, 0.0  ;;  %v1393_v51 = vadd.f32 %v1329_v37, %v1261_v13 }
 0x150   :  { %993 = vadd.xlane.f32.xlu1 %v992_v14  ;;  %990 = vadd.xlane.f32.xlu0 %v989_v50  ;;  %v5236_v14 = vadd.f32 %v4836_v44, %v4638_v9  ;;  %v5243_v50 = vadd.f32 %v4638_v9, %v4844_v0  ;;  %v728_v44 = vld [vmem:[%s6959_s1 + $0x180] sm:$0xff]  ;;  %v1392_v0 = vadd.f32 %v1328_v53, %v1260_v49  ;;  %v1551_v29 = vsel %vm946_vm2, %v1393_v51, 0.0 }
 0x151   :  { %v866_v22 = vmul.f32 %v4630_v7, %v728_v44  ;;  %v995_v53 = vsel %vm946_vm2, %v898_v35, 0.0  ;;  %v1331_v51 = vmul.f32 %v4645_v12, %v729_v62 }
 0x152   :  { %7065 = vst [vmem:[#allocation36_spill] sm:$0xff] %v5236_v14  ;;  %7066 = vst [vmem:[#allocation37_spill] sm:$0xff] %v5243_v50  ;;  %v798_v27 = vmul.f32 %v4643_v11, %v5243_v50  ;;  %v1548_v46 = vsel %vm946_vm2, %v1392_v0, 0.0  ;;  %v1263_v43 = vmul.f32 %v4651_v17, %v5236_v14  ;;  %v1262_v0 = vmul.f32 %v4651_v17, %v5243_v50 }
 0x154   :  { %1089 = vadd.xlane.f32.xlu1 %v1088_v15  ;;  %1086 = vadd.xlane.f32.xlu0 %v1085_v39  ;;  %v899_v15 = vadd.f32 %v835_v23, %v767_v5  ;;  %v799_v39 = vmul.f32 %v4643_v11, %v5236_v14  ;;  %v930_v49 = vadd.f32 %v866_v22, %v798_v27 }
 0x155   :  { %v1231_v5 = vmul.f32 %v4651_v17, %v5212_v16  ;;  %v1299_v23 = vmul.f32 %v4645_v12, %v697_v55  ;;  %v5280_v27 = vadd.f32 %v4638_v9, %v4854_v28  ;;  %v1330_v28 = vmul.f32 %v4645_v12, %v728_v44 }
 0x156   :  { %v998_v37 = vsel %vm946_vm2, %v899_v15, 0.0  ;;  %v931_v13 = vadd.f32 %v867_v30, %v799_v39  ;;  %v1091_v22 = vsel %vm946_vm2, %v930_v49, 0.0  ;;  %v699_v30 = vld [vmem:[%s6959_s1 + $0x98] sm:$0xff]  ;;  %v5296_v15 = vadd.f32 %v4850_v6, %v4638_v9  ;;  %v730_v6 = vld [vmem:[%s6959_s1 + $0x190] sm:$0xff] }
 0x157   :  { %7068 = vst [vmem:[#allocation39_spill] sm:$0xff] %v5280_v27  ;;  %v1363_v55 = vadd.f32 %v1299_v23, %v1231_v5  ;;  %v768_v62 = vmul.f32 %v4643_v11, %v5280_v27  ;;  %v1395_v49 = vadd.f32 %v1331_v51, %v1263_v43 }
 0x158   :  { %1456 = vadd.xlane.f32.xlu1 %v1455_v40  ;;  %1453 = vadd.xlane.f32.xlu0 %v1452_v21  ;;  %v5274_v40 = vadd.f32 %v4848_v2, %v4638_v9  ;;  %v1094_v35 = vsel %vm946_vm2, %v931_v13, 0.0  ;;  %v698_v2 = vld [vmem:[%s6959_s1 + $0x90] sm:$0xff]  ;;  %v1362_v21 = vadd.f32 %v1298_v59, %v1230_v48  ;;  %7069 = vst [vmem:[#allocation40_spill] sm:$0xff] %v5296_v15 }
 0x159   :  { %v836_v44 = vmul.f32 %v4630_v7, %v698_v2  ;;  %v801_v5 = vmul.f32 %v4643_v11, %v5296_v15 }
 0x15a   :  { %7067 = vst [vmem:[#allocation38_spill] sm:$0xff] %v5274_v40  ;;  %v769_v39 = vmul.f32 %v4643_v11, %v5274_v40  ;;  %v1458_v13 = vsel %vm946_vm2, %v1362_v21, 0.0 }
 0x15b   :  { %v900_v23 = vadd.f32 %v836_v44, %v768_v62  ;;  %v1301_v62 = vmul.f32 %v4645_v12, %v699_v30  ;;  %v1232_v44 = vmul.f32 %v4651_v17, %v5280_v27 }
 0x15c   :  { %1552 = vadd.xlane.f32.xlu1 %v1551_v29  ;;  %1549 = vadd.xlane.f32.xlu0 %v1548_v46  ;;  %v837_v29 = vmul.f32 %v4630_v7, %v699_v30  ;;  %v5303_v46 = vadd.f32 %v4638_v9, %v4856_v56  ;;  %v1394_v9 = vadd.f32 %v1330_v28, %v1262_v0 }
 0x15d   :  { %v1001_v0 = vsel %vm946_vm2, %v900_v23, 0.0  ;;  %v701_v23 = vld [vmem:[%s6959_s1 + $0xa8] sm:$0xff] }
 0x15e   :  { %7070 = vst [vmem:[#allocation41_spill] sm:$0xff] %v5303_v46  ;;  %v901_v56 = vadd.f32 %v837_v29, %v769_v39  ;;  %v800_v59 = vmul.f32 %v4643_v11, %v5303_v46  ;;  %v1233_v29 = vmul.f32 %v4651_v17, %v5274_v40 }
 0x160   :  { %999 = vadd.xlane.f32.xlu1 %v998_v37  ;;  %996 = vadd.xlane.f32.xlu0 %v995_v53  ;;  %v731_v37 = vld [vmem:[%s6959_s1 + $0x198] sm:$0xff]  ;;  %v1461_v53 = vsel %vm946_vm2, %v1363_v55, 0.0  ;;  %v1554_v55 = vsel %vm946_vm2, %v1394_v9, 0.0  ;;  %v1004_v51 = vsel %vm946_vm2, %v901_v56, 0.0 }
 0x161   :  { %v869_v48 = vmul.f32 %v4630_v7, %v731_v37 }
 0x163   :  { %v933_v28 = vadd.f32 %v869_v48, %v801_v5  ;;  %v6992_v48 = vmov 0  }
 0x164   :  { %1095 = vadd.xlane.f32.xlu1 %v1094_v35  ;;  %1092 = vadd.xlane.f32.xlu0 %v1091_v22  ;;  %v868_v35 = vmul.f32 %v4630_v7, %v730_v6  ;;  %v1557_v22 = vsel %vm946_vm2, %v1395_v49, 0.0 }
 0x165   :  { %v1100_v30 = vsel %vm946_vm2, %v933_v28, 0.0  ;;  %3696 = vset.pattern.permute.xlu1 %v6992_v48  ;;  %3697 = vset.pattern.permute.xlu0 %v6992_v48 }
 0x166   :  { %v932_v39 = vadd.f32 %v868_v35, %v800_v59  ;;  %v1265_v59 = vmul.f32 %v4651_v17, %v5296_v15  ;;  %v700_v35 = vld [vmem:[%s6959_s1 + $0xa0] sm:$0xff] }
 0x168   :  { %1462 = vadd.xlane.f32.xlu1 %v1461_v53  ;;  %1459 = vadd.xlane.f32.xlu0 %v1458_v13  ;;  %v1300_v53 = vmul.f32 %v4645_v12, %v698_v2  ;;  %v5339_v13 = vld [vmem:[%s6960_s3] ss:$0 sm:$0xff]  ;;  %v1097_v5 = vsel %vm946_vm2, %v932_v39, 0.0  ;;  %v839_v39 = vmul.f32 %v4630_v7, %v701_v23 }
 0x169   :  { %v5343_v49 = vadd.f32 %v5339_v13, %v4864_v45  ;;  %v5353_v2 = vadd.f32 %v5339_v13, %v4884_v1  ;;  %v1365_v45 = vadd.f32 %v1301_v62, %v1233_v29  ;;  %v1333_v1 = vmul.f32 %v4645_v12, %v731_v37 }
 0x16a   :  { %v5382_v37 = vadd.f32 %v5339_v13, %v4886_v8 }
 0x16b   :  { %7071 = vst [vmem:[#allocation42_spill] sm:$0xff] %v5343_v49  ;;  %7072 = vst [vmem:[#allocation43_spill] sm:$0xff] %v5353_v2  ;;  %v771_v28 = vmul.f32 %v4643_v11, %v5343_v49  ;;  %v1397_v48 = vadd.f32 %v1333_v1, %v1265_v59 }
 0x16c   :  { %1558 = vadd.xlane.f32.xlu1 %v1557_v22  ;;  %1555 = vadd.xlane.f32.xlu0 %v1554_v55  ;;  %v1364_v22 = vadd.f32 %v1300_v53, %v1232_v44  ;;  %v1264_v55 = vmul.f32 %v4651_v17, %v5303_v46  ;;  %7075 = vst [vmem:[#allocation46_spill] sm:$0xff] %v5382_v37  ;;  %v732_v53 = vld [vmem:[%s6959_s1 + $0x1a0] sm:$0xff] }
 0x16d   :  { %v5324_v43 = vpop.xlane.xlu1 %1047  ;;  %v5326_v21 = vpop.xlane.xlu0 %951  ;;  %v838_v44 = vmul.f32 %v4630_v7, %v700_v35  ;;  %v903_v15 = vadd.f32 %v839_v39, %v771_v28  ;;  %v1563_v59 = vsel %vm946_vm2, %v1397_v48, 0.0  ;;  %v1234_v48 = vmul.f32 %v4651_v17, %v5353_v2 }
 0x16f   :  { %v1010_v28 = vsel %vm946_vm2, %v903_v15, 0.0 }
 0x170   :  { %1005 = vadd.xlane.f32.xlu1 %v1004_v51  ;;  %1002 = vadd.xlane.f32.xlu0 %v1001_v0  ;;  %v1332_v51 = vmul.f32 %v4645_v12, %v730_v6  ;;  %v5371_v0 = vadd.f32 %v5339_v13, %v4866_v38  ;;  %v770_v6 = vmul.f32 %v4643_v11, %v5353_v2  ;;  %v733_v38 = vld [vmem:[%s6959_s1 + $0x1a8] sm:$0xff] }
 0x171   :  { %v5345_v9 = vpop.xlane.xlu1 %1414  ;;  %v5347_v56 = vpop.xlane.xlu0 %948  ;;  %v871_v40 = vmul.f32 %v4630_v7, %v733_v38 }
 0x172   :  { %7073 = vst [vmem:[#allocation44_spill] sm:$0xff] %v5371_v0  ;;  %v1396_v8 = vadd.f32 %v1332_v51, %v1264_v55  ;;  %v803_v14 = vmul.f32 %v4643_v11, %v5371_v0  ;;  %v902_v27 = vadd.f32 %v838_v44, %v770_v6 }
 0x174   :  { %1101 = vadd.xlane.f32.xlu1 %v1100_v30  ;;  %1098 = vadd.xlane.f32.xlu0 %v1097_v5  ;;  %v1467_v30 = vsel %vm946_vm2, %v1365_v45, 0.0  ;;  %v1464_v5 = vsel %vm946_vm2, %v1364_v22, 0.0  ;;  %v802_v45 = vmul.f32 %v4643_v11, %v5382_v37  ;;  %v870_v22 = vmul.f32 %v4630_v7, %v732_v53 }
 0x175   :  { %v5376_v29 = vpop.xlane.xlu1 %1510  ;;  %v5378_v62 = vpop.xlane.xlu0 %1044  ;;  %v1560_v1 = vsel %vm946_vm2, %v1396_v8, 0.0  ;;  %v1007_v39 = vsel %vm946_vm2, %v902_v27, 0.0  ;;  %v935_v6 = vadd.f32 %v871_v40, %v803_v14  ;;  %v1302_v8 = vmul.f32 %v4645_v12, %v700_v35  ;;  %v703_v35 = vld [vmem:[%s6959_s1 + $0xb8] sm:$0xff] }
 0x176   :  { %7074 = vst [vmem:[#allocation45_spill] sm:$0xff] %v5376_v29  ;;  %v934_v44 = vadd.f32 %v870_v22, %v802_v45  ;;  %v702_v22 = vld [vmem:[%s6959_s1 + $0xb0] sm:$0xff] }
 0x177   :  { %v1106_v40 = vsel %vm946_vm2, %v935_v6, 0.0  ;;  %v5447_v6 = vadd.f32 %v5339_v13, %v4930_v3  ;;  %v735_v3 = vld [vmem:[%s6959_s1 + $0x1b8] sm:$0xff] }
 0x178   :  { %1468 = vadd.xlane.f32.xlu1 %v1467_v30  ;;  %1465 = vadd.xlane.f32.xlu0 %v1464_v5  ;;  %v1235_v30 = vmul.f32 %v4651_v17, %v5343_v49  ;;  %v1303_v5 = vmul.f32 %v4645_v12, %v701_v23  ;;  %v1103_v27 = vsel %vm946_vm2, %v934_v44, 0.0  ;;  %v5431_v23 = vadd.f32 %v5339_v13, %v4926_v10 }
 0x179   :  { %v5397_v46 = vpop.xlane.xlu1 %957  ;;  %v5399_v50 = vpop.xlane.xlu0 %1411  ;;  %v1334_v10 = vmul.f32 %v4645_v12, %v732_v53  ;;  %7079 = vst [vmem:[#allocation50_spill] sm:$0xff] %v5447_v6  ;;  %v805_v49 = vmul.f32 %v4643_v11, %v5447_v6  ;;  %v873_v47 = vmul.f32 %v4630_v7, %v735_v3 }
 0x17a   :  { %7078 = vst [vmem:[#allocation49_spill] sm:$0xff] %v5431_v23  ;;  %v1367_v45 = vadd.f32 %v1303_v5, %v1235_v30  ;;  %v841_v30 = vmul.f32 %v4630_v7, %v703_v35  ;;  %v772_v53 = vmul.f32 %v4643_v11, %v5431_v23 }
 0x17c   :  { %1564 = vadd.xlane.f32.xlu1 %v1563_v59  ;;  %1561 = vadd.xlane.f32.xlu0 %v1560_v1  ;;  %v5421_v59 = vadd.f32 %v5339_v13, %v4922_v36  ;;  %v1267_v36 = vmul.f32 %v4651_v17, %v5371_v0  ;;  %v1366_v1 = vadd.f32 %v1302_v8, %v1234_v48 }
 0x17d   :  { %v5407_v55 = vpop.xlane.xlu1 %1053  ;;  %v5409_v51 = vpop.xlane.xlu0 %1507  ;;  %v840_v8 = vmul.f32 %v4630_v7, %v702_v22 }
 0x17e   :  { %7076 = vst [vmem:[#allocation47_spill] sm:$0xff] %v5409_v51  ;;  %7077 = vst [vmem:[#allocation48_spill] sm:$0xff] %v5421_v59  ;;  %v773_v44 = vmul.f32 %v4643_v11, %v5421_v59  ;;  %v1470_v0 = vsel %vm946_vm2, %v1366_v1, 0.0 }
 0x180   :  { %1011 = vadd.xlane.f32.xlu1 %v1010_v28  ;;  %1008 = vadd.xlane.f32.xlu0 %v1007_v39  ;;  %v1335_v28 = vmul.f32 %v4645_v12, %v733_v38  ;;  %v1266_v39 = vmul.f32 %v4651_v17, %v5382_v37  ;;  %v5458_v38 = vadd.f32 %v5339_v13, %v4938_v4 }
 0x181   :  { %v5423_v15 = vpop.xlane.xlu1 %1420  ;;  %v5425_v14 = vpop.xlane.xlu0 %1050  ;;  %v905_v2 = vadd.f32 %v841_v30, %v773_v44  ;;  %v937_v30 = vadd.f32 %v873_v47, %v805_v49  ;;  %v5503_v49 = vadd.f32 %v5339_v13, %v4992_v61  ;;  %v1337_v61 = vmul.f32 %v4645_v12, %v735_v3 }
 0x182   :  { %7081 = vst [vmem:[#allocation52_spill] sm:$0xff] %v5458_v38  ;;  %v1399_v37 = vadd.f32 %v1335_v28, %v1267_v36  ;;  %v1398_v4 = vadd.f32 %v1334_v10, %v1266_v39 }
 0x183   :  { %v1016_v10 = vsel %vm946_vm2, %v905_v2, 0.0  ;;  %v1112_v2 = vsel %vm946_vm2, %v937_v30, 0.0  ;;  %7083 = vst [vmem:[#allocation54_spill] sm:$0xff] %v5503_v49  ;;  %v5523_v30 = vadd.f32 %v5339_v13, %v5004_v25  ;;  %v775_v3 = vmul.f32 %v4643_v11, %v5503_v49  ;;  %v737_v25 = vld [vmem:[%s6959_s1 + $0x1c8] sm:$0xff] }
 0x184   :  { %1107 = vadd.xlane.f32.xlu1 %v1106_v40  ;;  %1104 = vadd.xlane.f32.xlu0 %v1103_v27  ;;  %v734_v40 = vld [vmem:[%s6959_s1 + $0x1b0] sm:$0xff]  ;;  %v1473_v27 = vsel %vm946_vm2, %v1367_v45, 0.0  ;;  %v804_v45 = vmul.f32 %v4643_v11, %v5458_v38  ;;  %v1569_v36 = vsel %vm946_vm2, %v1399_v37, 0.0  ;;  %v1236_v37 = vmul.f32 %v4651_v17, %v5431_v23 }
 0x185   :  { %v5452_v5 = vpop.xlane.xlu1 %1516  ;;  %v5454_v48 = vpop.xlane.xlu0 %1417  ;;  %v872_v1 = vmul.f32 %v4630_v7, %v734_v40  ;;  %7085 = vst [vmem:[#allocation56_spill] sm:$0xff] %v5523_v30 }
 0x186   :  { %7080 = vst [vmem:[#allocation51_spill] sm:$0xff] %v5452_v5  ;;  %v904_v5 = vadd.f32 %v840_v8, %v772_v53  ;;  %v1237_v8 = vmul.f32 %v4651_v17, %v5421_v59  ;;  %v807_v59 = vmul.f32 %v4643_v11, %v5523_v30 }
 0x187   :  { %v936_v53 = vadd.f32 %v872_v1, %v804_v45  ;;  %v705_v45 = vld [vmem:[%s6959_s1 + $0xc8] sm:$0xff]  ;;  %v704_v1 = vld [vmem:[%s6959_s1 + $0xc0] sm:$0xff] }
 0x188   :  { %1474 = vadd.xlane.f32.xlu1 %v1473_v27  ;;  %1471 = vadd.xlane.f32.xlu0 %v1470_v0  ;;  %v1566_v0 = vsel %vm946_vm2, %v1398_v4, 0.0  ;;  %v1013_v44 = vsel %vm946_vm2, %v904_v5, 0.0  ;;  %v1305_v27 = vmul.f32 %v4645_v12, %v703_v35  ;;  %v1304_v4 = vmul.f32 %v4645_v12, %v702_v22 }
 0x189   :  { %v5473_v58 = vpop.xlane.xlu1 %954  ;;  %v5475_v16 = vpop.xlane.xlu0 %1513  ;;  %v1109_v47 = vsel %vm946_vm2, %v936_v53, 0.0  ;;  %v5507_v35 = vadd.f32 %v5339_v13, %v4994_v42  ;;  %v1269_v22 = vmul.f32 %v4651_v17, %v5447_v6  ;;  %v1336_v42 = vmul.f32 %v4645_v12, %v734_v40 }
 0x18a   :  { %7082 = vst [vmem:[#allocation53_spill] sm:$0xff] %v5475_v16  ;;  %v1369_v5 = vadd.f32 %v1305_v27, %v1237_v8  ;;  %v5527_v53 = vadd.f32 %v5339_v13, %v5006_v63  ;;  %v736_v63 = vld [vmem:[%s6959_s1 + $0x1c0] sm:$0xff] }
 0x18b   :  { %7084 = vst [vmem:[#allocation55_spill] sm:$0xff] %v5507_v35  ;;  %v774_v40 = vmul.f32 %v4643_v11, %v5507_v35  ;;  %v1401_v6 = vadd.f32 %v1337_v61, %v1269_v22 }
 0x18c   :  { %1570 = vadd.xlane.f32.xlu1 %v1569_v36  ;;  %1567 = vadd.xlane.f32.xlu0 %v1566_v0  ;;  %7086 = vst [vmem:[#allocation57_spill] sm:$0xff] %v5527_v53  ;;  %v806_v23 = vmul.f32 %v4643_v11, %v5527_v53 }
 0x18d   :  { %v5483_v28 = vpop.xlane.xlu1 %963  ;;  %v5485_v39 = vpop.xlane.xlu0 %960  ;;  %v1575_v22 = vsel %vm946_vm2, %v1401_v6, 0.0  ;;  %v1238_v6 = vmul.f32 %v4651_v17, %v5507_v35 }
 0x190   :  { %1017 = vadd.xlane.f32.xlu1 %v1016_v10  ;;  %1014 = vadd.xlane.f32.xlu0 %v1013_v44  ;;  %v1368_v10 = vadd.f32 %v1304_v4, %v1236_v37  ;;  %v1268_v44 = vmul.f32 %v4651_v17, %v5458_v38  ;;  %v843_v37 = vmul.f32 %v4630_v7, %v705_v45 }
 0x191   :  { %v5495_v36 = vpop.xlane.xlu1 %1059  ;;  %v5497_v0 = vpop.xlane.xlu0 %1056  ;;  %v842_v4 = vmul.f32 %v4630_v7, %v704_v1 }
 0x192   :  { %v1400_v38 = vadd.f32 %v1336_v42, %v1268_v44  ;;  %v907_v29 = vadd.f32 %v843_v37, %v775_v3 }
 0x193   :  { %v906_v24 = vadd.f32 %v842_v4, %v774_v40  ;;  %v1239_v40 = vmul.f32 %v4651_v17, %v5503_v49  ;;  %v1306_v4 = vmul.f32 %v4645_v12, %v704_v1  ;;  %v1270_v1 = vmul.f32 %v4651_v17, %v5527_v53 }
 0x194   :  { %1113 = vadd.xlane.f32.xlu1 %v1112_v2  ;;  %1110 = vadd.xlane.f32.xlu0 %v1109_v47  ;;  %v1479_v2 = vsel %vm946_vm2, %v1369_v5, 0.0  ;;  %v1476_v47 = vsel %vm946_vm2, %v1368_v10, 0.0  ;;  %v875_v5 = vmul.f32 %v4630_v7, %v737_v25  ;;  %v874_v10 = vmul.f32 %v4630_v7, %v736_v63 }
 0x195   :  { %v5529_v8 = vpop.xlane.xlu1 %1426  ;;  %v5531_v27 = vpop.xlane.xlu0 %1423  ;;  %v1572_v61 = vsel %vm946_vm2, %v1400_v38, 0.0  ;;  %v1307_v38 = vmul.f32 %v4645_v12, %v705_v45  ;;  %v1271_v45 = vmul.f32 %v4651_v17, %v5523_v30 }
 0x196   :  { %v939_v3 = vadd.f32 %v875_v5, %v807_v59  ;;  %v938_v37 = vadd.f32 %v874_v10, %v806_v23  ;;  %v5579_v59 = vadd.f32 %v5339_v13, %v5060_v54  ;;  %v5583_v23 = vadd.f32 %v5339_v13, %v5062_v31  ;;  %v707_v5 = vld [vmem:[%s6959_s1 + $0xd8] sm:$0xff]  ;;  %v706_v10 = vld [vmem:[%s6959_s1 + $0xd0] sm:$0xff] }
 0x197   :  { %v1371_v54 = vadd.f32 %v1307_v38, %v1239_v40  ;;  %v1338_v31 = vmul.f32 %v4645_v12, %v736_v63  ;;  %v845_v63 = vmul.f32 %v4630_v7, %v707_v5 }
 0x198   :  { %1480 = vadd.xlane.f32.xlu1 %v1479_v2  ;;  %1477 = vadd.xlane.f32.xlu0 %v1476_v47  ;;  %v1022_v2 = vsel %vm946_vm2, %v907_v29, 0.0  ;;  %v1019_v47 = vsel %vm946_vm2, %v906_v24, 0.0  ;;  %v1118_v24 = vsel %vm946_vm2, %v939_v3, 0.0  ;;  %v1115_v29 = vsel %vm946_vm2, %v938_v37, 0.0  ;;  %7090 = vst [vmem:[#allocation61_spill] sm:$0xff] %v5579_v59  ;;  %7091 = vst [vmem:[#allocation62_spill] sm:$0xff] %v5583_v23 }
 0x199   :  { %v5551_v16 = vpop.xlane.xlu1 %1522  ;;  %v5553_v51 = vpop.xlane.xlu0 %1519  ;;  %v5599_v3 = vadd.f32 %v5339_v13, %v5072_v41  ;;  %v5603_v37 = vadd.f32 %v5339_v13, %v5074_v33  ;;  %v777_v40 = vmul.f32 %v4643_v11, %v5579_v59  ;;  %v739_v41 = vld [vmem:[%s6959_s1 + $0x1d8] sm:$0xff]  ;;  %v738_v33 = vld [vmem:[%s6959_s1 + $0x1d0] sm:$0xff]  ;;  %v1485_v38 = vsel %vm946_vm2, %v1371_v54, 0.0 }
 0x19a   :  { %7087 = vst [vmem:[#allocation58_spill] sm:$0xff] %v5551_v16  ;;  %7088 = vst [vmem:[#allocation59_spill] sm:$0xff] %v5553_v51  ;;  %v877_v54 = vmul.f32 %v4630_v7, %v739_v41 }
 0x19b   :  { %7092 = vst [vmem:[#allocation63_spill] sm:$0xff] %v5599_v3  ;;  %7093 = vst [vmem:[#allocation64_spill] sm:$0xff] %v5603_v37  ;;  %v809_v49 = vmul.f32 %v4643_v11, %v5599_v3  ;;  %v808_v35 = vmul.f32 %v4643_v11, %v5603_v37  ;;  %v909_v18 = vadd.f32 %v845_v63, %v777_v40 }
 0x19c   :  { %1576 = vadd.xlane.f32.xlu1 %v1575_v22  ;;  %1573 = vadd.xlane.f32.xlu0 %v1572_v61  ;;  %v1241_v63 = vmul.f32 %v4651_v17, %v5579_v59 }
 0x19d   :  { %v5559_v44 = vpop.xlane.xlu1 %969  ;;  %v5561_v42 = vpop.xlane.xlu0 %966  ;;  %v941_v40 = vadd.f32 %v877_v54, %v809_v49  ;;  %v709_v54 = vld [vmem:[%s6959_s1 + $0xe8] sm:$0xff] }
 0x1a0   :  { %1023 = vadd.xlane.f32.xlu1 %v1022_v2  ;;  %1020 = vadd.xlane.f32.xlu0 %v1019_v47  ;;  %v1370_v2 = vadd.f32 %v1306_v4, %v1238_v6  ;;  %v1339_v47 = vmul.f32 %v4645_v12, %v737_v25  ;;  %v776_v25 = vmul.f32 %v4643_v11, %v5583_v23 }
 0x1a1   :  { %v5571_v22 = vpop.xlane.xlu1 %1065  ;;  %v5573_v61 = vpop.xlane.xlu0 %1062  ;;  %v844_v6 = vmul.f32 %v4630_v7, %v706_v10 }
 0x1a2   :  { %7089 = vst [vmem:[#allocation60_spill] sm:$0xff] %v5573_v61  ;;  %v1482_v4 = vsel %vm946_vm2, %v1370_v2, 0.0  ;;  %v876_v2 = vmul.f32 %v4630_v7, %v738_v33 }
 0x1a3   :  { %v908_v61 = vadd.f32 %v844_v6, %v776_v25  ;;  %v1240_v6 = vmul.f32 %v4651_v17, %v5583_v23 }
 0x1a4   :  { %1119 = vadd.xlane.f32.xlu1 %v1118_v24  ;;  %1116 = vadd.xlane.f32.xlu0 %v1115_v29  ;;  %v1403_v24 = vadd.f32 %v1339_v47, %v1271_v45  ;;  %v1402_v29 = vadd.f32 %v1338_v31, %v1270_v1  ;;  %v940_v25 = vadd.f32 %v876_v2, %v808_v35  ;;  %v708_v2 = vld [vmem:[%s6959_s1 + $0xe0] sm:$0xff] }
 0x1a5   :  { %v5605_v30 = vpop.xlane.xlu1 %1432  ;;  %v5607_v53 = vpop.xlane.xlu0 %1429  ;;  %v5655_v35 = vadd.f32 %v5339_v13, %v5128_v26 }
 0x1a6   :  { %v1581_v45 = vsel %vm946_vm2, %v1403_v24, 0.0  ;;  %v1578_v1 = vsel %vm946_vm2, %v1402_v29, 0.0  ;;  %v1309_v24 = vmul.f32 %v4645_v12, %v707_v5  ;;  %v1308_v29 = vmul.f32 %v4645_v12, %v706_v10 }
 0x1a7   :  { %v1121_v49 = vsel %vm946_vm2, %v940_v25, 0.0  ;;  %7098 = vst [vmem:[#allocation69_spill] sm:$0xff] %v5655_v35  ;;  %v1273_v5 = vmul.f32 %v4651_v17, %v5599_v3  ;;  %v1272_v10 = vmul.f32 %v4651_v17, %v5603_v37  ;;  %v5679_v25 = vadd.f32 %v5339_v13, %v5142_v20  ;;  %v740_v20 = vld [vmem:[%s6959_s1 + $0x1e0] sm:$0xff] }
 0x1a8   :  { %1486 = vadd.xlane.f32.xlu1 %v1485_v38  ;;  %1483 = vadd.xlane.f32.xlu0 %v1482_v4  ;;  %v1028_v38 = vsel %vm946_vm2, %v909_v18, 0.0  ;;  %v1025_v4 = vsel %vm946_vm2, %v908_v61, 0.0  ;;  %v1124_v18 = vsel %vm946_vm2, %v941_v40, 0.0  ;;  %v5659_v61 = vadd.f32 %v5339_v13, %v5130_v57 }
 0x1a9   :  { %v5627_v16 = vpop.xlane.xlu1 %1528  ;;  %v5629_v51 = vpop.xlane.xlu0 %1525  ;;  %v1373_v26 = vadd.f32 %v1309_v24, %v1241_v63  ;;  %v1340_v57 = vmul.f32 %v4645_v12, %v738_v33  ;;  %v5675_v40 = vadd.f32 %v5339_v13, %v5140_v60  ;;  %7101 = vst [vmem:[#allocation72_spill] sm:$0xff] %v5679_v25  ;;  %v779_v63 = vmul.f32 %v4643_v11, %v5655_v35  ;;  %v741_v60 = vld [vmem:[%s6959_s1 + $0x1e8] sm:$0xff] }
 0x1aa   :  { %7094 = vst [vmem:[#allocation65_spill] sm:$0xff] %v5627_v16  ;;  %7095 = vst [vmem:[#allocation66_spill] sm:$0xff] %v5629_v51  ;;  %v847_v33 = vmul.f32 %v4630_v7, %v709_v54  ;;  %v810_v23 = vmul.f32 %v4643_v11, %v5679_v25 }
 0x1ab   :  { %7099 = vst [vmem:[#allocation70_spill] sm:$0xff] %v5659_v61  ;;  %7100 = vst [vmem:[#allocation71_spill] sm:$0xff] %v5675_v40  ;;  %v1491_v24 = vsel %vm946_vm2, %v1373_v26, 0.0  ;;  %v811_v59 = vmul.f32 %v4643_v11, %v5675_v40  ;;  %v879_v26 = vmul.f32 %v4630_v7, %v741_v60 }
 0x1ac   :  { %1582 = vadd.xlane.f32.xlu1 %v1581_v45  ;;  %1579 = vadd.xlane.f32.xlu0 %v1578_v1 }
 0x1ad   :  { %v5635_v47 = vpop.xlane.xlu1 %975  ;;  %v5637_v31 = vpop.xlane.xlu0 %972 }
 0x1ae   :  { %7096 = vst [vmem:[#allocation67_spill] sm:$0xff] %v5637_v31 }
 0x1b0   :  { %1029 = vadd.xlane.f32.xlu1 %v1028_v38  ;;  %1026 = vadd.xlane.f32.xlu0 %v1025_v4  ;;  %v1372_v38 = vadd.f32 %v1308_v29, %v1240_v6  ;;  %v1341_v4 = vmul.f32 %v4645_v12, %v739_v41  ;;  %v778_v41 = vmul.f32 %v4643_v11, %v5659_v61 }
 0x1b1   :  { %v5647_v45 = vpop.xlane.xlu1 %1071  ;;  %v5649_v1 = vpop.xlane.xlu0 %1068  ;;  %v846_v6 = vmul.f32 %v4630_v7, %v708_v2 }
 0x1b2   :  { %7097 = vst [vmem:[#allocation68_spill] sm:$0xff] %v5649_v1  ;;  %v1488_v29 = vsel %vm946_vm2, %v1372_v38, 0.0  ;;  %v911_v1 = vadd.f32 %v847_v33, %v779_v63  ;;  %v878_v38 = vmul.f32 %v4630_v7, %v740_v20  ;;  %v943_v63 = vadd.f32 %v879_v26, %v811_v59 }
 0x1b3   :  { %v910_v31 = vadd.f32 %v846_v6, %v778_v41  ;;  %v1243_v33 = vmul.f32 %v4651_v17, %v5655_v35  ;;  %v1242_v6 = vmul.f32 %v4651_v17, %v5659_v61  ;;  %v5735_v26 = vadd.f32 %v5339_v13, %v5198_v52 }
 0x1b4   :  { %1125 = vadd.xlane.f32.xlu1 %v1124_v18  ;;  %1122 = vadd.xlane.f32.xlu0 %v1121_v49  ;;  %v1405_v18 = vadd.f32 %v1341_v4, %v1273_v5  ;;  %v1404_v49 = vadd.f32 %v1340_v57, %v1272_v10  ;;  %v942_v41 = vadd.f32 %v878_v38, %v810_v23  ;;  %v1130_v23 = vsel %vm946_vm2, %v943_v63, 0.0  ;;  %v710_v38 = vld [vmem:[%s6959_s1 + $0xf0] sm:$0xff] }
 0x1b5   :  { %v5681_v3 = vpop.xlane.xlu1 %1438  ;;  %v5683_v37 = vpop.xlane.xlu0 %1435  ;;  %7107 = vst [vmem:[#allocation78_spill] sm:$0xff] %v5735_v26  ;;  %v1342_v52 = vmul.f32 %v4645_v12, %v740_v20  ;;  %v5764_v20 = vadd.f32 %v5339_v13, %v5214_v34 }
 0x1b6   :  { %v1587_v5 = vsel %vm946_vm2, %v1405_v18, 0.0  ;;  %v1584_v10 = vsel %vm946_vm2, %v1404_v49, 0.0  ;;  %v1311_v18 = vmul.f32 %v4645_v12, %v709_v54  ;;  %v1310_v49 = vmul.f32 %v4645_v12, %v708_v2  ;;  %v711_v54 = vld [vmem:[%s6959_s1 + $0xf8] sm:$0xff] }
 0x1b7   :  { %v1274_v2 = vmul.f32 %v4651_v17, %v5679_v25  ;;  %7109 = vst [vmem:[#allocation80_spill] sm:$0xff] %v5764_v20 }
 0x1b8   :  { %1492 = vadd.xlane.f32.xlu1 %v1491_v24  ;;  %1489 = vadd.xlane.f32.xlu0 %v1488_v29  ;;  %v1034_v24 = vsel %vm946_vm2, %v911_v1, 0.0  ;;  %v1031_v29 = vsel %vm946_vm2, %v910_v31, 0.0  ;;  %v1127_v31 = vsel %vm946_vm2, %v942_v41, 0.0  ;;  %v5753_v41 = vadd.f32 %v5339_v13, %v5208_v32  ;;  %v743_v32 = vld [vmem:[%s6959_s1 + $0x1f8] sm:$0xff] }
 0x1b9   :  { %v5703_v16 = vpop.xlane.xlu1 %1534  ;;  %v5705_v51 = vpop.xlane.xlu0 %1531 }
 0x1ba   :  { %7102 = vst [vmem:[#allocation73_spill] sm:$0xff] %v5703_v16  ;;  %7103 = vst [vmem:[#allocation74_spill] sm:$0xff] %v5705_v51  ;;  %v813_v61 = vmul.f32 %v4643_v11, %v5753_v41 }
 0x1bb   :  { %7108 = vst [vmem:[#allocation79_spill] sm:$0xff] %v5753_v41 }
 0x1bc   :  { %1588 = vadd.xlane.f32.xlu1 %v1587_v5  ;;  %1585 = vadd.xlane.f32.xlu0 %v1584_v10  ;;  %v5725_v5 = vadd.f32 %v5339_v13, %v5196_v19  ;;  %v1275_v19 = vmul.f32 %v4651_v17, %v5675_v40  ;;  %v1375_v10 = vadd.f32 %v1311_v18, %v1243_v33  ;;  %v5776_v18 = vld [vmem:[%s6961_s6] ss:$0 sm:$0xff] }
 0x1bd   :  { %v5711_v4 = vpop.xlane.xlu1 %981  ;;  %v5713_v57 = vpop.xlane.xlu0 %978  ;;  %v849_v40 = vmul.f32 %v4630_v7, %v711_v54  ;;  %v848_v33 = vmul.f32 %v4630_v7, %v710_v38 }
 0x1be   :  { %7104 = vst [vmem:[#allocation75_spill] sm:$0xff] %v5713_v57  ;;  %7105 = vst [vmem:[#allocation76_spill] sm:$0xff] %v5725_v5  ;;  %v781_v63 = vmul.f32 %v4643_v11, %v5725_v5 }
 0x1c0   :  { %1035 = vadd.xlane.f32.xlu1 %v1034_v24  ;;  %1032 = vadd.xlane.f32.xlu0 %v1031_v29  ;;  %v1374_v24 = vadd.f32 %v1310_v49, %v1242_v6  ;;  %v1343_v29 = vmul.f32 %v4645_v12, %v741_v60  ;;  %v780_v60 = vmul.f32 %v4643_v11, %v5735_v26  ;;  %v742_v6 = vld [vmem:[%s6959_s1 + $0x1f0] sm:$0xff]  ;;  %v1497_v49 = vsel %vm946_vm2, %v1375_v10, 0.0 }
 0x1c1   :  { %v5727_v1 = vpop.xlane.xlu1 %1077  ;;  %v5729_v59 = vpop.xlane.xlu0 %1074  ;;  %v913_v16 = vadd.f32 %v849_v40, %v781_v63  ;;  %v812_v10 = vmul.f32 %v4643_v11, %v5764_v20 }
 0x1c2   :  { %7106 = vst [vmem:[#allocation77_spill] sm:$0xff] %v5729_v59  ;;  %v1494_v34 = vsel %vm946_vm2, %v1374_v24, 0.0  ;;  %v1407_v13 = vadd.f32 %v1343_v29, %v1275_v19  ;;  %v912_v57 = vadd.f32 %v848_v33, %v780_v60  ;;  %v881_v19 = vmul.f32 %v4630_v7, %v743_v32 }
 0x1c3   :  { %v1040_v40 = vsel %vm946_vm2, %v913_v16, 0.0  ;;  %v1244_v16 = vmul.f32 %v4651_v17, %v5735_v26 }
 0x1c4   :  { %1131 = vadd.xlane.f32.xlu1 %v1130_v23  ;;  %1128 = vadd.xlane.f32.xlu0 %v1127_v31  ;;  %v1406_v23 = vadd.f32 %v1342_v52, %v1274_v2  ;;  %v1147_v31 = vadd.f32 %v5776_v18, %v5326_v21  ;;  %v880_v2 = vmul.f32 %v4630_v7, %v742_v6  ;;  %v1593_v21 = vsel %vm946_vm2, %v1407_v13, 0.0 }
 0x1c5   :  { %v5756_v25 = vpop.xlane.xlu1 %1444  ;;  %v5758_v35 = vpop.xlane.xlu0 %1441  ;;  %v1178_v52 = vadd.f32 %v5776_v18, %v5378_v62  ;;  %v1037_v60 = vsel %vm946_vm2, %v912_v57, 0.0  ;;  %v945_v33 = vadd.f32 %v881_v19, %v813_v61  ;;  %v1313_v13 = vmul.f32 %v4645_v12, %v711_v54 }
 0x1c6   :  { %v1590_v24 = vsel %vm946_vm2, %v1406_v23, 0.0  ;;  %v3402_v29 = vmul.f32 -1.442695, %v1147_v31  ;;  %v944_v7 = vadd.f32 %v880_v2, %v812_v10  ;;  %v1312_v62 = vmul.f32 %v4645_v12, %v710_v38 }
 0x1c7   :  { %v1603_v61 = vadd.f32 %v5776_v18, %v5345_v9  ;;  %v3433_v57 = vmul.f32 -1.442695, %v1178_v52  ;;  %v1136_v31 = vsel %vm946_vm2, %v945_v33, 0.0  ;;  %v1602_v54 = vadd.f32 %v5776_v18, %v5399_v50 }
 0x1c8   :  { %1498 = vadd.xlane.f32.xlu1 %v1497_v49  ;;  %1495 = vadd.xlane.f32.xlu0 %v1494_v34  ;;  %v1179_v49 = vadd.f32 %v5776_v18, %v5324_v43  ;;  %v1245_v34 = vmul.f32 %v4651_v17, %v5725_v5  ;;  %3744 = vpow2.f32 %v3402_v29  ;;  %v1133_v10 = vsel %vm946_vm2, %v944_v7, 0.0 }
 0x1c9   :  { %v5784_v51 = vpop.xlane.xlu1 %1540  ;;  %v5786_v59 = vpop.xlane.xlu0 %1537  ;;  %v1277_v38 = vmul.f32 %v4651_v17, %v5753_v41  ;;  %v1276_v2 = vmul.f32 %v4651_v17, %v5764_v20  ;;  %v1344_v29 = vmul.f32 %v4645_v12, %v742_v6  ;;  %3746 = vpow2.f32 %v3433_v57  ;;  %v7116_v41 = vld [vmem:[#allocation68_spill] sm:$0xff]  ;;  %v7118_v26 = vld [vmem:[#allocation77_spill] sm:$0xff] }
 0x1ca   :  { %v3434_v19 = vmul.f32 -1.442695, %v1179_v49  ;;  %v1377_v9 = vadd.f32 %v1313_v13, %v1245_v34  ;;  %v1149_v50 = vadd.f32 %v5776_v18, %v5397_v46  ;;  %v3465_v33 = vmul.f32 -1.442695, %v1602_v54 }
 0x1cb   :  { %v1408_v49 = vadd.f32 %v1344_v29, %v1276_v2  ;;  %v1181_v46 = vadd.f32 %v5776_v18, %v5407_v55  ;;  %v1186_v20 = vadd.f32 %v5776_v18, %v7116_v41 }
 0x1cc   :  { %1594 = vadd.xlane.f32.xlu1 %v1593_v21  ;;  %1591 = vadd.xlane.f32.xlu0 %v1590_v24  ;;  %v1376_v21 = vadd.f32 %v1312_v62, %v1244_v16  ;;  %v1345_v24 = vmul.f32 %v4645_v12, %v743_v32  ;;  %3748 = vpow2.f32 %v3434_v19  ;;  %v1503_v17 = vsel %vm946_vm2, %v1377_v9, 0.0 }
 0x1cd   :  { %v5797_v63 = vpop.xlane.xlu1 %987  ;;  %v5799_v11 = vpop.xlane.xlu0 %984  ;;  %v1146_v12 = vadd.f32 %v5776_v18, %v5347_v56  ;;  %v3404_v13 = vmul.f32 -1.442695, %v1149_v50  ;;  %v1605_v62 = vadd.f32 %v5776_v18, %v5423_v15  ;;  %v1596_v56 = vsel %vm946_vm2, %v1408_v49, 0.0 }
 0x1ce   :  { %v1500_v7 = vsel %vm946_vm2, %v1376_v21, 0.0  ;;  %v1409_v32 = vadd.f32 %v1345_v24, %v1277_v38  ;;  %v3436_v54 = vmul.f32 -1.442695, %v1181_v46  ;;  %v1183_v15 = vadd.f32 %v5776_v18, %v5495_v36 }
 0x1cf   :  { %v3401_v57 = vmul.f32 -1.442695, %v1146_v12  ;;  %v3468_v2 = vmul.f32 -1.442695, %v1605_v62  ;;  %v1148_v9 = vadd.f32 %v5776_v18, %v5473_v58  ;;  %v1606_v36 = vadd.f32 %v5776_v18, %v5531_v27 }
 0x1d0   :  { %1041 = vadd.xlane.f32.xlu1 %v1040_v40  ;;  %1038 = vadd.xlane.f32.xlu0 %v1037_v60  ;;  %v3466_v40 = vmul.f32 -1.442695, %v1603_v61  ;;  %v1599_v61 = vsel %vm946_vm2, %v1409_v32, 0.0  ;;  %v1604_v62 = vadd.f32 %v5776_v18, %v5454_v48 }
 0x1d1   :  { %v5812_v23 = vpop.xlane.xlu1 %1083  ;;  %v5814_v43 = vpop.xlane.xlu0 %1080  ;;  %v3403_v32 = vmul.f32 -1.442695, %v1148_v9 }
 0x1d2   :  { %3750 = vpow2.f32 %v3466_v40  ;;  %v3745_v16 = vpop.eup %3744 }
 0x1d3   :  { %3752 = vpow2.f32 %v3465_v33  ;;  %v3747_v38 = vpop.eup %3746 }
 0x1d4   :  { %1137 = vadd.xlane.f32.xlu1 %v1136_v31  ;;  %1134 = vadd.xlane.f32.xlu0 %v1133_v10  ;;  %v1859_v31 = vadd.f32 1.0, %v3745_v16  ;;  %3754 = vpow2.f32 %v3404_v13  ;;  %v1890_v29 = vadd.f32 1.0, %v3747_v38 }
 0x1d5   :  { %v5826_v52 = vpop.xlane.xlu1 %1450  ;;  %v5828_v60 = vpop.xlane.xlu0 %1447  ;;  %3756 = vpow2.f32 %v3401_v57  ;;  %v1185_v57 = vadd.f32 %v5776_v18, %v5571_v22 }
 0x1d6   :  { %v3749_v55 = vpop.eup %3748  ;;  %3758 = vrcp.f32 %v1859_v31 }
 0x1d7   :  { %3760 = vpow2.f32 %v3436_v54  ;;  %v1891_v50 = vadd.f32 1.0, %v3749_v55 }
 0x1d8   :  { %1504 = vadd.xlane.f32.xlu1 %v1503_v17  ;;  %1501 = vadd.xlane.f32.xlu0 %v1500_v7  ;;  %3762 = vpow2.f32 %v3468_v2  ;;  %v1180_v17 = vadd.f32 %v5776_v18, %v5425_v14  ;;  %v3438_v7 = vmul.f32 -1.442695, %v1183_v15  ;;  %v3469_v14 = vmul.f32 -1.442695, %v1606_v36 }
 0x1d9   :  { %v5836_v6 = vpop.xlane.xlu1 %1546  ;;  %v5838_v34 = vpop.xlane.xlu0 %1543  ;;  %3764 = vrcp.f32 %v1890_v29  ;;  %v3467_v2 = vmul.f32 -1.442695, %v1604_v62  ;;  %v1151_v15 = vadd.f32 %v5776_v18, %v5483_v28 }
 0x1da   :  { %3766 = vrcp.f32 %v1891_v50  ;;  %v3435_v46 = vmul.f32 -1.442695, %v1180_v17  ;;  %v1608_v50 = vadd.f32 %v5776_v18, %v5607_v53 }
 0x1db   :  { %3768 = vpow2.f32 %v3438_v7  ;;  %v1607_v7 = vadd.f32 %v5776_v18, %v5529_v8  ;;  %v3406_v28 = vmul.f32 -1.442695, %v1151_v15  ;;  %v1155_v8 = vadd.f32 %v5776_v18, %v5635_v47 }
 0x1dc   :  { %1600 = vadd.xlane.f32.xlu1 %v1599_v61  ;;  %1597 = vadd.xlane.f32.xlu0 %v1596_v56  ;;  %v3751_v40 = vpop.eup %3750  ;;  %3770 = vpow2.f32 %v3403_v32  ;;  %v3471_v53 = vmul.f32 -1.442695, %v1608_v50  ;;  %v1187_v15 = vadd.f32 %v5776_v18, %v5647_v45 }
 0x1dd   :  { %v5846_v10 = vpop.xlane.xlu1 %993  ;;  %v5848_v19 = vpop.xlane.xlu0 %990  ;;  %v2243_v12 = vadd.f32 1.0, %v3751_v40  ;;  %v3440_v40 = vmul.f32 -1.442695, %v1185_v57  ;;  %v3470_v62 = vmul.f32 -1.442695, %v1607_v7  ;;  %v1182_v7 = vadd.f32 %v5776_v18, %v5497_v0 }
 0x1de   :  { %v3753_v33 = vpop.eup %3752  ;;  %v3410_v47 = vmul.f32 -1.442695, %v1155_v8  ;;  %v1161_v41 = vadd.f32 %v5776_v18, %v5846_v10 }
 0x1df   :  { %v2242_v16 = vadd.f32 1.0, %v3753_v33  ;;  %v3755_v13 = vpop.eup %3754  ;;  %3772 = vrcp.f32 %v2243_v12 }
 0x1e0   :  { %v3757_v27 = vpop.eup %3756  ;;  %v1861_v54 = vadd.f32 1.0, %v3755_v13  ;;  %v3416_v10 = vmul.f32 -1.442695, %v1161_v41 }
 0x1e1   :  { %v5854_v21 = vpop.xlane.xlu1 %1089  ;;  %v5856_v24 = vpop.xlane.xlu0 %1086  ;;  %3774 = vrcp.f32 %v2242_v16  ;;  %v1858_v48 = vadd.f32 1.0, %v3757_v27 }
 0x1e2   :  { %v3759_v31 = vpop.eup %3758  ;;  %3776 = vpow2.f32 %v3435_v46 }
 0x1e3   :  { %v3761_v38 = vpop.eup %3760  ;;  %3778 = vpow2.f32 %v3469_v14 }
 0x1e4   :  { %v3763_v55 = vpop.eup %3762  ;;  %3780 = vrcp.f32 %v1861_v54  ;;  %v1893_v22 = vadd.f32 1.0, %v3761_v38 }
 0x1e5   :  { %v5862_v49 = vpop.xlane.xlu1 %1456  ;;  %v5864_v58 = vpop.xlane.xlu0 %1453  ;;  %v2245_v17 = vadd.f32 1.0, %v3763_v55  ;;  %3782 = vpow2.f32 %v3467_v2 }
 0x1e6   :  { %v3765_v33 = vpop.eup %3764  ;;  %3784 = vrcp.f32 %v1858_v48  ;;  %v1150_v48 = vadd.f32 %v5776_v18, %v5485_v39 }
 0x1e7   :  { %v3767_v32 = vpop.eup %3766  ;;  %3786 = vpow2.f32 %v3440_v40 }
 0x1e8   :  { %v3769_v16 = vpop.eup %3768  ;;  %3788 = vrcp.f32 %v1893_v22 }
 0x1e9   :  { %v5868_v61 = vpop.xlane.xlu1 %1552  ;;  %v5870_v56 = vpop.xlane.xlu0 %1549  ;;  %3790 = vrcp.f32 %v2245_v17  ;;  %v1895_v27 = vadd.f32 1.0, %v3769_v16  ;;  %v3405_v16 = vmul.f32 -1.442695, %v1150_v48 }
 0x1ea   :  { %v3771_v13 = vpop.eup %3770  ;;  %3792 = vpow2.f32 %v3406_v28 }
 0x1eb   :  { %v3773_v46 = vpop.eup %3772  ;;  %v1860_v2 = vadd.f32 1.0, %v3771_v13  ;;  %3794 = vpow2.f32 %v3471_v53  ;;  %v3442_v13 = vmul.f32 -1.442695, %v1187_v15 }
 0x1ec   :  { %v3775_v14 = vpop.eup %3774  ;;  %3796 = vpow2.f32 %v3470_v62  ;;  %v1610_v62 = vadd.f32 %v5776_v18, %v5683_v37 }
 0x1ed   :  { %2441 = vperm.xlu1 %3696, %v3759_v31   ;;  %v5876_v9 = vpop.xlane.xlu1 %999  ;;  %v5878_v29 = vpop.xlane.xlu0 %996  ;;  %v7025_v31 = vmov 1   ;;  %3798 = vrcp.f32 %v1895_v27  ;;  %v3437_v27 = vmul.f32 -1.442695, %v1182_v7 }
 0x1ee   :  { %v3777_v38 = vpop.eup %3776  ;;  %3800 = vrcp.f32 %v1860_v2  ;;  %v1153_v2 = vadd.f32 %v5776_v18, %v5559_v44  ;;  %v3473_v37 = vmul.f32 -1.442695, %v1610_v62 }
 0x1ef   :  { %v3779_v55 = vpop.eup %3778  ;;  %v1892_v22 = vadd.f32 1.0, %v3777_v38  ;;  %3802 = vpow2.f32 %v3410_v47 }
 0x1f0   :  { %v3781_v40 = vpop.eup %3780  ;;  %v2246_v39 = vadd.f32 1.0, %v3779_v55  ;;  %v3408_v7 = vmul.f32 -1.442695, %v1153_v2 }
 0x1f1   :  { %v5884_v36 = vpop.xlane.xlu1 %1095  ;;  %2596 = vperm.xlu1 %3696, %v3765_v33   ;;  %v5886_v12 = vpop.xlane.xlu0 %1092  ;;  %3804 = vrcp.f32 %v1892_v22 }
 0x1f2   :  { %2601 = vperm.xlu0 %3697, %v3767_v32   ;;  %v3783_v17 = vpop.eup %3782  ;;  %v7110_v32 = vmov 0   ;;  %3806 = vrcp.f32 %v2246_v39 }
 0x1f3   :  { %v3785_v28 = vpop.eup %3784  ;;  %3808 = vpow2.f32 %v3405_v16 }
 0x1f4   :  { %v3787_v45 = vpop.eup %3786  ;;  %3810 = vpow2.f32 %v3442_v13 }
 0x1f5   :  { %v5890_v57 = vpop.xlane.xlu1 %1462  ;;  %3700 = vset.pattern.permute.xlu1 %v7025_v31  ;;  %v5893_v54 = vpop.xlane.xlu0 %1459  ;;  %v1897_v55 = vadd.f32 1.0, %v3787_v45 }
 0x1f6   :  { %2820 = vperm.xlu1 %3700, %v3775_v14   ;;  %3698 = vset.pattern.permute.xlu0 %v7025_v31  ;;  %v3789_v53 = vpop.eup %3788 }
 0x1f7   :  { %2825 = vperm.xlu0 %3698, %v3773_v46   ;;  %v2244_v46 = vadd.f32 1.0, %v3783_v17  ;;  %v3791_v14 = vpop.eup %3790  ;;  %v1157_v17 = vadd.f32 %v5776_v18, %v5711_v4 }
 0x1f8   :  { %v3793_v38 = vpop.eup %3792 }
 0x1f9   :  { %v5900_v50 = vpop.xlane.xlu1 %1558  ;;  %v5902_v33 = vpop.xlane.xlu0 %1555  ;;  %3812 = vrcp.f32 %v2244_v46  ;;  %v1863_v22 = vadd.f32 1.0, %v3793_v38  ;;  %v3412_v4 = vmul.f32 -1.442695, %v1157_v17  ;;  %v1189_v46 = vadd.f32 %v5776_v18, %v5727_v1 }
 0x1fa   :  { %3701 = vset.pattern.permute.xlu1 %v7110_v32  ;;  %v3795_v48 = vpop.eup %3794  ;;  %3814 = vpow2.f32 %v3437_v27  ;;  %v1152_v27 = vadd.f32 %v5776_v18, %v5561_v42  ;;  %v1612_v42 = vadd.f32 %v5776_v18, %v5758_v35 }
 0x1fb   :  { %2451 = vperm.xlu1 %3701, %v3781_v40   ;;  %3699 = vset.pattern.permute.xlu0 %v7110_v32  ;;  %v3797_v40 = vpop.eup %3796  ;;  %3816 = vrcp.f32 %v1897_v55  ;;  %v2248_v16 = vadd.f32 1.0, %v3795_v48 }
 0x1fc   :  { %2436 = vperm.xlu0 %3699, %v3785_v28   ;;  %v3799_v44 = vpop.eup %3798  ;;  %v1609_v28 = vadd.f32 %v5776_v18, %v5605_v30  ;;  %3818 = vpow2.f32 %v3473_v37 }
 0x1fd   :  { %v5910_v8 = vpop.xlane.xlu1 %1005  ;;  %v5912_v0 = vpop.xlane.xlu0 %1002  ;;  %3820 = vrcp.f32 %v1863_v22 }
 0x1fe   :  { %v3801_v39 = vpop.eup %3800  ;;  %3822 = vpow2.f32 %v3408_v7  ;;  %v3472_v38 = vmul.f32 -1.442695, %v1609_v28 }
 0x1ff   :  { %3702 = vset.pattern.permute.xlu1 %v7025_v31  ;;  %3824 = vrcp.f32 %v2248_v16 }
 0x200   :  { %2835 = vperm.xlu1 %3702, %v3791_v14   ;;  %2611 = vperm.xlu0 %3699, %v3789_v53   ;;  %v3803_v53 = vpop.eup %3802  ;;  %v2247_v14 = vadd.f32 1.0, %v3797_v40  ;;  %3826 = vpow2.f32 %v3412_v4  ;;  %v3444_v40 = vmul.f32 -1.442695, %v1189_v46 }
 0x201   :  { %v5917_v47 = vpop.xlane.xlu1 %1101  ;;  %v5919_v15 = vpop.xlane.xlu0 %1098  ;;  %v1867_v55 = vadd.f32 1.0, %v3803_v53 }
 0x202   :  { %v3805_v62 = vpop.eup %3804  ;;  %3828 = vrcp.f32 %v2247_v14 }
 0x203   :  { %v3807_v30 = vpop.eup %3806  ;;  %3830 = vpow2.f32 %v3472_v38 }
 0x204   :  { %3703 = vset.pattern.permute.xlu1 %v7110_v32  ;;  %2621 = vperm.xlu0 %3699, %v3799_v44   ;;  %v3809_v2 = vpop.eup %3808  ;;  %v3407_v44 = vmul.f32 -1.442695, %v1152_v27  ;;  %3832 = vrcp.f32 %v1867_v55  ;;  %v1159_v27 = vadd.f32 %v5776_v18, %v5797_v63 }
 0x205   :  { %v5926_v45 = vpop.xlane.xlu1 %1468  ;;  %2446 = vperm.xlu1 %3703, %v3801_v39   ;;  %v5928_v13 = vpop.xlane.xlu0 %1465  ;;  %v7112_v39 = vld [vmem:[#allocation60_spill] sm:$0xff]  ;;  %v1862_v46 = vadd.f32 1.0, %v3809_v2  ;;  %3834 = vpow2.f32 %v3444_v40  ;;  %v1611_v2 = vadd.f32 %v5776_v18, %v5681_v3 }
 0x206   :  { %v3811_v1 = vpop.eup %3810  ;;  %v1184_v28 = vadd.f32 %v5776_v18, %v7112_v39  ;;  %3836 = vpow2.f32 %v3407_v44 }
 0x207   :  { %v3813_v22 = vpop.eup %3812  ;;  %v1899_v16 = vadd.f32 1.0, %v3811_v1 }
 0x208   :  { %3708 = vset.pattern.permute.xlu0 %v7025_v31  ;;  %v3815_v17 = vpop.eup %3814  ;;  %v3439_v55 = vmul.f32 -1.442695, %v1184_v28  ;;  %v7114_v28 = vld [vmem:[#allocation67_spill] sm:$0xff] }
 0x209   :  { %v5935_v48 = vpop.xlane.xlu1 %1564  ;;  %2606 = vperm.xlu1 %3703, %v3805_v62   ;;  %2840 = vperm.xlu0 %3708, %v3807_v30   ;;  %v5937_v37 = vpop.xlane.xlu0 %1561  ;;  %v3475_v62 = vmul.f32 -1.442695, %v1612_v42  ;;  %v1894_v30 = vadd.f32 1.0, %v3815_v17  ;;  %3838 = vrcp.f32 %v1899_v16  ;;  %v3414_v42 = vmul.f32 -1.442695, %v1159_v27 }
 0x20a   :  { %7111 = vst [vmem:[#allocation81_spill] sm:$0xff] %v5935_v48  ;;  %v3817_v7 = vpop.eup %3816  ;;  %3840 = vrcp.f32 %v1862_v46  ;;  %v1191_v17 = vadd.f32 %v5776_v18, %v5812_v23  ;;  %v1154_v3 = vadd.f32 %v5776_v18, %v7114_v28 }
 0x20b   :  { %v3819_v35 = vpop.eup %3818  ;;  %3842 = vpow2.f32 %v3475_v62  ;;  %v3474_v62 = vmul.f32 -1.442695, %v1611_v2 }
 0x20c   :  { %v3821_v14 = vpop.eup %3820  ;;  %v2250_v40 = vadd.f32 1.0, %v3819_v35  ;;  %3844 = vrcp.f32 %v1894_v30  ;;  %v3446_v30 = vmul.f32 -1.442695, %v1191_v17  ;;  %v3409_v27 = vmul.f32 -1.442695, %v1154_v3 }
 0x20d   :  { %v5943_v53 = vpop.xlane.xlu1 %1011  ;;  %3704 = vset.pattern.permute.xlu1 %v7025_v31  ;;  %3709 = vset.pattern.permute.xlu0 %v7110_v32  ;;  %v5947_v4 = vpop.xlane.xlu0 %1008  ;;  %3846 = vpow2.f32 %v3439_v55 }
 0x20e   :  { %2830 = vperm.xlu1 %3704, %v3813_v22   ;;  %2631 = vperm.xlu0 %3709, %v3817_v7   ;;  %v3823_v38 = vpop.eup %3822  ;;  %v7113_v22 = vmov 1   ;;  %3848 = vrcp.f32 %v2250_v40 }
 0x20f   :  { %v3825_v31 = vpop.eup %3824  ;;  %v1865_v7 = vadd.f32 1.0, %v3823_v38  ;;  %3850 = vpow2.f32 %v3414_v42  ;;  %v1614_v38 = vadd.f32 %v5776_v18, %v5828_v60 }
 0x210   :  { %v3827_v63 = vpop.eup %3826 }
 0x211   :  { %v5951_v1 = vpop.xlane.xlu1 %1107  ;;  %v5953_v39 = vpop.xlane.xlu0 %1104  ;;  %3852 = vrcp.f32 %v1865_v7  ;;  %v3477_v60 = vmul.f32 -1.442695, %v1614_v38 }
 0x212   :  { %3705 = vset.pattern.permute.xlu1 %v7110_v32  ;;  %3712 = vset.pattern.permute.xlu0 %v7113_v22  ;;  %v3829_v44 = vpop.eup %3828  ;;  %3854 = vpow2.f32 %v3474_v62 }
 0x213   :  { %2461 = vperm.xlu1 %3705, %v3821_v14   ;;  %2850 = vperm.xlu0 %3712, %v3825_v31   ;;  %v3831_v35 = vpop.eup %3830  ;;  %v1869_v14 = vadd.f32 1.0, %v3827_v63 }
 0x214   :  { %v3833_v31 = vpop.eup %3832  ;;  %v2249_v63 = vadd.f32 1.0, %v3831_v35 }
 0x215   :  { %v5963_v16 = vpop.xlane.xlu1 %1474  ;;  %v5965_v46 = vpop.xlane.xlu0 %1471  ;;  %3856 = vrcp.f32 %v1869_v14  ;;  %v3441_v14 = vmul.f32 -1.442695, %v1186_v20  ;;  %v1193_v20 = vadd.f32 %v5776_v18, %v5854_v21 }
 0x216   :  { %v3835_v23 = vpop.eup %3834  ;;  %3858 = vpow2.f32 %v3446_v30  ;;  %v1613_v30 = vadd.f32 %v5776_v18, %v5756_v25  ;;  %v7117_v25 = vld [vmem:[#allocation75_spill] sm:$0xff] }
 0x217   :  { %3706 = vset.pattern.permute.xlu1 %v7113_v22  ;;  %3713 = vset.pattern.permute.xlu0 %v7110_v32  ;;  %v3837_v40 = vpop.eup %3836  ;;  %v1901_v42 = vadd.f32 1.0, %v3835_v23  ;;  %3860 = vpow2.f32 %v3409_v27  ;;  %v3448_v21 = vmul.f32 -1.442695, %v1193_v20 }
 0x218   :  { %2845 = vperm.xlu1 %3706, %v3829_v44   ;;  %2481 = vperm.xlu0 %3713, %v3833_v31   ;;  %v3839_v28 = vpop.eup %3838  ;;  %v1864_v62 = vadd.f32 1.0, %v3837_v40  ;;  %3862 = vrcp.f32 %v2249_v63 }
 0x219   :  { %v5971_v55 = vpop.xlane.xlu1 %1570  ;;  %v5973_v2 = vpop.xlane.xlu0 %1567  ;;  %3864 = vrcp.f32 %v1901_v42 }
 0x21a   :  { %7115 = vst [vmem:[#allocation60_spill] sm:$0xff] %v5971_v55  ;;  %v3841_v17 = vpop.eup %3840  ;;  %3866 = vpow2.f32 %v3477_v60  ;;  %v3476_v60 = vmul.f32 -1.442695, %v1613_v30  ;;  %v1616_v30 = vadd.f32 %v5776_v18, %v5864_v58 }
 0x21b   :  { %v3843_v44 = vpop.eup %3842  ;;  %3868 = vrcp.f32 %v1864_v62 }
 0x21c   :  { %3707 = vset.pattern.permute.xlu1 %v7110_v32  ;;  %2641 = vperm.xlu0 %3713, %v3839_v28   ;;  %v3845_v35 = vpop.eup %3844  ;;  %v2252_v27 = vadd.f32 1.0, %v3843_v44  ;;  %3870 = vpow2.f32 %v3441_v14  ;;  %v3479_v58 = vmul.f32 -1.442695, %v1616_v30 }
 0x21d   :  { %v5978_v7 = vpop.xlane.xlu1 %1017  ;;  %2456 = vperm.xlu1 %3707, %v3841_v17   ;;  %v5980_v3 = vpop.xlane.xlu0 %1014  ;;  %v1156_v17 = vadd.f32 %v5776_v18, %v7117_v25 }
 0x21e   :  { %v3847_v31 = vpop.eup %3846  ;;  %3872 = vrcp.f32 %v2252_v27 }
 0x21f   :  { %v3849_v23 = vpop.eup %3848  ;;  %v1896_v42 = vadd.f32 1.0, %v3847_v31  ;;  %3874 = vpow2.f32 %v3416_v10  ;;  %v3411_v14 = vmul.f32 -1.442695, %v1156_v17 }
 0x220   :  { %3716 = vset.pattern.permute.xlu0 %v7113_v22  ;;  %v3851_v63 = vpop.eup %3850 }
 0x221   :  { %v5987_v38 = vpop.xlane.xlu1 %1113  ;;  %2616 = vperm.xlu1 %3707, %v3845_v35   ;;  %2860 = vperm.xlu0 %3716, %v3849_v23   ;;  %v5989_v40 = vpop.xlane.xlu0 %1110  ;;  %v1871_v35 = vadd.f32 1.0, %v3851_v63  ;;  %3876 = vrcp.f32 %v1896_v42 }
 0x222   :  { %v3853_v28 = vpop.eup %3852  ;;  %3878 = vpow2.f32 %v3476_v60 }
 0x223   :  { %v3855_v44 = vpop.eup %3854  ;;  %3880 = vrcp.f32 %v1871_v35 }
 0x224   :  { %v3857_v5 = vpop.eup %3856  ;;  %v2251_v25 = vadd.f32 1.0, %v3855_v44  ;;  %3882 = vpow2.f32 %v3448_v21  ;;  %v1615_v21 = vadd.f32 %v5776_v18, %v5826_v52  ;;  %v1158_v52 = vadd.f32 %v5776_v18, %v5799_v11 }
 0x225   :  { %v5995_v23 = vpop.xlane.xlu1 %1480  ;;  %2471 = vperm.xlu1 %3707, %v3853_v28   ;;  %3717 = vset.pattern.permute.xlu0 %v7110_v32  ;;  %v5998_v62 = vpop.xlane.xlu0 %1477  ;;  %v1188_v28 = vadd.f32 %v5776_v18, %v7118_v26  ;;  %3884 = vpow2.f32 %v3411_v14  ;;  %v1163_v26 = vadd.f32 %v5776_v18, %v5876_v9  ;;  %v1618_v11 = vadd.f32 %v5776_v18, %v5893_v54 }
 0x226   :  { %v3859_v41 = vpop.eup %3858  ;;  %2491 = vperm.xlu0 %3717, %v3857_v5   ;;  %3886 = vrcp.f32 %v2251_v25 }
 0x227   :  { %v3861_v31 = vpop.eup %3860  ;;  %v1903_v55 = vadd.f32 1.0, %v3859_v41  ;;  %v3443_v44 = vmul.f32 -1.442695, %v1188_v28  ;;  %v3481_v54 = vmul.f32 -1.442695, %v1618_v11 }
 0x228   :  { %v3863_v27 = vpop.eup %3862  ;;  %v1866_v42 = vadd.f32 1.0, %v3861_v31  ;;  %v3418_v31 = vmul.f32 -1.442695, %v1163_v26 }
 0x229   :  { %v3865_v63 = vpop.eup %3864  ;;  %v6004_v48 = vpop.xlane.xlu1 %1576  ;;  %3710 = vset.pattern.permute.xlu1 %v7113_v22  ;;  %3888 = vrcp.f32 %v1903_v55  ;;  %v1195_v55 = vadd.f32 %v5776_v18, %v5884_v36 }
 0x22a   :  { %7119 = vst [vmem:[#allocation67_spill] sm:$0xff] %v6004_v48  ;;  %v6007_v5 = vpop.xlane.xlu0 %1573  ;;  %2855 = vperm.xlu1 %3710, %v3863_v27   ;;  %2651 = vperm.xlu0 %3717, %v3865_v63   ;;  %v3867_v10 = vpop.eup %3866  ;;  %3890 = vpow2.f32 %v3479_v58 }
 0x22b   :  { %v3869_v20 = vpop.eup %3868  ;;  %v2254_v27 = vadd.f32 1.0, %v3867_v10  ;;  %3892 = vrcp.f32 %v1866_v42  ;;  %v3478_v10 = vmul.f32 -1.442695, %v1615_v21  ;;  %v3450_v36 = vmul.f32 -1.442695, %v1195_v55 }
 0x22c   :  { %v3871_v17 = vpop.eup %3870  ;;  %3894 = vpow2.f32 %v3443_v44 }
 0x22d   :  { %v6011_v60 = vpop.xlane.xlu1 %1023  ;;  %v3873_v41 = vpop.eup %3872  ;;  %v1898_v30 = vadd.f32 1.0, %v3871_v17  ;;  %3896 = vrcp.f32 %v2254_v27  ;;  %v3413_v17 = vmul.f32 -1.442695, %v1158_v52 }
 0x22e   :  { %v6013_v35 = vpop.xlane.xlu0 %1020  ;;  %3711 = vset.pattern.permute.xlu1 %v7110_v32  ;;  %3720 = vset.pattern.permute.xlu0 %v7113_v22  ;;  %v3875_v9 = vpop.eup %3874  ;;  %3898 = vpow2.f32 %v3418_v31 }
 0x22f   :  { %2466 = vperm.xlu1 %3711, %v3869_v20   ;;  %2870 = vperm.xlu0 %3720, %v3873_v41   ;;  %v3877_v14 = vpop.eup %3876  ;;  %v1873_v20 = vadd.f32 1.0, %v3875_v9  ;;  %3900 = vrcp.f32 %v1898_v30 }
 0x230   :  { %v3879_v28 = vpop.eup %3878  ;;  %3902 = vpow2.f32 %v3478_v10 }
 0x231   :  { %v6023_v25 = vpop.xlane.xlu1 %1119  ;;  %v3881_v58 = vpop.eup %3880  ;;  %v2253_v27 = vadd.f32 1.0, %v3879_v28  ;;  %3904 = vrcp.f32 %v1873_v20 }
 0x232   :  { %v6025_v63 = vpop.xlane.xlu0 %1116  ;;  %v3883_v42 = vpop.eup %3882  ;;  %3906 = vpow2.f32 %v3450_v36  ;;  %v1617_v36 = vadd.f32 %v5776_v18, %v5862_v49 }
 0x233   :  { %2626 = vperm.xlu1 %3711, %v3877_v14   ;;  %3721 = vset.pattern.permute.xlu0 %v7110_v32  ;;  %v3885_v26 = vpop.eup %3884  ;;  %v1190_v14 = vadd.f32 %v5776_v18, %v5814_v43  ;;  %v1905_v31 = vadd.f32 1.0, %v3883_v42  ;;  %3908 = vpow2.f32 %v3413_v17  ;;  %v1165_v43 = vadd.f32 %v5776_v18, %v5910_v8 }
 0x234   :  { %2501 = vperm.xlu0 %3721, %v3881_v58   ;;  %v3887_v21 = vpop.eup %3886  ;;  %v1868_v10 = vadd.f32 1.0, %v3885_v26  ;;  %3910 = vrcp.f32 %v2253_v27  ;;  %v1197_v27 = vadd.f32 %v5776_v18, %v5917_v47 }
 0x235   :  { %v6030_v44 = vpop.xlane.xlu1 %1486  ;;  %v3889_v9 = vpop.eup %3888  ;;  %v3445_v20 = vmul.f32 -1.442695, %v1190_v14  ;;  %3912 = vrcp.f32 %v1905_v31  ;;  %v3420_v11 = vmul.f32 -1.442695, %v1165_v43  ;;  %v1160_v14 = vadd.f32 %v5776_v18, %v5848_v19 }
 0x236   :  { %v6032_v41 = vpop.xlane.xlu0 %1483  ;;  %v3891_v55 = vpop.eup %3890  ;;  %3914 = vpow2.f32 %v3481_v54  ;;  %v3452_v47 = vmul.f32 -1.442695, %v1197_v27  ;;  %v1620_v19 = vadd.f32 %v5776_v18, %v5928_v13 }
 0x237   :  { %3714 = vset.pattern.permute.xlu1 %v7113_v22  ;;  %v3893_v28 = vpop.eup %3892  ;;  %3916 = vrcp.f32 %v1868_v10 }
 0x238   :  { %2865 = vperm.xlu1 %3714, %v3887_v21   ;;  %2661 = vperm.xlu0 %3721, %v3889_v9   ;;  %v3895_v58 = vpop.eup %3894  ;;  %v2256_v21 = vadd.f32 1.0, %v3891_v55  ;;  %3918 = vpow2.f32 %v3445_v20  ;;  %v3480_v55 = vmul.f32 -1.442695, %v1617_v36  ;;  %v3415_v20 = vmul.f32 -1.442695, %v1160_v14 }
 0x239   :  { %v6037_v30 = vpop.xlane.xlu1 %1582  ;;  %v3897_v42 = vpop.eup %3896  ;;  %v1900_v49 = vadd.f32 1.0, %v3895_v58  ;;  %v3483_v13 = vmul.f32 -1.442695, %v1620_v19 }
 0x23a   :  { %7120 = vst [vmem:[#allocation68_spill] sm:$0xff] %v6037_v30  ;;  %v6039_v52 = vpop.xlane.xlu0 %1579  ;;  %v3899_v8 = vpop.eup %3898  ;;  %3920 = vrcp.f32 %v2256_v21 }
 0x23b   :  { %v3901_v9 = vpop.eup %3900  ;;  %3922 = vpow2.f32 %v3420_v11 }
 0x23c   :  { %3715 = vset.pattern.permute.xlu1 %v7110_v32  ;;  %3724 = vset.pattern.permute.xlu0 %v7113_v22  ;;  %v3903_v31 = vpop.eup %3902  ;;  %3924 = vrcp.f32 %v1900_v49 }
 0x23d   :  { %v6047_v17 = vpop.xlane.xlu1 %1029  ;;  %2476 = vperm.xlu1 %3715, %v3893_v28   ;;  %2880 = vperm.xlu0 %3724, %v3897_v42   ;;  %v3905_v54 = vpop.eup %3904  ;;  %v1875_v28 = vadd.f32 1.0, %v3899_v8  ;;  %v2255_v21 = vadd.f32 1.0, %v3903_v31  ;;  %3926 = vpow2.f32 %v3480_v55 }
 0x23e   :  { %v6049_v26 = vpop.xlane.xlu0 %1026  ;;  %v3907_v43 = vpop.eup %3906 }
 0x23f   :  { %v3909_v58 = vpop.eup %3908  ;;  %3928 = vrcp.f32 %v1875_v28  ;;  %v1907_v30 = vadd.f32 1.0, %v3907_v43 }
 0x240   :  { %v3911_v36 = vpop.eup %3910  ;;  %3930 = vpow2.f32 %v3452_v47  ;;  %v1870_v14 = vadd.f32 1.0, %v3909_v58 }
 0x241   :  { %v6055_v42 = vpop.xlane.xlu1 %1125  ;;  %2636 = vperm.xlu1 %3715, %v3901_v9   ;;  %3725 = vset.pattern.permute.xlu0 %v7110_v32  ;;  %v3913_v8 = vpop.eup %3912  ;;  %v1192_v9 = vadd.f32 %v5776_v18, %v5856_v24  ;;  %3932 = vpow2.f32 %v3415_v20  ;;  %v6072_v18 = vld [vmem:[%s6961_s6] ss:$0 sm:$0xff] }
 0x242   :  { %v6058_v10 = vpop.xlane.xlu0 %1122  ;;  %2511 = vperm.xlu0 %3725, %v3905_v54   ;;  %v3915_v27 = vpop.eup %3914  ;;  %3934 = vrcp.f32 %v2255_v21  ;;  %v1167_v24 = vadd.f32 %v6072_v18, %v5943_v53  ;;  %v1619_v47 = vadd.f32 %v6072_v18, %v5890_v57  ;;  %v1162_v57 = vadd.f32 %v6072_v18, %v5878_v29 }
 0x243   :  { %v3917_v49 = vpop.eup %3916  ;;  %v3447_v55 = vmul.f32 -1.442695, %v1192_v9  ;;  %3936 = vrcp.f32 %v1907_v30  ;;  %v2258_v58 = vadd.f32 1.0, %v3915_v27  ;;  %v1199_v30 = vadd.f32 %v6072_v18, %v5951_v1 }
 0x244   :  { %v3919_v31 = vpop.eup %3918  ;;  %3938 = vpow2.f32 %v3483_v13  ;;  %v3422_v20 = vmul.f32 -1.442695, %v1167_v24  ;;  %v3482_v27 = vmul.f32 -1.442695, %v1619_v47  ;;  %v1622_v24 = vadd.f32 %v6072_v18, %v5965_v46 }
 0x245   :  { %v6064_v48 = vpop.xlane.xlu1 %1492  ;;  %3718 = vset.pattern.permute.xlu1 %v7113_v22  ;;  %v3921_v43 = vpop.eup %3920  ;;  %3940 = vrcp.f32 %v1870_v14  ;;  %v3454_v1 = vmul.f32 -1.442695, %v1199_v30 }
 0x246   :  { %v6067_v11 = vpop.xlane.xlu0 %1489  ;;  %2875 = vperm.xlu1 %3718, %v3911_v36   ;;  %2671 = vperm.xlu0 %3725, %v3913_v8   ;;  %v3923_v53 = vpop.eup %3922  ;;  %v1902_v36 = vadd.f32 1.0, %v3919_v31  ;;  %3942 = vpow2.f32 %v3447_v55  ;;  %v3417_v31 = vmul.f32 -1.442695, %v1162_v57  ;;  %v3485_v46 = vmul.f32 -1.442695, %v1622_v24 }
 0x247   :  { %v3925_v19 = vpop.eup %3924  ;;  %3944 = vrcp.f32 %v2258_v58 }
 0x248   :  { %v3927_v9 = vpop.eup %3926  ;;  %3946 = vpow2.f32 %v3422_v20 }
 0x249   :  { %v6076_v54 = vpop.xlane.xlu1 %1588  ;;  %v3929_v13 = vpop.eup %3928  ;;  %3948 = vrcp.f32 %v1902_v36  ;;  %v2257_v58 = vadd.f32 1.0, %v3927_v9 }
 0x24a   :  { %7121 = vst [vmem:[#allocation75_spill] sm:$0xff] %v6076_v54  ;;  %v6078_v28 = vpop.xlane.xlu0 %1585  ;;  %3719 = vset.pattern.permute.xlu1 %v7110_v32  ;;  %3728 = vset.pattern.permute.xlu0 %v7113_v22  ;;  %v3931_v14 = vpop.eup %3930  ;;  %3950 = vpow2.f32 %v3482_v27 }
 0x24b   :  { %2486 = vperm.xlu1 %3719, %v3917_v49   ;;  %2890 = vperm.xlu0 %3728, %v3921_v43   ;;  %v1877_v49 = vadd.f32 1.0, %v3923_v53  ;;  %v3933_v29 = vpop.eup %3932  ;;  %v1909_v20 = vadd.f32 1.0, %v3931_v14 }
 0x24c   :  { %v3935_v47 = vpop.eup %3934  ;;  %v1872_v27 = vadd.f32 1.0, %v3933_v29 }
 0x24d   :  { %v6088_v21 = vpop.xlane.xlu1 %1035  ;;  %v3937_v53 = vpop.eup %3936  ;;  %3952 = vrcp.f32 %v1877_v49 }
 0x24e   :  { %v6090_v8 = vpop.xlane.xlu0 %1032  ;;  %3954 = vpow2.f32 %v3454_v1  ;;  %v3939_v30 = vpop.eup %3938  ;;  %v1621_v1 = vadd.f32 %v6072_v18, %v5926_v45 }
 0x24f   :  { %2646 = vperm.xlu1 %3719, %v3925_v19   ;;  %3729 = vset.pattern.permute.xlu0 %v7110_v32  ;;  %v1194_v19 = vadd.f32 %v6072_v18, %v5886_v12  ;;  %3956 = vpow2.f32 %v3417_v31  ;;  %v3941_v9 = vpop.eup %3940  ;;  %v1169_v12 = vadd.f32 %v6072_v18, %v5978_v7  ;;  %v2260_v24 = vadd.f32 1.0, %v3939_v30 }
 0x250   :  { %2521 = vperm.xlu0 %3729, %v3929_v13   ;;  %3958 = vrcp.f32 %v2257_v58  ;;  %v3943_v13 = vpop.eup %3942  ;;  %v1201_v58 = vadd.f32 %v6072_v18, %v5987_v38  ;;  %v1171_v38 = vadd.f32 %v6072_v18, %v6011_v60 }
 0x251   :  { %v6095_v55 = vpop.xlane.xlu1 %1131  ;;  %v3449_v49 = vmul.f32 -1.442695, %v1194_v19  ;;  %3960 = vrcp.f32 %v1909_v20  ;;  %v3945_v14 = vpop.eup %3944  ;;  %v1904_v45 = vadd.f32 1.0, %v3943_v13  ;;  %v3484_v20 = vmul.f32 -1.442695, %v1621_v1 }
 0x252   :  { %v6097_v43 = vpop.xlane.xlu0 %1128  ;;  %3962 = vpow2.f32 %v3485_v46  ;;  %v3947_v7 = vpop.eup %3946  ;;  %v3426_v60 = vmul.f32 -1.442695, %v1171_v38 }
 0x253   :  { %3722 = vset.pattern.permute.xlu1 %v7113_v22  ;;  %3964 = vrcp.f32 %v1872_v27  ;;  %v1879_v30 = vadd.f32 1.0, %v3947_v7 }
 0x254   :  { %2885 = vperm.xlu1 %3722, %v3935_v47   ;;  %2681 = vperm.xlu0 %3729, %v3937_v53   ;;  %v3424_v47 = vmul.f32 -1.442695, %v1169_v12  ;;  %v3949_v53 = vpop.eup %3948  ;;  %3966 = vpow2.f32 %v3449_v49  ;;  %v3456_v12 = vmul.f32 -1.442695, %v1201_v58  ;;  %v1164_v49 = vadd.f32 %v6072_v18, %v5912_v0 }
 0x255   :  { %v6102_v36 = vpop.xlane.xlu1 %1498  ;;  %v3951_v19 = vpop.eup %3950  ;;  %3968 = vrcp.f32 %v2260_v24 }
 0x256   :  { %v6104_v57 = vpop.xlane.xlu0 %1495  ;;  %3970 = vpow2.f32 %v3424_v47  ;;  %v2259_v1 = vadd.f32 1.0, %v3951_v19  ;;  %v3419_v0 = vmul.f32 -1.442695, %v1164_v49  ;;  %v1196_v19 = vadd.f32 %v6072_v18, %v5919_v15 }
 0x257   :  { %v3953_v46 = vpop.eup %3952  ;;  %3972 = vrcp.f32 %v1904_v45  ;;  %v1203_v45 = vadd.f32 %v6072_v18, %v6023_v25  ;;  %v1173_v49 = vadd.f32 %v6072_v18, %v6047_v17 }
 0x258   :  { %3723 = vset.pattern.permute.xlu1 %v7110_v32  ;;  %3732 = vset.pattern.permute.xlu0 %v7113_v22  ;;  %v3955_v27 = vpop.eup %3954  ;;  %3974 = vpow2.f32 %v3484_v20  ;;  %v3451_v15 = vmul.f32 -1.442695, %v1196_v19 }
 0x259   :  { %v6112_v31 = vpop.xlane.xlu1 %1594  ;;  %2496 = vperm.xlu1 %3723, %v3941_v9   ;;  %2900 = vperm.xlu0 %3732, %v3945_v14   ;;  %v3957_v13 = vpop.eup %3956  ;;  %3976 = vrcp.f32 %v1879_v30  ;;  %v1911_v7 = vadd.f32 1.0, %v3955_v27  ;;  %v1166_v27 = vadd.f32 %v6072_v18, %v5947_v4  ;;  %v3458_v25 = vmul.f32 -1.442695, %v1203_v45 }
 0x25a   :  { %7122 = vst [vmem:[#allocation77_spill] sm:$0xff] %v6112_v31  ;;  %v6114_v29 = vpop.xlane.xlu0 %1591  ;;  %v3959_v14 = vpop.eup %3958  ;;  %3978 = vpow2.f32 %v3456_v12  ;;  %v1205_v45 = vadd.f32 %v6072_v18, %v6055_v42 }
 0x25b   :  { %v3961_v24 = vpop.eup %3960  ;;  %3980 = vrcp.f32 %v2259_v1  ;;  %v1623_v1 = vadd.f32 %v6072_v18, %v5963_v16 }
 0x25c   :  { %v3963_v58 = vpop.eup %3962  ;;  %3982 = vrcp.f32 %v1911_v7  ;;  %v3421_v7 = vmul.f32 -1.442695, %v1166_v27  ;;  %v3460_v42 = vmul.f32 -1.442695, %v1205_v45 }
 0x25d   :  { %v6118_v54 = vpop.xlane.xlu1 %1041  ;;  %2656 = vperm.xlu1 %3723, %v3949_v53   ;;  %3733 = vset.pattern.permute.xlu0 %v7110_v32  ;;  %v3965_v20 = vpop.eup %3964  ;;  %v2262_v31 = vadd.f32 1.0, %v3963_v58  ;;  %3984 = vpow2.f32 %v3426_v60  ;;  %v3428_v60 = vmul.f32 -1.442695, %v1173_v49  ;;  %v3486_v16 = vmul.f32 -1.442695, %v1623_v1 }
 0x25e   :  { %v6121_v9 = vpop.xlane.xlu0 %1038  ;;  %2531 = vperm.xlu0 %3733, %v3953_v46   ;;  %v1874_v46 = vadd.f32 1.0, %v3957_v13  ;;  %v3967_v30 = vpop.eup %3966  ;;  %3986 = vpow2.f32 %v3419_v0  ;;  %v1168_v1 = vadd.f32 %v6072_v18, %v5980_v3 }
 0x25f   :  { %v3969_v38 = vpop.eup %3968 }
 0x260   :  { %v3971_v4 = vpop.eup %3970  ;;  %3988 = vrcp.f32 %v1874_v46 }
 0x261   :  { %v6127_v53 = vpop.xlane.xlu1 %1137  ;;  %3726 = vset.pattern.permute.xlu1 %v7113_v22  ;;  %3990 = vrcp.f32 %v2262_v31  ;;  %v1881_v19 = vadd.f32 1.0, %v3971_v4  ;;  %v1198_v31 = vadd.f32 %v6072_v18, %v5953_v39 }
 0x262   :  { %v6130_v47 = vpop.xlane.xlu0 %1134  ;;  %2895 = vperm.xlu1 %3726, %v3959_v14   ;;  %2691 = vperm.xlu0 %3733, %v3961_v24   ;;  %v1906_v14 = vadd.f32 1.0, %v3967_v30  ;;  %v3973_v24 = vpop.eup %3972  ;;  %3992 = vpow2.f32 %v3458_v25  ;;  %v1175_v25 = vadd.f32 %v6072_v18, %v6088_v21 }
 0x263   :  { %v3975_v58 = vpop.eup %3974  ;;  %3994 = vpow2.f32 %v3451_v15  ;;  %v3453_v39 = vmul.f32 -1.442695, %v1198_v31 }
 0x264   :  { %v3977_v0 = vpop.eup %3976  ;;  %3996 = vrcp.f32 %v1906_v14  ;;  %v2261_v46 = vadd.f32 1.0, %v3975_v58  ;;  %v3430_v58 = vmul.f32 -1.442695, %v1175_v25 }
 0x265   :  { %v6138_v12 = vpop.xlane.xlu1 %1504  ;;  %3998 = vpow2.f32 %v3421_v7 }
 0x266   :  { %3727 = vset.pattern.permute.xlu1 %v7110_v32  ;;  %3736 = vset.pattern.permute.xlu0 %v7113_v22  ;;  %v6144_v13 = vpop.xlane.xlu0 %1501  ;;  %4000 = vpow2.f32 %v3428_v60  ;;  %v1207_v60 = vadd.f32 %v6072_v18, %v6095_v55 }
 0x267   :  { %2506 = vperm.xlu1 %3727, %v3965_v20   ;;  %2910 = vperm.xlu0 %3736, %v3969_v38   ;;  %v3979_v20 = vpop.eup %3978  ;;  %4002 = vrcp.f32 %v1881_v19 }
 0x268   :  { %v3981_v38 = vpop.eup %3980  ;;  %v1913_v15 = vadd.f32 1.0, %v3979_v20  ;;  %4004 = vpow2.f32 %v3486_v16  ;;  %v3423_v16 = vmul.f32 -1.442695, %v1168_v1  ;;  %v3462_v55 = vmul.f32 -1.442695, %v1207_v60 }
 0x269   :  { %v6148_v17 = vpop.xlane.xlu1 %1600  ;;  %v3983_v49 = vpop.eup %3982  ;;  %4006 = vrcp.f32 %v2261_v46  ;;  %v1200_v46 = vadd.f32 %v6072_v18, %v5989_v40 }
 0x26a   :  { %v6155_v30 = vpop.xlane.xlu0 %1597  ;;  %v3985_v4 = vpop.eup %3984  ;;  %4008 = vpow2.f32 %v3460_v42  ;;  %v1177_v42 = vadd.f32 %v6072_v18, %v6118_v54 }
 0x26b   :  { %2666 = vperm.xlu1 %3727, %v3973_v24   ;;  %3737 = vset.pattern.permute.xlu0 %v7110_v32  ;;  %v3987_v14 = vpop.eup %3986  ;;  %4010 = vrcp.f32 %v1913_v15 }
 0x26c   :  { %2541 = vperm.xlu0 %3737, %v3977_v0   ;;  %v3989_v21 = vpop.eup %3988  ;;  %v1883_v0 = vadd.f32 1.0, %v3985_v4  ;;  %v1876_v20 = vadd.f32 1.0, %v3987_v14  ;;  %4012 = vpow2.f32 %v3453_v39  ;;  %v7123_v4 = vld [vmem:[#allocation2_spill] sm:$0xff]  ;;  %v4258_v39 = vld [vmem:[%s6959_s1 + $0x8] sm:$0xff] }
 0x26d   :  { %v2442_v27 = vpop.permute.xlu1 %2441  ;;  %v3991_v45 = vpop.eup %3990  ;;  %4014 = vpow2.f32 %v3430_v58  ;;  %v3455_v58 = vmul.f32 -1.442695, %v1200_v46 }
 0x26e   :  { %v3993_v19 = vpop.eup %3992  ;;  %4016 = vrcp.f32 %v1883_v0  ;;  %v2755_v14 = vmul.f32 %v2442_v27, %v7123_v4  ;;  %v3432_v0 = vmul.f32 -1.442695, %v1177_v42  ;;  %v1209_v27 = vadd.f32 %v6072_v18, %v6127_v53 }
 0x26f   :  { %3730 = vset.pattern.permute.xlu1 %v7113_v22  ;;  %v3995_v3 = vpop.eup %3994  ;;  %v1915_v15 = vadd.f32 1.0, %v3993_v19  ;;  %4018 = vrcp.f32 %v1876_v20 }
 0x270   :  { %2905 = vperm.xlu1 %3730, %v3981_v38   ;;  %2701 = vperm.xlu0 %3737, %v3983_v49   ;;  %v3997_v38 = vpop.eup %3996  ;;  %4020 = vpow2.f32 %v3423_v16  ;;  %v4259_v16 = vld [vmem:[%s6959_s1] sm:$0xff] }
 0x271   :  { %v6162_v24 = vpop.permute.xlu1 %2596  ;;  %v6164_v7 = vpop.permute.xlu0 %2601  ;;  %4022 = vpow2.f32 %v3462_v55 }
 0x272   :  { %v3999_v49 = vpop.eup %3998  ;;  %4024 = vrcp.f32 %v1915_v15  ;;  %v1170_v15 = vadd.f32 %v6072_v18, %v6013_v35 }
 0x273   :  { %v4001_v1 = vpop.eup %4000 }
 0x274   :  { %3731 = vset.pattern.permute.xlu1 %v7110_v32  ;;  %3740 = vset.pattern.permute.xlu0 %v7113_v22 }
 0x275   :  { %v2821_v31 = vpop.permute.xlu1 %2820  ;;  %2516 = vperm.xlu1 %3731, %v3989_v21   ;;  %2920 = vperm.xlu0 %3740, %v3991_v45   ;;  %v1908_v21 = vadd.f32 1.0, %v3995_v3  ;;  %v4003_v45 = vpop.eup %4002 }
 0x276   :  { %v2826_v25 = vpop.permute.xlu0 %2825  ;;  %v4005_v54 = vpop.eup %4004  ;;  %v3138_v46 = vmul.f32 %v4259_v16, %v2821_v31 }
 0x277   :  { %v3139_v40 = vmul.f32 %v4258_v39, %v2826_v25  ;;  %v4007_v4 = vpop.eup %4006  ;;  %v1885_v25 = vadd.f32 1.0, %v4001_v1  ;;  %4026 = vrcp.f32 %v1908_v21  ;;  %v2263_v42 = vadd.f32 1.0, %v4005_v54  ;;  %v7125_v54 = vld [vmem:[#allocation6_spill] sm:$0xff] }
 0x278   :  { %v4009_v3 = vpop.eup %4008  ;;  %4028 = vpow2.f32 %v3455_v58  ;;  %v3464_v39 = vmul.f32 -1.442695, %v1209_v27 }
 0x279   :  { %v3203_v60 = vadd.f32 %v3139_v40, %v2755_v14  ;;  %2676 = vperm.xlu1 %3731, %v3997_v38   ;;  %3741 = vset.pattern.permute.xlu0 %v7110_v32  ;;  %v7124_v38 = vld [vmem:[#allocation4_spill] sm:$0xff]  ;;  %v4011_v55 = vpop.eup %4010  ;;  %v1624_v14 = vadd.f32 %v6072_v18, %v5998_v62  ;;  %4030 = vpow2.f32 %v3432_v0  ;;  %v1917_v31 = vadd.f32 1.0, %v4009_v3  ;;  %v4260_v62 = vld [vmem:[%s6959_s1 + $0x18] sm:$0xff] }
 0x27a   :  { %v2452_v19 = vpop.permute.xlu1 %2451  ;;  %2551 = vperm.xlu0 %3741, %v4003_v45   ;;  %v4013_v1 = vpop.eup %4012  ;;  %4032 = vrcp.f32 %v1885_v25  ;;  %v1202_v25 = vadd.f32 %v6072_v18, %v6025_v63 }
 0x27b   :  { %3267 = vst.msk [vmem:[%s6962_s7 + $0x8] sm:$0xff] %vm946_vm2, %v3203_v60  ;;  %v2437_v20 = vpop.permute.xlu0 %2436  ;;  %v4015_v58 = vpop.eup %4014  ;;  %v1878_v60 = vadd.f32 1.0, %v3999_v49  ;;  %v2757_v35 = vmul.f32 %v2452_v19, %v7125_v54  ;;  %4034 = vrcp.f32 %v2263_v42  ;;  %v3487_v49 = vmul.f32 -1.442695, %v1624_v14 }
 0x27c   :  { %v2754_v53 = vmul.f32 %v2437_v20, %v7124_v38  ;;  %v4017_v27 = vpop.eup %4016  ;;  %v1626_v19 = vadd.f32 %v6072_v18, %v6032_v41  ;;  %4036 = vpow2.f32 %v3464_v39  ;;  %v3457_v42 = vmul.f32 -1.442695, %v1202_v25 }
 0x27d   :  { %3734 = vset.pattern.permute.xlu1 %v7113_v22  ;;  %v4019_v20 = vpop.eup %4018  ;;  %4038 = vrcp.f32 %v1917_v31 }
 0x27e   :  { %v3202_v40 = vadd.f32 %v3138_v46, %v2754_v53  ;;  %2915 = vperm.xlu1 %3734, %v4007_v4   ;;  %2711 = vperm.xlu0 %3741, %v4011_v55   ;;  %v3425_v4 = vmul.f32 -1.442695, %v1170_v15  ;;  %v4021_v16 = vpop.eup %4020  ;;  %v1887_v46 = vadd.f32 1.0, %v4015_v58  ;;  %4040 = vrcp.f32 %v1878_v60 }
 0x27f   :  { %v2836_v21 = vpop.permute.xlu1 %2835  ;;  %v6194_v45 = vpop.permute.xlu0 %2611  ;;  %v1910_v55 = vadd.f32 1.0, %v4013_v1  ;;  %v1172_v15 = vadd.f32 %v6072_v18, %v6049_v26  ;;  %v3489_v39 = vmul.f32 -1.442695, %v1626_v19  ;;  %v1880_v58 = vadd.f32 1.0, %v4021_v16 }
 0x280   :  { %3266 = vst.msk [vmem:[%s6962_s7] sm:$0xff] %vm946_vm2, %v3202_v40  ;;  %v3141_v0 = vmul.f32 %v4260_v62, %v2836_v21  ;;  %v4023_v53 = vpop.eup %4022  ;;  %4042 = vpow2.f32 %v3425_v4  ;;  %v1628_v40 = vadd.f32 %v6072_v18, %v6067_v11  ;;  %v1204_v62 = vadd.f32 %v6072_v18, %v6058_v10 }
 0x281   :  { %v4025_v41 = vpop.eup %4024  ;;  %4044 = vpow2.f32 %v3487_v49  ;;  %v1919_v31 = vadd.f32 1.0, %v4023_v53  ;;  %v3427_v26 = vmul.f32 -1.442695, %v1172_v15  ;;  %v1174_v16 = vadd.f32 %v6072_v18, %v6090_v8  ;;  %v4261_v15 = vld [vmem:[%s6959_s1 + $0x10] sm:$0xff] }
 0x282   :  { %v3205_v3 = vadd.f32 %v3141_v0, %v2757_v35  ;;  %3735 = vset.pattern.permute.xlu1 %v7110_v32  ;;  %2561 = vperm.xlu0 %3741, %v4017_v27   ;;  %v4027_v14 = vpop.eup %4026  ;;  %4046 = vrcp.f32 %v1887_v46  ;;  %v3491_v11 = vmul.f32 -1.442695, %v1628_v40  ;;  %v1630_v0 = vadd.f32 %v6072_v18, %v6104_v57 }
 0x283   :  { %2526 = vperm.xlu1 %3735, %v4019_v20   ;;  %v6209_v38 = vpop.permute.xlu0 %2621  ;;  %v4029_v1 = vpop.eup %4028  ;;  %4048 = vrcp.f32 %v1910_v55  ;;  %v7126_v20 = vld [vmem:[#allocation45_spill] sm:$0xff]  ;;  %v3459_v10 = vmul.f32 -1.442695, %v1204_v62  ;;  %v1632_v8 = vadd.f32 %v6072_v18, %v6144_v13 }
 0x284   :  { %3269 = vst.msk [vmem:[%s6962_s7 + $0x18] sm:$0xff] %vm946_vm2, %v3205_v3  ;;  %v2447_v63 = vpop.permute.xlu1 %2446  ;;  %v4031_v21 = vpop.eup %4030  ;;  %4050 = vpow2.f32 %v3457_v42  ;;  %v1635_v49 = vadd.f32 %v6072_v18, %v7126_v20  ;;  %v1912_v19 = vadd.f32 1.0, %v4029_v1  ;;  %v3493_v55 = vmul.f32 -1.442695, %v1630_v0  ;;  %v7128_v0 = vld [vmem:[#allocation47_spill] sm:$0xff] }
 0x285   :  { %v4033_v35 = vpop.eup %4032  ;;  %4052 = vpow2.f32 %v3489_v39  ;;  %v1889_v4 = vadd.f32 1.0, %v4031_v21 }
 0x286   :  { %2721 = vperm.xlu0 %3741, %v4025_v41   ;;  %v4035_v27 = vpop.eup %4034  ;;  %4054 = vrcp.f32 %v1919_v31  ;;  %v7127_v41 = vld [vmem:[#allocation9_spill] sm:$0xff]  ;;  %v3498_v31 = vmul.f32 -1.442695, %v1635_v49 }
 0x287   :  { %2686 = vperm.xlu1 %3735, %v4027_v14   ;;  %v4037_v25 = vpop.eup %4036  ;;  %4056 = vrcp.f32 %v1880_v58  ;;  %v2756_v42 = vmul.f32 %v2447_v63, %v7127_v41  ;;  %v3429_v63 = vmul.f32 -1.442695, %v1174_v16 }
 0x288   :  { %v6219_v60 = vpop.permute.xlu1 %2606  ;;  %v6221_v54 = vpop.permute.xlu0 %2840  ;;  %4058 = vpow2.f32 %v3427_v26  ;;  %v1921_v40 = vadd.f32 1.0, %v4037_v25 }
 0x289   :  { %v4039_v3 = vpop.eup %4038  ;;  %4060 = vpow2.f32 %v3491_v11 }
 0x28a   :  { %2571 = vperm.xlu0 %3741, %v4033_v35   ;;  %v4041_v53 = vpop.eup %4040  ;;  %4062 = vrcp.f32 %v1889_v4  ;;  %v1206_v35 = vadd.f32 %v6072_v18, %v6097_v43  ;;  %v3495_v4 = vmul.f32 -1.442695, %v1632_v8 }
 0x28b   :  { %3738 = vset.pattern.permute.xlu1 %v7113_v22  ;;  %v4043_v39 = vpop.eup %4042  ;;  %4064 = vrcp.f32 %v1912_v19  ;;  %v1176_v19 = vadd.f32 %v6072_v18, %v6121_v9  ;;  %v4262_v9 = vld [vmem:[%s6959_s1 + $0x28] sm:$0xff] }
 0x28c   :  { %2925 = vperm.xlu1 %3738, %v4035_v27   ;;  %v4045_v1 = vpop.eup %4044  ;;  %4066 = vpow2.f32 %v3459_v10  ;;  %v1882_v62 = vadd.f32 1.0, %v4043_v39  ;;  %v1634_v27 = vadd.f32 %v6072_v18, %v7128_v0  ;;  %v3461_v49 = vmul.f32 -1.442695, %v1206_v35  ;;  %v7130_v39 = vld [vmem:[#allocation10_spill] sm:$0xff] }
 0x28d   :  { %v2831_v57 = vpop.permute.xlu1 %2830  ;;  %v6232_v46 = vpop.permute.xlu0 %2631  ;;  %4068 = vpow2.f32 %v3493_v55  ;;  %v2264_v25 = vadd.f32 1.0, %v4045_v1 }
 0x28e   :  { %v3140_v14 = vmul.f32 %v4261_v15, %v2831_v57  ;;  %2731 = vperm.xlu0 %3741, %v4039_v3   ;;  %v4047_v58 = vpop.eup %4046  ;;  %4070 = vrcp.f32 %v1921_v40  ;;  %v3497_v57 = vmul.f32 -1.442695, %v1634_v27 }
 0x28f   :  { %v4049_v26 = vpop.eup %4048  ;;  %4072 = vpow2.f32 %v3498_v31  ;;  %v3431_v31 = vmul.f32 -1.442695, %v1176_v19 }
 0x290   :  { %v3204_v21 = vadd.f32 %v3140_v14, %v2756_v42  ;;  %3739 = vset.pattern.permute.xlu1 %v7110_v32  ;;  %v4051_v32 = vpop.eup %4050  ;;  %4074 = vpow2.f32 %v3429_v63 }
 0x291   :  { %2536 = vperm.xlu1 %3739, %v4041_v53   ;;  %v4053_v43 = vpop.eup %4052  ;;  %4076 = vrcp.f32 %v1882_v62  ;;  %v1914_v10 = vadd.f32 1.0, %v4051_v32  ;;  %v7129_v53 = vld [vmem:[#allocation53_spill] sm:$0xff] }
 0x292   :  { %3268 = vst.msk [vmem:[%s6962_s7 + $0x10] sm:$0xff] %vm946_vm2, %v3204_v21  ;;  %v2462_v13 = vpop.permute.xlu1 %2461  ;;  %2581 = vperm.xlu0 %3741, %v4047_v58   ;;  %v6247_v11 = vpop.permute.xlu0 %2850  ;;  %v1636_v55 = vadd.f32 %v6072_v18, %v7129_v53  ;;  %4078 = vpow2.f32 %v3495_v4  ;;  %v2266_v14 = vadd.f32 1.0, %v4053_v43  ;;  %v1208_v21 = vadd.f32 %v6072_v18, %v6130_v47 }
 0x293   :  { %v4055_v20 = vpop.eup %4054  ;;  %4080 = vrcp.f32 %v2264_v25  ;;  %v2759_v40 = vmul.f32 %v2462_v13, %v7130_v39  ;;  %v7131_v13 = vld [vmem:[#allocation59_spill] sm:$0xff]  ;;  %v1625_v4 = vadd.f32 %v6072_v18, %v5995_v23 }
 0x294   :  { %v4057_v3 = vpop.eup %4056  ;;  %4082 = vpow2.f32 %v3461_v49  ;;  %v3499_v62 = vmul.f32 -1.442695, %v1636_v55  ;;  %v1638_v32 = vadd.f32 %v6072_v18, %v7131_v13  ;;  %v4263_v49 = vld [vmem:[%s6959_s1 + $0x20] sm:$0xff] }
 0x295   :  { %2696 = vperm.xlu1 %3739, %v4049_v26   ;;  %v4059_v16 = vpop.eup %4058  ;;  %4084 = vrcp.f32 %v1914_v10  ;;  %v3142_v19 = vmul.f32 %v4263_v49, %v6221_v54  ;;  %v7133_v55 = vld [vmem:[#allocation66_spill] sm:$0xff] }
 0x296   :  { %2741 = vperm.xlu0 %3741, %v4055_v20   ;;  %v4061_v15 = vpop.eup %4060  ;;  %v1884_v63 = vadd.f32 1.0, %v4059_v16  ;;  %4086 = vpow2.f32 %v3497_v57  ;;  %v3463_v20 = vmul.f32 -1.442695, %v1208_v21  ;;  %v3501_v53 = vmul.f32 -1.442695, %v1638_v32 }
 0x297   :  { %v2846_v41 = vpop.permute.xlu1 %2845  ;;  %v6255_v42 = vpop.permute.xlu0 %2481  ;;  %4088 = vrcp.f32 %v2266_v14  ;;  %v2268_v47 = vadd.f32 1.0, %v4061_v15 }
 0x298   :  { %v3143_v8 = vmul.f32 %v4262_v9, %v2846_v41  ;;  %v4063_v1 = vpop.eup %4062  ;;  %4090 = vpow2.f32 %v3431_v31  ;;  %v1640_v41 = vadd.f32 %v6072_v18, %v7133_v55 }
 0x299   :  { %2546 = vperm.xlu1 %3739, %v4057_v3   ;;  %v4065_v58 = vpop.eup %4064  ;;  %v7132_v3 = vld [vmem:[#allocation11_spill] sm:$0xff]  ;;  %4092 = vrcp.f32 %v1884_v63 }
 0x29a   :  { %v3207_v35 = vadd.f32 %v3143_v8, %v2759_v40  ;;  %2591 = vperm.xlu0 %3741, %v4063_v1   ;;  %v4067_v26 = vpop.eup %4066  ;;  %4094 = vpow2.f32 %v3499_v62  ;;  %v3488_v8 = vmul.f32 -1.442695, %v1625_v4  ;;  %v1627_v1 = vadd.f32 %v6072_v18, %v6030_v44 }
 0x29b   :  { %v6265_v0 = vpop.permute.xlu0 %2641  ;;  %v4069_v27 = vpop.eup %4068  ;;  %v1916_v16 = vadd.f32 1.0, %v4067_v26  ;;  %4096 = vrcp.f32 %v2268_v47  ;;  %v3503_v63 = vmul.f32 -1.442695, %v1640_v41  ;;  %v1629_v4 = vadd.f32 %v6072_v18, %v6064_v48 }
 0x29c   :  { %3271 = vst.msk [vmem:[%s6962_s7 + $0x28] sm:$0xff] %vm946_vm2, %v3207_v35  ;;  %v2457_v43 = vpop.permute.xlu1 %2456  ;;  %v4071_v25 = vpop.eup %4070  ;;  %v2270_v39 = vadd.f32 1.0, %v4069_v27  ;;  %4098 = vpow2.f32 %v3463_v20  ;;  %v7134_v35 = vld [vmem:[#allocation74_spill] sm:$0xff]  ;;  %v3490_v27 = vmul.f32 -1.442695, %v1627_v1  ;;  %v1631_v48 = vadd.f32 %v6072_v18, %v6102_v36 }
 0x29d   :  { %v2758_v10 = vmul.f32 %v2457_v43, %v7132_v3  ;;  %2706 = vperm.xlu1 %3739, %v4065_v58   ;;  %v6278_v23 = vpop.eup %4072  ;;  %4100 = vrcp.f32 %v1916_v16  ;;  %v1642_v26 = vadd.f32 %v6072_v18, %v7134_v35  ;;  %v1646_v36 = vadd.f32 %v6072_v18, %v5838_v34 }
 0x29e   :  { %2751 = vperm.xlu0 %3741, %v4071_v25   ;;  %v4075_v57 = vpop.eup %4074  ;;  %4102 = vpow2.f32 %v3501_v53  ;;  %v1648_v35 = vadd.f32 %v6072_v18, %v5870_v56 }
 0x29f   :  { %v3206_v15 = vadd.f32 %v3142_v19, %v2758_v10  ;;  %v4077_v14 = vpop.eup %4076  ;;  %v1886_v21 = vadd.f32 1.0, %v4075_v57  ;;  %4104 = vrcp.f32 %v2270_v39  ;;  %v3505_v49 = vmul.f32 -1.442695, %v1642_v26 }
 0x2a0   :  { %v6282_v40 = vpop.permute.xlu1 %2616  ;;  %v6284_v54 = vpop.permute.xlu0 %2860  ;;  %4106 = vpow2.f32 %v3488_v8  ;;  %v1644_v19 = vadd.f32 %v6072_v18, %v5786_v59  ;;  %v3492_v57 = vmul.f32 -1.442695, %v1629_v4  ;;  %v4264_v59 = vld [vmem:[%s6959_s1 + $0x38] sm:$0xff]  ;;  %v3494_v26 = vmul.f32 -1.442695, %v1631_v48  ;;  %v4265_v4 = vld [vmem:[%s6959_s1 + $0x30] sm:$0xff] }
 0x2a1   :  { %v4079_v9 = vpop.eup %4078  ;;  %3270 = vst.msk [vmem:[%s6962_s7 + $0x20] sm:$0xff] %vm946_vm2, %v3206_v15  ;;  %2556 = vperm.xlu1 %3739, %v4077_v14   ;;  %4108 = vrcp.f32 %v1886_v21  ;;  %v7135_v14 = vld [vmem:[#allocation14_spill] sm:$0xff]  ;;  %v3509_v56 = vmul.f32 -1.442695, %v1646_v36 }
 0x2a2   :  { %v4081_v31 = vpop.eup %4080  ;;  %3742 = vset.pattern.permute.xlu0 %v7113_v22  ;;  %v2272_v62 = vadd.f32 1.0, %v4079_v9  ;;  %4110 = vpow2.f32 %v3503_v63  ;;  %v3507_v1 = vmul.f32 -1.442695, %v1644_v19 }
 0x2a3   :  { %v4083_v58 = vpop.eup %4082  ;;  %2930 = vperm.xlu0 %3742, %v4081_v31  }
 0x2a4   :  { %v4085_v44 = vpop.eup %4084  ;;  %v2472_v13 = vpop.permute.xlu1 %2471  ;;  %v1918_v25 = vadd.f32 1.0, %v4083_v58  ;;  %4112 = vrcp.f32 %v2272_v62 }
 0x2a5   :  { %v4087_v32 = vpop.eup %4086  ;;  %2716 = vperm.xlu1 %3739, %v4085_v44   ;;  %v6297_v47 = vpop.permute.xlu0 %2491  ;;  %4114 = vpow2.f32 %v3490_v27  ;;  %v2761_v39 = vmul.f32 %v2472_v13, %v7135_v14  ;;  %v1633_v13 = vadd.f32 %v6072_v18, %v6138_v12 }
 0x2a6   :  { %v4089_v43 = vpop.eup %4088  ;;  %v2274_v10 = vadd.f32 1.0, %v4087_v32  ;;  %4116 = vrcp.f32 %v1918_v25  ;;  %v7136_v25 = vld [vmem:[#allocation15_spill] sm:$0xff] }
 0x2a7   :  { %v4091_v20 = vpop.eup %4090  ;;  %2940 = vperm.xlu0 %3742, %v4089_v43   ;;  %4118 = vpow2.f32 %v3505_v49  ;;  %v3144_v43 = vmul.f32 %v4265_v4, %v6247_v11  ;;  %v3496_v11 = vmul.f32 -1.442695, %v1633_v13 }
 0x2a8   :  { %v4093_v3 = vpop.eup %4092  ;;  %v1888_v15 = vadd.f32 1.0, %v4091_v20  ;;  %4120 = vrcp.f32 %v2274_v10 }
 0x2a9   :  { %v4095_v16 = vpop.eup %4094  ;;  %v2856_v53 = vpop.permute.xlu1 %2855  ;;  %2566 = vperm.xlu1 %3739, %v4093_v3   ;;  %4122 = vpow2.f32 %v3492_v57  ;;  %v7137_v3 = vld [vmem:[#allocation51_spill] sm:$0xff] }
 0x2aa   :  { %v6303_v55 = vpop.permute.xlu0 %2651  ;;  %v4097_v41 = vpop.eup %4096  ;;  %v3145_v9 = vmul.f32 %v4264_v59, %v2856_v53  ;;  %v2276_v21 = vadd.f32 1.0, %v4095_v16  ;;  %4124 = vrcp.f32 %v1888_v15  ;;  %v1637_v10 = vadd.f32 %v6072_v18, %v7137_v3 }
 0x2ab   :  { %v4099_v8 = vpop.eup %4098  ;;  %2950 = vperm.xlu0 %3742, %v4097_v41   ;;  %4126 = vpow2.f32 %v3507_v1  ;;  %v3511_v16 = vmul.f32 -1.442695, %v1648_v35  ;;  %v1650_v53 = vadd.f32 %v6072_v18, %v5902_v33  ;;  %v7138_v1 = vld [vmem:[#allocation58_spill] sm:$0xff] }
 0x2ac   :  { %v4101_v31 = vpop.eup %4100  ;;  %v3209_v58 = vadd.f32 %v3145_v9, %v2761_v39  ;;  %v1920_v62 = vadd.f32 1.0, %v4099_v8  ;;  %4128 = vrcp.f32 %v2276_v21  ;;  %v3500_v33 = vmul.f32 -1.442695, %v1637_v10 }
 0x2ad   :  { %v4103_v63 = vpop.eup %4102  ;;  %2726 = vperm.xlu1 %3739, %v4101_v31   ;;  %4130 = vpow2.f32 %v3494_v26  ;;  %v1639_v36 = vadd.f32 %v6072_v18, %v7138_v1  ;;  %v3513_v21 = vmul.f32 -1.442695, %v1650_v53 }
 0x2ae   :  { %v4105_v44 = vpop.eup %4104  ;;  %3273 = vst.msk [vmem:[%s6962_s7 + $0x38] sm:$0xff] %vm946_vm2, %v3209_v58  ;;  %v2467_v34 = vpop.permute.xlu1 %2466  ;;  %v2278_v49 = vadd.f32 1.0, %v4103_v63  ;;  %4132 = vrcp.f32 %v1920_v62  ;;  %v6343_v58 = vld [vmem:[%s6961_s6] ss:$0 sm:$0xff] }
 0x2af   :  { %v6319_v32 = vpop.permute.xlu0 %2870  ;;  %v4107_v27 = vpop.eup %4106  ;;  %v2760_v20 = vmul.f32 %v2467_v34, %v7136_v25  ;;  %2960 = vperm.xlu0 %3742, %v4105_v44   ;;  %4134 = vpow2.f32 %v3509_v56  ;;  %v1652_v63 = vadd.f32 %v6343_v58, %v5937_v37  ;;  %v7139_v34 = vld [vmem:[#allocation18_spill] sm:$0xff]  ;;  %v4267_v56 = vld [vmem:[%s6959_s1 + $0x48] sm:$0xff]  ;;  %v7140_v25 = vld [vmem:[#allocation65_spill] sm:$0xff]  ;;  %v1656_v1 = vadd.f32 %v6343_v58, %v6007_v5 }
 0x2b0   :  { %v4109_v12 = vpop.eup %4108  ;;  %v2265_v14 = vadd.f32 1.0, %v4107_v27  ;;  %4136 = vrcp.f32 %v2278_v49  ;;  %v2763_v27 = vmul.f32 %v6255_v42, %v7139_v34 }
 0x2b1   :  { %v4111_v19 = vpop.eup %4110  ;;  %v3208_v57 = vadd.f32 %v3144_v43, %v2760_v20  ;;  %2576 = vperm.xlu1 %3739, %v4109_v12   ;;  %4138 = vpow2.f32 %v3511_v16  ;;  %v3502_v43 = vmul.f32 -1.442695, %v1639_v36  ;;  %v1641_v20 = vadd.f32 %v6343_v58, %v7140_v25 }
 0x2b2   :  { %v4113_v48 = vpop.eup %4112  ;;  %v6330_v41 = vpop.permute.xlu1 %2626  ;;  %v2280_v9 = vadd.f32 1.0, %v4111_v19  ;;  %4140 = vpow2.f32 %v3496_v11  ;;  %v3515_v49 = vmul.f32 -1.442695, %v1652_v63  ;;  %v1654_v19 = vadd.f32 %v6343_v58, %v5973_v2  ;;  %v4268_v2 = vld [vmem:[%s6959_s1 + $0x40] sm:$0xff] }
 0x2b3   :  { %v4115_v15 = vpop.eup %4114  ;;  %3272 = vst.msk [vmem:[%s6962_s7 + $0x30] sm:$0xff] %vm946_vm2, %v3208_v57  ;;  %2970 = vperm.xlu0 %3742, %v4113_v48   ;;  %v6336_v39 = vpop.permute.xlu0 %2501  ;;  %4142 = vrcp.f32 %v2265_v14  ;;  %v3146_v14 = vmul.f32 %v4268_v2, %v6284_v54 }
 0x2b4   :  { %v4117_v59 = vpop.eup %4116  ;;  %v2267_v26 = vadd.f32 1.0, %v4115_v15  ;;  %4144 = vrcp.f32 %v2280_v9  ;;  %v3504_v15 = vmul.f32 -1.442695, %v1641_v20 }
 0x2b5   :  { %v4119_v8 = vpop.eup %4118  ;;  %2736 = vperm.xlu1 %3739, %v4117_v59   ;;  %4146 = vpow2.f32 %v3500_v33  ;;  %v7141_v59 = vld [vmem:[#allocation19_spill] sm:$0xff]  ;;  %v3517_v33 = vmul.f32 -1.442695, %v1654_v19 }
 0x2b6   :  { %v4121_v31 = vpop.eup %4120  ;;  %v2282_v13 = vadd.f32 1.0, %v4119_v8  ;;  %4148 = vpow2.f32 %v3513_v21 }
 0x2b7   :  { %v4123_v35 = vpop.eup %4122  ;;  %v2866_v44 = vpop.permute.xlu1 %2865  ;;  %2980 = vperm.xlu0 %3742, %v4121_v31   ;;  %4150 = vrcp.f32 %v2267_v26 }
 0x2b8   :  { %v6347_v62 = vpop.permute.xlu0 %2661  ;;  %v4125_v18 = vpop.eup %4124  ;;  %v3147_v4 = vmul.f32 %v4267_v56, %v2866_v44  ;;  %v2269_v10 = vadd.f32 1.0, %v4123_v35  ;;  %4152 = vrcp.f32 %v2282_v13  ;;  %v2275_v44 = vadd.f32 1.0, %v6278_v23 }
 0x2b9   :  { %v4127_v37 = vpop.eup %4126  ;;  %2586 = vperm.xlu1 %3739, %v4125_v18   ;;  %4154 = vpow2.f32 %v3502_v43  ;;  %v7142_v18 = vld [vmem:[#allocation73_spill] sm:$0xff]  ;;  %v1658_v56 = vadd.f32 %v6343_v58, %v6039_v52 }
 0x2ba   :  { %v4129_v12 = vpop.eup %4128  ;;  %v3211_v3 = vadd.f32 %v3147_v4, %v2763_v27  ;;  %v2284_v57 = vadd.f32 1.0, %v4127_v37  ;;  %4156 = vpow2.f32 %v3515_v49  ;;  %v1643_v13 = vadd.f32 %v6343_v58, %v7142_v18 }
 0x2bb   :  { %v4131_v42 = vpop.eup %4130  ;;  %2990 = vperm.xlu0 %3742, %v4129_v12   ;;  %4158 = vrcp.f32 %v2269_v10  ;;  %v3519_v27 = vmul.f32 -1.442695, %v1656_v1  ;;  %v3521_v52 = vmul.f32 -1.442695, %v1658_v56  ;;  %v4269_v10 = vld [vmem:[%s6959_s1 + $0x58] sm:$0xff] }
 0x2bc   :  { %v4133_v16 = vpop.eup %4132  ;;  %3275 = vst.msk [vmem:[%s6962_s7 + $0x48] sm:$0xff] %vm946_vm2, %v3211_v3  ;;  %v2477_v48 = vpop.permute.xlu1 %2476  ;;  %v2271_v31 = vadd.f32 1.0, %v4131_v42  ;;  %4160 = vrcp.f32 %v2284_v57  ;;  %v3506_v20 = vmul.f32 -1.442695, %v1643_v13  ;;  %v7143_v3 = vld [vmem:[#allocation22_spill] sm:$0xff] }
 0x2bd   :  { %v6362_v53 = vpop.permute.xlu0 %2880  ;;  %v4135_v11 = vpop.eup %4134  ;;  %v2762_v9 = vmul.f32 %v2477_v48, %v7141_v59  ;;  %2746 = vperm.xlu1 %3739, %v4133_v16   ;;  %4162 = vpow2.f32 %v3504_v15  ;;  %v2765_v42 = vmul.f32 %v6297_v47, %v7143_v3  ;;  %v1660_v48 = vadd.f32 %v6343_v58, %v6078_v28 }
 0x2be   :  { %v4137_v8 = vpop.eup %4136  ;;  %v2286_v35 = vadd.f32 1.0, %v4135_v11  ;;  %4164 = vpow2.f32 %v3517_v33 }
 0x2bf   :  { %v4139_v36 = vpop.eup %4138  ;;  %v3210_v21 = vadd.f32 %v3146_v14, %v2762_v9  ;;  %3000 = vperm.xlu0 %3742, %v4137_v8   ;;  %4166 = vrcp.f32 %v2271_v31  ;;  %v1647_v9 = vadd.f32 %v6343_v58, %v5836_v6  ;;  %v3523_v1 = vmul.f32 -1.442695, %v1660_v48  ;;  %v4270_v31 = vld [vmem:[%s6959_s1 + $0x50] sm:$0xff] }
 0x2c0   :  { %v4141_v63 = vpop.eup %4140  ;;  %v6371_v26 = vpop.permute.xlu1 %2636  ;;  %4168 = vrcp.f32 %v2286_v35  ;;  %v2288_v43 = vadd.f32 1.0, %v4139_v36  ;;  %v1662_v36 = vadd.f32 %v6343_v58, %v6114_v29  ;;  %v3148_v6 = vmul.f32 %v4270_v31, %v6319_v32  ;;  %v7147_v31 = vld [vmem:[#allocation60_spill] sm:$0xff] }
 0x2c1   :  { %v4143_v54 = vpop.eup %4142  ;;  %3274 = vst.msk [vmem:[%s6962_s7 + $0x40] sm:$0xff] %vm946_vm2, %v3210_v21  ;;  %3743 = vset.pattern.permute.xlu1 %v7113_v22  ;;  %v6381_v5 = vpop.permute.xlu0 %2511  ;;  %v2273_v4 = vadd.f32 1.0, %v4141_v63  ;;  %4170 = vrcp.f32 %v2275_v44  ;;  %v1645_v22 = vadd.f32 %v6343_v58, %v5784_v51  ;;  %v7144_v21 = vld [vmem:[#allocation23_spill] sm:$0xff]  ;;  %v1649_v29 = vadd.f32 %v6343_v58, %v5868_v61 }
 0x2c2   :  { %v4145_v34 = vpop.eup %4144  ;;  %2935 = vperm.xlu1 %3743, %v4143_v54   ;;  %4172 = vpow2.f32 %v3519_v27  ;;  %v3510_v27 = vmul.f32 -1.442695, %v1647_v9 }
 0x2c3   :  { %v4147_v23 = vpop.eup %4146  ;;  %3010 = vperm.xlu0 %3742, %v4145_v34   ;;  %4174 = vrcp.f32 %v2273_v4  ;;  %v3508_v59 = vmul.f32 -1.442695, %v1645_v22  ;;  %v1664_v4 = vadd.f32 %v6343_v58, %v6155_v30  ;;  %v1651_v30 = vadd.f32 %v6343_v58, %v5900_v50 }
 0x2c4   :  { %v4149_v37 = vpop.eup %4148  ;;  %4176 = vrcp.f32 %v2288_v43  ;;  %v2277_v14 = vadd.f32 1.0, %v4147_v23  ;;  %v3525_v23 = vmul.f32 -1.442695, %v1662_v36 }
 0x2c5   :  { %v4151_v25 = vpop.eup %4150  ;;  %v2876_v12 = vpop.permute.xlu1 %2875  ;;  %v2290_v11 = vadd.f32 1.0, %v4149_v37  ;;  %4178 = vpow2.f32 %v3506_v20 }
 0x2c6   :  { %v6387_v49 = vpop.permute.xlu0 %2671  ;;  %v4153_v19 = vpop.eup %4152  ;;  %v3149_v16 = vmul.f32 %v4269_v10, %v2876_v12  ;;  %2945 = vperm.xlu1 %3743, %v4151_v25   ;;  %4180 = vpow2.f32 %v3521_v52  ;;  %v3512_v12 = vmul.f32 -1.442695, %v1649_v29  ;;  %v3527_v52 = vmul.f32 -1.442695, %v1664_v4 }
 0x2c7   :  { %v4155_v57 = vpop.eup %4154  ;;  %3020 = vperm.xlu0 %3742, %v4153_v19   ;;  %4182 = vrcp.f32 %v2290_v11 }
 0x2c8   :  { %v4157_v51 = vpop.eup %4156  ;;  %v3213_v15 = vadd.f32 %v3149_v16, %v2765_v42  ;;  %4184 = vrcp.f32 %v2277_v14  ;;  %v2279_v18 = vadd.f32 1.0, %v4155_v57  ;;  %v7145_v57 = vld [vmem:[#allocation26_spill] sm:$0xff] }
 0x2c9   :  { %v4159_v2 = vpop.eup %4158  ;;  %v2292_v54 = vadd.f32 1.0, %v4157_v51  ;;  %4186 = vpow2.f32 %v3508_v59  ;;  %v2767_v48 = vmul.f32 %v6336_v39, %v7145_v57  ;;  %v4271_v51 = vld [vmem:[%s6959_s1 + $0x68] sm:$0xff] }
 0x2ca   :  { %v4161_v47 = vpop.eup %4160  ;;  %3277 = vst.msk [vmem:[%s6962_s7 + $0x58] sm:$0xff] %vm946_vm2, %v3213_v15  ;;  %v2487_v28 = vpop.permute.xlu1 %2486  ;;  %2955 = vperm.xlu1 %3743, %v4159_v2   ;;  %4188 = vpow2.f32 %v3523_v1  ;;  %v3514_v15 = vmul.f32 -1.442695, %v1651_v30  ;;  %v7146_v2 = vld [vmem:[#allocation81_spill] sm:$0xff] }
 0x2cb   :  { %v6402_v8 = vpop.permute.xlu0 %2890  ;;  %v4163_v33 = vpop.eup %4162  ;;  %v2764_v63 = vmul.f32 %v2487_v28, %v7144_v21  ;;  %3030 = vperm.xlu0 %3742, %v4161_v47   ;;  %4190 = vrcp.f32 %v2292_v54  ;;  %v1653_v14 = vadd.f32 %v6343_v58, %v7146_v2  ;;  %v4272_v21 = vld [vmem:[%s6959_s1 + $0x60] sm:$0xff] }
 0x2cc   :  { %v4165_v35 = vpop.eup %4164  ;;  %4192 = vrcp.f32 %v2279_v18  ;;  %v2281_v20 = vadd.f32 1.0, %v4163_v33 }
 0x2cd   :  { %v4167_v44 = vpop.eup %4166  ;;  %v3212_v13 = vadd.f32 %v3148_v6, %v2764_v63  ;;  %v2294_v61 = vadd.f32 1.0, %v4165_v35  ;;  %4194 = vpow2.f32 %v3510_v27  ;;  %v1655_v6 = vadd.f32 %v6343_v58, %v7147_v31  ;;  %v7148_v35 = vld [vmem:[#allocation27_spill] sm:$0xff] }
 0x2ce   :  { %v4169_v34 = vpop.eup %4168  ;;  %v6413_v56 = vpop.permute.xlu1 %2646  ;;  %2965 = vperm.xlu1 %3743, %v4167_v44   ;;  %4196 = vpow2.f32 %v3525_v23  ;;  %v3150_v63 = vmul.f32 %v4272_v21, %v6362_v53  ;;  %v3516_v18 = vmul.f32 -1.442695, %v1653_v14 }
 0x2cf   :  { %v4171_v32 = vpop.eup %4170  ;;  %3276 = vst.msk [vmem:[%s6962_s7 + $0x50] sm:$0xff] %vm946_vm2, %v3212_v13  ;;  %3040 = vperm.xlu0 %3742, %v4169_v34   ;;  %v6421_v37 = vpop.permute.xlu0 %2521  ;;  %4198 = vrcp.f32 %v2294_v61 }
 0x2d0   :  { %v4173_v43 = vpop.eup %4172  ;;  %4200 = vrcp.f32 %v2281_v20 }
 0x2d1   :  { %v4175_v25 = vpop.eup %4174  ;;  %v2296_v16 = vadd.f32 1.0, %v4173_v43  ;;  %4202 = vpow2.f32 %v3512_v12  ;;  %v3518_v43 = vmul.f32 -1.442695, %v1655_v6 }
 0x2d2   :  { %v4177_v22 = vpop.eup %4176  ;;  %2975 = vperm.xlu1 %3743, %v4175_v25   ;;  %4204 = vpow2.f32 %v3527_v52  ;;  %v7149_v25 = vld [vmem:[#allocation67_spill] sm:$0xff] }
 0x2d3   :  { %v4179_v19 = vpop.eup %4178  ;;  %v2886_v3 = vpop.permute.xlu1 %2885  ;;  %3050 = vperm.xlu0 %3742, %v4177_v22   ;;  %4206 = vrcp.f32 %v2296_v16  ;;  %v1657_v20 = vadd.f32 %v6343_v58, %v7149_v25 }
 0x2d4   :  { %v6425_v42 = vpop.permute.xlu0 %2681  ;;  %v4181_v10 = vpop.eup %4180  ;;  %v3151_v11 = vmul.f32 %v4271_v51, %v2886_v3  ;;  %v2283_v9 = vadd.f32 1.0, %v4179_v19  ;;  %4208 = vpow2.f32 %v3514_v15  ;;  %v4273_v15 = vld [vmem:[%s6959_s1 + $0x78] sm:$0xff] }
 0x2d5   :  { %v4183_v50 = vpop.eup %4182  ;;  %v2298_v39 = vadd.f32 1.0, %v4181_v10  ;;  %v3520_v57 = vmul.f32 -1.442695, %v1657_v20 }
 0x2d6   :  { %v3215_v47 = vadd.f32 %v3151_v11, %v2767_v48  ;;  %2985 = vperm.xlu1 %3743, %v4171_v32   ;;  %v4185_v59 = vpop.eup %4184  ;;  %4210 = vrcp.f32 %v2283_v9  ;;  %v7150_v48 = vld [vmem:[#allocation68_spill] sm:$0xff]  ;;  %v7151_v11 = vld [vmem:[#allocation30_spill] sm:$0xff] }
 0x2d7   :  { %3060 = vperm.xlu0 %3742, %v4183_v50   ;;  %v4187_v28 = vpop.eup %4186  ;;  %4212 = vrcp.f32 %v2298_v39  ;;  %v1659_v51 = vadd.f32 %v6343_v58, %v7150_v48  ;;  %v2769_v50 = vmul.f32 %v6381_v5, %v7151_v11 }
 0x2d8   :  { %3279 = vst.msk [vmem:[%s6962_s7 + $0x68] sm:$0xff] %vm946_vm2, %v3215_v47  ;;  %v2497_v33 = vpop.permute.xlu1 %2496  ;;  %v6438_v1 = vpop.permute.xlu0 %2900  ;;  %v2285_v34 = vadd.f32 1.0, %v4187_v28  ;;  %4214 = vpow2.f32 %v3516_v18 }
 0x2d9   :  { %v4189_v36 = vpop.eup %4188  ;;  %v2766_v54 = vmul.f32 %v2497_v33, %v7148_v35  ;;  %v3522_v33 = vmul.f32 -1.442695, %v1659_v51  ;;  %v4275_v51 = vld [vmem:[%s6959_s1 + $0x88] sm:$0xff] }
 0x2da   :  { %v4191_v44 = vpop.eup %4190  ;;  %2995 = vperm.xlu1 %3743, %v4185_v59   ;;  %v2300_v32 = vadd.f32 1.0, %v4189_v36  ;;  %4216 = vrcp.f32 %v2285_v34  ;;  %v7152_v36 = vld [vmem:[#allocation75_spill] sm:$0xff] }
 0x2db   :  { %v4193_v13 = vpop.eup %4192  ;;  %v3214_v27 = vadd.f32 %v3150_v63, %v2766_v54  ;;  %3070 = vperm.xlu0 %3742, %v4191_v44   ;;  %v1661_v5 = vadd.f32 %v6343_v58, %v7152_v36  ;;  %v4274_v63 = vld [vmem:[%s6959_s1 + $0x70] sm:$0xff]  ;;  %v7153_v54 = vld [vmem:[#allocation31_spill] sm:$0xff] }
 0x2dc   :  { %v4195_v29 = vpop.eup %4194  ;;  %v6447_v23 = vpop.permute.xlu1 %2656  ;;  %4218 = vrcp.f32 %v2300_v32  ;;  %v3152_v35 = vmul.f32 %v4274_v63, %v6402_v8  ;;  %v7154_v32 = vld [vmem:[#allocation77_spill] sm:$0xff] }
 0x2dd   :  { %v4197_v4 = vpop.eup %4196  ;;  %3278 = vst.msk [vmem:[%s6962_s7 + $0x60] sm:$0xff] %vm946_vm2, %v3214_v27  ;;  %v6453_v53 = vpop.permute.xlu0 %2531  ;;  %v2287_v12 = vadd.f32 1.0, %v4195_v29  ;;  %4220 = vpow2.f32 %v3518_v43  ;;  %v3524_v29 = vmul.f32 -1.442695, %v1661_v5 }
 0x2de   :  { %v4199_v61 = vpop.eup %4198  ;;  %3005 = vperm.xlu1 %3743, %v4193_v13   ;;  %v2302_v19 = vadd.f32 1.0, %v4197_v4  ;;  %v1663_v4 = vadd.f32 %v6343_v58, %v7154_v32 }
 0x2df   :  { %v4201_v22 = vpop.eup %4200  ;;  %3080 = vperm.xlu0 %3742, %v4199_v61   ;;  %4222 = vrcp.f32 %v2287_v12 }
 0x2e0   :  { %v4203_v30 = vpop.eup %4202  ;;  %4224 = vrcp.f32 %v2302_v19  ;;  %v3526_v12 = vmul.f32 -1.442695, %v1663_v4 }
 0x2e1   :  { %v4205_v52 = vpop.eup %4204  ;;  %v2896_v3 = vpop.permute.xlu1 %2895  ;;  %v2289_v14 = vadd.f32 1.0, %v4203_v30  ;;  %4226 = vpow2.f32 %v3520_v57  ;;  %v1665_v30 = vadd.f32 %v6343_v58, %v6148_v17  ;;  %v7155_v57 = vld [vmem:[#allocation34_spill] sm:$0xff] }
 0x2e2   :  { %v6457_v10 = vpop.permute.xlu0 %2691  ;;  %v4207_v16 = vpop.eup %4206  ;;  %v3153_v2 = vmul.f32 %v4273_v15, %v2896_v3  ;;  %3015 = vperm.xlu1 %3743, %v4201_v22   ;;  %v2304_v59 = vadd.f32 1.0, %v4205_v52  ;;  %v2771_v48 = vmul.f32 %v6421_v37, %v7155_v57 }
 0x2e3   :  { %3090 = vperm.xlu0 %3742, %v4207_v16   ;;  %v4209_v47 = vpop.eup %4208  ;;  %4228 = vrcp.f32 %v2289_v14  ;;  %v3528_v17 = vmul.f32 -1.442695, %v1665_v30  ;;  %v4278_v30 = vld [vmem:[%s6959_s1 + $0x90] sm:$0xff] }
 0x2e4   :  { %v3217_v9 = vadd.f32 %v3153_v2, %v2769_v50  ;;  %v4211_v28 = vpop.eup %4210  ;;  %v2291_v21 = vadd.f32 1.0, %v4209_v47  ;;  %4230 = vrcp.f32 %v2304_v59 }
 0x2e5   :  { %v4213_v39 = vpop.eup %4212  ;;  %4232 = vpow2.f32 %v3522_v33 }
 0x2e6   :  { %3281 = vst.msk [vmem:[%s6962_s7 + $0x78] sm:$0xff] %vm946_vm2, %v3217_v9  ;;  %v2507_v31 = vpop.permute.xlu1 %2506  ;;  %3025 = vperm.xlu1 %3743, %v4211_v28   ;;  %v6472_v6 = vpop.permute.xlu0 %2910  ;;  %4234 = vrcp.f32 %v2291_v21  ;;  %v4276_v9 = vld [vmem:[%s6959_s1 + $0x80] sm:$0xff] }
 0x2e7   :  { %v2768_v44 = vmul.f32 %v2507_v31, %v7153_v54  ;;  %3100 = vperm.xlu0 %3742, %v4213_v39   ;;  %v4215_v18 = vpop.eup %4214  ;;  %4236 = vpow2.f32 %v3524_v29  ;;  %v3154_v28 = vmul.f32 %v4276_v9, %v6438_v1  ;;  %v7156_v39 = vld [vmem:[#allocation35_spill] sm:$0xff]  ;;  %v4277_v29 = vld [vmem:[%s6959_s1 + $0x98] sm:$0xff] }
 0x2e8   :  { %v4217_v13 = vpop.eup %4216  ;;  %v2293_v25 = vadd.f32 1.0, %v4215_v18 }
 0x2e9   :  { %v3216_v34 = vadd.f32 %v3152_v35, %v2768_v44  ;;  %v4219_v27 = vpop.eup %4218 }
 0x2ea   :  { %v6481_v43 = vpop.permute.xlu1 %2666  ;;  %3035 = vperm.xlu1 %3743, %v4217_v13   ;;  %v4221_v61 = vpop.eup %4220  ;;  %4238 = vrcp.f32 %v2293_v25 }
 0x2eb   :  { %3280 = vst.msk [vmem:[%s6962_s7 + $0x70] sm:$0xff] %vm946_vm2, %v3216_v34  ;;  %3110 = vperm.xlu0 %3742, %v4219_v27   ;;  %v6487_v8 = vpop.permute.xlu0 %2541  ;;  %v4223_v20 = vpop.eup %4222  ;;  %v2295_v19 = vadd.f32 1.0, %v4221_v61  ;;  %4240 = vpow2.f32 %v3526_v12  ;;  %v7157_v34 = vld [vmem:[#allocation38_spill] sm:$0xff] }
 0x2ec   :  { %v4225_v22 = vpop.eup %4224  ;;  %v2773_v27 = vmul.f32 %v6453_v53, %v7157_v34 }
 0x2ed   :  { %v4227_v16 = vpop.eup %4226  ;;  %4242 = vrcp.f32 %v2295_v19  ;;  %v3156_v19 = vmul.f32 %v4278_v30, %v6472_v6  ;;  %v7162_v30 = vld [vmem:[#allocation55_spill] sm:$0xff] }
 0x2ee   :  { %3045 = vperm.xlu1 %3743, %v4223_v20   ;;  %v4229_v50 = vpop.eup %4228  ;;  %v2297_v2 = vadd.f32 1.0, %v4227_v16  ;;  %4244 = vpow2.f32 %v3528_v17  ;;  %v7159_v17 = vld [vmem:[#allocation42_spill] sm:$0xff] }
 0x2ef   :  { %v2906_v52 = vpop.permute.xlu1 %2905  ;;  %3120 = vperm.xlu0 %3742, %v4225_v22   ;;  %v6491_v3 = vpop.permute.xlu0 %2701 }
 0x2f0   :  { %v3155_v11 = vmul.f32 %v4275_v51, %v2906_v52  ;;  %v4231_v15 = vpop.eup %4230  ;;  %4246 = vrcp.f32 %v2297_v2  ;;  %v7158_v52 = vld [vmem:[#allocation39_spill] sm:$0xff] }
 0x2f1   :  { %v4233_v14 = vpop.eup %4232  ;;  %v4279_v2 = vld [vmem:[%s6959_s1 + $0xa8] sm:$0xff] }
 0x2f2   :  { %v3219_v58 = vadd.f32 %v3155_v11, %v2771_v48  ;;  %3055 = vperm.xlu1 %3743, %v4229_v50   ;;  %v4235_v59 = vpop.eup %4234  ;;  %v2299_v36 = vadd.f32 1.0, %v4233_v14 }
 0x2f3   :  { %3130 = vperm.xlu0 %3742, %v4231_v15   ;;  %v4237_v31 = vpop.eup %4236 }
 0x2f4   :  { %3283 = vst.msk [vmem:[%s6962_s7 + $0x88] sm:$0xff] %vm946_vm2, %v3219_v58  ;;  %v2517_v37 = vpop.permute.xlu1 %2516  ;;  %v2921_v47 = vpop.permute.xlu0 %2920  ;;  %4248 = vrcp.f32 %v2299_v36  ;;  %v2301_v1 = vadd.f32 1.0, %v4237_v31  ;;  %v2775_v58 = vmul.f32 %v6487_v8, %v7159_v17  ;;  %v4280_v8 = vld [vmem:[%s6959_s1 + $0xa0] sm:$0xff]  ;;  %v7160_v36 = vld [vmem:[#allocation43_spill] sm:$0xff] }
 0x2f5   :  { %v2770_v33 = vmul.f32 %v2517_v37, %v7156_v39  ;;  %v4239_v63 = vpop.eup %4238 }
 0x2f6   :  { %3065 = vperm.xlu1 %3743, %v4235_v59   ;;  %v4241_v54 = vpop.eup %4240  ;;  %4250 = vrcp.f32 %v2301_v1 }
 0x2f7   :  { %v3218_v5 = vadd.f32 %v3154_v28, %v2770_v33  ;;  %v4243_v44 = vpop.eup %4242  ;;  %v2303_v4 = vadd.f32 1.0, %v4241_v54  ;;  %v3158_v33 = vmul.f32 %v4280_v8, %v2921_v47 }
 0x2f8   :  { %v6507_v21 = vpop.permute.xlu1 %2676  ;;  %v4245_v61 = vpop.eup %4244 }
 0x2f9   :  { %3282 = vst.msk [vmem:[%s6962_s7 + $0x80] sm:$0xff] %vm946_vm2, %v3218_v5  ;;  %v6513_v35 = vpop.permute.xlu0 %2551  ;;  %4252 = vrcp.f32 %v2303_v4  ;;  %v2305_v53 = vadd.f32 1.0, %v4245_v61  ;;  %v4281_v61 = vld [vmem:[%s6959_s1 + $0xb0] sm:$0xff] }
 0x2fa   :  { %3075 = vperm.xlu1 %3743, %v4239_v63   ;;  %v4247_v20 = vpop.eup %4246 }
 0x2fb   :  { %4254 = vrcp.f32 %v2305_v53 }
 0x2fd   :  { %v2916_v18 = vpop.permute.xlu1 %2915  ;;  %v6515_v13 = vpop.permute.xlu0 %2711 }
 0x2fe   :  { %v3157_v32 = vmul.f32 %v4277_v29, %v2916_v18  ;;  %3085 = vperm.xlu1 %3743, %v4243_v44   ;;  %v4249_v57 = vpop.eup %4248 }
 0x300   :  { %v3221_v25 = vadd.f32 %v3157_v32, %v2773_v27  ;;  %v4251_v50 = vpop.eup %4250  ;;  %v7161_v32 = vld [vmem:[#allocation49_spill] sm:$0xff] }
 0x301   :  { %v6522_v22 = vpop.permute.xlu0 %2561 }
 0x302   :  { %3285 = vst.msk [vmem:[%s6962_s7 + $0x98] sm:$0xff] %vm946_vm2, %v3221_v25  ;;  %v2527_v12 = vpop.permute.xlu1 %2526  ;;  %3095 = vperm.xlu1 %3743, %v4247_v20  }
 0x303   :  { %v2772_v16 = vmul.f32 %v2527_v12, %v7158_v52  ;;  %v4253_v37 = vpop.eup %4252  ;;  %v4282_v52 = vld [vmem:[%s6959_s1 + $0xc0] sm:$0xff] }
 0x305   :  { %v3220_v48 = vadd.f32 %v3156_v19, %v2772_v16  ;;  %v6533_v51 = vpop.permute.xlu0 %2721  ;;  %v4255_v39 = vpop.eup %4254 }
 0x306   :  { %v6535_v11 = vpop.permute.xlu1 %2686  ;;  %3105 = vperm.xlu1 %3743, %v4249_v57  }
 0x307   :  { %3284 = vst.msk [vmem:[%s6962_s7 + $0x90] sm:$0xff] %vm946_vm2, %v3220_v48 }
 0x309   :  { %v6541_v15 = vpop.permute.xlu0 %2571 }
 0x30a   :  { %3115 = vperm.xlu1 %3743, %v4251_v50  }
 0x30b   :  { %v2926_v6 = vpop.permute.xlu1 %2925 }
 0x30c   :  { %v3159_v14 = vmul.f32 %v4279_v2, %v2926_v6  ;;  %v7163_v6 = vld [vmem:[#allocation62_spill] sm:$0xff] }
 0x30d   :  { %v6548_v59 = vpop.permute.xlu0 %2731 }
 0x30e   :  { %v3223_v9 = vadd.f32 %v3159_v14, %v2775_v58  ;;  %3125 = vperm.xlu1 %3743, %v4253_v37   ;;  %v4283_v58 = vld [vmem:[%s6959_s1 + $0xd0] sm:$0xff] }
 0x310   :  { %3287 = vst.msk [vmem:[%s6962_s7 + $0xa8] sm:$0xff] %vm946_vm2, %v3223_v9  ;;  %v2537_v28 = vpop.permute.xlu1 %2536 }
 0x311   :  { %v2774_v5 = vmul.f32 %v2537_v28, %v7160_v36  ;;  %v6558_v31 = vpop.permute.xlu0 %2581 }
 0x312   :  { %3135 = vperm.xlu1 %3743, %v4255_v39   ;;  %v4284_v39 = vld [vmem:[%s6959_s1 + $0xe0] sm:$0xff] }
 0x313   :  { %v3222_v63 = vadd.f32 %v3158_v33, %v2774_v5  ;;  %v7164_v33 = vld [vmem:[#allocation70_spill] sm:$0xff] }
 0x314   :  { %v6560_v1 = vpop.permute.xlu1 %2696 }
 0x315   :  { %3286 = vst.msk [vmem:[%s6962_s7 + $0xa0] sm:$0xff] %vm946_vm2, %v3222_v63  ;;  %v6566_v54 = vpop.permute.xlu0 %2741 }
 0x318   :  { %v2547_v44 = vpop.permute.xlu1 %2546 }
 0x319   :  { %v6568_v18 = vpop.permute.xlu0 %2591  ;;  %v2776_v4 = vmul.f32 %v2547_v44, %v7161_v32 }
 0x31c   :  { %v6570_v34 = vpop.permute.xlu1 %2706 }
 0x31d   :  { %v6572_v47 = vpop.permute.xlu0 %2751 }
 0x320   :  { %v2557_v27 = vpop.permute.xlu1 %2556 }
 0x321   :  { %v2778_v19 = vmul.f32 %v2557_v27, %v7162_v30 }
 0x322   :  { %v2931_v29 = vpop.permute.xlu0 %2930 }
 0x323   :  { %v3160_v25 = vmul.f32 %v4281_v61, %v2931_v29  ;;  %v7165_v29 = vld [vmem:[#allocation5_spill] sm:$0xff] }
 0x324   :  { %v6578_v20 = vpop.permute.xlu1 %2716  ;;  %v2786_v32 = vmul.f32 %v6162_v24, %v7165_v29 }
 0x325   :  { %v3224_v12 = vadd.f32 %v3160_v25, %v2776_v4  ;;  %v4285_v4 = vld [vmem:[%s6959_s1 + $0x100] sm:$0xff] }
 0x326   :  { %v2941_v53 = vpop.permute.xlu0 %2940 }
 0x327   :  { %3288 = vst.msk [vmem:[%s6962_s7 + $0xb0] sm:$0xff] %vm946_vm2, %v3224_v12  ;;  %v3162_v16 = vmul.f32 %v4282_v52, %v2941_v53  ;;  %v4286_v12 = vld [vmem:[%s6959_s1 + $0xf0] sm:$0xff] }
 0x328   :  { %v2567_v57 = vpop.permute.xlu1 %2566 }
 0x329   :  { %v3226_v48 = vadd.f32 %v3162_v16, %v2778_v19  ;;  %v2780_v17 = vmul.f32 %v2567_v57, %v7163_v6  ;;  %v7166_v19 = vld [vmem:[#allocation78_spill] sm:$0xff]  ;;  %v7167_v57 = vld [vmem:[#allocation8_spill] sm:$0xff] }
 0x32a   :  { %v2951_v50 = vpop.permute.xlu0 %2950 }
 0x32b   :  { %3290 = vst.msk [vmem:[%s6962_s7 + $0xc0] sm:$0xff] %vm946_vm2, %v3226_v48  ;;  %v3164_v2 = vmul.f32 %v4283_v58, %v2951_v50  ;;  %v2788_v48 = vmul.f32 %v6219_v60, %v7167_v57  ;;  %v4287_v50 = vld [vmem:[%s6959_s1 + $0x110] sm:$0xff] }
 0x32c   :  { %v6596_v14 = vpop.permute.xlu1 %2726 }
 0x32d   :  { %v3228_v37 = vadd.f32 %v3164_v2, %v2780_v17  ;;  %v7168_v2 = vld [vmem:[#allocation13_spill] sm:$0xff] }
 0x32e   :  { %v2961_v9 = vpop.permute.xlu0 %2960 }
 0x32f   :  { %3292 = vst.msk [vmem:[%s6962_s7 + $0xd0] sm:$0xff] %vm946_vm2, %v3228_v37  ;;  %v3166_v8 = vmul.f32 %v4284_v39, %v2961_v9  ;;  %v2790_v37 = vmul.f32 %v6282_v40, %v7168_v2  ;;  %v4288_v9 = vld [vmem:[%s6959_s1 + $0x120] sm:$0xff] }
 0x330   :  { %v2577_v28 = vpop.permute.xlu1 %2576 }
 0x331   :  { %v2782_v36 = vmul.f32 %v2577_v28, %v7164_v33  ;;  %v7169_v33 = vld [vmem:[#allocation48_spill] sm:$0xff] }
 0x332   :  { %v2971_v5 = vpop.permute.xlu0 %2970 }
 0x333   :  { %v3230_v63 = vadd.f32 %v3166_v8, %v2782_v36  ;;  %v3168_v53 = vmul.f32 %v4286_v12, %v2971_v5  ;;  %v2777_v36 = vmul.f32 %v6513_v35, %v7169_v33  ;;  %v4289_v5 = vld [vmem:[%s6959_s1 + $0xb8] sm:$0xff]  ;;  %v7171_v12 = vld [vmem:[#allocation54_spill] sm:$0xff] }
 0x334   :  { %v6606_v44 = vpop.permute.xlu1 %2736 }
 0x335   :  { %3294 = vst.msk [vmem:[%s6962_s7 + $0xe0] sm:$0xff] %vm946_vm2, %v3230_v63 }
 0x336   :  { %v2981_v27 = vpop.permute.xlu0 %2980 }
 0x337   :  { %v3170_v61 = vmul.f32 %v4285_v4, %v2981_v27  ;;  %v7170_v27 = vld [vmem:[#allocation17_spill] sm:$0xff] }
 0x338   :  { %v2587_v25 = vpop.permute.xlu1 %2586  ;;  %v2792_v29 = vmul.f32 %v6330_v41, %v7170_v27  ;;  %v4291_v41 = vld [vmem:[%s6959_s1 + $0xc8] sm:$0xff]  ;;  %v7176_v27 = vld [vmem:[#allocation29_spill] sm:$0xff] }
 0x339   :  { %v3234_v30 = vadd.f32 %v3170_v61, %v2786_v32  ;;  %v2784_v52 = vmul.f32 %v2587_v25, %v7166_v19  ;;  %v4290_v32 = vld [vmem:[%s6959_s1 + $0x130] sm:$0xff] }
 0x33a   :  { %v2991_v16 = vpop.permute.xlu0 %2990 }
 0x33b   :  { %3298 = vst.msk [vmem:[%s6962_s7 + $0x100] sm:$0xff] %vm946_vm2, %v3234_v30  ;;  %v3232_v24 = vadd.f32 %v3168_v53, %v2784_v52  ;;  %v3172_v6 = vmul.f32 %v4287_v50, %v2991_v16  ;;  %v2779_v53 = vmul.f32 %v6522_v22, %v7171_v12  ;;  %v7172_v52 = vld [vmem:[#allocation21_spill] sm:$0xff]  ;;  %v4292_v22 = vld [vmem:[%s6959_s1 + $0x140] sm:$0xff] }
 0x33c   :  { %v6630_v17 = vpop.permute.xlu1 %2746  ;;  %v2794_v16 = vmul.f32 %v6371_v26, %v7172_v52  ;;  %v4293_v26 = vld [vmem:[%s6959_s1 + $0xd8] sm:$0xff] }
 0x33d   :  { %3296 = vst.msk [vmem:[%s6962_s7 + $0xf0] sm:$0xff] %vm946_vm2, %v3232_v24  ;;  %v3236_v58 = vadd.f32 %v3172_v6, %v2788_v48  ;;  %v7173_v6 = vld [vmem:[#allocation61_spill] sm:$0xff] }
 0x33e   :  { %v3001_v60 = vpop.permute.xlu0 %3000 }
 0x33f   :  { %3300 = vst.msk [vmem:[%s6962_s7 + $0x110] sm:$0xff] %vm946_vm2, %v3236_v58  ;;  %v3174_v28 = vmul.f32 %v4288_v9, %v3001_v60  ;;  %v2781_v58 = vmul.f32 %v6541_v15, %v7173_v6  ;;  %v4294_v15 = vld [vmem:[%s6959_s1 + $0x150] sm:$0xff] }
 0x341   :  { %v3238_v39 = vadd.f32 %v3174_v28, %v2790_v37  ;;  %v2936_v8 = vpop.permute.xlu1 %2935  ;;  %v7174_v37 = vld [vmem:[#allocation25_spill] sm:$0xff] }
 0x342   :  { %v3161_v40 = vmul.f32 %v4289_v5, %v2936_v8  ;;  %v3011_v63 = vpop.permute.xlu0 %3010  ;;  %v2796_v9 = vmul.f32 %v6413_v56, %v7174_v37  ;;  %v4295_v56 = vld [vmem:[%s6959_s1 + $0xe8] sm:$0xff] }
 0x343   :  { %3302 = vst.msk [vmem:[%s6962_s7 + $0x120] sm:$0xff] %vm946_vm2, %v3238_v39  ;;  %v3176_v4 = vmul.f32 %v4290_v32, %v3011_v63 }
 0x344   :  { %v3225_v35 = vadd.f32 %v3161_v40, %v2777_v36  ;;  %v7175_v36 = vld [vmem:[#allocation69_spill] sm:$0xff] }
 0x345   :  { %v3240_v61 = vadd.f32 %v3176_v4, %v2792_v29  ;;  %v2946_v25 = vpop.permute.xlu1 %2945  ;;  %v2783_v5 = vmul.f32 %v6558_v31, %v7175_v36  ;;  %v2798_v29 = vmul.f32 %v6447_v23, %v7176_v27  ;;  %v4296_v31 = vld [vmem:[%s6959_s1 + $0x160] sm:$0xff]  ;;  %v4297_v23 = vld [vmem:[%s6959_s1 + $0xf8] sm:$0xff]  ;;  %v7183_v27 = vld [vmem:[#allocation12_spill] sm:$0xff] }
 0x346   :  { %3289 = vst.msk [vmem:[%s6962_s7 + $0xb8] sm:$0xff] %vm946_vm2, %v3225_v35  ;;  %v3163_v30 = vmul.f32 %v4291_v41, %v2946_v25  ;;  %v3021_v19 = vpop.permute.xlu0 %3020  ;;  %v7177_v25 = vld [vmem:[#allocation76_spill] sm:$0xff] }
 0x347   :  { %3304 = vst.msk [vmem:[%s6962_s7 + $0x130] sm:$0xff] %vm946_vm2, %v3240_v61  ;;  %v3178_v57 = vmul.f32 %v4292_v22, %v3021_v19  ;;  %v2785_v12 = vmul.f32 %v6568_v18, %v7177_v25  ;;  %v4298_v18 = vld [vmem:[%s6959_s1 + $0x170] sm:$0xff] }
 0x348   :  { %v3227_v48 = vadd.f32 %v3163_v30, %v2779_v53  ;;  %v7178_v30 = vld [vmem:[#allocation33_spill] sm:$0xff] }
 0x349   :  { %v3242_v24 = vadd.f32 %v3178_v57, %v2794_v16  ;;  %v2956_v50 = vpop.permute.xlu1 %2955  ;;  %v2800_v19 = vmul.f32 %v6481_v43, %v7178_v30  ;;  %v4299_v43 = vld [vmem:[%s6959_s1 + $0x108] sm:$0xff] }
 0x34a   :  { %3291 = vst.msk [vmem:[%s6962_s7 + $0xc8] sm:$0xff] %vm946_vm2, %v3227_v48  ;;  %v3165_v60 = vmul.f32 %v4293_v26, %v2956_v50  ;;  %v3031_v2 = vpop.permute.xlu0 %3030  ;;  %v7179_v48 = vld [vmem:[#allocation3_spill] sm:$0xff] }
 0x34b   :  { %3306 = vst.msk [vmem:[%s6962_s7 + $0x140] sm:$0xff] %vm946_vm2, %v3242_v24  ;;  %v3180_v28 = vmul.f32 %v4294_v15, %v3031_v2  ;;  %v2787_v24 = vmul.f32 %v6164_v7, %v7179_v48  ;;  %v4300_v7 = vld [vmem:[%s6959_s1 + $0x180] sm:$0xff]  ;;  %v7181_v15 = vld [vmem:[#allocation7_spill] sm:$0xff] }
 0x34c   :  { %v3229_v39 = vadd.f32 %v3165_v60, %v2781_v58  ;;  %v7180_v58 = vld [vmem:[#allocation37_spill] sm:$0xff] }
 0x34d   :  { %v3244_v8 = vadd.f32 %v3180_v28, %v2796_v9  ;;  %v2966_v33 = vpop.permute.xlu1 %2965  ;;  %v2802_v26 = vmul.f32 %v6507_v21, %v7180_v58  ;;  %v2789_v28 = vmul.f32 %v6194_v45, %v7181_v15  ;;  %v4301_v21 = vld [vmem:[%s6959_s1 + $0x118] sm:$0xff]  ;;  %v4302_v45 = vld [vmem:[%s6959_s1 + $0x190] sm:$0xff] }
 0x34e   :  { %3293 = vst.msk [vmem:[%s6962_s7 + $0xd8] sm:$0xff] %vm946_vm2, %v3229_v39  ;;  %v3167_v40 = vmul.f32 %v4295_v56, %v2966_v33  ;;  %v3041_v63 = vpop.permute.xlu0 %3040  ;;  %v7182_v33 = vld [vmem:[#allocation41_spill] sm:$0xff] }
 0x34f   :  { %3308 = vst.msk [vmem:[%s6962_s7 + $0x150] sm:$0xff] %vm946_vm2, %v3244_v8  ;;  %v3182_v32 = vmul.f32 %v4296_v31, %v3041_v63  ;;  %v2804_v36 = vmul.f32 %v6535_v11, %v7182_v33  ;;  %v4303_v11 = vld [vmem:[%s6959_s1 + $0x128] sm:$0xff]  ;;  %v7188_v58 = vld [vmem:[#allocation57_spill] sm:$0xff] }
 0x350   :  { %v3231_v4 = vadd.f32 %v3167_v40, %v2783_v5 }
 0x351   :  { %v3246_v35 = vadd.f32 %v3182_v32, %v2798_v29  ;;  %v2976_v61 = vpop.permute.xlu1 %2975  ;;  %v2791_v29 = vmul.f32 %v6209_v38, %v7183_v27  ;;  %v4304_v38 = vld [vmem:[%s6959_s1 + $0x1a0] sm:$0xff] }
 0x352   :  { %3295 = vst.msk [vmem:[%s6962_s7 + $0xe8] sm:$0xff] %vm946_vm2, %v3231_v4  ;;  %v3169_v53 = vmul.f32 %v4297_v23, %v2976_v61  ;;  %v3051_v41 = vpop.permute.xlu0 %3050  ;;  %v7184_v4 = vld [vmem:[#allocation46_spill] sm:$0xff] }
 0x353   :  { %3310 = vst.msk [vmem:[%s6962_s7 + $0x160] sm:$0xff] %vm946_vm2, %v3246_v35  ;;  %v3184_v52 = vmul.f32 %v4298_v18, %v3051_v41  ;;  %v2806_v35 = vmul.f32 %v6560_v1, %v7184_v4  ;;  %v4305_v1 = vld [vmem:[%s6959_s1 + $0x138] sm:$0xff]  ;;  %v7186_v18 = vld [vmem:[#allocation52_spill] sm:$0xff] }
 0x354   :  { %v3233_v16 = vadd.f32 %v3169_v53, %v2785_v12  ;;  %v7185_v53 = vld [vmem:[#allocation16_spill] sm:$0xff] }
 0x355   :  { %v3248_v22 = vadd.f32 %v3184_v52, %v2800_v19  ;;  %v2986_v57 = vpop.permute.xlu1 %2985  ;;  %v2793_v41 = vmul.f32 %v6232_v46, %v7185_v53  ;;  %v2808_v52 = vmul.f32 %v6570_v34, %v7186_v18  ;;  %v4306_v46 = vld [vmem:[%s6959_s1 + $0x1b0] sm:$0xff]  ;;  %v4307_v34 = vld [vmem:[%s6959_s1 + $0x148] sm:$0xff] }
 0x356   :  { %3297 = vst.msk [vmem:[%s6962_s7 + $0xf8] sm:$0xff] %vm946_vm2, %v3233_v16  ;;  %v3171_v50 = vmul.f32 %v4299_v43, %v2986_v57  ;;  %v3061_v6 = vpop.permute.xlu0 %3060  ;;  %v7195_v18 = vld [vmem:[#allocation36_spill] sm:$0xff] }
 0x357   :  { %3312 = vst.msk [vmem:[%s6962_s7 + $0x170] sm:$0xff] %vm946_vm2, %v3248_v22  ;;  %v3186_v60 = vmul.f32 %v4300_v7, %v3061_v6 }
 0x358   :  { %v3235_v2 = vadd.f32 %v3171_v50, %v2787_v24  ;;  %v7187_v24 = vld [vmem:[#allocation20_spill] sm:$0xff] }
 0x359   :  { %v3250_v37 = vadd.f32 %v3186_v60, %v2802_v26  ;;  %v2996_v9 = vpop.permute.xlu1 %2995  ;;  %v2795_v43 = vmul.f32 %v6265_v0, %v7187_v24  ;;  %v2810_v26 = vmul.f32 %v6578_v20, %v7188_v58  ;;  %v4308_v0 = vld [vmem:[%s6959_s1 + $0x1c0] sm:$0xff]  ;;  %v4309_v20 = vld [vmem:[%s6959_s1 + $0x158] sm:$0xff] }
 0x35a   :  { %3299 = vst.msk [vmem:[%s6962_s7 + $0x108] sm:$0xff] %vm946_vm2, %v3235_v2  ;;  %v3173_v39 = vmul.f32 %v4301_v21, %v2996_v9  ;;  %v3071_v8 = vpop.permute.xlu0 %3070  ;;  %v7189_v9 = vld [vmem:[#allocation24_spill] sm:$0xff] }
 0x35b   :  { %3314 = vst.msk [vmem:[%s6962_s7 + $0x180] sm:$0xff] %vm946_vm2, %v3250_v37  ;;  %v3188_v5 = vmul.f32 %v4302_v45, %v3071_v8  ;;  %v2797_v15 = vmul.f32 %v6303_v55, %v7189_v9  ;;  %v4310_v55 = vld [vmem:[%s6959_s1 + $0x1d0] sm:$0xff] }
 0x35c   :  { %v3237_v56 = vadd.f32 %v3173_v39, %v2789_v28  ;;  %v7190_v39 = vld [vmem:[#allocation64_spill] sm:$0xff] }
 0x35d   :  { %v3252_v40 = vadd.f32 %v3188_v5, %v2804_v36  ;;  %v3006_v63 = vpop.permute.xlu1 %3005  ;;  %v2812_v8 = vmul.f32 %v6596_v14, %v7190_v39  ;;  %v4311_v14 = vld [vmem:[%s6959_s1 + $0x168] sm:$0xff] }
 0x35e   :  { %3301 = vst.msk [vmem:[%s6962_s7 + $0x118] sm:$0xff] %vm946_vm2, %v3237_v56  ;;  %v3175_v31 = vmul.f32 %v4303_v11, %v3006_v63  ;;  %v3081_v32 = vpop.permute.xlu0 %3080  ;;  %v7191_v56 = vld [vmem:[#allocation28_spill] sm:$0xff] }
 0x35f   :  { %3316 = vst.msk [vmem:[%s6962_s7 + $0x190] sm:$0xff] %vm946_vm2, %v3252_v40  ;;  %v3190_v61 = vmul.f32 %v4304_v38, %v3081_v32  ;;  %v2799_v40 = vmul.f32 %v6347_v62, %v7191_v56  ;;  %v4312_v62 = vld [vmem:[%s6959_s1 + $0x1e0] sm:$0xff]  ;;  %v7193_v38 = vld [vmem:[#allocation32_spill] sm:$0xff] }
 0x360   :  { %v3239_v25 = vadd.f32 %v3175_v31, %v2791_v29  ;;  %v7192_v29 = vld [vmem:[#allocation72_spill] sm:$0xff] }
 0x361   :  { %v3254_v12 = vadd.f32 %v3190_v61, %v2806_v35  ;;  %v3016_v23 = vpop.permute.xlu1 %3015  ;;  %v2814_v11 = vmul.f32 %v6606_v44, %v7192_v29  ;;  %v2801_v61 = vmul.f32 %v6387_v49, %v7193_v38  ;;  %v4313_v44 = vld [vmem:[%s6959_s1 + $0x178] sm:$0xff]  ;;  %v4314_v49 = vld [vmem:[%s6959_s1 + $0x1f0] sm:$0xff] }
 0x362   :  { %3303 = vst.msk [vmem:[%s6962_s7 + $0x128] sm:$0xff] %vm946_vm2, %v3239_v25  ;;  %v3177_v30 = vmul.f32 %v4305_v1, %v3016_v23  ;;  %v3091_v19 = vpop.permute.xlu0 %3090  ;;  %v7194_v23 = vld [vmem:[#allocation80_spill] sm:$0xff] }
 0x363   :  { %3318 = vst.msk [vmem:[%s6962_s7 + $0x1a0] sm:$0xff] %vm946_vm2, %v3254_v12  ;;  %v3192_v16 = vmul.f32 %v4306_v46, %v3091_v19  ;;  %v2816_v53 = vmul.f32 %v6630_v17, %v7194_v23  ;;  %v4315_v17 = vld [vmem:[%s6959_s1 + $0x188] sm:$0xff] }
 0x364   :  { %v3241_v22 = vadd.f32 %v3177_v30, %v2793_v41 }
 0x365   :  { %v3256_v57 = vadd.f32 %v3192_v16, %v2808_v52  ;;  %v3026_v48 = vpop.permute.xlu1 %3025  ;;  %v2803_v52 = vmul.f32 %v6425_v42, %v7195_v18 }
 0x366   :  { %3305 = vst.msk [vmem:[%s6962_s7 + $0x138] sm:$0xff] %vm946_vm2, %v3241_v22  ;;  %v3179_v50 = vmul.f32 %v4307_v34, %v3026_v48  ;;  %v3101_v6 = vpop.permute.xlu0 %3100  ;;  %v4316_v48 = vld [vmem:[%s6959_s1 + $0x198] sm:$0xff] }
 0x367   :  { %3320 = vst.msk [vmem:[%s6962_s7 + $0x1b0] sm:$0xff] %vm946_vm2, %v3256_v57  ;;  %v3194_v7 = vmul.f32 %v4308_v0, %v3101_v6  ;;  %v7196_v57 = vld [vmem:[#allocation40_spill] sm:$0xff] }
 0x368   :  { %v3243_v60 = vadd.f32 %v3179_v50, %v2795_v43  ;;  %v2805_v42 = vmul.f32 %v6457_v10, %v7196_v57  ;;  %v7197_v50 = vld [vmem:[#allocation44_spill] sm:$0xff]  ;;  %v4317_v10 = vld [vmem:[%s6959_s1 + $0x1a8] sm:$0xff] }
 0x369   :  { %v3258_v2 = vadd.f32 %v3194_v7, %v2810_v26  ;;  %v3036_v37 = vpop.permute.xlu1 %3035  ;;  %v2807_v6 = vmul.f32 %v6491_v3, %v7197_v50  ;;  %v7198_v7 = vld [vmem:[#allocation50_spill] sm:$0xff]  ;;  %v4318_v3 = vld [vmem:[%s6959_s1 + $0x1b8] sm:$0xff] }
 0x36a   :  { %3307 = vst.msk [vmem:[%s6962_s7 + $0x148] sm:$0xff] %vm946_vm2, %v3243_v60  ;;  %v3181_v28 = vmul.f32 %v4309_v20, %v3036_v37  ;;  %v3111_v21 = vpop.permute.xlu0 %3110  ;;  %v2809_v60 = vmul.f32 %v6515_v13, %v7198_v7  ;;  %v4319_v13 = vld [vmem:[%s6959_s1 + $0x1c8] sm:$0xff] }
 0x36b   :  { %3322 = vst.msk [vmem:[%s6962_s7 + $0x1c0] sm:$0xff] %vm946_vm2, %v3258_v2  ;;  %v3196_v33 = vmul.f32 %v4310_v55, %v3111_v21 }
 0x36c   :  { %v3245_v36 = vadd.f32 %v3181_v28, %v2797_v15  ;;  %v7199_v15 = vld [vmem:[#allocation56_spill] sm:$0xff] }
 0x36d   :  { %v3260_v45 = vadd.f32 %v3196_v33, %v2812_v8  ;;  %v3046_v5 = vpop.permute.xlu1 %3045  ;;  %v2811_v20 = vmul.f32 %v6533_v51, %v7199_v15  ;;  %v7200_v8 = vld [vmem:[#allocation63_spill] sm:$0xff]  ;;  %v4320_v51 = vld [vmem:[%s6959_s1 + $0x1d8] sm:$0xff] }
 0x36e   :  { %3309 = vst.msk [vmem:[%s6962_s7 + $0x158] sm:$0xff] %vm946_vm2, %v3245_v36  ;;  %v3183_v63 = vmul.f32 %v4311_v14, %v3046_v5  ;;  %v3121_v27 = vpop.permute.xlu0 %3120  ;;  %v2813_v55 = vmul.f32 %v6548_v59, %v7200_v8  ;;  %v7201_v5 = vld [vmem:[#allocation71_spill] sm:$0xff] }
 0x36f   :  { %3324 = vst.msk [vmem:[%s6962_s7 + $0x1d0] sm:$0xff] %vm946_vm2, %v3260_v45  ;;  %v3198_v31 = vmul.f32 %v4312_v62, %v3121_v27  ;;  %v2815_v56 = vmul.f32 %v6566_v54, %v7201_v5  ;;  %v4321_v59 = vld [vmem:[%s6959_s1 + $0x1e8] sm:$0xff]  ;;  %v4322_v54 = vld [vmem:[%s6959_s1 + $0x1f8] sm:$0xff] }
 0x370   :  { %v3247_v32 = vadd.f32 %v3183_v63, %v2799_v40  ;;  %v7202_v27 = vld [vmem:[#allocation79_spill] sm:$0xff] }
 0x371   :  { %v3262_v4 = vadd.f32 %v3198_v31, %v2814_v11  ;;  %v3056_v35 = vpop.permute.xlu1 %3055  ;;  %v2817_v29 = vmul.f32 %v6572_v47, %v7202_v27 }
 0x372   :  { %3311 = vst.msk [vmem:[%s6962_s7 + $0x168] sm:$0xff] %vm946_vm2, %v3247_v32  ;;  %v3185_v25 = vmul.f32 %v4313_v44, %v3056_v35  ;;  %v3131_v12 = vpop.permute.xlu0 %3130 }
 0x373   :  { %3326 = vst.msk [vmem:[%s6962_s7 + $0x1e0] sm:$0xff] %vm946_vm2, %v3262_v4  ;;  %v3200_v41 = vmul.f32 %v4314_v49, %v3131_v12 }
 0x374   :  { %v3249_v1 = vadd.f32 %v3185_v25, %v2801_v61 }
 0x375   :  { %v3264_v30 = vadd.f32 %v3200_v41, %v2816_v53  ;;  %v3066_v19 = vpop.permute.xlu1 %3065 }
 0x376   :  { %3313 = vst.msk [vmem:[%s6962_s7 + $0x178] sm:$0xff] %vm946_vm2, %v3249_v1  ;;  %v3187_v46 = vmul.f32 %v4315_v17, %v3066_v19 }
 0x377   :  { %3328 = vst.msk [vmem:[%s6962_s7 + $0x1f0] sm:$0xff] %vm946_vm2, %v3264_v30 }
 0x378   :  { %v3251_v16 = vadd.f32 %v3187_v46, %v2803_v52 }
 0x379   :  { %v3076_v22 = vpop.permute.xlu1 %3075 }
 0x37a   :  { %3315 = vst.msk [vmem:[%s6962_s7 + $0x188] sm:$0xff] %vm946_vm2, %v3251_v16  ;;  %v3189_v24 = vmul.f32 %v4316_v48, %v3076_v22 }
 0x37c   :  { %v3253_v43 = vadd.f32 %v3189_v24, %v2805_v42 }
 0x37d   :  { %v3086_v34 = vpop.permute.xlu1 %3085 }
 0x37e   :  { %3317 = vst.msk [vmem:[%s6962_s7 + $0x198] sm:$0xff] %vm946_vm2, %v3253_v43  ;;  %v3191_v58 = vmul.f32 %v4317_v10, %v3086_v34 }
 0x380   :  { %v3255_v26 = vadd.f32 %v3191_v58, %v2807_v6 }
 0x381   :  { %v3096_v0 = vpop.permute.xlu1 %3095 }
 0x382   :  { %3319 = vst.msk [vmem:[%s6962_s7 + $0x1a8] sm:$0xff] %vm946_vm2, %v3255_v26  ;;  %v3193_v2 = vmul.f32 %v4318_v3, %v3096_v0 }
 0x384   :  { %v3257_v37 = vadd.f32 %v3193_v2, %v2809_v60 }
 0x385   :  { %v3106_v9 = vpop.permute.xlu1 %3105 }
 0x386   :  { %3321 = vst.msk [vmem:[%s6962_s7 + $0x1b8] sm:$0xff] %vm946_vm2, %v3257_v37  ;;  %v3195_v28 = vmul.f32 %v4319_v13, %v3106_v9 }
 0x388   :  { %v3259_v21 = vadd.f32 %v3195_v28, %v2811_v20 }
 0x389   :  { %v3116_v39 = vpop.permute.xlu1 %3115 }
 0x38a   :  { %3323 = vst.msk [vmem:[%s6962_s7 + $0x1c8] sm:$0xff] %vm946_vm2, %v3259_v21  ;;  %v3197_v33 = vmul.f32 %v4320_v51, %v3116_v39 }
 0x38c   :  { %v3261_v36 = vadd.f32 %v3197_v33, %v2813_v55 }
 0x38d   :  { %v3126_v45 = vpop.permute.xlu1 %3125 }
 0x38e   :  { %3325 = vst.msk [vmem:[%s6962_s7 + $0x1d8] sm:$0xff] %vm946_vm2, %v3261_v36  ;;  %v3199_v40 = vmul.f32 %v4321_v59, %v3126_v45 }
 0x390   :  { %v3263_v14 = vadd.f32 %v3199_v40, %v2815_v56 }
 0x391   :  { %v3136_v63 = vpop.permute.xlu1 %3135 }
 0x392   :  { %3327 = vst.msk [vmem:[%s6962_s7 + $0x1e8] sm:$0xff] %vm946_vm2, %v3263_v14  ;;  %v3201_v11 = vmul.f32 %v4322_v54, %v3136_v63 }
 0x394   :  { %v3265_v62 = vadd.f32 %v3201_v11, %v2817_v29 }
 0x396   :  { %3329 = vst.msk [vmem:[%s6962_s7 + $0x1f8] sm:$0xff] %vm946_vm2, %v3265_v62 }

// kernel: abf_forward.3
= control target key start
LH: loop header
LB: loop body
LE: loop exit
PB: predicated region body
PF: predicated region fallthrough
CT: control target
= control target key end

     0   :  { %s9749_s12 = smov 0   ;;  %s14017_s0 = inlined_call_operand.vmem [shape: f32[2,1368,8], index: 0, kind: input, shape index: {}]   ;;  %s14018_s1 = inlined_call_operand.vmem [shape: f32[3,8,12], index: 1, kind: input, shape index: {}]   ;;  %s14019_s2 = inlined_call_operand.vmem [shape: f32[1,4], index: 2, kind: input, shape index: {}]   ;;  %s14020_s3 = inlined_call_operand.vmem [shape: f32[2,1280,4], index: 3, kind: output, shape index: {}]  }
   0x1 LB: > { %s6724_s13 = sadd.s32 4294967295, %s9723_s12   ;;  %p6728_p0 = scmp.ge.s32.totalorder %s9723_s12, 1  ;;  %s9723_s12 = sphi %s9749_s12, %s13_s12  }
   0x2   : > { %p137_p1 = scmp.lt.s32.totalorder %s9723_s12, 3 }
   0x4   : > { %p138_p2 = pnand %p6728_p0, %p137_p1 }
   0x6   : > { %141 = sbr.rel (%p138_p2) target bundleno = 1326 (0x52e), region = 32 }
   0xd   : > { %v332_v0 = vld [vmem:[%s14018_s1] sm:$0xff]  ;;  %v6731_v1 = vld [vmem:[%s14018_s1 + $0x8] sm:$0xff]  ;;  %p161_p3 = scmp.lt.s32.totalorder %s6724_s13, 1  ;;  %v14021_v2 = vmov 0.0   ;;  %vm9726_vm0 = vmmov 0   ;;  %vm340_vm1 = vcmask 64512  }
   0xe   : > { %8190 = vmatprep.subr.mxu0 %v14021_v2  ;;  %7705 = vmatprep.subr.mxu1 %v14021_v2  ;;  %v7054_v3 = vld [vmem:[%s14018_s1 + $0x10] sm:$0xff]  ;;  %vm4417_vm2 = vcmask 1046528   ;;  %s9727_s24 = smov 124   ;;  %vm5379_vm3 = vcmask 1045504   ;;  %s9728_s25 = smov 120   ;;  %vm6508_vm4 = vcmask 31744  }
   0xf   : > { %8191 = vmatpush3.msra.mxu0 %v332_v0  ;;  %7706 = vmatpush3.msra.mxu1 %v6731_v1  ;;  %s14148_s13 = smov (!%p161_p3, %s6724_s13), 1 }
  0x10   : > { %7707 = vmatprep.mubr.msk.f32.mxu1 %vm9726_vm0, %v14021_v2  ;;  %8192 = vmatprep.mubr.msk.f32.mxu0 %vm9726_vm0, %v14021_v2  ;;  %s9618_s18 = smul.u32 1368, %s14148_s13 }
  0x11   : > { %8675 = vmatprep.subr.mxu0 %v14021_v2  ;;  %9160 = vmatprep.subr.mxu1 %v14021_v2  ;;  %s9619_s26 = smul.u32 1280, %s14148_s13 }
  0x12   : > { %s9777_s21 = scalar_lea.vmem %s14017_s0, %s9618_s18 }
  0x13   : > { %v176_v4 = vld [vmem:[%s9777_s21 + $0x28] sm:$0xff]  ;;  %v171_v5 = vld [vmem:[%s9777_s21] sm:$0xff]  ;;  %v177_v6 = vld [vmem:[%s9777_s21 + $0x30] sm:$0xff]  ;;  %s11644_s4 = scalar_lea.vmem %s14020_s3, %s9619_s26 }
  0x14   : > { %7708 = vmatmul.mubr.msk.f32.vlgmr.msra.gmra.mrb[0].mxu1 %vm340_vm1, %v176_v4  ;;  %8193 = vmatmul.mubr.msk.f32.vlgmr.msra.gmra.mrb[0].mxu0 %vm340_vm1, %v171_v5  ;;  %v172_v7 = vld [vmem:[%s9777_s21 + $0x8] sm:$0xff]  ;;  %v178_v8 = vld [vmem:[%s9777_s21 + $0x38] sm:$0xff]  ;;  %v173_v9 = vld [vmem:[%s9777_s21 + $0x10] sm:$0xff] }
  0x15   : > { %8676 = vmatpush3.msra.mxu0 %v7054_v3  ;;  %9161 = vmatpush3.msra.mxu1 %v332_v0  ;;  %v179_v10 = vld [vmem:[%s9777_s21 + $0x40] sm:$0xff]  ;;  %v174_v11 = vld [vmem:[%s9777_s21 + $0x18] sm:$0xff]  ;;  %v180_v12 = vld [vmem:[%s9777_s21 + $0x48] sm:$0xff] }
  0x16   : > { %7710 = vmatprep.mubr.msk.f32.mxu1 %vm9726_vm0, %v14021_v2  ;;  %8195 = vmatprep.mubr.msk.f32.mxu0 %vm9726_vm0, %v14021_v2  ;;  %v175_v13 = vld [vmem:[%s9777_s21 + $0x20] sm:$0xff]  ;;  %v9823_v14 = vld [vmem:[%s9777_s21 + $0x50] sm:$0xff]  ;;  %v9833_v15 = vld [vmem:[%s9777_s21 + $0x58] sm:$0xff] }
  0x17   : > { %v9843_v16 = vld [vmem:[%s9777_s21 + $0x60] sm:$0xff]  ;;  %v9853_v17 = vld [vmem:[%s9777_s21 + $0x68] sm:$0xff]  ;;  %v9863_v18 = vld [vmem:[%s9777_s21 + $0x70] sm:$0xff] }
  0x18   : > { %7711 = vmatmul.mubr.msk.f32.gmra.mrb[2].mxu1 %vm340_vm1, %v177_v6  ;;  %8196 = vmatmul.mubr.msk.f32.gmra.mrb[2].mxu0 %vm340_vm1, %v172_v7  ;;  %v9873_v19 = vld [vmem:[%s9777_s21 + $0x78] sm:$0xff]  ;;  %v9884_v20 = vld [vmem:[%s9777_s21 + $0x80] sm:$0xff]  ;;  %v9895_v21 = vld [vmem:[%s9777_s21 + $0x88] sm:$0xff] }
  0x19   : > { %7713 = vmatprep.mubr.msk.f32.mxu1 %vm9726_vm0, %v14021_v2  ;;  %8198 = vmatprep.mubr.msk.f32.mxu0 %vm9726_vm0, %v14021_v2  ;;  %v9906_v22 = vld [vmem:[%s9777_s21 + $0x90] sm:$0xff]  ;;  %v9917_v23 = vld [vmem:[%s9777_s21 + $0x98] sm:$0xff]  ;;  %v9928_v24 = vld [vmem:[%s9777_s21 + $0xa0] sm:$0xff] }
  0x1a   : > { %v9939_v25 = vld [vmem:[%s9777_s21 + $0xa8] sm:$0xff]  ;;  %v9950_v26 = vld [vmem:[%s9777_s21 + $0xb0] sm:$0xff]  ;;  %v9961_v27 = vld [vmem:[%s9777_s21 + $0xb8] sm:$0xff] }
  0x1b   : > { %v9972_v28 = vld [vmem:[%s9777_s21 + $0xc0] sm:$0xff]  ;;  %v9983_v29 = vld [vmem:[%s9777_s21 + $0xc8] sm:$0xff]  ;;  %v9994_v30 = vld [vmem:[%s9777_s21 + $0xd0] sm:$0xff] }
  0x1c   : > { %7714 = vmatmul.mubr.msk.f32.gmra.mrb[4].mxu1 %vm340_vm1, %v178_v8  ;;  %8199 = vmatmul.mubr.msk.f32.gmra.mrb[4].mxu0 %vm340_vm1, %v173_v9  ;;  %v10005_v31 = vld [vmem:[%s9777_s21 + $0xd8] sm:$0xff]  ;;  %v10016_v32 = vld [vmem:[%s9777_s21 + $0xe0] sm:$0xff]  ;;  %v10027_v33 = vld [vmem:[%s9777_s21 + $0xe8] sm:$0xff] }
  0x1d   : > { %7716 = vmatprep.mubr.msk.f32.mxu1 %vm9726_vm0, %v14021_v2  ;;  %8201 = vmatprep.mubr.msk.f32.mxu0 %vm9726_vm0, %v14021_v2  ;;  %v10038_v34 = vld [vmem:[%s9777_s21 + $0xf0] sm:$0xff]  ;;  %v10049_v35 = vld [vmem:[%s9777_s21 + $0xf8] sm:$0xff]  ;;  %v10060_v36 = vld [vmem:[%s9777_s21 + $0x100] sm:$0xff] }
  0x1e   : > { %v10071_v37 = vld [vmem:[%s9777_s21 + $0x108] sm:$0xff]  ;;  %v10082_v38 = vld [vmem:[%s9777_s21 + $0x110] sm:$0xff]  ;;  %v206_v39 = vld [vmem:[%s9777_s21 + $0x118] sm:$0xff] }
  0x1f   : > { %v207_v40 = vld [vmem:[%s9777_s21 + $0x120] sm:$0xff]  ;;  %v208_v41 = vld [vmem:[%s9777_s21 + $0x128] sm:$0xff]  ;;  %v209_v42 = vld [vmem:[%s9777_s21 + $0x130] sm:$0xff] }
  0x20   : > { %7717 = vmatmul.mubr.msk.f32.gmra.mrb[6].mxu1 %vm340_vm1, %v179_v10  ;;  %8202 = vmatmul.mubr.msk.f32.gmra.mrb[6].mxu0 %vm340_vm1, %v174_v11  ;;  %v210_v43 = vld [vmem:[%s9777_s21 + $0x138] sm:$0xff]  ;;  %v211_v44 = vld [vmem:[%s9777_s21 + $0x140] sm:$0xff]  ;;  %v212_v45 = vld [vmem:[%s9777_s21 + $0x148] sm:$0xff] }
  0x21   : > { %7719 = vmatprep.mubr.msk.f32.mxu1 %vm9726_vm0, %v14021_v2  ;;  %8204 = vmatprep.mubr.msk.f32.mxu0 %vm9726_vm0, %v14021_v2  ;;  %v213_v46 = vld [vmem:[%s9777_s21 + $0x150] sm:$0xff]  ;;  %v214_v47 = vld [vmem:[%s9777_s21 + $0x158] sm:$0xff]  ;;  %v215_v48 = vld [vmem:[%s9777_s21 + $0x160] sm:$0xff] }
  0x22   : > { %v216_v49 = vld [vmem:[%s9777_s21 + $0x168] sm:$0xff]  ;;  %v217_v50 = vld [vmem:[%s9777_s21 + $0x170] sm:$0xff]  ;;  %v218_v51 = vld [vmem:[%s9777_s21 + $0x178] sm:$0xff] }
  0x23   : > { %v219_v52 = vld [vmem:[%s9777_s21 + $0x180] sm:$0xff]  ;;  %v220_v53 = vld [vmem:[%s9777_s21 + $0x188] sm:$0xff]  ;;  %v221_v54 = vld [vmem:[%s9777_s21 + $0x190] sm:$0xff] }
  0x24   : > { %7720 = vmatmul.mubr.msk.f32.gmra.mrb[8].mxu1 %vm340_vm1, %v180_v12  ;;  %8205 = vmatmul.mubr.msk.f32.gmra.mrb[8].mxu0 %vm340_vm1, %v175_v13  ;;  %v222_v55 = vld [vmem:[%s9777_s21 + $0x198] sm:$0xff]  ;;  %v223_v56 = vld [vmem:[%s9777_s21 + $0x1a0] sm:$0xff]  ;;  %v224_v57 = vld [vmem:[%s9777_s21 + $0x1a8] sm:$0xff] }
  0x25   : > { %7722 = vmatprep.mubr.msk.f32.mxu1 %vm9726_vm0, %v14021_v2  ;;  %8207 = vmatprep.mubr.msk.f32.mxu0 %vm9726_vm0, %v14021_v2  ;;  %v225_v58 = vld [vmem:[%s9777_s21 + $0x1b0] sm:$0xff]  ;;  %v226_v59 = vld [vmem:[%s9777_s21 + $0x1b8] sm:$0xff]  ;;  %v227_v60 = vld [vmem:[%s9777_s21 + $0x1c0] sm:$0xff] }
  0x26   : > { %v228_v61 = vld [vmem:[%s9777_s21 + $0x1c8] sm:$0xff]  ;;  %v229_v62 = vld [vmem:[%s9777_s21 + $0x1d0] sm:$0xff]  ;;  %v230_v1 = vld [vmem:[%s9777_s21 + $0x1d8] sm:$0xff] }
  0x27   : > { %v231_v5 = vld [vmem:[%s9777_s21 + $0x1e0] sm:$0xff]  ;;  %v233_v11 = vld [vmem:[%s9777_s21 + $0x1f0] sm:$0xff] }
  0x28   : > { %7723 = vmatmul.mubr.msk.f32.gmra.mrb[10].mxu1 %vm340_vm1, %v9823_v14  ;;  %8208 = vmatmul.mubr.msk.f32.gmra.mrb[10].mxu0 %vm340_vm1, %v176_v4 }
  0x29   : > { %7725 = vmatprep.mubr.msk.f32.mxu1 %vm9726_vm0, %v14021_v2  ;;  %8210 = vmatprep.mubr.msk.f32.mxu0 %vm9726_vm0, %v14021_v2 }
  0x2c   : > { %7726 = vmatmul.mubr.msk.f32.gmra.mrb[12].mxu1 %vm340_vm1, %v9833_v15  ;;  %8211 = vmatmul.mubr.msk.f32.gmra.mrb[12].mxu0 %vm340_vm1, %v177_v6 }
  0x2d   : > { %7728 = vmatprep.mubr.msk.f32.mxu1 %vm9726_vm0, %v14021_v2  ;;  %8213 = vmatprep.mubr.msk.f32.mxu0 %vm9726_vm0, %v14021_v2 }
  0x30   : > { %7729 = vmatmul.mubr.msk.f32.gmra.mrb[14].mxu1 %vm340_vm1, %v9843_v16  ;;  %8214 = vmatmul.mubr.msk.f32.gmra.mrb[14].mxu0 %vm340_vm1, %v178_v8  ;;  %v232_v8 = vld [vmem:[%s9777_s21 + $0x1e8] sm:$0xff] }
  0x31   : > { %7731 = vmatprep.mubr.msk.f32.mxu1 %vm9726_vm0, %v14021_v2  ;;  %8216 = vmatprep.mubr.msk.f32.mxu0 %vm9726_vm0, %v14021_v2 }
  0x34   : > { %7732 = vmatmul.mubr.msk.f32.gmra.mrb[16].mxu1 %vm340_vm1, %v9853_v17  ;;  %8217 = vmatmul.mubr.msk.f32.gmra.mrb[16].mxu0 %vm340_vm1, %v179_v10 }
  0x35   : > { %7734 = vmatprep.mubr.msk.f32.mxu1 %vm9726_vm0, %v14021_v2  ;;  %8219 = vmatprep.mubr.msk.f32.mxu0 %vm9726_vm0, %v14021_v2 }
  0x38   : > { %7735 = vmatmul.mubr.msk.f32.gmra.mrb[18].mxu1 %vm340_vm1, %v9863_v18  ;;  %8220 = vmatmul.mubr.msk.f32.gmra.mrb[18].mxu0 %vm340_vm1, %v180_v12 }
  0x39   : > { %7737 = vmatprep.mubr.msk.f32.mxu1 %vm9726_vm0, %v14021_v2  ;;  %8222 = vmatprep.mubr.msk.f32.mxu0 %vm9726_vm0, %v14021_v2 }
  0x3c   : > { %7738 = vmatmul.mubr.msk.f32.gmra.mrb[20].mxu1 %vm340_vm1, %v9873_v19  ;;  %8223 = vmatmul.mubr.msk.f32.gmra.mrb[20].mxu0 %vm340_vm1, %v9823_v14 }
  0x3d   : > { %7740 = vmatprep.mubr.msk.f32.mxu1 %vm9726_vm0, %v14021_v2  ;;  %8225 = vmatprep.mubr.msk.f32.mxu0 %vm9726_vm0, %v14021_v2 }
  0x40   : > { %7741 = vmatmul.mubr.msk.f32.gmra.mrb[22].mxu1 %vm340_vm1, %v9884_v20  ;;  %8226 = vmatmul.mubr.msk.f32.gmra.mrb[22].mxu0 %vm340_vm1, %v9833_v15 }
  0x41   : > { %7743 = vmatprep.mubr.msk.f32.mxu1 %vm9726_vm0, %v14021_v2  ;;  %8228 = vmatprep.mubr.msk.f32.mxu0 %vm9726_vm0, %v14021_v2 }
  0x44   : > { %7744 = vmatmul.mubr.msk.f32.gmra.mrb[24].mxu1 %vm340_vm1, %v9895_v21  ;;  %8229 = vmatmul.mubr.msk.f32.gmra.mrb[24].mxu0 %vm340_vm1, %v9843_v16 }
  0x45   : > { %7746 = vmatprep.mubr.msk.f32.mxu1 %vm9726_vm0, %v14021_v2  ;;  %8231 = vmatprep.mubr.msk.f32.mxu0 %vm9726_vm0, %v14021_v2 }
  0x48   : > { %7747 = vmatmul.mubr.msk.f32.gmra.mrb[26].mxu1 %vm340_vm1, %v9906_v22  ;;  %8232 = vmatmul.mubr.msk.f32.gmra.mrb[26].mxu0 %vm340_vm1, %v9853_v17 }
  0x49   : > { %7749 = vmatprep.mubr.msk.f32.mxu1 %vm9726_vm0, %v14021_v2  ;;  %8234 = vmatprep.mubr.msk.f32.mxu0 %vm9726_vm0, %v14021_v2 }
  0x4c   : > { %7750 = vmatmul.mubr.msk.f32.gmra.mrb[28].mxu1 %vm340_vm1, %v9917_v23  ;;  %8235 = vmatmul.mubr.msk.f32.gmra.mrb[28].mxu0 %vm340_vm1, %v9863_v18 }
  0x4d   : > { %7752 = vmatprep.mubr.msk.f32.mxu1 %vm9726_vm0, %v14021_v2  ;;  %8237 = vmatprep.mubr.msk.f32.mxu0 %vm9726_vm0, %v14021_v2 }
  0x50   : > { %7753 = vmatmul.mubr.msk.f32.gmra.mrb[30].mxu1 %vm340_vm1, %v9928_v24  ;;  %8238 = vmatmul.mubr.msk.f32.gmra.mrb[30].mxu0 %vm340_vm1, %v9873_v19 }
  0x51   : > { %7755 = vmatprep.mubr.msk.f32.mxu1 %vm9726_vm0, %v14021_v2  ;;  %8240 = vmatprep.mubr.msk.f32.mxu0 %vm9726_vm0, %v14021_v2 }
  0x54   : > { %7756 = vmatmul.mubr.msk.f32.gmra.mrb[32].mxu1 %vm340_vm1, %v9939_v25  ;;  %8241 = vmatmul.mubr.msk.f32.gmra.mrb[32].mxu0 %vm340_vm1, %v9884_v20 }
  0x55   : > { %7758 = vmatprep.mubr.msk.f32.mxu1 %vm9726_vm0, %v14021_v2  ;;  %8243 = vmatprep.mubr.msk.f32.mxu0 %vm9726_vm0, %v14021_v2 }
  0x58   : > { %7759 = vmatmul.mubr.msk.f32.gmra.mrb[34].mxu1 %vm340_vm1, %v9950_v26  ;;  %8244 = vmatmul.mubr.msk.f32.gmra.mrb[34].mxu0 %vm340_vm1, %v9895_v21 }
  0x59   : > { %7761 = vmatprep.mubr.msk.f32.mxu1 %vm9726_vm0, %v14021_v2  ;;  %8246 = vmatprep.mubr.msk.f32.mxu0 %vm9726_vm0, %v14021_v2 }
  0x5c   : > { %7762 = vmatmul.mubr.msk.f32.gmra.mrb[36].mxu1 %vm340_vm1, %v9961_v27  ;;  %8247 = vmatmul.mubr.msk.f32.gmra.mrb[36].mxu0 %vm340_vm1, %v9906_v22 }
  0x5d   : > { %7764 = vmatprep.mubr.msk.f32.mxu1 %vm9726_vm0, %v14021_v2  ;;  %8249 = vmatprep.mubr.msk.f32.mxu0 %vm9726_vm0, %v14021_v2 }
  0x60   : > { %7765 = vmatmul.mubr.msk.f32.gmra.mrb[38].mxu1 %vm340_vm1, %v9972_v28  ;;  %8250 = vmatmul.mubr.msk.f32.gmra.mrb[38].mxu0 %vm340_vm1, %v9917_v23 }
  0x61   : > { %7767 = vmatprep.mubr.msk.f32.mxu1 %vm9726_vm0, %v14021_v2  ;;  %8252 = vmatprep.mubr.msk.f32.mxu0 %vm9726_vm0, %v14021_v2 }
  0x64   : > { %7768 = vmatmul.mubr.msk.f32.gmra.mrb[40].mxu1 %vm340_vm1, %v9983_v29  ;;  %8253 = vmatmul.mubr.msk.f32.gmra.mrb[40].mxu0 %vm340_vm1, %v9928_v24 }
  0x65   : > { %7770 = vmatprep.mubr.msk.f32.mxu1 %vm9726_vm0, %v14021_v2  ;;  %8255 = vmatprep.mubr.msk.f32.mxu0 %vm9726_vm0, %v14021_v2 }
  0x68   : > { %7771 = vmatmul.mubr.msk.f32.gmra.mrb[42].mxu1 %vm340_vm1, %v9994_v30  ;;  %8256 = vmatmul.mubr.msk.f32.gmra.mrb[42].mxu0 %vm340_vm1, %v9939_v25 }
  0x69   : > { %7773 = vmatprep.mubr.msk.f32.mxu1 %vm9726_vm0, %v14021_v2  ;;  %8258 = vmatprep.mubr.msk.f32.mxu0 %vm9726_vm0, %v14021_v2 }
  0x6c   : > { %7774 = vmatmul.mubr.msk.f32.gmra.mrb[44].mxu1 %vm340_vm1, %v10005_v31  ;;  %8259 = vmatmul.mubr.msk.f32.gmra.mrb[44].mxu0 %vm340_vm1, %v9950_v26 }
  0x6d   : > { %7776 = vmatprep.mubr.msk.f32.mxu1 %vm9726_vm0, %v14021_v2  ;;  %8261 = vmatprep.mubr.msk.f32.mxu0 %vm9726_vm0, %v14021_v2 }
  0x70   : > { %7777 = vmatmul.mubr.msk.f32.gmra.mrb[46].mxu1 %vm340_vm1, %v10016_v32  ;;  %8262 = vmatmul.mubr.msk.f32.gmra.mrb[46].mxu0 %vm340_vm1, %v9961_v27 }
  0x71   : > { %7779 = vmatprep.mubr.msk.f32.mxu1 %vm9726_vm0, %v14021_v2  ;;  %8264 = vmatprep.mubr.msk.f32.mxu0 %vm9726_vm0, %v14021_v2 }
  0x74   : > { %7780 = vmatmul.mubr.msk.f32.gmra.mrb[48].mxu1 %vm340_vm1, %v10027_v33  ;;  %8265 = vmatmul.mubr.msk.f32.gmra.mrb[48].mxu0 %vm340_vm1, %v9972_v28 }
  0x75   : > { %7782 = vmatprep.mubr.msk.f32.mxu1 %vm9726_vm0, %v14021_v2  ;;  %8267 = vmatprep.mubr.msk.f32.mxu0 %vm9726_vm0, %v14021_v2 }
  0x78   : > { %7783 = vmatmul.mubr.msk.f32.gmra.mrb[50].mxu1 %vm340_vm1, %v10038_v34  ;;  %8268 = vmatmul.mubr.msk.f32.gmra.mrb[50].mxu0 %vm340_vm1, %v9983_v29 }
  0x79   : > { %7785 = vmatprep.mubr.msk.f32.mxu1 %vm9726_vm0, %v14021_v2  ;;  %8270 = vmatprep.mubr.msk.f32.mxu0 %vm9726_vm0, %v14021_v2 }
  0x7c   : > { %7786 = vmatmul.mubr.msk.f32.gmra.mrb[52].mxu1 %vm340_vm1, %v10049_v35  ;;  %8271 = vmatmul.mubr.msk.f32.gmra.mrb[52].mxu0 %vm340_vm1, %v9994_v30 }
  0x7d   : > { %7788 = vmatprep.mubr.msk.f32.mxu1 %vm9726_vm0, %v14021_v2  ;;  %8273 = vmatprep.mubr.msk.f32.mxu0 %vm9726_vm0, %v14021_v2 }
  0x80   : > { %7789 = vmatmul.mubr.msk.f32.gmra.mrb[54].mxu1 %vm340_vm1, %v10060_v36  ;;  %8274 = vmatmul.mubr.msk.f32.gmra.mrb[54].mxu0 %vm340_vm1, %v10005_v31 }
  0x81   : > { %7791 = vmatprep.mubr.msk.f32.mxu1 %vm9726_vm0, %v14021_v2  ;;  %8276 = vmatprep.mubr.msk.f32.mxu0 %vm9726_vm0, %v14021_v2 }
  0x84   : > { %7792 = vmatmul.mubr.msk.f32.gmra.mrb[56].mxu1 %vm340_vm1, %v10071_v37  ;;  %8277 = vmatmul.mubr.msk.f32.gmra.mrb[56].mxu0 %vm340_vm1, %v10016_v32 }
  0x85   : > { %7794 = vmatprep.mubr.msk.f32.mxu1 %vm9726_vm0, %v14021_v2  ;;  %8279 = vmatprep.mubr.msk.f32.mxu0 %vm9726_vm0, %v14021_v2 }
  0x88   : > { %7795 = vmatmul.mubr.msk.f32.gmra.mrb[58].mxu1 %vm340_vm1, %v10082_v38  ;;  %8280 = vmatmul.mubr.msk.f32.gmra.mrb[58].mxu0 %vm340_vm1, %v10027_v33 }
  0x89   : > { %7797 = vmatprep.mubr.msk.f32.mxu1 %vm9726_vm0, %v14021_v2  ;;  %8282 = vmatprep.mubr.msk.f32.mxu0 %vm9726_vm0, %v14021_v2 }
  0x8c   : > { %7798 = vmatmul.mubr.msk.f32.gmra.mrb[60].mxu1 %vm340_vm1, %v206_v39  ;;  %8283 = vmatmul.mubr.msk.f32.gmra.mrb[60].mxu0 %vm340_vm1, %v10038_v34 }
  0x8d   : > { %7800 = vmatprep.mubr.msk.f32.mxu1 %vm9726_vm0, %v14021_v2  ;;  %8285 = vmatprep.mubr.msk.f32.mxu0 %vm9726_vm0, %v14021_v2 }
  0x90   : > { %7801 = vmatmul.mubr.msk.f32.gmra.mrb[62].mxu1 %vm340_vm1, %v207_v40  ;;  %8286 = vmatmul.mubr.msk.f32.gmra.mrb[62].mxu0 %vm340_vm1, %v10049_v35 }
  0x91   : > { %7803 = vmatprep.mubr.msk.f32.mxu1 %vm9726_vm0, %v14021_v2  ;;  %8288 = vmatprep.mubr.msk.f32.mxu0 %vm9726_vm0, %v14021_v2 }
  0x94   : > { %7804 = vmatmul.mubr.msk.f32.gmra.mrb[64].mxu1 %vm340_vm1, %v208_v41  ;;  %8289 = vmatmul.mubr.msk.f32.gmra.mrb[64].mxu0 %vm340_vm1, %v10060_v36 }
  0x95   : > { %7806 = vmatprep.mubr.msk.f32.mxu1 %vm9726_vm0, %v14021_v2  ;;  %8291 = vmatprep.mubr.msk.f32.mxu0 %vm9726_vm0, %v14021_v2 }
  0x98   : > { %7807 = vmatmul.mubr.msk.f32.gmra.mrb[66].mxu1 %vm340_vm1, %v209_v42  ;;  %8292 = vmatmul.mubr.msk.f32.gmra.mrb[66].mxu0 %vm340_vm1, %v10071_v37 }
  0x99   : > { %7809 = vmatprep.mubr.msk.f32.mxu1 %vm9726_vm0, %v14021_v2  ;;  %8294 = vmatprep.mubr.msk.f32.mxu0 %vm9726_vm0, %v14021_v2 }
  0x9c   : > { %7810 = vmatmul.mubr.msk.f32.gmra.mrb[68].mxu1 %vm340_vm1, %v210_v43  ;;  %8295 = vmatmul.mubr.msk.f32.gmra.mrb[68].mxu0 %vm340_vm1, %v10082_v38 }
  0x9d   : > { %7812 = vmatprep.mubr.msk.f32.mxu1 %vm9726_vm0, %v14021_v2  ;;  %8297 = vmatprep.mubr.msk.f32.mxu0 %vm9726_vm0, %v14021_v2 }
  0xa0   : > { %7813 = vmatmul.mubr.msk.f32.gmra.mrb[70].mxu1 %vm340_vm1, %v211_v44  ;;  %8298 = vmatmul.mubr.msk.f32.gmra.mrb[70].mxu0 %vm340_vm1, %v206_v39  ;;  %v234_v39 = vld [vmem:[%s9777_s21 + $0x1f8] sm:$0xff] }
  0xa1   : > { %7815 = vmatprep.mubr.msk.f32.mxu1 %vm9726_vm0, %v14021_v2  ;;  %8300 = vmatprep.mubr.msk.f32.mxu0 %vm9726_vm0, %v14021_v2 }
  0xa4   : > { %7816 = vmatmul.mubr.msk.f32.gmra.mrb[72].mxu1 %vm340_vm1, %v212_v45  ;;  %8301 = vmatmul.mubr.msk.f32.gmra.mrb[72].mxu0 %vm340_vm1, %v207_v40 }
  0xa5   : > { %7818 = vmatprep.mubr.msk.f32.mxu1 %vm9726_vm0, %v14021_v2  ;;  %8303 = vmatprep.mubr.msk.f32.mxu0 %vm9726_vm0, %v14021_v2 }
  0xa8   : > { %7819 = vmatmul.mubr.msk.f32.gmra.mrb[74].mxu1 %vm340_vm1, %v213_v46  ;;  %8304 = vmatmul.mubr.msk.f32.gmra.mrb[74].mxu0 %vm340_vm1, %v208_v41 }
  0xa9   : > { %7821 = vmatprep.mubr.msk.f32.mxu1 %vm9726_vm0, %v14021_v2  ;;  %8306 = vmatprep.mubr.msk.f32.mxu0 %vm9726_vm0, %v14021_v2 }
  0xac   : > { %7822 = vmatmul.mubr.msk.f32.gmra.mrb[76].mxu1 %vm340_vm1, %v214_v47  ;;  %8307 = vmatmul.mubr.msk.f32.gmra.mrb[76].mxu0 %vm340_vm1, %v209_v42  ;;  %v235_v42 = vld [vmem:[%s9777_s21 + $0x200] sm:$0xff] }
  0xad   : > { %7824 = vmatprep.mubr.msk.f32.mxu1 %vm9726_vm0, %v14021_v2  ;;  %8309 = vmatprep.mubr.msk.f32.mxu0 %vm9726_vm0, %v14021_v2 }
  0xb0   : > { %7825 = vmatmul.mubr.msk.f32.gmra.mrb[78].mxu1 %vm340_vm1, %v215_v48  ;;  %8310 = vmatmul.mubr.msk.f32.gmra.mrb[78].mxu0 %vm340_vm1, %v210_v43 }
  0xb1   : > { %7827 = vmatprep.mubr.msk.f32.mxu1 %vm9726_vm0, %v14021_v2  ;;  %8312 = vmatprep.mubr.msk.f32.mxu0 %vm9726_vm0, %v14021_v2 }
  0xb4   : > { %7828 = vmatmul.mubr.msk.f32.gmra.mrb[80].mxu1 %vm340_vm1, %v216_v49  ;;  %8313 = vmatmul.mubr.msk.f32.gmra.mrb[80].mxu0 %vm340_vm1, %v211_v44 }
  0xb5   : > { %7830 = vmatprep.mubr.msk.f32.mxu1 %vm9726_vm0, %v14021_v2  ;;  %8315 = vmatprep.mubr.msk.f32.mxu0 %vm9726_vm0, %v14021_v2 }
  0xb8   : > { %7831 = vmatmul.mubr.msk.f32.gmra.mrb[82].mxu1 %vm340_vm1, %v217_v50  ;;  %8316 = vmatmul.mubr.msk.f32.gmra.mrb[82].mxu0 %vm340_vm1, %v212_v45  ;;  %v236_v45 = vld [vmem:[%s9777_s21 + $0x208] sm:$0xff] }
  0xb9   : > { %7833 = vmatprep.mubr.msk.f32.mxu1 %vm9726_vm0, %v14021_v2  ;;  %8318 = vmatprep.mubr.msk.f32.mxu0 %vm9726_vm0, %v14021_v2 }
  0xbc   : > { %7834 = vmatmul.mubr.msk.f32.gmra.mrb[84].mxu1 %vm340_vm1, %v218_v51  ;;  %8319 = vmatmul.mubr.msk.f32.gmra.mrb[84].mxu0 %vm340_vm1, %v213_v46 }
  0xbd   : > { %7836 = vmatprep.mubr.msk.f32.mxu1 %vm9726_vm0, %v14021_v2  ;;  %8321 = vmatprep.mubr.msk.f32.mxu0 %vm9726_vm0, %v14021_v2 }
  0xc0   : > { %7837 = vmatmul.mubr.msk.f32.gmra.mrb[86].mxu1 %vm340_vm1, %v219_v52  ;;  %8322 = vmatmul.mubr.msk.f32.gmra.mrb[86].mxu0 %vm340_vm1, %v214_v47 }
  0xc1   : > { %7839 = vmatprep.mubr.msk.f32.mxu1 %vm9726_vm0, %v14021_v2  ;;  %8324 = vmatprep.mubr.msk.f32.mxu0 %vm9726_vm0, %v14021_v2 }
  0xc4   : > { %7840 = vmatmul.mubr.msk.f32.gmra.mrb[88].mxu1 %vm340_vm1, %v220_v53  ;;  %8325 = vmatmul.mubr.msk.f32.gmra.mrb[88].mxu0 %vm340_vm1, %v215_v48  ;;  %v237_v48 = vld [vmem:[%s9777_s21 + $0x210] sm:$0xff] }
  0xc5   : > { %7842 = vmatprep.mubr.msk.f32.mxu1 %vm9726_vm0, %v14021_v2  ;;  %8327 = vmatprep.mubr.msk.f32.mxu0 %vm9726_vm0, %v14021_v2 }
  0xc8   : > { %7843 = vmatmul.mubr.msk.f32.gmra.mrb[90].mxu1 %vm340_vm1, %v221_v54  ;;  %8328 = vmatmul.mubr.msk.f32.gmra.mrb[90].mxu0 %vm340_vm1, %v216_v49 }
  0xc9   : > { %7845 = vmatprep.mubr.msk.f32.mxu1 %vm9726_vm0, %v14021_v2  ;;  %8330 = vmatprep.mubr.msk.f32.mxu0 %vm9726_vm0, %v14021_v2 }
  0xcc   : > { %7846 = vmatmul.mubr.msk.f32.gmra.mrb[92].mxu1 %vm340_vm1, %v222_v55  ;;  %8331 = vmatmul.mubr.msk.f32.gmra.mrb[92].mxu0 %vm340_vm1, %v217_v50 }
  0xcd   : > { %7848 = vmatprep.mubr.msk.f32.mxu1 %vm9726_vm0, %v14021_v2  ;;  %8333 = vmatprep.mubr.msk.f32.mxu0 %vm9726_vm0, %v14021_v2 }
  0xd0   : > { %7849 = vmatmul.mubr.msk.f32.gmra.mrb[94].mxu1 %vm340_vm1, %v223_v56  ;;  %8334 = vmatmul.mubr.msk.f32.gmra.mrb[94].mxu0 %vm340_vm1, %v218_v51  ;;  %v238_v51 = vld [vmem:[%s9777_s21 + $0x218] sm:$0xff] }
  0xd1   : > { %7851 = vmatprep.mubr.msk.f32.mxu1 %vm9726_vm0, %v14021_v2  ;;  %8336 = vmatprep.mubr.msk.f32.mxu0 %vm9726_vm0, %v14021_v2 }
  0xd4   : > { %7852 = vmatmul.mubr.msk.f32.gmra.mrb[96].mxu1 %vm340_vm1, %v224_v57  ;;  %8337 = vmatmul.mubr.msk.f32.gmra.mrb[96].mxu0 %vm340_vm1, %v219_v52 }
  0xd5   : > { %7854 = vmatprep.mubr.msk.f32.mxu1 %vm9726_vm0, %v14021_v2  ;;  %8339 = vmatprep.mubr.msk.f32.mxu0 %vm9726_vm0, %v14021_v2 }
  0xd8   : > { %7855 = vmatmul.mubr.msk.f32.gmra.mrb[98].mxu1 %vm340_vm1, %v225_v58  ;;  %8340 = vmatmul.mubr.msk.f32.gmra.mrb[98].mxu0 %vm340_vm1, %v220_v53 }
  0xd9   : > { %7857 = vmatprep.mubr.msk.f32.mxu1 %vm9726_vm0, %v14021_v2  ;;  %8342 = vmatprep.mubr.msk.f32.mxu0 %vm9726_vm0, %v14021_v2 }
  0xdc   : > { %7858 = vmatmul.mubr.msk.f32.gmra.mrb[100].mxu1 %vm340_vm1, %v226_v59  ;;  %8343 = vmatmul.mubr.msk.f32.gmra.mrb[100].mxu0 %vm340_vm1, %v221_v54  ;;  %v239_v54 = vld [vmem:[%s9777_s21 + $0x220] sm:$0xff] }
  0xdd   : > { %7860 = vmatprep.mubr.msk.f32.mxu1 %vm9726_vm0, %v14021_v2  ;;  %8345 = vmatprep.mubr.msk.f32.mxu0 %vm9726_vm0, %v14021_v2 }
  0xe0   : > { %7861 = vmatmul.mubr.msk.f32.gmra.mrb[102].mxu1 %vm340_vm1, %v227_v60  ;;  %8346 = vmatmul.mubr.msk.f32.gmra.mrb[102].mxu0 %vm340_vm1, %v222_v55 }
  0xe1   : > { %7863 = vmatprep.mubr.msk.f32.mxu1 %vm9726_vm0, %v14021_v2  ;;  %8348 = vmatprep.mubr.msk.f32.mxu0 %vm9726_vm0, %v14021_v2 }
  0xe4   : > { %7864 = vmatmul.mubr.msk.f32.gmra.mrb[104].mxu1 %vm340_vm1, %v228_v61  ;;  %8349 = vmatmul.mubr.msk.f32.gmra.mrb[104].mxu0 %vm340_vm1, %v223_v56 }
  0xe5   : > { %7866 = vmatprep.mubr.msk.f32.mxu1 %vm9726_vm0, %v14021_v2  ;;  %8351 = vmatprep.mubr.msk.f32.mxu0 %vm9726_vm0, %v14021_v2 }
  0xe7   : > { %v10259_v63 = vpop.f32.mrb[0].mxu1 }
  0xe8   : > { %7867 = vmatmul.mubr.msk.f32.gmra.mrb[106].mxu1 %vm340_vm1, %v229_v62  ;;  %8352 = vmatmul.mubr.msk.f32.gmra.mrb[106].mxu0 %vm340_vm1, %v224_v57  ;;  %v7709_v0 = vpop.f32.mrb[1].mxu1  ;;  %v240_v57 = vld [vmem:[%s9777_s21 + $0x228] sm:$0xff] }
  0xe9   : > { %7869 = vmatprep.mubr.msk.f32.mxu1 %vm9726_vm0, %v14021_v2  ;;  %8354 = vmatprep.mubr.msk.f32.mxu0 %vm9726_vm0, %v14021_v2  ;;  %v242_v0 = vld [vmem:[%s9777_s21 + $0x238] sm:$0xff] }
  0xeb   : > { %v10268_v3 = vpop.f32.mrb[2].mxu1 }
  0xec   : > { %7870 = vmatmul.mubr.msk.f32.gmra.mrb[108].mxu1 %vm340_vm1, %v230_v1  ;;  %8355 = vmatmul.mubr.msk.f32.gmra.mrb[108].mxu0 %vm340_vm1, %v225_v58  ;;  %v7712_v4 = vpop.f32.mrb[3].mxu1 }
  0xed   : > { %7872 = vmatprep.mubr.msk.f32.mxu1 %vm9726_vm0, %v14021_v2  ;;  %8357 = vmatprep.mubr.msk.f32.mxu0 %vm9726_vm0, %v14021_v2 }
  0xef   : > { %v10277_v6 = vpop.f32.mrb[4].mxu1 }
  0xf0   : > { %7873 = vmatmul.mubr.msk.f32.gmra.mrb[110].mxu1 %vm340_vm1, %v231_v5  ;;  %8358 = vmatmul.mubr.msk.f32.gmra.mrb[110].mxu0 %vm340_vm1, %v226_v59  ;;  %v7715_v7 = vpop.f32.mrb[5].mxu1 }
  0xf1   : > { %7875 = vmatprep.mubr.msk.f32.mxu1 %vm9726_vm0, %v14021_v2  ;;  %8360 = vmatprep.mubr.msk.f32.mxu0 %vm9726_vm0, %v14021_v2 }
  0xf3   : > { %v10286_v9 = vpop.f32.mrb[6].mxu1 }
  0xf4   : > { %7876 = vmatmul.mubr.msk.f32.gmra.mrb[112].mxu1 %vm340_vm1, %v232_v8  ;;  %8361 = vmatmul.mubr.msk.f32.gmra.mrb[112].mxu0 %vm340_vm1, %v227_v60  ;;  %v7718_v10 = vpop.f32.mrb[7].mxu1  ;;  %v241_v60 = vld [vmem:[%s9777_s21 + $0x230] sm:$0xff] }
  0xf5   : > { %7878 = vmatprep.mubr.msk.f32.mxu1 %vm9726_vm0, %v14021_v2  ;;  %8363 = vmatprep.mubr.msk.f32.mxu0 %vm9726_vm0, %v14021_v2  ;;  %v244_v10 = vld [vmem:[%s9777_s21 + $0x248] sm:$0xff] }
  0xf7   : > { %v10295_v12 = vpop.f32.mrb[8].mxu1 }
  0xf8   : > { %7879 = vmatmul.mubr.msk.f32.gmra.mrb[114].mxu1 %vm340_vm1, %v233_v11  ;;  %8364 = vmatmul.mubr.msk.f32.gmra.mrb[114].mxu0 %vm340_vm1, %v228_v61  ;;  %v7721_v13 = vpop.f32.mrb[9].mxu1 }
  0xf9   : > { %7881 = vmatprep.mubr.msk.f32.mxu1 %vm9726_vm0, %v14021_v2  ;;  %8366 = vmatprep.mubr.msk.f32.mxu0 %vm9726_vm0, %v14021_v2 }
  0xfb   : > { %v10304_v40 = vpop.f32.mrb[10].mxu1 }
  0xfc   : > { %7882 = vmatmul.mubr.msk.f32.gmra.mrb[116].mxu1 %vm340_vm1, %v234_v39  ;;  %8367 = vmatmul.mubr.msk.f32.gmra.mrb[116].mxu0 %vm340_vm1, %v229_v62  ;;  %v7724_v41 = vpop.f32.mrb[11].mxu1 }
  0xfd   : > { %7884 = vmatprep.mubr.msk.f32.mxu1 %vm9726_vm0, %v14021_v2  ;;  %8369 = vmatprep.mubr.msk.f32.mxu0 %vm9726_vm0, %v14021_v2 }
  0xff   : > { %v10313_v43 = vpop.f32.mrb[12].mxu1 }
 0x100   : > { %7885 = vmatmul.mubr.msk.f32.gmra.mrb[118].mxu1 %vm340_vm1, %v235_v42  ;;  %8370 = vmatmul.mubr.msk.f32.gmra.mrb[118].mxu0 %vm340_vm1, %v230_v1  ;;  %v7727_v44 = vpop.f32.mrb[13].mxu1 }
 0x101   : > { %7887 = vmatprep.mubr.msk.f32.mxu1 %vm9726_vm0, %v14021_v2  ;;  %8372 = vmatprep.mubr.msk.f32.mxu0 %vm9726_vm0, %v14021_v2  ;;  %v246_v44 = vld [vmem:[%s9777_s21 + $0x258] sm:$0xff] }
 0x103   : > { %v10322_v46 = vpop.f32.mrb[14].mxu1 }
 0x104   : > { %7888 = vmatmul.mubr.msk.f32.gmra.mrb[120].mxu1 %vm340_vm1, %v236_v45  ;;  %8373 = vmatmul.mubr.msk.f32.gmra.mrb[120].mxu0 %vm340_vm1, %v231_v5  ;;  %v7730_v47 = vpop.f32.mrb[15].mxu1  ;;  %v243_v5 = vld [vmem:[%s9777_s21 + $0x240] sm:$0xff] }
 0x105   : > { %7890 = vmatprep.mubr.msk.f32.mxu1 %vm9726_vm0, %v14021_v2  ;;  %8375 = vmatprep.mubr.msk.f32.mxu0 %vm9726_vm0, %v14021_v2 }
 0x107   : > { %v10331_v49 = vpop.f32.mrb[16].mxu1 }
 0x108   : > { %7891 = vmatmul.mubr.msk.f32.gmra.mrb[122].mxu1 %vm340_vm1, %v237_v48  ;;  %8376 = vmatmul.mubr.msk.f32.gmra.mrb[122].mxu0 %vm340_vm1, %v232_v8  ;;  %v7733_v50 = vpop.f32.mrb[17].mxu1 }
 0x109   : > { %7893 = vmatprep.mubr.msk.f32.mxu1 %vm9726_vm0, %v14021_v2  ;;  %8378 = vmatprep.mubr.msk.f32.mxu0 %vm9726_vm0, %v14021_v2 }
 0x10b   : > { %v10340_v52 = vpop.f32.mrb[18].mxu1 }
 0x10c   : > { %7894 = vmatmul.mubr.msk.f32.gmra.mrb[124].mxu1 %vm340_vm1, %v238_v51  ;;  %8379 = vmatmul.mubr.msk.f32.gmra.mrb[124].mxu0 %vm340_vm1, %v233_v11  ;;  %v7736_v53 = vpop.f32.mrb[19].mxu1 }
 0x10d   : > { %7896 = vmatprep.mubr.msk.f32.mxu1 %vm9726_vm0, %v14021_v2  ;;  %8381 = vmatprep.mubr.msk.f32.mxu0 %vm9726_vm0, %v14021_v2  ;;  %v248_v53 = vld [vmem:[%s9777_s21 + $0x268] sm:$0xff] }
 0x10f   : > { %v10349_v55 = vpop.f32.mrb[20].mxu1 }
 0x110   : > { %7897 = vmatmul.mubr.msk.f32.gmra.mrb[126].mxu1 %vm340_vm1, %v239_v54  ;;  %8382 = vmatmul.mubr.msk.f32.gmra.mrb[126].mxu0 %vm340_vm1, %v234_v39  ;;  %v7739_v56 = vpop.f32.mrb[21].mxu1  ;;  %v245_v39 = vld [vmem:[%s9777_s21 + $0x250] sm:$0xff] }
 0x111   : > { %7899 = vmatprep.mubr.msk.f32.mxu1 %vm9726_vm0, %v14021_v2  ;;  %8384 = vmatprep.mubr.msk.f32.mxu0 %vm9726_vm0, %v14021_v2 }
 0x113   : > { %v10358_v58 = vpop.f32.mrb[22].mxu1 }
 0x114   : > { %7900 = vmatmul.mubr.msk.f32.gmra.mrb[128].mxu1 %vm340_vm1, %v240_v57  ;;  %8385 = vmatmul.mubr.msk.f32.gmra.mrb[128].mxu0 %vm340_vm1, %v235_v42  ;;  %v7742_v59 = vpop.f32.mrb[23].mxu1 }
 0x115   : > { %7902 = vmatprep.mubr.msk.f32.mxu1 %vm9726_vm0, %v14021_v2  ;;  %8387 = vmatprep.mubr.msk.f32.mxu0 %vm9726_vm0, %v14021_v2 }
 0x117   : > { %v10367_v61 = vpop.f32.mrb[24].mxu1 }
 0x118   : > { %7903 = vmatmul.mubr.msk.f32.gmra.mrb[130].mxu1 %vm340_vm1, %v241_v60  ;;  %8388 = vmatmul.mubr.msk.f32.gmra.mrb[130].mxu0 %vm340_vm1, %v236_v45  ;;  %v7745_v62 = vpop.f32.mrb[25].mxu1 }
 0x119   : > { %7905 = vmatprep.mubr.msk.f32.mxu1 %vm9726_vm0, %v14021_v2  ;;  %8390 = vmatprep.mubr.msk.f32.mxu0 %vm9726_vm0, %v14021_v2  ;;  %v250_v62 = vld [vmem:[%s9777_s21 + $0x278] sm:$0xff] }
 0x11b   : > { %v10376_v1 = vpop.f32.mrb[26].mxu1 }
 0x11c   : > { %7906 = vmatmul.mubr.msk.f32.gmra.mrb[132].mxu1 %vm340_vm1, %v242_v0  ;;  %8391 = vmatmul.mubr.msk.f32.gmra.mrb[132].mxu0 %vm340_vm1, %v237_v48  ;;  %v7748_v4 = vpop.f32.mrb[27].mxu1  ;;  %v247_v48 = vld [vmem:[%s9777_s21 + $0x260] sm:$0xff] }
 0x11d   : > { %7908 = vmatprep.mubr.msk.f32.mxu1 %vm9726_vm0, %v14021_v2  ;;  %8393 = vmatprep.mubr.msk.f32.mxu0 %vm9726_vm0, %v14021_v2 }
 0x11f   : > { %v10385_v7 = vpop.f32.mrb[28].mxu1 }
 0x120   : > { %7909 = vmatmul.mubr.msk.f32.gmra.mrb[134].mxu1 %vm340_vm1, %v243_v5  ;;  %8394 = vmatmul.mubr.msk.f32.gmra.mrb[134].mxu0 %vm340_vm1, %v238_v51  ;;  %v7751_v8 = vpop.f32.mrb[29].mxu1 }
 0x121   : > { %7911 = vmatprep.mubr.msk.f32.mxu1 %vm9726_vm0, %v14021_v2  ;;  %8396 = vmatprep.mubr.msk.f32.mxu0 %vm9726_vm0, %v14021_v2 }
 0x123   : > { %v10394_v11 = vpop.f32.mrb[30].mxu1 }
 0x124   : > { %7912 = vmatmul.mubr.msk.f32.gmra.mrb[136].mxu1 %vm340_vm1, %v244_v10  ;;  %8397 = vmatmul.mubr.msk.f32.gmra.mrb[136].mxu0 %vm340_vm1, %v239_v54  ;;  %v7754_v13 = vpop.f32.mrb[31].mxu1 }
 0x125   : > { %7914 = vmatprep.mubr.msk.f32.mxu1 %vm9726_vm0, %v14021_v2  ;;  %8399 = vmatprep.mubr.msk.f32.mxu0 %vm9726_vm0, %v14021_v2  ;;  %v252_v13 = vld [vmem:[%s9777_s21 + $0x288] sm:$0xff] }
 0x127   : > { %v10403_v41 = vpop.f32.mrb[32].mxu1 }
 0x128   : > { %7915 = vmatmul.mubr.msk.f32.gmra.mrb[138].mxu1 %vm340_vm1, %v245_v39  ;;  %8400 = vmatmul.mubr.msk.f32.gmra.mrb[138].mxu0 %vm340_vm1, %v240_v57  ;;  %v7757_v42 = vpop.f32.mrb[33].mxu1  ;;  %v249_v57 = vld [vmem:[%s9777_s21 + $0x270] sm:$0xff] }
 0x129   : > { %7917 = vmatprep.mubr.msk.f32.mxu1 %vm9726_vm0, %v14021_v2  ;;  %8402 = vmatprep.mubr.msk.f32.mxu0 %vm9726_vm0, %v14021_v2 }
 0x12b   : > { %v10412_v45 = vpop.f32.mrb[34].mxu1 }
 0x12c   : > { %7918 = vmatmul.mubr.msk.f32.gmra.mrb[140].mxu1 %vm340_vm1, %v246_v44  ;;  %8403 = vmatmul.mubr.msk.f32.gmra.mrb[140].mxu0 %vm340_vm1, %v241_v60  ;;  %v7760_v47 = vpop.f32.mrb[35].mxu1 }
 0x12d   : > { %7920 = vmatprep.mubr.msk.f32.mxu1 %vm9726_vm0, %v14021_v2  ;;  %8405 = vmatprep.mubr.msk.f32.mxu0 %vm9726_vm0, %v14021_v2 }
 0x12f   : > { %v10421_v50 = vpop.f32.mrb[36].mxu1 }
 0x130   : > { %7921 = vmatmul.mubr.msk.f32.gmra.mrb[142].mxu1 %vm340_vm1, %v247_v48  ;;  %8406 = vmatmul.mubr.msk.f32.gmra.mrb[142].mxu0 %vm340_vm1, %v242_v0  ;;  %v7763_v51 = vpop.f32.mrb[37].mxu1 }
 0x131   : > { %7923 = vmatprep.mubr.msk.f32.mxu1 %vm9726_vm0, %v14021_v2  ;;  %8408 = vmatprep.mubr.msk.f32.mxu0 %vm9726_vm0, %v14021_v2 }
 0x133   : > { %v10430_v54 = vpop.f32.mrb[38].mxu1 }
 0x134   : > { %7924 = vmatmul.mubr.msk.f32.gmra.mrb[144].mxu1 %vm340_vm1, %v248_v53  ;;  %8409 = vmatmul.mubr.msk.f32.gmra.mrb[144].mxu0 %vm340_vm1, %v243_v5  ;;  %v7766_v56 = vpop.f32.mrb[39].mxu1  ;;  %v251_v5 = vld [vmem:[%s9777_s21 + $0x280] sm:$0xff] }
 0x135   : > { %7926 = vmatprep.mubr.msk.f32.mxu1 %vm9726_vm0, %v14021_v2  ;;  %8411 = vmatprep.mubr.msk.f32.mxu0 %vm9726_vm0, %v14021_v2 }
 0x137   : > { %v10439_v59 = vpop.f32.mrb[40].mxu1 }
 0x138   : > { %7927 = vmatmul.mubr.msk.f32.gmra.mrb[146].mxu1 %vm340_vm1, %v249_v57  ;;  %8412 = vmatmul.mubr.msk.f32.gmra.mrb[146].mxu0 %vm340_vm1, %v244_v10  ;;  %v7769_v60 = vpop.f32.mrb[41].mxu1 }
 0x139   : > { %7929 = vmatprep.mubr.msk.f32.mxu1 %vm9726_vm0, %v14021_v2  ;;  %8414 = vmatprep.mubr.msk.f32.mxu0 %vm9726_vm0, %v14021_v2 }
 0x13b   : > { %v10448_v0 = vpop.f32.mrb[42].mxu1 }
 0x13c   : > { %7930 = vmatmul.mubr.msk.f32.gmra.mrb[148].mxu1 %vm340_vm1, %v250_v62  ;;  %8415 = vmatmul.mubr.msk.f32.gmra.mrb[148].mxu0 %vm340_vm1, %v245_v39  ;;  %v7772_v4 = vpop.f32.mrb[43].mxu1 }
 0x13d   : > { %7932 = vmatprep.mubr.msk.f32.mxu1 %vm9726_vm0, %v14021_v2  ;;  %8417 = vmatprep.mubr.msk.f32.mxu0 %vm9726_vm0, %v14021_v2 }
 0x13f   : > { %v10457_v8 = vpop.f32.mrb[44].mxu1 }
 0x140   : > { %7933 = vmatmul.mubr.msk.f32.gmra.mrb[150].mxu1 %vm340_vm1, %v251_v5  ;;  %8418 = vmatmul.mubr.msk.f32.gmra.mrb[150].mxu0 %vm340_vm1, %v246_v44  ;;  %v7775_v10 = vpop.f32.mrb[45].mxu1  ;;  %v253_v44 = vld [vmem:[%s9777_s21 + $0x290] sm:$0xff] }
 0x141   : > { %7935 = vmatprep.mubr.msk.f32.mxu1 %vm9726_vm0, %v14021_v2  ;;  %8420 = vmatprep.mubr.msk.f32.mxu0 %vm9726_vm0, %v14021_v2 }
 0x143   : > { %v10466_v39 = vpop.f32.mrb[46].mxu1 }
 0x144   : > { %7936 = vmatmul.mubr.msk.f32.gmra.mrb[152].mxu1 %vm340_vm1, %v252_v13  ;;  %8421 = vmatmul.mubr.msk.f32.gmra.mrb[152].mxu0 %vm340_vm1, %v247_v48  ;;  %v7778_v42 = vpop.f32.mrb[47].mxu1  ;;  %v254_v48 = vld [vmem:[%s9777_s21 + $0x298] sm:$0xff] }
 0x145   : > { %7938 = vmatprep.mubr.msk.f32.mxu1 %vm9726_vm0, %v14021_v2  ;;  %8423 = vmatprep.mubr.msk.f32.mxu0 %vm9726_vm0, %v14021_v2 }
 0x147   : > { %v10475_v47 = vpop.f32.mrb[48].mxu1 }
 0x148   : > { %7939 = vmatmul.mubr.msk.f32.gmra.mrb[154].mxu1 %vm340_vm1, %v253_v44  ;;  %8424 = vmatmul.mubr.msk.f32.gmra.mrb[154].mxu0 %vm340_vm1, %v248_v53  ;;  %v7781_v51 = vpop.f32.mrb[49].mxu1  ;;  %v255_v53 = vld [vmem:[%s9777_s21 + $0x2a0] sm:$0xff] }
 0x149   : > { %7941 = vmatprep.mubr.msk.f32.mxu1 %vm9726_vm0, %v14021_v2  ;;  %8426 = vmatprep.mubr.msk.f32.mxu0 %vm9726_vm0, %v14021_v2 }
 0x14b   : > { %v10484_v56 = vpop.f32.mrb[50].mxu1 }
 0x14c   : > { %7942 = vmatmul.mubr.msk.f32.gmra.mrb[156].mxu1 %vm340_vm1, %v254_v48  ;;  %8427 = vmatmul.mubr.msk.f32.gmra.mrb[156].mxu0 %vm340_vm1, %v249_v57  ;;  %v7784_v60 = vpop.f32.mrb[51].mxu1  ;;  %v256_v57 = vld [vmem:[%s9777_s21 + $0x2a8] sm:$0xff] }
 0x14d   : > { %7944 = vmatprep.mubr.msk.f32.mxu1 %vm9726_vm0, %v14021_v2  ;;  %8429 = vmatprep.mubr.msk.f32.mxu0 %vm9726_vm0, %v14021_v2 }
 0x14f   : > { %v10493_v4 = vpop.f32.mrb[52].mxu1 }
 0x150   : > { %7945 = vmatmul.mubr.msk.f32.gmra.mrb[158].mxu1 %vm340_vm1, %v255_v53  ;;  %8430 = vmatmul.mubr.msk.f32.gmra.mrb[158].mxu0 %vm340_vm1, %v250_v62  ;;  %v7787_v10 = vpop.f32.mrb[53].mxu1  ;;  %v257_v62 = vld [vmem:[%s9777_s21 + $0x2b0] sm:$0xff] }
 0x151   : > { %7947 = vmatprep.mubr.msk.f32.mxu1 %vm9726_vm0, %v14021_v2  ;;  %8432 = vmatprep.mubr.msk.f32.mxu0 %vm9726_vm0, %v14021_v2 }
 0x153   : > { %v10502_v13 = vpop.f32.mrb[54].mxu1 }
 0x154   : > { %7948 = vmatmul.mubr.msk.f32.gmra.mrb[160].mxu1 %vm340_vm1, %v256_v57  ;;  %8433 = vmatmul.mubr.msk.f32.gmra.mrb[160].mxu0 %vm340_vm1, %v251_v5  ;;  %v7790_v42 = vpop.f32.mrb[55].mxu1  ;;  %v258_v5 = vld [vmem:[%s9777_s21 + $0x2b8] sm:$0xff] }
 0x155   : > { %7950 = vmatprep.mubr.msk.f32.mxu1 %vm9726_vm0, %v14021_v2  ;;  %8677 = vmatprep.mubr.msk.f32.mxu0 %vm9726_vm0, %v14021_v2 }
 0x157   : > { %v10511_v44 = vpop.f32.mrb[56].mxu1 }
 0x158   : > { %7951 = vmatmul.mubr.msk.f32.gmra.mrb[162].mxu1 %vm340_vm1, %v257_v62  ;;  %8678 = vmatmul.mubr.msk.f32.vlgmr.msra.gmra.mrb[0].mxu0 %vm340_vm1, %v9823_v14  ;;  %v7793_v51 = vpop.f32.mrb[57].mxu1  ;;  %v259_v14 = vld [vmem:[%s9777_s21 + $0x2c0] sm:$0xff] }
 0x159   : > { %7953 = vmatprep.mubr.msk.f32.mxu1 %vm9726_vm0, %v14021_v2  ;;  %8680 = vmatprep.mubr.msk.f32.mxu0 %vm9726_vm0, %v14021_v2 }
 0x15b   : > { %v10521_v48 = vpop.f32.mrb[58].mxu1 }
 0x15c   : > { %7954 = vmatmul.mubr.msk.f32.gmra.mrb[164].mxu1 %vm340_vm1, %v258_v5  ;;  %8681 = vmatmul.mubr.msk.f32.gmra.mrb[2].mxu0 %vm340_vm1, %v9833_v15  ;;  %v7796_v60 = vpop.f32.mrb[59].mxu1  ;;  %v260_v15 = vld [vmem:[%s9777_s21 + $0x2c8] sm:$0xff] }
 0x15d   : > { %7956 = vmatprep.mubr.msk.f32.mxu1 %vm9726_vm0, %v14021_v2  ;;  %8683 = vmatprep.mubr.msk.f32.mxu0 %vm9726_vm0, %v14021_v2 }
 0x15f   : > { %v10531_v53 = vpop.f32.mrb[60].mxu1 }
 0x160   : > { %7957 = vmatmul.mubr.msk.f32.gmra.mrb[166].mxu1 %vm340_vm1, %v259_v14  ;;  %8684 = vmatmul.mubr.msk.f32.gmra.mrb[4].mxu0 %vm340_vm1, %v9843_v16  ;;  %v7799_v10 = vpop.f32.mrb[61].mxu1  ;;  %v261_v16 = vld [vmem:[%s9777_s21 + $0x2d0] sm:$0xff] }
 0x161   : > { %7959 = vmatprep.mubr.msk.f32.mxu1 %vm9726_vm0, %v14021_v2  ;;  %8686 = vmatprep.mubr.msk.f32.mxu0 %vm9726_vm0, %v14021_v2 }
 0x163   : > { %v10541_v57 = vpop.f32.mrb[62].mxu1 }
 0x164   : > { %7960 = vmatmul.mubr.msk.f32.gmra.mrb[168].mxu1 %vm340_vm1, %v260_v15  ;;  %8687 = vmatmul.mubr.msk.f32.gmra.mrb[6].mxu0 %vm340_vm1, %v9853_v17  ;;  %v7802_v42 = vpop.f32.mrb[63].mxu1  ;;  %v262_v17 = vld [vmem:[%s9777_s21 + $0x2d8] sm:$0xff] }
 0x165   : > { %7962 = vmatprep.mubr.msk.f32.mxu1 %vm9726_vm0, %v14021_v2  ;;  %8689 = vmatprep.mubr.msk.f32.mxu0 %vm9726_vm0, %v14021_v2 }
 0x167   : > { %v10551_v62 = vpop.f32.mrb[64].mxu1 }
 0x168   : > { %7963 = vmatmul.mubr.msk.f32.gmra.mrb[170].mxu1 %vm340_vm1, %v261_v16  ;;  %8690 = vmatmul.mubr.msk.f32.gmra.mrb[8].mxu0 %vm340_vm1, %v9863_v18  ;;  %v7805_v51 = vpop.f32.mrb[65].mxu1  ;;  %v263_v18 = vld [vmem:[%s9777_s21 + $0x2e0] sm:$0xff] }
 0x169   : > { %7965 = vmatprep.mubr.msk.f32.mxu1 %vm9726_vm0, %v14021_v2  ;;  %8692 = vmatprep.mubr.msk.f32.mxu0 %vm9726_vm0, %v14021_v2 }
 0x16b   : > { %v10561_v5 = vpop.f32.mrb[66].mxu1 }
 0x16c   : > { %7966 = vmatmul.mubr.msk.f32.gmra.mrb[172].mxu1 %vm340_vm1, %v262_v17  ;;  %8693 = vmatmul.mubr.msk.f32.gmra.mrb[10].mxu0 %vm340_vm1, %v9873_v19  ;;  %v7808_v60 = vpop.f32.mrb[67].mxu1  ;;  %v264_v19 = vld [vmem:[%s9777_s21 + $0x2e8] sm:$0xff] }
 0x16d   : > { %7968 = vmatprep.mubr.msk.f32.mxu1 %vm9726_vm0, %v14021_v2  ;;  %8695 = vmatprep.mubr.msk.f32.mxu0 %vm9726_vm0, %v14021_v2 }
 0x16f   : > { %v10571_v14 = vpop.f32.mrb[68].mxu1 }
 0x170   : > { %7969 = vmatmul.mubr.msk.f32.gmra.mrb[174].mxu1 %vm340_vm1, %v263_v18  ;;  %8696 = vmatmul.mubr.msk.f32.gmra.mrb[12].mxu0 %vm340_vm1, %v9884_v20  ;;  %v7811_v10 = vpop.f32.mrb[69].mxu1  ;;  %v265_v20 = vld [vmem:[%s9777_s21 + $0x2f0] sm:$0xff] }
 0x171   : > { %7971 = vmatprep.mubr.msk.f32.mxu1 %vm9726_vm0, %v14021_v2  ;;  %8698 = vmatprep.mubr.msk.f32.mxu0 %vm9726_vm0, %v14021_v2 }
 0x173   : > { %v10581_v15 = vpop.f32.mrb[70].mxu1 }
 0x174   : > { %7972 = vmatmul.mubr.msk.f32.gmra.mrb[176].mxu1 %vm340_vm1, %v264_v19  ;;  %8699 = vmatmul.mubr.msk.f32.gmra.mrb[14].mxu0 %vm340_vm1, %v9895_v21  ;;  %v7814_v42 = vpop.f32.mrb[71].mxu1  ;;  %v266_v21 = vld [vmem:[%s9777_s21 + $0x2f8] sm:$0xff] }
 0x175   : > { %7974 = vmatprep.mubr.msk.f32.mxu1 %vm9726_vm0, %v14021_v2  ;;  %8701 = vmatprep.mubr.msk.f32.mxu0 %vm9726_vm0, %v14021_v2 }
 0x177   : > { %v10591_v16 = vpop.f32.mrb[72].mxu1 }
 0x178   : > { %7975 = vmatmul.mubr.msk.f32.gmra.mrb[178].mxu1 %vm340_vm1, %v265_v20  ;;  %8702 = vmatmul.mubr.msk.f32.gmra.mrb[16].mxu0 %vm340_vm1, %v9906_v22  ;;  %v7817_v51 = vpop.f32.mrb[73].mxu1  ;;  %v267_v22 = vld [vmem:[%s9777_s21 + $0x300] sm:$0xff] }
 0x179   : > { %7977 = vmatprep.mubr.msk.f32.mxu1 %vm9726_vm0, %v14021_v2  ;;  %8704 = vmatprep.mubr.msk.f32.mxu0 %vm9726_vm0, %v14021_v2 }
 0x17b   : > { %v10601_v17 = vpop.f32.mrb[74].mxu1 }
 0x17c   : > { %7978 = vmatmul.mubr.msk.f32.gmra.mrb[180].mxu1 %vm340_vm1, %v266_v21  ;;  %8705 = vmatmul.mubr.msk.f32.gmra.mrb[18].mxu0 %vm340_vm1, %v9917_v23  ;;  %v7820_v60 = vpop.f32.mrb[75].mxu1  ;;  %v268_v23 = vld [vmem:[%s9777_s21 + $0x308] sm:$0xff] }
 0x17d   : > { %7980 = vmatprep.mubr.msk.f32.mxu1 %vm9726_vm0, %v14021_v2  ;;  %8707 = vmatprep.mubr.msk.f32.mxu0 %vm9726_vm0, %v14021_v2 }
 0x17f   : > { %v10611_v18 = vpop.f32.mrb[76].mxu1 }
 0x180   : > { %7981 = vmatmul.mubr.msk.f32.gmra.mrb[182].mxu1 %vm340_vm1, %v267_v22  ;;  %8708 = vmatmul.mubr.msk.f32.gmra.mrb[20].mxu0 %vm340_vm1, %v9928_v24  ;;  %v7823_v10 = vpop.f32.mrb[77].mxu1  ;;  %v269_v24 = vld [vmem:[%s9777_s21 + $0x310] sm:$0xff] }
 0x181   : > { %7983 = vmatprep.mubr.msk.f32.mxu1 %vm9726_vm0, %v14021_v2  ;;  %8710 = vmatprep.mubr.msk.f32.mxu0 %vm9726_vm0, %v14021_v2 }
 0x183   : > { %v10621_v19 = vpop.f32.mrb[78].mxu1 }
 0x184   : > { %7984 = vmatmul.mubr.msk.f32.gmra.mrb[184].mxu1 %vm340_vm1, %v268_v23  ;;  %8711 = vmatmul.mubr.msk.f32.gmra.mrb[22].mxu0 %vm340_vm1, %v9939_v25  ;;  %v7826_v42 = vpop.f32.mrb[79].mxu1  ;;  %v270_v25 = vld [vmem:[%s9777_s21 + $0x318] sm:$0xff] }
 0x185   : > { %7986 = vmatprep.mubr.msk.f32.mxu1 %vm9726_vm0, %v14021_v2  ;;  %8713 = vmatprep.mubr.msk.f32.mxu0 %vm9726_vm0, %v14021_v2 }
 0x187   : > { %v10631_v20 = vpop.f32.mrb[80].mxu1 }
 0x188   : > { %7987 = vmatmul.mubr.msk.f32.gmra.mrb[186].mxu1 %vm340_vm1, %v269_v24  ;;  %8714 = vmatmul.mubr.msk.f32.gmra.mrb[24].mxu0 %vm340_vm1, %v9950_v26  ;;  %v7829_v51 = vpop.f32.mrb[81].mxu1  ;;  %v271_v26 = vld [vmem:[%s9777_s21 + $0x320] sm:$0xff] }
 0x189   : > { %7989 = vmatprep.mubr.msk.f32.mxu1 %vm9726_vm0, %v14021_v2  ;;  %8716 = vmatprep.mubr.msk.f32.mxu0 %vm9726_vm0, %v14021_v2 }
 0x18b   : > { %v10641_v21 = vpop.f32.mrb[82].mxu1 }
 0x18c   : > { %7990 = vmatmul.mubr.msk.f32.gmra.mrb[188].mxu1 %vm340_vm1, %v270_v25  ;;  %8717 = vmatmul.mubr.msk.f32.gmra.mrb[26].mxu0 %vm340_vm1, %v9961_v27  ;;  %v7832_v60 = vpop.f32.mrb[83].mxu1  ;;  %v272_v27 = vld [vmem:[%s9777_s21 + $0x328] sm:$0xff] }
 0x18d   : > { %7992 = vmatprep.mubr.msk.f32.mxu1 %vm9726_vm0, %v14021_v2  ;;  %8719 = vmatprep.mubr.msk.f32.mxu0 %vm9726_vm0, %v14021_v2 }
 0x18f   : > { %v10651_v22 = vpop.f32.mrb[84].mxu1 }
 0x190   : > { %7993 = vmatmul.mubr.msk.f32.gmra.mrb[190].mxu1 %vm340_vm1, %v271_v26  ;;  %8720 = vmatmul.mubr.msk.f32.gmra.mrb[28].mxu0 %vm340_vm1, %v9972_v28  ;;  %v7835_v10 = vpop.f32.mrb[85].mxu1  ;;  %v273_v28 = vld [vmem:[%s9777_s21 + $0x330] sm:$0xff] }
 0x191   : > { %7995 = vmatprep.mubr.msk.f32.mxu1 %vm9726_vm0, %v14021_v2  ;;  %8722 = vmatprep.mubr.msk.f32.mxu0 %vm9726_vm0, %v14021_v2 }
 0x193   : > { %v10661_v23 = vpop.f32.mrb[86].mxu1 }
 0x194   : > { %7996 = vmatmul.mubr.msk.f32.gmra.mrb[192].mxu1 %vm340_vm1, %v272_v27  ;;  %8723 = vmatmul.mubr.msk.f32.gmra.mrb[30].mxu0 %vm340_vm1, %v9983_v29  ;;  %v7838_v42 = vpop.f32.mrb[87].mxu1  ;;  %v274_v29 = vld [vmem:[%s9777_s21 + $0x338] sm:$0xff] }
 0x195   : > { %7998 = vmatprep.mubr.msk.f32.mxu1 %vm9726_vm0, %v14021_v2  ;;  %8725 = vmatprep.mubr.msk.f32.mxu0 %vm9726_vm0, %v14021_v2 }
 0x197   : > { %v10671_v24 = vpop.f32.mrb[88].mxu1 }
 0x198   : > { %7999 = vmatmul.mubr.msk.f32.gmra.mrb[194].mxu1 %vm340_vm1, %v273_v28  ;;  %8726 = vmatmul.mubr.msk.f32.gmra.mrb[32].mxu0 %vm340_vm1, %v9994_v30  ;;  %v7841_v51 = vpop.f32.mrb[89].mxu1  ;;  %v275_v30 = vld [vmem:[%s9777_s21 + $0x340] sm:$0xff] }
 0x199   : > { %8001 = vmatprep.mubr.msk.f32.mxu1 %vm9726_vm0, %v14021_v2  ;;  %8728 = vmatprep.mubr.msk.f32.mxu0 %vm9726_vm0, %v14021_v2 }
 0x19b   : > { %v10681_v25 = vpop.f32.mrb[90].mxu1 }
 0x19c   : > { %8002 = vmatmul.mubr.msk.f32.gmra.mrb[196].mxu1 %vm340_vm1, %v274_v29  ;;  %8729 = vmatmul.mubr.msk.f32.gmra.mrb[34].mxu0 %vm340_vm1, %v10005_v31  ;;  %v7844_v60 = vpop.f32.mrb[91].mxu1  ;;  %v276_v31 = vld [vmem:[%s9777_s21 + $0x348] sm:$0xff] }
 0x19d   : > { %8004 = vmatprep.mubr.msk.f32.mxu1 %vm9726_vm0, %v14021_v2  ;;  %8731 = vmatprep.mubr.msk.f32.mxu0 %vm9726_vm0, %v14021_v2 }
 0x19f   : > { %v10691_v26 = vpop.f32.mrb[92].mxu1 }
 0x1a0   : > { %8005 = vmatmul.mubr.msk.f32.gmra.mrb[198].mxu1 %vm340_vm1, %v275_v30  ;;  %8732 = vmatmul.mubr.msk.f32.gmra.mrb[36].mxu0 %vm340_vm1, %v10016_v32  ;;  %v7847_v10 = vpop.f32.mrb[93].mxu1  ;;  %v277_v32 = vld [vmem:[%s9777_s21 + $0x350] sm:$0xff] }
 0x1a1   : > { %8007 = vmatprep.mubr.msk.f32.mxu1 %vm9726_vm0, %v14021_v2  ;;  %8734 = vmatprep.mubr.msk.f32.mxu0 %vm9726_vm0, %v14021_v2 }
 0x1a3   : > { %v10701_v27 = vpop.f32.mrb[94].mxu1 }
 0x1a4   : > { %8008 = vmatmul.mubr.msk.f32.gmra.mrb[200].mxu1 %vm340_vm1, %v276_v31  ;;  %8735 = vmatmul.mubr.msk.f32.gmra.mrb[38].mxu0 %vm340_vm1, %v10027_v33  ;;  %v7850_v42 = vpop.f32.mrb[95].mxu1  ;;  %v278_v33 = vld [vmem:[%s9777_s21 + $0x358] sm:$0xff] }
 0x1a5   : > { %8010 = vmatprep.mubr.msk.f32.mxu1 %vm9726_vm0, %v14021_v2  ;;  %8737 = vmatprep.mubr.msk.f32.mxu0 %vm9726_vm0, %v14021_v2 }
 0x1a7   : > { %v10711_v28 = vpop.f32.mrb[96].mxu1 }
 0x1a8   : > { %14024 = vst [vmem:[#allocation2_spill] sm:$0xff] %v10711_v28  ;;  %8011 = vmatmul.mubr.msk.f32.gmra.mrb[202].mxu1 %vm340_vm1, %v277_v32  ;;  %8738 = vmatmul.mubr.msk.f32.gmra.mrb[40].mxu0 %vm340_vm1, %v10038_v34  ;;  %v7853_v51 = vpop.f32.mrb[97].mxu1  ;;  %v279_v34 = vld [vmem:[%s9777_s21 + $0x360] sm:$0xff] }
 0x1a9   : > { %8013 = vmatprep.mubr.msk.f32.mxu1 %vm9726_vm0, %v14021_v2  ;;  %8740 = vmatprep.mubr.msk.f32.mxu0 %vm9726_vm0, %v14021_v2  ;;  %v2637_v28 = vld [vmem:[%s9777_s21 + $0x220] sm:$0xff] }
 0x1ab   : > { %v10721_v29 = vpop.f32.mrb[98].mxu1 }
 0x1ac   : > { %14025 = vst [vmem:[#allocation3_spill] sm:$0xff] %v10721_v29  ;;  %8014 = vmatmul.mubr.msk.f32.gmra.mrb[204].mxu1 %vm340_vm1, %v278_v33  ;;  %8741 = vmatmul.mubr.msk.f32.gmra.mrb[42].mxu0 %vm340_vm1, %v10049_v35  ;;  %v7856_v60 = vpop.f32.mrb[99].mxu1  ;;  %v280_v35 = vld [vmem:[%s9777_s21 + $0x368] sm:$0xff]  ;;  %v2604_v33 = vld [vmem:[%s9777_s21 + $0x118] sm:$0xff] }
 0x1ad   : > { %8016 = vmatprep.mubr.msk.f32.mxu1 %vm9726_vm0, %v14021_v2  ;;  %8743 = vmatprep.mubr.msk.f32.mxu0 %vm9726_vm0, %v14021_v2 }
 0x1af   : > { %v10731_v30 = vpop.f32.mrb[100].mxu1 }
 0x1b0   : > { %14026 = vst [vmem:[#allocation4_spill] sm:$0xff] %v10731_v30  ;;  %8017 = vmatmul.mubr.msk.f32.gmra.mrb[206].mxu1 %vm340_vm1, %v279_v34  ;;  %8744 = vmatmul.mubr.msk.f32.gmra.mrb[44].mxu0 %vm340_vm1, %v10060_v36  ;;  %v7859_v10 = vpop.f32.mrb[101].mxu1  ;;  %v281_v36 = vld [vmem:[%s9777_s21 + $0x370] sm:$0xff] }
 0x1b1   : > { %8019 = vmatprep.mubr.msk.f32.mxu1 %vm9726_vm0, %v14021_v2  ;;  %8746 = vmatprep.mubr.msk.f32.mxu0 %vm9726_vm0, %v14021_v2  ;;  %v2605_v10 = vld [vmem:[%s9777_s21 + $0x120] sm:$0xff] }
 0x1b3   : > { %v10741_v31 = vpop.f32.mrb[102].mxu1 }
 0x1b4   : > { %14027 = vst [vmem:[#allocation5_spill] sm:$0xff] %v10741_v31  ;;  %8020 = vmatmul.mubr.msk.f32.gmra.mrb[208].mxu1 %vm340_vm1, %v280_v35  ;;  %8747 = vmatmul.mubr.msk.f32.gmra.mrb[46].mxu0 %vm340_vm1, %v10071_v37  ;;  %v7862_v42 = vpop.f32.mrb[103].mxu1  ;;  %v282_v37 = vld [vmem:[%s9777_s21 + $0x378] sm:$0xff]  ;;  %v2635_v31 = vld [vmem:[%s9777_s21 + $0x210] sm:$0xff] }
 0x1b5   : > { %8022 = vmatprep.mubr.msk.f32.mxu1 %vm9726_vm0, %v14021_v2  ;;  %8749 = vmatprep.mubr.msk.f32.mxu0 %vm9726_vm0, %v14021_v2 }
 0x1b7   : > { %v10751_v32 = vpop.f32.mrb[104].mxu1 }
 0x1b8   : > { %14028 = vst [vmem:[#allocation6_spill] sm:$0xff] %v10751_v32  ;;  %8023 = vmatmul.mubr.msk.f32.gmra.mrb[210].mxu1 %vm340_vm1, %v281_v36  ;;  %8750 = vmatmul.mubr.msk.f32.gmra.mrb[48].mxu0 %vm340_vm1, %v10082_v38  ;;  %v7865_v51 = vpop.f32.mrb[105].mxu1  ;;  %v283_v38 = vld [vmem:[%s9777_s21 + $0x380] sm:$0xff]  ;;  %v284_v36 = vld [vmem:[%s9777_s21 + $0x388] sm:$0xff]  ;;  %v14060_v32 = vmov 0.0  }
 0x1b9   : > { %8025 = vmatprep.mubr.msk.f32.mxu1 %vm9726_vm0, %v14021_v2  ;;  %8752 = vmatprep.mubr.msk.f32.mxu0 %vm9726_vm0, %v14021_v2  ;;  %v2606_v51 = vld [vmem:[%s9777_s21 + $0x128] sm:$0xff] }
 0x1bb   : > { %v10762_v60 = vpop.f32.mrb[106].mxu1 }
 0x1bc   : > { %14029 = vst [vmem:[#allocation7_spill] sm:$0xff] %v10762_v60  ;;  %8026 = vmatmul.mubr.msk.f32.gmra.mrb[212].mxu1 %vm340_vm1, %v282_v37  ;;  %8753 = vmatmul.mubr.msk.f32.gmra.mrb[50].mxu0 %vm340_vm1, %v2604_v33  ;;  %v7868_v34 = vpop.f32.mrb[107].mxu1 }
 0x1bd   : > { %8028 = vmatprep.mubr.msk.f32.mxu1 %vm9726_vm0, %v14021_v2  ;;  %8755 = vmatprep.mubr.msk.f32.mxu0 %vm9726_vm0, %v14021_v2  ;;  %v285_v34 = vld [vmem:[%s9777_s21 + $0x390] sm:$0xff] }
 0x1bf   : > { %v10772_v35 = vpop.f32.mrb[108].mxu1 }
 0x1c0   : > { %14030 = vst [vmem:[#allocation8_spill] sm:$0xff] %v10772_v35  ;;  %8029 = vmatmul.mubr.msk.f32.gmra.mrb[214].mxu1 %vm340_vm1, %v283_v38  ;;  %8756 = vmatmul.mubr.msk.f32.gmra.mrb[52].mxu0 %vm340_vm1, %v2605_v10  ;;  %v7871_v42 = vpop.f32.mrb[109].mxu1  ;;  %v2607_v38 = vld [vmem:[%s9777_s21 + $0x130] sm:$0xff] }
 0x1c1   : > { %8031 = vmatprep.mubr.msk.f32.mxu1 %vm9726_vm0, %v14021_v2  ;;  %8758 = vmatprep.mubr.msk.f32.mxu0 %vm9726_vm0, %v14021_v2 }
 0x1c3   : > { %v10782_v37 = vpop.f32.mrb[110].mxu1 }
 0x1c4   : > { %14031 = vst [vmem:[#allocation9_spill] sm:$0xff] %v10782_v37  ;;  %8032 = vmatmul.mubr.msk.f32.gmra.mrb[216].mxu1 %vm340_vm1, %v284_v36  ;;  %8759 = vmatmul.mubr.msk.f32.gmra.mrb[54].mxu0 %vm340_vm1, %v2606_v51  ;;  %v7874_v33 = vpop.f32.mrb[111].mxu1  ;;  %v286_v36 = vld [vmem:[%s9777_s21 + $0x398] sm:$0xff] }
 0x1c5   : > { %8034 = vmatprep.mubr.msk.f32.mxu1 %vm9726_vm0, %v14021_v2  ;;  %8761 = vmatprep.mubr.msk.f32.mxu0 %vm9726_vm0, %v14021_v2  ;;  %v2608_v51 = vld [vmem:[%s9777_s21 + $0x138] sm:$0xff] }
 0x1c7   : > { %v10792_v10 = vpop.f32.mrb[112].mxu1 }
 0x1c8   : > { %14032 = vst [vmem:[#allocation10_spill] sm:$0xff] %v10792_v10  ;;  %8035 = vmatmul.mubr.msk.f32.gmra.mrb[218].mxu1 %vm340_vm1, %v285_v34  ;;  %8762 = vmatmul.mubr.msk.f32.gmra.mrb[56].mxu0 %vm340_vm1, %v2607_v38  ;;  %v7877_v42 = vpop.f32.mrb[113].mxu1  ;;  %v287_v38 = vld [vmem:[%s9777_s21 + $0x3a0] sm:$0xff] }
 0x1c9   : > { %8037 = vmatprep.mubr.msk.f32.mxu1 %vm9726_vm0, %v14021_v2  ;;  %8764 = vmatprep.mubr.msk.f32.mxu0 %vm9726_vm0, %v14021_v2  ;;  %v2609_v42 = vld [vmem:[%s9777_s21 + $0x140] sm:$0xff] }
 0x1cb   : > { %v10802_v33 = vpop.f32.mrb[114].mxu1 }
 0x1cc   : > { %14033 = vst [vmem:[#allocation11_spill] sm:$0xff] %v10802_v33  ;;  %8038 = vmatmul.mubr.msk.f32.gmra.mrb[220].mxu1 %vm340_vm1, %v286_v36  ;;  %8765 = vmatmul.mubr.msk.f32.gmra.mrb[58].mxu0 %vm340_vm1, %v2608_v51  ;;  %v7880_v34 = vpop.f32.mrb[115].mxu1  ;;  %v288_v51 = vld [vmem:[%s9777_s21 + $0x3a8] sm:$0xff] }
 0x1cd   : > { %8040 = vmatprep.mubr.msk.f32.mxu1 %vm9726_vm0, %v14021_v2  ;;  %8767 = vmatprep.mubr.msk.f32.mxu0 %vm9726_vm0, %v14021_v2  ;;  %v2610_v34 = vld [vmem:[%s9777_s21 + $0x148] sm:$0xff] }
 0x1cf   : > { %v10812_v10 = vpop.f32.mrb[116].mxu1 }
 0x1d0   : > { %14034 = vst [vmem:[#allocation12_spill] sm:$0xff] %v10812_v10  ;;  %8041 = vmatmul.mubr.msk.f32.gmra.mrb[222].mxu1 %vm340_vm1, %v287_v38  ;;  %8768 = vmatmul.mubr.msk.f32.gmra.mrb[60].mxu0 %vm340_vm1, %v2609_v42  ;;  %v7883_v36 = vpop.f32.mrb[117].mxu1  ;;  %v289_v42 = vld [vmem:[%s9777_s21 + $0x3b0] sm:$0xff] }
 0x1d1   : > { %8043 = vmatprep.mubr.msk.f32.mxu1 %vm9726_vm0, %v14021_v2  ;;  %8770 = vmatprep.mubr.msk.f32.mxu0 %vm9726_vm0, %v14021_v2  ;;  %v2611_v36 = vld [vmem:[%s9777_s21 + $0x150] sm:$0xff] }
 0x1d3   : > { %v10822_v33 = vpop.f32.mrb[118].mxu1 }
 0x1d4   : > { %14035 = vst [vmem:[#allocation13_spill] sm:$0xff] %v10822_v33  ;;  %8044 = vmatmul.mubr.msk.f32.gmra.mrb[224].mxu1 %vm340_vm1, %v288_v51  ;;  %8771 = vmatmul.mubr.msk.f32.gmra.mrb[62].mxu0 %vm340_vm1, %v2610_v34  ;;  %v7886_v38 = vpop.f32.mrb[119].mxu1  ;;  %v290_v34 = vld [vmem:[%s9777_s21 + $0x3b8] sm:$0xff] }
 0x1d5   : > { %8046 = vmatprep.mubr.msk.f32.mxu1 %vm9726_vm0, %v14021_v2  ;;  %8773 = vmatprep.mubr.msk.f32.mxu0 %vm9726_vm0, %v14021_v2  ;;  %v2612_v38 = vld [vmem:[%s9777_s21 + $0x158] sm:$0xff] }
 0x1d7   : > { %v10832_v10 = vpop.f32.mrb[120].mxu1 }
 0x1d8   : > { %14036 = vst [vmem:[#allocation14_spill] sm:$0xff] %v10832_v10  ;;  %8047 = vmatmul.mubr.msk.f32.gmra.mrb[226].mxu1 %vm340_vm1, %v289_v42  ;;  %8774 = vmatmul.mubr.msk.f32.gmra.mrb[64].mxu0 %vm340_vm1, %v2611_v36  ;;  %v7889_v51 = vpop.f32.mrb[121].mxu1  ;;  %v291_v36 = vld [vmem:[%s9777_s21 + $0x3c0] sm:$0xff] }
 0x1d9   : > { %8049 = vmatprep.mubr.msk.f32.mxu1 %vm9726_vm0, %v14021_v2  ;;  %8776 = vmatprep.mubr.msk.f32.mxu0 %vm9726_vm0, %v14021_v2  ;;  %v2613_v51 = vld [vmem:[%s9777_s21 + $0x160] sm:$0xff] }
 0x1db   : > { %v10842_v33 = vpop.f32.mrb[122].mxu1 }
 0x1dc   : > { %14037 = vst [vmem:[#allocation15_spill] sm:$0xff] %v10842_v33  ;;  %8050 = vmatmul.mubr.msk.f32.gmra.mrb[228].mxu1 %vm340_vm1, %v290_v34  ;;  %8777 = vmatmul.mubr.msk.f32.gmra.mrb[66].mxu0 %vm340_vm1, %v2612_v38  ;;  %v7892_v42 = vpop.f32.mrb[123].mxu1  ;;  %v292_v38 = vld [vmem:[%s9777_s21 + $0x3c8] sm:$0xff] }
 0x1dd   : > { %8052 = vmatprep.mubr.msk.f32.mxu1 %vm9726_vm0, %v14021_v2  ;;  %8779 = vmatprep.mubr.msk.f32.mxu0 %vm9726_vm0, %v14021_v2  ;;  %v2614_v42 = vld [vmem:[%s9777_s21 + $0x168] sm:$0xff] }
 0x1df   : > { %v10852_v10 = vpop.f32.mrb[124].mxu1 }
 0x1e0   : > { %14038 = vst [vmem:[#allocation16_spill] sm:$0xff] %v10852_v10  ;;  %8053 = vmatmul.mubr.msk.f32.gmra.mrb[230].mxu1 %vm340_vm1, %v291_v36  ;;  %8780 = vmatmul.mubr.msk.f32.gmra.mrb[68].mxu0 %vm340_vm1, %v2613_v51  ;;  %v7895_v34 = vpop.f32.mrb[125].mxu1  ;;  %v293_v51 = vld [vmem:[%s9777_s21 + $0x3d0] sm:$0xff] }
 0x1e1   : > { %8055 = vmatprep.mubr.msk.f32.mxu1 %vm9726_vm0, %v14021_v2  ;;  %8782 = vmatprep.mubr.msk.f32.mxu0 %vm9726_vm0, %v14021_v2  ;;  %v2615_v34 = vld [vmem:[%s9777_s21 + $0x170] sm:$0xff] }
 0x1e3   : > { %v10862_v33 = vpop.f32.mrb[126].mxu1 }
 0x1e4   : > { %14039 = vst [vmem:[#allocation17_spill] sm:$0xff] %v10862_v33  ;;  %8056 = vmatmul.mubr.msk.f32.gmra.mrb[232].mxu1 %vm340_vm1, %v292_v38  ;;  %8783 = vmatmul.mubr.msk.f32.gmra.mrb[70].mxu0 %vm340_vm1, %v2614_v42  ;;  %v7898_v36 = vpop.f32.mrb[127].mxu1  ;;  %v294_v42 = vld [vmem:[%s9777_s21 + $0x3d8] sm:$0xff] }
 0x1e5   : > { %8058 = vmatprep.mubr.msk.f32.mxu1 %vm9726_vm0, %v14021_v2  ;;  %8785 = vmatprep.mubr.msk.f32.mxu0 %vm9726_vm0, %v14021_v2  ;;  %v2616_v36 = vld [vmem:[%s9777_s21 + $0x178] sm:$0xff] }
 0x1e7   : > { %v10872_v10 = vpop.f32.mrb[128].mxu1 }
 0x1e8   : > { %14040 = vst [vmem:[#allocation18_spill] sm:$0xff] %v10872_v10  ;;  %8059 = vmatmul.mubr.msk.f32.gmra.mrb[234].mxu1 %vm340_vm1, %v293_v51  ;;  %8786 = vmatmul.mubr.msk.f32.gmra.mrb[72].mxu0 %vm340_vm1, %v2615_v34  ;;  %v7901_v38 = vpop.f32.mrb[129].mxu1  ;;  %v295_v34 = vld [vmem:[%s9777_s21 + $0x3e0] sm:$0xff] }
 0x1e9   : > { %8061 = vmatprep.mubr.msk.f32.mxu1 %vm9726_vm0, %v14021_v2  ;;  %8788 = vmatprep.mubr.msk.f32.mxu0 %vm9726_vm0, %v14021_v2  ;;  %v2617_v38 = vld [vmem:[%s9777_s21 + $0x180] sm:$0xff] }
 0x1eb   : > { %v10882_v33 = vpop.f32.mrb[130].mxu1 }
 0x1ec   : > { %14041 = vst [vmem:[#allocation19_spill] sm:$0xff] %v10882_v33  ;;  %8062 = vmatmul.mubr.msk.f32.gmra.mrb[236].mxu1 %vm340_vm1, %v294_v42  ;;  %8789 = vmatmul.mubr.msk.f32.gmra.mrb[74].mxu0 %vm340_vm1, %v2616_v36  ;;  %v7904_v51 = vpop.f32.mrb[131].mxu1  ;;  %v296_v36 = vld [vmem:[%s9777_s21 + $0x3e8] sm:$0xff] }
 0x1ed   : > { %8064 = vmatprep.mubr.msk.f32.mxu1 %vm9726_vm0, %v14021_v2  ;;  %8791 = vmatprep.mubr.msk.f32.mxu0 %vm9726_vm0, %v14021_v2  ;;  %v2618_v51 = vld [vmem:[%s9777_s21 + $0x188] sm:$0xff] }
 0x1ef   : > { %v10892_v10 = vpop.f32.mrb[132].mxu1 }
 0x1f0   : > { %14042 = vst [vmem:[#allocation20_spill] sm:$0xff] %v10892_v10  ;;  %8065 = vmatmul.mubr.msk.f32.gmra.mrb[238].mxu1 %vm340_vm1, %v295_v34  ;;  %8792 = vmatmul.mubr.msk.f32.gmra.mrb[76].mxu0 %vm340_vm1, %v2617_v38  ;;  %v7907_v42 = vpop.f32.mrb[133].mxu1  ;;  %v297_v38 = vld [vmem:[%s9777_s21 + $0x3f0] sm:$0xff] }
 0x1f1   : > { %8067 = vmatprep.mubr.msk.f32.mxu1 %vm9726_vm0, %v14021_v2  ;;  %8794 = vmatprep.mubr.msk.f32.mxu0 %vm9726_vm0, %v14021_v2  ;;  %v2619_v42 = vld [vmem:[%s9777_s21 + $0x190] sm:$0xff] }
 0x1f3   : > { %v10902_v33 = vpop.f32.mrb[134].mxu1 }
 0x1f4   : > { %14043 = vst [vmem:[#allocation21_spill] sm:$0xff] %v10902_v33  ;;  %8068 = vmatmul.mubr.msk.f32.gmra.mrb[240].mxu1 %vm340_vm1, %v296_v36  ;;  %8795 = vmatmul.mubr.msk.f32.gmra.mrb[78].mxu0 %vm340_vm1, %v2618_v51  ;;  %v7910_v34 = vpop.f32.mrb[135].mxu1  ;;  %v298_v51 = vld [vmem:[%s9777_s21 + $0x3f8] sm:$0xff] }
 0x1f5   : > { %8070 = vmatprep.mubr.msk.f32.mxu1 %vm9726_vm0, %v14021_v2  ;;  %8797 = vmatprep.mubr.msk.f32.mxu0 %vm9726_vm0, %v14021_v2  ;;  %v2620_v34 = vld [vmem:[%s9777_s21 + $0x198] sm:$0xff] }
 0x1f7   : > { %v10912_v10 = vpop.f32.mrb[136].mxu1 }
 0x1f8   : > { %14044 = vst [vmem:[#allocation22_spill] sm:$0xff] %v10912_v10  ;;  %8071 = vmatmul.mubr.msk.f32.gmra.mrb[242].mxu1 %vm340_vm1, %v297_v38  ;;  %8798 = vmatmul.mubr.msk.f32.gmra.mrb[80].mxu0 %vm340_vm1, %v2619_v42  ;;  %v7913_v36 = vpop.f32.mrb[137].mxu1  ;;  %v299_v42 = vld [vmem:[%s9777_s21 + $0x400] sm:$0xff] }
 0x1f9   : > { %8073 = vmatprep.mubr.msk.f32.mxu1 %vm9726_vm0, %v14021_v2  ;;  %8800 = vmatprep.mubr.msk.f32.mxu0 %vm9726_vm0, %v14021_v2  ;;  %v2621_v36 = vld [vmem:[%s9777_s21 + $0x1a0] sm:$0xff] }
 0x1fb   : > { %v10922_v33 = vpop.f32.mrb[138].mxu1 }
 0x1fc   : > { %14045 = vst [vmem:[#allocation23_spill] sm:$0xff] %v10922_v33  ;;  %8074 = vmatmul.mubr.msk.f32.gmra.mrb[244].mxu1 %vm340_vm1, %v298_v51  ;;  %8801 = vmatmul.mubr.msk.f32.gmra.mrb[82].mxu0 %vm340_vm1, %v2620_v34  ;;  %v7916_v38 = vpop.f32.mrb[139].mxu1  ;;  %v300_v34 = vld [vmem:[%s9777_s21 + $0x408] sm:$0xff] }
 0x1fd   : > { %8076 = vmatprep.mubr.msk.f32.mxu1 %vm9726_vm0, %v14021_v2  ;;  %8803 = vmatprep.mubr.msk.f32.mxu0 %vm9726_vm0, %v14021_v2  ;;  %v2622_v38 = vld [vmem:[%s9777_s21 + $0x1a8] sm:$0xff] }
 0x1ff   : > { %v10932_v10 = vpop.f32.mrb[140].mxu1 }
 0x200   : > { %14046 = vst [vmem:[#allocation24_spill] sm:$0xff] %v10932_v10  ;;  %8077 = vmatmul.mubr.msk.f32.gmra.mrb[246].mxu1 %vm340_vm1, %v299_v42  ;;  %8804 = vmatmul.mubr.msk.f32.gmra.mrb[84].mxu0 %vm340_vm1, %v2621_v36  ;;  %v7919_v51 = vpop.f32.mrb[141].mxu1  ;;  %v301_v36 = vld [vmem:[%s9777_s21 + $0x410] sm:$0xff] }
 0x201   : > { %8079 = vmatprep.mubr.msk.f32.mxu1 %vm9726_vm0, %v14021_v2  ;;  %8806 = vmatprep.mubr.msk.f32.mxu0 %vm9726_vm0, %v14021_v2  ;;  %v2623_v51 = vld [vmem:[%s9777_s21 + $0x1b0] sm:$0xff] }
 0x203   : > { %v10942_v33 = vpop.f32.mrb[142].mxu1 }
 0x204   : > { %14047 = vst [vmem:[#allocation25_spill] sm:$0xff] %v10942_v33  ;;  %8080 = vmatmul.mubr.msk.f32.gmra.mrb[248].mxu1 %vm340_vm1, %v300_v34  ;;  %8807 = vmatmul.mubr.msk.f32.gmra.mrb[86].mxu0 %vm340_vm1, %v2622_v38  ;;  %v7922_v42 = vpop.f32.mrb[143].mxu1  ;;  %v302_v38 = vld [vmem:[%s9777_s21 + $0x418] sm:$0xff] }
 0x205   : > { %8082 = vmatprep.mubr.msk.f32.mxu1 %vm9726_vm0, %v14021_v2  ;;  %8809 = vmatprep.mubr.msk.f32.mxu0 %vm9726_vm0, %v14021_v2  ;;  %v2624_v42 = vld [vmem:[%s9777_s21 + $0x1b8] sm:$0xff] }
 0x207   : > { %v10952_v10 = vpop.f32.mrb[144].mxu1 }
 0x208   : > { %14048 = vst [vmem:[#allocation26_spill] sm:$0xff] %v10952_v10  ;;  %8083 = vmatmul.mubr.msk.f32.gmra.mrb[250].mxu1 %vm340_vm1, %v301_v36  ;;  %8810 = vmatmul.mubr.msk.f32.gmra.mrb[88].mxu0 %vm340_vm1, %v2623_v51  ;;  %v7925_v34 = vpop.f32.mrb[145].mxu1  ;;  %v303_v51 = vld [vmem:[%s9777_s21 + $0x420] sm:$0xff] }
 0x209   : > { %8085 = vmatprep.mubr.msk.f32.mxu1 %vm9726_vm0, %v14021_v2  ;;  %8812 = vmatprep.mubr.msk.f32.mxu0 %vm9726_vm0, %v14021_v2  ;;  %v2625_v34 = vld [vmem:[%s9777_s21 + $0x1c0] sm:$0xff] }
 0x20b   : > { %v10962_v33 = vpop.f32.mrb[146].mxu1 }
 0x20c   : > { %14049 = vst [vmem:[#allocation27_spill] sm:$0xff] %v10962_v33  ;;  %8086 = vmatmul.mubr.msk.f32.gmra.mrb[252].mxu1 %vm340_vm1, %v302_v38  ;;  %8813 = vmatmul.mubr.msk.f32.gmra.mrb[90].mxu0 %vm340_vm1, %v2624_v42  ;;  %v7928_v36 = vpop.f32.mrb[147].mxu1  ;;  %v304_v42 = vld [vmem:[%s9777_s21 + $0x428] sm:$0xff] }
 0x20d   : > { %8088 = vmatprep.mubr.msk.f32.mxu1 %vm9726_vm0, %v14021_v2  ;;  %8815 = vmatprep.mubr.msk.f32.mxu0 %vm9726_vm0, %v14021_v2  ;;  %v2626_v36 = vld [vmem:[%s9777_s21 + $0x1c8] sm:$0xff] }
 0x20f   : > { %v10972_v10 = vpop.f32.mrb[148].mxu1 }
 0x210   : > { %14050 = vst [vmem:[#allocation28_spill] sm:$0xff] %v10972_v10  ;;  %8089 = vmatmul.mubr.msk.f32.gmra.mrb[254].mxu1 %vm340_vm1, %v303_v51  ;;  %8816 = vmatmul.mubr.msk.f32.gmra.mrb[92].mxu0 %vm340_vm1, %v2625_v34  ;;  %v7931_v38 = vpop.f32.mrb[149].mxu1  ;;  %v305_v51 = vld [vmem:[%s9777_s21 + $0x430] sm:$0xff] }
 0x211   : > { %8091 = vmatprep.mubr.msk.f32.mxu1 %vm9726_vm0, %v14021_v2  ;;  %8818 = vmatprep.mubr.msk.f32.mxu0 %vm9726_vm0, %v14021_v2  ;;  %v2627_v34 = vld [vmem:[%s9777_s21 + $0x1d0] sm:$0xff] }
 0x213   : > { %v10982_v33 = vpop.f32.mrb[150].mxu1 }
 0x214   : > { %14051 = vst [vmem:[#allocation29_spill] sm:$0xff] %v10982_v33  ;;  %v7934_v37 = vpop.f32.mrb[151].mxu1  ;;  %8092 = vmatmul.mubr.msk.f32.gmra.mrb[150].mxu1 %vm340_vm1, %v304_v42  ;;  %8819 = vmatmul.mubr.msk.f32.gmra.mrb[94].mxu0 %vm340_vm1, %v2626_v36  ;;  %v2628_v42 = vld [vmem:[%s9777_s21 + $0x1d8] sm:$0xff] }
 0x215   : > { %8094 = vmatprep.mubr.msk.f32.mxu1 %vm9726_vm0, %v14021_v2  ;;  %8821 = vmatprep.mubr.msk.f32.mxu0 %vm9726_vm0, %v14021_v2  ;;  %v306_v37 = vld [vmem:[%s9777_s21 + $0x438] sm:$0xff] }
 0x217   : > { %v10992_v38 = vpop.f32.mrb[152].mxu1 }
 0x218   : > { %14052 = vst [vmem:[#allocation30_spill] sm:$0xff] %v10992_v38  ;;  %v7937_v10 = vpop.f32.mrb[153].mxu1  ;;  %8095 = vmatmul.mubr.msk.f32.gmra.mrb[152].mxu1 %vm340_vm1, %v305_v51  ;;  %8822 = vmatmul.mubr.msk.f32.gmra.mrb[96].mxu0 %vm340_vm1, %v2627_v34  ;;  %v2629_v51 = vld [vmem:[%s9777_s21 + $0x1e0] sm:$0xff] }
 0x219   : > { %8097 = vmatprep.mubr.msk.f32.mxu1 %vm9726_vm0, %v14021_v2  ;;  %8824 = vmatprep.mubr.msk.f32.mxu0 %vm9726_vm0, %v14021_v2  ;;  %v307_v10 = vld [vmem:[%s9777_s21 + $0x440] sm:$0xff] }
 0x21b   : > { %v11002_v36 = vpop.f32.mrb[154].mxu1 }
 0x21c   : > { %14053 = vst [vmem:[#allocation31_spill] sm:$0xff] %v11002_v36  ;;  %v7940_v33 = vpop.f32.mrb[155].mxu1  ;;  %8098 = vmatmul.mubr.msk.f32.gmra.mrb[154].mxu1 %vm340_vm1, %v306_v37  ;;  %8825 = vmatmul.mubr.msk.f32.gmra.mrb[98].mxu0 %vm340_vm1, %v2628_v42  ;;  %v2630_v37 = vld [vmem:[%s9777_s21 + $0x1e8] sm:$0xff] }
 0x21d   : > { %8100 = vmatprep.mubr.msk.f32.mxu1 %vm9726_vm0, %v14021_v2  ;;  %8827 = vmatprep.mubr.msk.f32.mxu0 %vm9726_vm0, %v14021_v2  ;;  %v308_v33 = vld [vmem:[%s9777_s21 + $0x448] sm:$0xff] }
 0x21f   : > { %v11012_v34 = vpop.f32.mrb[156].mxu1 }
 0x220   : > { %14054 = vst [vmem:[#allocation32_spill] sm:$0xff] %v11012_v34  ;;  %v7943_v38 = vpop.f32.mrb[157].mxu1  ;;  %8101 = vmatmul.mubr.msk.f32.gmra.mrb[156].mxu1 %vm340_vm1, %v307_v10  ;;  %8828 = vmatmul.mubr.msk.f32.gmra.mrb[100].mxu0 %vm340_vm1, %v2629_v51  ;;  %v2631_v10 = vld [vmem:[%s9777_s21 + $0x1f0] sm:$0xff] }
 0x221   : > { %8103 = vmatprep.mubr.msk.f32.mxu1 %vm9726_vm0, %v14021_v2  ;;  %8830 = vmatprep.mubr.msk.f32.mxu0 %vm9726_vm0, %v14021_v2  ;;  %v309_v38 = vld [vmem:[%s9777_s21 + $0x450] sm:$0xff] }
 0x223   : > { %v11022_v42 = vpop.f32.mrb[158].mxu1 }
 0x224   : > { %14055 = vst [vmem:[#allocation33_spill] sm:$0xff] %v11022_v42  ;;  %v7946_v36 = vpop.f32.mrb[159].mxu1  ;;  %8104 = vmatmul.mubr.msk.f32.gmra.mrb[158].mxu1 %vm340_vm1, %v308_v33  ;;  %8831 = vmatmul.mubr.msk.f32.gmra.mrb[102].mxu0 %vm340_vm1, %v2630_v37  ;;  %v2632_v33 = vld [vmem:[%s9777_s21 + $0x1f8] sm:$0xff] }
 0x225   : > { %8106 = vmatprep.mubr.msk.f32.mxu1 %vm9726_vm0, %v14021_v2  ;;  %8833 = vmatprep.mubr.msk.f32.mxu0 %vm9726_vm0, %v14021_v2  ;;  %v310_v36 = vld [vmem:[%s9777_s21 + $0x458] sm:$0xff] }
 0x227   : > { %v11032_v51 = vpop.f32.mrb[160].mxu1 }
 0x228   : > { %14056 = vst [vmem:[#allocation34_spill] sm:$0xff] %v11032_v51  ;;  %v7949_v34 = vpop.f32.mrb[161].mxu1  ;;  %8107 = vmatmul.mubr.msk.f32.gmra.mrb[160].mxu1 %vm340_vm1, %v309_v38  ;;  %8834 = vmatmul.mubr.msk.f32.gmra.mrb[104].mxu0 %vm340_vm1, %v2631_v10  ;;  %v311_v10 = vld [vmem:[%s9777_s21 + $0x460] sm:$0xff] }
 0x229   : > { %8109 = vmatprep.mubr.msk.f32.mxu1 %vm9726_vm0, %v14021_v2  ;;  %8836 = vmatprep.mubr.msk.f32.mxu0 %vm9726_vm0, %v14021_v2 }
 0x22b   : > { %v11042_v37 = vpop.f32.mrb[162].mxu1  ;;  %v3291_v42 = vpop.f32.mrb[0].mxu0 }
 0x22c   : > { %14057 = vst [vmem:[#allocation35_spill] sm:$0xff] %v11042_v37  ;;  %v11045_v51 = vadd.f32 %v3291_v42, %v10259_v63  ;;  %v7952_v34 = vpop.f32.mrb[163].mxu1  ;;  %8110 = vmatmul.mubr.msk.f32.gmra.mrb[162].mxu1 %vm340_vm1, %v310_v36  ;;  %v8679_v38 = vpop.f32.mrb[1].mxu0  ;;  %8837 = vmatmul.mubr.msk.f32.gmra.mrb[106].mxu0 %vm340_vm1, %v2632_v33  ;;  %v2633_v37 = vld [vmem:[%s9777_s21 + $0x200] sm:$0xff]  ;;  %v312_v33 = vld [vmem:[%s9777_s21 + $0x468] sm:$0xff] }
 0x22d   : > { %8112 = vmatprep.mubr.msk.f32.mxu1 %vm9726_vm0, %v14021_v2  ;;  %8839 = vmatprep.mubr.msk.f32.mxu0 %vm9726_vm0, %v14021_v2  ;;  %v2634_v38 = vld [vmem:[%s9777_s21 + $0x208] sm:$0xff] }
 0x22f   : > { %v11055_v35 = vpop.f32.mrb[164].mxu1  ;;  %v3296_v63 = vpop.f32.mrb[2].mxu0 }
 0x230   : > { %14058 = vst [vmem:[#allocation36_spill] sm:$0xff] %v11055_v35  ;;  %v11058_v42 = vadd.f32 %v3296_v63, %v10268_v3  ;;  %v7955_v36 = vpop.f32.mrb[165].mxu1  ;;  %8113 = vmatmul.mubr.msk.f32.gmra.mrb[164].mxu1 %vm340_vm1, %v311_v10  ;;  %v8682_v34 = vpop.f32.mrb[3].mxu0  ;;  %8840 = vmatmul.mubr.msk.f32.gmra.mrb[108].mxu0 %vm340_vm1, %v2633_v37  ;;  %v4418_v3 = vrot.slane %v11045_v51, 1 }
 0x231   : > { %8115 = vmatprep.mubr.msk.f32.mxu1 %vm9726_vm0, %v14021_v2  ;;  %8842 = vmatprep.mubr.msk.f32.mxu0 %vm9726_vm0, %v14021_v2 }
 0x232   : > { %v4419_v63 = vrot.slane %v11058_v42, 1  ;;  %v5381_v60 = vrot.slane %v11058_v42, 2 }
 0x233   : > { %v11070_v36 = vpop.f32.mrb[166].mxu1  ;;  %v3301_v10 = vpop.f32.mrb[4].mxu0 }
 0x234   : > { %14059 = vst [vmem:[#allocation37_spill] sm:$0xff] %v11070_v36  ;;  %v11073_v37 = vadd.f32 %v3301_v10, %v10277_v6  ;;  %v7958_v34 = vpop.f32.mrb[167].mxu1  ;;  %8116 = vmatmul.mubr.msk.f32.gmra.mrb[166].mxu1 %vm340_vm1, %v312_v33  ;;  %v8685_v35 = vpop.f32.mrb[5].mxu0  ;;  %8843 = vmatmul.mubr.msk.f32.gmra.mrb[110].mxu0 %vm340_vm1, %v2634_v38  ;;  %v4420_v2 = vsel %vm4417_vm2, %v4418_v3, %v4419_v63  ;;  %v313_v36 = vld [vmem:[%s9777_s21 + $0x470] sm:$0xff]  ;;  %v5380_v6 = vrot.slane %v11045_v51, 2 }
 0x235   : > { %4739 = vrot.lane.b32.xlu0 %v4420_v2, %s9727_s24  ;;  %8118 = vmatprep.mubr.msk.f32.mxu1 %vm9726_vm0, %v14060_v32 }
 0x236   : > { %8845 = vmatprep.mubr.msk.f32.mxu0 %vm9726_vm0, %v14060_v32  ;;  %v5383_v35 = vrot.slane %v11073_v37, 2  ;;  %v5382_v34 = vsel %vm5379_vm3, %v5380_v6, %v5381_v60  ;;  %v4421_v29 = vrot.slane %v11073_v37, 1 }
 0x237   : > { %v11088_v33 = vpop.f32.mrb[168].mxu1  ;;  %v3306_v38 = vpop.f32.mrb[6].mxu0 }
 0x238   : > { %14061 = vst [vmem:[#allocation38_spill] sm:$0xff] %v11088_v33  ;;  %v11091_v2 = vadd.f32 %v3306_v38, %v10286_v9  ;;  %v7961_v3 = vpop.f32.mrb[169].mxu1  ;;  %8119 = vmatmul.mubr.msk.f32.gmra.mrb[168].mxu1 %vm340_vm1, %v313_v36  ;;  %v8688_v10 = vpop.f32.mrb[7].mxu0  ;;  %8846 = vmatmul.mubr.msk.f32.gmra.mrb[112].mxu0 %vm340_vm1, %v2635_v31  ;;  %v5384_v30 = vsel %vm5379_vm3, %v5381_v60, %v5383_v35  ;;  %v314_v33 = vld [vmem:[%s9777_s21 + $0x478] sm:$0xff] }
 0x239   : > { %5701 = vrot.lane.b32.xlu0 %v5382_v34, %s9728_s25  ;;  %5703 = vrot.lane.b32.xlu1 %v5384_v30, %s9728_s25  ;;  %v2636_v9 = vld [vmem:[%s9777_s21 + $0x218] sm:$0xff]  ;;  %v4422_v3 = vsel %vm4417_vm2, %v4419_v63, %v4421_v29 }
 0x23a   : > { %8121 = vmatprep.mubr.msk.f32.mxu1 %vm9726_vm0, %v14060_v32  ;;  %8848 = vmatprep.mubr.msk.f32.mxu0 %vm9726_vm0, %v14060_v32  ;;  %v4423_v31 = vrot.slane %v11091_v2, 1  ;;  %v5385_v34 = vrot.slane %v11091_v2, 2 }
 0x23b   : > { %v11107_v60 = vpop.f32.mrb[170].mxu1  ;;  %v3311_v36 = vpop.f32.mrb[8].mxu0 }
 0x23c   : > { %14062 = vst [vmem:[#allocation39_spill] sm:$0xff] %v11107_v60  ;;  %v11110_v6 = vadd.f32 %v3311_v36, %v10295_v12  ;;  %v7964_v38 = vpop.f32.mrb[171].mxu1  ;;  %8122 = vmatmul.mubr.msk.f32.gmra.mrb[170].mxu1 %vm340_vm1, %v314_v33  ;;  %v8691_v30 = vpop.f32.mrb[9].mxu0  ;;  %8849 = vmatmul.mubr.msk.f32.gmra.mrb[114].mxu0 %vm340_vm1, %v2636_v9  ;;  %v4424_v10 = vsel %vm4417_vm2, %v4421_v29, %v4423_v31  ;;  %v315_v60 = vld [vmem:[%s9777_s21 + $0x480] sm:$0xff] }
 0x23d   : > { %4741 = vrot.lane.b32.xlu0 %v4422_v3, %s9727_s24  ;;  %4743 = vrot.lane.b32.xlu1 %v4424_v10, %s9727_s24  ;;  %v5386_v38 = vsel %vm5379_vm3, %v5383_v35, %v5385_v34  ;;  %v316_v10 = vld [vmem:[%s9777_s21 + $0x488] sm:$0xff] }
 0x23e   : > { %8124 = vmatprep.mubr.msk.f32.mxu1 %vm9726_vm0, %v14060_v32  ;;  %8851 = vmatprep.mubr.msk.f32.mxu0 %vm9726_vm0, %v14060_v32  ;;  %v4425_v12 = vrot.slane %v11110_v6, 1  ;;  %v5387_v3 = vrot.slane %v11110_v6, 2 }
 0x23f   : > { %v11126_v63 = vpop.f32.mrb[172].mxu1  ;;  %v3316_v29 = vpop.f32.mrb[10].mxu0 }
 0x240   : > { %14063 = vst [vmem:[#allocation40_spill] sm:$0xff] %v11126_v63  ;;  %v11129_v33 = vadd.f32 %v3316_v29, %v10304_v40  ;;  %v7967_v9 = vpop.f32.mrb[173].mxu1  ;;  %8125 = vmatmul.mubr.msk.f32.gmra.mrb[172].mxu1 %vm340_vm1, %v315_v60  ;;  %v8694_v36 = vpop.f32.mrb[11].mxu0  ;;  %8852 = vmatmul.mubr.msk.f32.gmra.mrb[116].mxu0 %vm340_vm1, %v2637_v28  ;;  %v4426_v30 = vsel %vm4417_vm2, %v4423_v31, %v4425_v12  ;;  %v2638_v63 = vld [vmem:[%s9777_s21 + $0x228] sm:$0xff] }
 0x241   : > { %5705 = vrot.lane.b32.xlu0 %v5386_v38, %s9728_s25  ;;  %4745 = vrot.lane.b32.xlu1 %v4426_v30, %s9727_s24  ;;  %v5388_v9 = vsel %vm5379_vm3, %v5385_v34, %v5387_v3  ;;  %v317_v30 = vld [vmem:[%s9777_s21 + $0x490] sm:$0xff] }
 0x242   : > { %8127 = vmatprep.mubr.msk.f32.mxu1 %vm9726_vm0, %v14060_v32  ;;  %8854 = vmatprep.mubr.msk.f32.mxu0 %vm9726_vm0, %v14060_v32  ;;  %v4427_v40 = vrot.slane %v11129_v33, 1  ;;  %v5389_v38 = vrot.slane %v11129_v33, 2 }
 0x243   : > { %v11145_v28 = vpop.f32.mrb[174].mxu1  ;;  %v3321_v35 = vpop.f32.mrb[12].mxu0 }
 0x244   : > { %14064 = vst [vmem:[#allocation41_spill] sm:$0xff] %v11145_v28  ;;  %v11148_v31 = vadd.f32 %v3321_v35, %v10313_v43  ;;  %v7970_v60 = vpop.f32.mrb[175].mxu1  ;;  %8128 = vmatmul.mubr.msk.f32.gmra.mrb[174].mxu1 %vm340_vm1, %v316_v10  ;;  %v8697_v29 = vpop.f32.mrb[13].mxu0  ;;  %8855 = vmatmul.mubr.msk.f32.gmra.mrb[118].mxu0 %vm340_vm1, %v2638_v63  ;;  %v4428_v36 = vsel %vm4417_vm2, %v4425_v12, %v4427_v40  ;;  %v2639_v28 = vld [vmem:[%s9777_s21 + $0x230] sm:$0xff] }
 0x245   : > { %5707 = vrot.lane.b32.xlu1 %v5388_v9, %s9728_s25  ;;  %4747 = vrot.lane.b32.xlu0 %v4428_v36, %s9727_s24  ;;  %v5390_v60 = vsel %vm5379_vm3, %v5387_v3, %v5389_v38  ;;  %v318_v36 = vld [vmem:[%s9777_s21 + $0x498] sm:$0xff] }
 0x246   : > { %8130 = vmatprep.mubr.msk.f32.mxu1 %vm9726_vm0, %v14060_v32  ;;  %8857 = vmatprep.mubr.msk.f32.mxu0 %vm9726_vm0, %v14060_v32  ;;  %v4429_v43 = vrot.slane %v11148_v31, 1  ;;  %v5391_v9 = vrot.slane %v11148_v31, 2 }
 0x247   : > { %v11164_v34 = vpop.f32.mrb[176].mxu1  ;;  %v3326_v12 = vpop.f32.mrb[14].mxu0 }
 0x248   : > { %14065 = vst [vmem:[#allocation42_spill] sm:$0xff] %v11164_v34  ;;  %v11167_v63 = vadd.f32 %v3326_v12, %v10322_v46  ;;  %v7973_v10 = vpop.f32.mrb[177].mxu1  ;;  %8131 = vmatmul.mubr.msk.f32.gmra.mrb[176].mxu1 %vm340_vm1, %v317_v30  ;;  %v8700_v35 = vpop.f32.mrb[15].mxu0  ;;  %8858 = vmatmul.mubr.msk.f32.gmra.mrb[120].mxu0 %vm340_vm1, %v2639_v28  ;;  %v4430_v29 = vsel %vm4417_vm2, %v4427_v40, %v4429_v43  ;;  %v2640_v34 = vld [vmem:[%s9777_s21 + $0x238] sm:$0xff] }
 0x249   : > { %5709 = vrot.lane.b32.xlu0 %v5390_v60, %s9728_s25  ;;  %4749 = vrot.lane.b32.xlu1 %v4430_v29, %s9727_s24  ;;  %v5392_v10 = vsel %vm5379_vm3, %v5389_v38, %v5391_v9  ;;  %v319_v29 = vld [vmem:[%s9777_s21 + $0x4a0] sm:$0xff] }
 0x24a   : > { %8133 = vmatprep.mubr.msk.f32.mxu1 %vm9726_vm0, %v14060_v32  ;;  %8860 = vmatprep.mubr.msk.f32.mxu0 %vm9726_vm0, %v14060_v32  ;;  %v4431_v46 = vrot.slane %v11167_v63, 1  ;;  %v5393_v60 = vrot.slane %v11167_v63, 2 }
 0x24b   : > { %v11183_v3 = vpop.f32.mrb[178].mxu1  ;;  %v3331_v40 = vpop.f32.mrb[16].mxu0 }
 0x24c   : > { %14066 = vst [vmem:[#allocation43_spill] sm:$0xff] %v11183_v3  ;;  %v11186_v28 = vadd.f32 %v3331_v40, %v10331_v49  ;;  %v7976_v30 = vpop.f32.mrb[179].mxu1  ;;  %8134 = vmatmul.mubr.msk.f32.gmra.mrb[178].mxu1 %vm340_vm1, %v318_v36  ;;  %v8703_v12 = vpop.f32.mrb[17].mxu0  ;;  %8861 = vmatmul.mubr.msk.f32.gmra.mrb[122].mxu0 %vm340_vm1, %v2640_v34  ;;  %v4432_v35 = vsel %vm4417_vm2, %v4429_v43, %v4431_v46  ;;  %v2641_v3 = vld [vmem:[%s9777_s21 + $0x240] sm:$0xff] }
 0x24d   : > { %5711 = vrot.lane.b32.xlu1 %v5392_v10, %s9728_s25  ;;  %4751 = vrot.lane.b32.xlu0 %v4432_v35, %s9727_s24  ;;  %v5394_v30 = vsel %vm5379_vm3, %v5391_v9, %v5393_v60  ;;  %v320_v35 = vld [vmem:[%s9777_s21 + $0x4a8] sm:$0xff] }
 0x24e   : > { %8136 = vmatprep.mubr.msk.f32.mxu1 %vm9726_vm0, %v14060_v32  ;;  %8863 = vmatprep.mubr.msk.f32.mxu0 %vm9726_vm0, %v14060_v32  ;;  %v4433_v49 = vrot.slane %v11186_v28, 1  ;;  %v5395_v10 = vrot.slane %v11186_v28, 2 }
 0x24f   : > { %v11202_v38 = vpop.f32.mrb[180].mxu1  ;;  %v3336_v43 = vpop.f32.mrb[18].mxu0 }
 0x250   : > { %14067 = vst [vmem:[#allocation44_spill] sm:$0xff] %v11202_v38  ;;  %v11205_v34 = vadd.f32 %v3336_v43, %v10340_v52  ;;  %v7979_v36 = vpop.f32.mrb[181].mxu1  ;;  %8137 = vmatmul.mubr.msk.f32.gmra.mrb[180].mxu1 %vm340_vm1, %v319_v29  ;;  %v8706_v40 = vpop.f32.mrb[19].mxu0  ;;  %8864 = vmatmul.mubr.msk.f32.gmra.mrb[124].mxu0 %vm340_vm1, %v2641_v3  ;;  %v4434_v12 = vsel %vm4417_vm2, %v4431_v46, %v4433_v49  ;;  %v2642_v38 = vld [vmem:[%s9777_s21 + $0x248] sm:$0xff] }
 0x251   : > { %5713 = vrot.lane.b32.xlu0 %v5394_v30, %s9728_s25  ;;  %4753 = vrot.lane.b32.xlu1 %v4434_v12, %s9727_s24  ;;  %v5396_v36 = vsel %vm5379_vm3, %v5393_v60, %v5395_v10  ;;  %v321_v12 = vld [vmem:[%s9777_s21 + $0x4b0] sm:$0xff] }
 0x252   : > { %8139 = vmatprep.mubr.msk.f32.mxu1 %vm9726_vm0, %v14060_v32  ;;  %8866 = vmatprep.mubr.msk.f32.mxu0 %vm9726_vm0, %v14060_v32  ;;  %v4435_v52 = vrot.slane %v11205_v34, 1  ;;  %v5397_v30 = vrot.slane %v11205_v34, 2 }
 0x253   : > { %v11221_v9 = vpop.f32.mrb[182].mxu1  ;;  %v3341_v46 = vpop.f32.mrb[20].mxu0 }
 0x254   : > { %14068 = vst [vmem:[#allocation45_spill] sm:$0xff] %v11221_v9  ;;  %v11224_v3 = vadd.f32 %v3341_v46, %v10349_v55  ;;  %v7982_v29 = vpop.f32.mrb[183].mxu1  ;;  %8140 = vmatmul.mubr.msk.f32.gmra.mrb[182].mxu1 %vm340_vm1, %v320_v35  ;;  %v8709_v43 = vpop.f32.mrb[21].mxu0  ;;  %8867 = vmatmul.mubr.msk.f32.gmra.mrb[126].mxu0 %vm340_vm1, %v2642_v38  ;;  %v4436_v40 = vsel %vm4417_vm2, %v4433_v49, %v4435_v52  ;;  %v2643_v9 = vld [vmem:[%s9777_s21 + $0x250] sm:$0xff] }
 0x255   : > { %5715 = vrot.lane.b32.xlu1 %v5396_v36, %s9728_s25  ;;  %4755 = vrot.lane.b32.xlu0 %v4436_v40, %s9727_s24  ;;  %v5398_v29 = vsel %vm5379_vm3, %v5395_v10, %v5397_v30  ;;  %v322_v40 = vld [vmem:[%s9777_s21 + $0x4b8] sm:$0xff] }
 0x256   : > { %8142 = vmatprep.mubr.msk.f32.mxu1 %vm9726_vm0, %v14060_v32  ;;  %8869 = vmatprep.mubr.msk.f32.mxu0 %vm9726_vm0, %v14060_v32  ;;  %v4437_v55 = vrot.slane %v11224_v3, 1  ;;  %v5399_v36 = vrot.slane %v11224_v3, 2 }
 0x257   : > { %v11240_v60 = vpop.f32.mrb[184].mxu1  ;;  %v3346_v49 = vpop.f32.mrb[22].mxu0 }
 0x258   : > { %14069 = vst [vmem:[#allocation46_spill] sm:$0xff] %v11240_v60  ;;  %v11243_v38 = vadd.f32 %v3346_v49, %v10358_v58  ;;  %v7985_v35 = vpop.f32.mrb[185].mxu1  ;;  %8143 = vmatmul.mubr.msk.f32.gmra.mrb[184].mxu1 %vm340_vm1, %v321_v12  ;;  %v8712_v46 = vpop.f32.mrb[23].mxu0  ;;  %8870 = vmatmul.mubr.msk.f32.gmra.mrb[128].mxu0 %vm340_vm1, %v2643_v9  ;;  %v4438_v43 = vsel %vm4417_vm2, %v4435_v52, %v4437_v55  ;;  %v2644_v60 = vld [vmem:[%s9777_s21 + $0x258] sm:$0xff] }
 0x259   : > { %5717 = vrot.lane.b32.xlu0 %v5398_v29, %s9728_s25  ;;  %4757 = vrot.lane.b32.xlu1 %v4438_v43, %s9727_s24  ;;  %v5400_v35 = vsel %vm5379_vm3, %v5397_v30, %v5399_v36  ;;  %v323_v43 = vld [vmem:[%s9777_s21 + $0x4c0] sm:$0xff] }
 0x25a   : > { %8145 = vmatprep.mubr.msk.f32.mxu1 %vm9726_vm0, %v14060_v32  ;;  %8872 = vmatprep.mubr.msk.f32.mxu0 %vm9726_vm0, %v14060_v32  ;;  %v4439_v58 = vrot.slane %v11243_v38, 1  ;;  %v5401_v29 = vrot.slane %v11243_v38, 2 }
 0x25b   : > { %v11259_v10 = vpop.f32.mrb[186].mxu1  ;;  %v3351_v52 = vpop.f32.mrb[24].mxu0 }
 0x25c   : > { %14070 = vst [vmem:[#allocation47_spill] sm:$0xff] %v11259_v10  ;;  %v11262_v9 = vadd.f32 %v3351_v52, %v10367_v61  ;;  %v7988_v12 = vpop.f32.mrb[187].mxu1  ;;  %8146 = vmatmul.mubr.msk.f32.gmra.mrb[186].mxu1 %vm340_vm1, %v322_v40  ;;  %v8715_v49 = vpop.f32.mrb[25].mxu0  ;;  %8873 = vmatmul.mubr.msk.f32.gmra.mrb[130].mxu0 %vm340_vm1, %v2644_v60  ;;  %v4440_v46 = vsel %vm4417_vm2, %v4437_v55, %v4439_v58  ;;  %v2645_v10 = vld [vmem:[%s9777_s21 + $0x260] sm:$0xff] }
 0x25d   : > { %5719 = vrot.lane.b32.xlu1 %v5400_v35, %s9728_s25  ;;  %4759 = vrot.lane.b32.xlu0 %v4440_v46, %s9727_s24  ;;  %v5402_v12 = vsel %vm5379_vm3, %v5399_v36, %v5401_v29  ;;  %v324_v46 = vld [vmem:[%s9777_s21 + $0x4c8] sm:$0xff] }
 0x25e   : > { %8148 = vmatprep.mubr.msk.f32.mxu1 %vm9726_vm0, %v14060_v32  ;;  %8875 = vmatprep.mubr.msk.f32.mxu0 %vm9726_vm0, %v14060_v32  ;;  %v4441_v61 = vrot.slane %v11262_v9, 1  ;;  %v5403_v35 = vrot.slane %v11262_v9, 2 }
 0x25f   : > { %v11278_v30 = vpop.f32.mrb[188].mxu1  ;;  %v3356_v55 = vpop.f32.mrb[26].mxu0 }
 0x260   : > { %14071 = vst [vmem:[#allocation48_spill] sm:$0xff] %v11278_v30  ;;  %v11281_v60 = vadd.f32 %v3356_v55, %v10376_v1  ;;  %v7991_v40 = vpop.f32.mrb[189].mxu1  ;;  %8149 = vmatmul.mubr.msk.f32.gmra.mrb[188].mxu1 %vm340_vm1, %v323_v43  ;;  %v8718_v52 = vpop.f32.mrb[27].mxu0  ;;  %8876 = vmatmul.mubr.msk.f32.gmra.mrb[132].mxu0 %vm340_vm1, %v2645_v10  ;;  %v4442_v49 = vsel %vm4417_vm2, %v4439_v58, %v4441_v61  ;;  %v2646_v30 = vld [vmem:[%s9777_s21 + $0x268] sm:$0xff] }
 0x261   : > { %5721 = vrot.lane.b32.xlu0 %v5402_v12, %s9728_s25  ;;  %4761 = vrot.lane.b32.xlu1 %v4442_v49, %s9727_s24  ;;  %v5404_v40 = vsel %vm5379_vm3, %v5401_v29, %v5403_v35  ;;  %v325_v49 = vld [vmem:[%s9777_s21 + $0x4d0] sm:$0xff] }
 0x262   : > { %8151 = vmatprep.mubr.msk.f32.mxu1 %vm9726_vm0, %v14060_v32  ;;  %8878 = vmatprep.mubr.msk.f32.mxu0 %vm9726_vm0, %v14060_v32  ;;  %v4443_v1 = vrot.slane %v11281_v60, 1  ;;  %v5405_v12 = vrot.slane %v11281_v60, 2 }
 0x263   : > { %v11297_v36 = vpop.f32.mrb[190].mxu1  ;;  %v3361_v58 = vpop.f32.mrb[28].mxu0 }
 0x264   : > { %14072 = vst [vmem:[#allocation49_spill] sm:$0xff] %v11297_v36  ;;  %v11300_v10 = vadd.f32 %v3361_v58, %v10385_v7  ;;  %v7994_v43 = vpop.f32.mrb[191].mxu1  ;;  %8152 = vmatmul.mubr.msk.f32.gmra.mrb[190].mxu1 %vm340_vm1, %v324_v46  ;;  %v8721_v55 = vpop.f32.mrb[29].mxu0  ;;  %8879 = vmatmul.mubr.msk.f32.gmra.mrb[134].mxu0 %vm340_vm1, %v2646_v30  ;;  %v4444_v52 = vsel %vm4417_vm2, %v4441_v61, %v4443_v1  ;;  %v2647_v36 = vld [vmem:[%s9777_s21 + $0x270] sm:$0xff] }
 0x265   : > { %5723 = vrot.lane.b32.xlu1 %v5404_v40, %s9728_s25  ;;  %4763 = vrot.lane.b32.xlu0 %v4444_v52, %s9727_s24  ;;  %v5406_v43 = vsel %vm5379_vm3, %v5403_v35, %v5405_v12  ;;  %v326_v52 = vld [vmem:[%s9777_s21 + $0x4d8] sm:$0xff] }
 0x266   : > { %8154 = vmatprep.mubr.msk.f32.mxu1 %vm9726_vm0, %v14060_v32  ;;  %8881 = vmatprep.mubr.msk.f32.mxu0 %vm9726_vm0, %v14060_v32  ;;  %v4445_v7 = vrot.slane %v11300_v10, 1  ;;  %v5407_v40 = vrot.slane %v11300_v10, 2 }
 0x267   : > { %v11316_v29 = vpop.f32.mrb[192].mxu1  ;;  %v3366_v61 = vpop.f32.mrb[30].mxu0 }
 0x268   : > { %14073 = vst [vmem:[#allocation50_spill] sm:$0xff] %v11316_v29  ;;  %v11319_v30 = vadd.f32 %v3366_v61, %v10394_v11  ;;  %v7997_v46 = vpop.f32.mrb[193].mxu1  ;;  %8155 = vmatmul.mubr.msk.f32.gmra.mrb[192].mxu1 %vm340_vm1, %v325_v49  ;;  %v8724_v58 = vpop.f32.mrb[31].mxu0  ;;  %8882 = vmatmul.mubr.msk.f32.gmra.mrb[136].mxu0 %vm340_vm1, %v2647_v36  ;;  %v4446_v55 = vsel %vm4417_vm2, %v4443_v1, %v4445_v7  ;;  %v2648_v29 = vld [vmem:[%s9777_s21 + $0x278] sm:$0xff] }
 0x269   : > { %5725 = vrot.lane.b32.xlu0 %v5406_v43, %s9728_s25  ;;  %4765 = vrot.lane.b32.xlu1 %v4446_v55, %s9727_s24  ;;  %v5408_v46 = vsel %vm5379_vm3, %v5405_v12, %v5407_v40  ;;  %v327_v55 = vld [vmem:[%s9777_s21 + $0x4e0] sm:$0xff] }
 0x26a   : > { %8157 = vmatprep.mubr.msk.f32.mxu1 %vm9726_vm0, %v14060_v32  ;;  %8884 = vmatprep.mubr.msk.f32.mxu0 %vm9726_vm0, %v14060_v32  ;;  %v4447_v11 = vrot.slane %v11319_v30, 1  ;;  %v5409_v43 = vrot.slane %v11319_v30, 2 }
 0x26b   : > { %v11335_v35 = vpop.f32.mrb[194].mxu1  ;;  %v3371_v1 = vpop.f32.mrb[32].mxu0 }
 0x26c   : > { %14074 = vst [vmem:[#allocation51_spill] sm:$0xff] %v11335_v35  ;;  %v11338_v36 = vadd.f32 %v3371_v1, %v10403_v41  ;;  %v8000_v49 = vpop.f32.mrb[195].mxu1  ;;  %8158 = vmatmul.mubr.msk.f32.gmra.mrb[194].mxu1 %vm340_vm1, %v326_v52  ;;  %v8727_v61 = vpop.f32.mrb[33].mxu0  ;;  %8885 = vmatmul.mubr.msk.f32.gmra.mrb[138].mxu0 %vm340_vm1, %v2648_v29  ;;  %v4448_v58 = vsel %vm4417_vm2, %v4445_v7, %v4447_v11  ;;  %v2649_v35 = vld [vmem:[%s9777_s21 + $0x280] sm:$0xff] }
 0x26d   : > { %5727 = vrot.lane.b32.xlu1 %v5408_v46, %s9728_s25  ;;  %4767 = vrot.lane.b32.xlu0 %v4448_v58, %s9727_s24  ;;  %v5410_v49 = vsel %vm5379_vm3, %v5407_v40, %v5409_v43  ;;  %v328_v58 = vld [vmem:[%s9777_s21 + $0x4e8] sm:$0xff] }
 0x26e   : > { %8160 = vmatprep.mubr.msk.f32.mxu1 %vm9726_vm0, %v14060_v32  ;;  %8887 = vmatprep.mubr.msk.f32.mxu0 %vm9726_vm0, %v14060_v32  ;;  %v4449_v41 = vrot.slane %v11338_v36, 1  ;;  %v5411_v46 = vrot.slane %v11338_v36, 2 }
 0x26f   : > { %v11354_v12 = vpop.f32.mrb[196].mxu1  ;;  %v3376_v7 = vpop.f32.mrb[34].mxu0 }
 0x270   : > { %14075 = vst [vmem:[#allocation52_spill] sm:$0xff] %v11354_v12  ;;  %v11357_v29 = vadd.f32 %v3376_v7, %v10412_v45  ;;  %v8003_v52 = vpop.f32.mrb[197].mxu1  ;;  %8161 = vmatmul.mubr.msk.f32.gmra.mrb[196].mxu1 %vm340_vm1, %v327_v55  ;;  %v8730_v1 = vpop.f32.mrb[35].mxu0  ;;  %8888 = vmatmul.mubr.msk.f32.gmra.mrb[140].mxu0 %vm340_vm1, %v2649_v35  ;;  %v4450_v61 = vsel %vm4417_vm2, %v4447_v11, %v4449_v41  ;;  %v2650_v12 = vld [vmem:[%s9777_s21 + $0x288] sm:$0xff] }
 0x271   : > { %5729 = vrot.lane.b32.xlu0 %v5410_v49, %s9728_s25  ;;  %4769 = vrot.lane.b32.xlu1 %v4450_v61, %s9727_s24  ;;  %v5412_v52 = vsel %vm5379_vm3, %v5409_v43, %v5411_v46  ;;  %v329_v61 = vld [vmem:[%s9777_s21 + $0x4f0] sm:$0xff] }
 0x272   : > { %8163 = vmatprep.mubr.msk.f32.mxu1 %vm9726_vm0, %v14060_v32  ;;  %8890 = vmatprep.mubr.msk.f32.mxu0 %vm9726_vm0, %v14060_v32  ;;  %v4451_v45 = vrot.slane %v11357_v29, 1  ;;  %v5413_v49 = vrot.slane %v11357_v29, 2 }
 0x273   : > { %v11373_v40 = vpop.f32.mrb[198].mxu1  ;;  %v3381_v11 = vpop.f32.mrb[36].mxu0 }
 0x274   : > { %14076 = vst [vmem:[#allocation53_spill] sm:$0xff] %v11373_v40  ;;  %v11376_v35 = vadd.f32 %v3381_v11, %v10421_v50  ;;  %v8006_v55 = vpop.f32.mrb[199].mxu1  ;;  %8164 = vmatmul.mubr.msk.f32.gmra.mrb[198].mxu1 %vm340_vm1, %v328_v58  ;;  %v8733_v7 = vpop.f32.mrb[37].mxu0  ;;  %8891 = vmatmul.mubr.msk.f32.gmra.mrb[142].mxu0 %vm340_vm1, %v2650_v12  ;;  %v4452_v1 = vsel %vm4417_vm2, %v4449_v41, %v4451_v45  ;;  %v2651_v40 = vld [vmem:[%s9777_s21 + $0x290] sm:$0xff] }
 0x275   : > { %5731 = vrot.lane.b32.xlu1 %v5412_v52, %s9728_s25  ;;  %4771 = vrot.lane.b32.xlu0 %v4452_v1, %s9727_s24  ;;  %v5414_v55 = vsel %vm5379_vm3, %v5411_v46, %v5413_v49  ;;  %v330_v1 = vld [vmem:[%s9777_s21 + $0x4f8] sm:$0xff] }
 0x276   : > { %8166 = vmatprep.mubr.msk.f32.mxu1 %vm9726_vm0, %v14060_v32  ;;  %8893 = vmatprep.mubr.msk.f32.mxu0 %vm9726_vm0, %v14060_v32  ;;  %v4453_v50 = vrot.slane %v11376_v35, 1  ;;  %v5415_v52 = vrot.slane %v11376_v35, 2 }
 0x277   : > { %v11392_v43 = vpop.f32.mrb[200].mxu1  ;;  %v3386_v41 = vpop.f32.mrb[38].mxu0 }
 0x278   : > { %14077 = vst [vmem:[#allocation54_spill] sm:$0xff] %v11392_v43  ;;  %v11395_v12 = vadd.f32 %v3386_v41, %v10430_v54  ;;  %v8009_v58 = vpop.f32.mrb[201].mxu1  ;;  %8167 = vmatmul.mubr.msk.f32.gmra.mrb[200].mxu1 %vm340_vm1, %v329_v61  ;;  %v8736_v11 = vpop.f32.mrb[39].mxu0  ;;  %8894 = vmatmul.mubr.msk.f32.gmra.mrb[144].mxu0 %vm340_vm1, %v2651_v40  ;;  %v4454_v7 = vsel %vm4417_vm2, %v4451_v45, %v4453_v50  ;;  %v2652_v43 = vld [vmem:[%s9777_s21 + $0x298] sm:$0xff] }
 0x279   : > { %5733 = vrot.lane.b32.xlu0 %v5414_v55, %s9728_s25  ;;  %4773 = vrot.lane.b32.xlu1 %v4454_v7, %s9727_s24  ;;  %v5416_v58 = vsel %vm5379_vm3, %v5413_v49, %v5415_v52  ;;  %v331_v7 = vld [vmem:[%s9777_s21 + $0x500] sm:$0xff] }
 0x27a   : > { %8169 = vmatprep.mubr.msk.f32.mxu1 %vm9726_vm0, %v14060_v32  ;;  %8896 = vmatprep.mubr.msk.f32.mxu0 %vm9726_vm0, %v14060_v32  ;;  %v4455_v54 = vrot.slane %v11395_v12, 1  ;;  %v5417_v55 = vrot.slane %v11395_v12, 2 }
 0x27b   : > { %v11411_v46 = vpop.f32.mrb[202].mxu1  ;;  %v3391_v45 = vpop.f32.mrb[40].mxu0 }
 0x27c   : > { %14078 = vst [vmem:[#allocation55_spill] sm:$0xff] %v11411_v46  ;;  %v11414_v40 = vadd.f32 %v3391_v45, %v10439_v59  ;;  %v8012_v61 = vpop.f32.mrb[203].mxu1  ;;  %8170 = vmatmul.mubr.msk.f32.gmra.mrb[202].mxu1 %vm340_vm1, %v330_v1  ;;  %v8739_v41 = vpop.f32.mrb[41].mxu0  ;;  %8897 = vmatmul.mubr.msk.f32.gmra.mrb[146].mxu0 %vm340_vm1, %v2652_v43  ;;  %v4456_v11 = vsel %vm4417_vm2, %v4453_v50, %v4455_v54  ;;  %v2653_v46 = vld [vmem:[%s9777_s21 + $0x2a0] sm:$0xff] }
 0x27d   : > { %5735 = vrot.lane.b32.xlu1 %v5416_v58, %s9728_s25  ;;  %4775 = vrot.lane.b32.xlu0 %v4456_v11, %s9727_s24  ;;  %v5418_v61 = vsel %vm5379_vm3, %v5415_v52, %v5417_v55  ;;  %v333_v11 = vld [vmem:[%s9777_s21 + $0x508] sm:$0xff] }
 0x27e   : > { %8172 = vmatprep.mubr.msk.f32.mxu1 %vm9726_vm0, %v14060_v32  ;;  %8899 = vmatprep.mubr.msk.f32.mxu0 %vm9726_vm0, %v14060_v32  ;;  %v4457_v59 = vrot.slane %v11414_v40, 1  ;;  %v5419_v58 = vrot.slane %v11414_v40, 2 }
 0x27f   : > { %v11430_v49 = vpop.f32.mrb[204].mxu1  ;;  %v3396_v50 = vpop.f32.mrb[42].mxu0 }
 0x280   : > { %14079 = vst [vmem:[#allocation56_spill] sm:$0xff] %v11430_v49  ;;  %v11433_v43 = vadd.f32 %v3396_v50, %v10448_v0  ;;  %v8015_v1 = vpop.f32.mrb[205].mxu1  ;;  %8173 = vmatmul.mubr.msk.f32.gmra.mrb[204].mxu1 %vm340_vm1, %v331_v7  ;;  %v8742_v45 = vpop.f32.mrb[43].mxu0  ;;  %8900 = vmatmul.mubr.msk.f32.gmra.mrb[148].mxu0 %vm340_vm1, %v2653_v46  ;;  %v4458_v41 = vsel %vm4417_vm2, %v4455_v54, %v4457_v59  ;;  %v2654_v49 = vld [vmem:[%s9777_s21 + $0x2a8] sm:$0xff] }
 0x281   : > { %5737 = vrot.lane.b32.xlu0 %v5418_v61, %s9728_s25  ;;  %4777 = vrot.lane.b32.xlu1 %v4458_v41, %s9727_s24  ;;  %v5420_v1 = vsel %vm5379_vm3, %v5417_v55, %v5419_v58  ;;  %v334_v41 = vld [vmem:[%s9777_s21 + $0x510] sm:$0xff] }
 0x282   : > { %8175 = vmatprep.mubr.msk.f32.mxu1 %vm9726_vm0, %v14060_v32  ;;  %8902 = vmatprep.mubr.msk.f32.mxu0 %vm9726_vm0, %v14060_v32  ;;  %v4459_v0 = vrot.slane %v11433_v43, 1  ;;  %v5421_v61 = vrot.slane %v11433_v43, 2 }
 0x283   : > { %v11449_v52 = vpop.f32.mrb[206].mxu1  ;;  %v3401_v54 = vpop.f32.mrb[44].mxu0 }
 0x284   : > { %14080 = vst [vmem:[#allocation57_spill] sm:$0xff] %v11449_v52  ;;  %v11452_v46 = vadd.f32 %v3401_v54, %v10457_v8  ;;  %v8018_v7 = vpop.f32.mrb[207].mxu1  ;;  %8176 = vmatmul.mubr.msk.f32.gmra.mrb[206].mxu1 %vm340_vm1, %v333_v11  ;;  %v8745_v50 = vpop.f32.mrb[45].mxu0  ;;  %8903 = vmatmul.mubr.msk.f32.gmra.mrb[150].mxu0 %vm340_vm1, %v2654_v49  ;;  %v4460_v45 = vsel %vm4417_vm2, %v4457_v59, %v4459_v0  ;;  %v2655_v52 = vld [vmem:[%s9777_s21 + $0x2b0] sm:$0xff] }
 0x285   : > { %5739 = vrot.lane.b32.xlu1 %v5420_v1, %s9728_s25  ;;  %4779 = vrot.lane.b32.xlu0 %v4460_v45, %s9727_s24  ;;  %v5422_v7 = vsel %vm5379_vm3, %v5419_v58, %v5421_v61  ;;  %v335_v45 = vld [vmem:[%s9777_s21 + $0x518] sm:$0xff] }
 0x286   : > { %8178 = vmatprep.mubr.msk.f32.mxu1 %vm9726_vm0, %v14060_v32  ;;  %8905 = vmatprep.mubr.msk.f32.mxu0 %vm9726_vm0, %v14060_v32  ;;  %v4461_v8 = vrot.slane %v11452_v46, 1  ;;  %v5423_v1 = vrot.slane %v11452_v46, 2 }
 0x287   : > { %v11468_v55 = vpop.f32.mrb[208].mxu1  ;;  %v3406_v59 = vpop.f32.mrb[46].mxu0 }
 0x288   : > { %14081 = vst [vmem:[#allocation58_spill] sm:$0xff] %v11468_v55  ;;  %v11471_v49 = vadd.f32 %v3406_v59, %v10466_v39  ;;  %v8021_v11 = vpop.f32.mrb[209].mxu1  ;;  %8179 = vmatmul.mubr.msk.f32.gmra.mrb[208].mxu1 %vm340_vm1, %v334_v41  ;;  %v8748_v54 = vpop.f32.mrb[47].mxu0  ;;  %8906 = vmatmul.mubr.msk.f32.gmra.mrb[152].mxu0 %vm340_vm1, %v2655_v52  ;;  %v4462_v50 = vsel %vm4417_vm2, %v4459_v0, %v4461_v8  ;;  %v2656_v55 = vld [vmem:[%s9777_s21 + $0x2b8] sm:$0xff] }
 0x289   : > { %5741 = vrot.lane.b32.xlu0 %v5422_v7, %s9728_s25  ;;  %4781 = vrot.lane.b32.xlu1 %v4462_v50, %s9727_s24  ;;  %v5424_v11 = vsel %vm5379_vm3, %v5421_v61, %v5423_v1  ;;  %v336_v50 = vld [vmem:[%s9777_s21 + $0x520] sm:$0xff] }
 0x28a   : > { %8181 = vmatprep.mubr.msk.f32.mxu1 %vm9726_vm0, %v14060_v32  ;;  %8908 = vmatprep.mubr.msk.f32.mxu0 %vm9726_vm0, %v14060_v32  ;;  %v4463_v39 = vrot.slane %v11471_v49, 1  ;;  %v5425_v7 = vrot.slane %v11471_v49, 2 }
 0x28b   : > { %v11487_v58 = vpop.f32.mrb[210].mxu1  ;;  %v3411_v0 = vpop.f32.mrb[48].mxu0 }
 0x28c   : > { %14082 = vst [vmem:[#allocation59_spill] sm:$0xff] %v11487_v58  ;;  %v11490_v52 = vadd.f32 %v3411_v0, %v10475_v47  ;;  %v8024_v41 = vpop.f32.mrb[211].mxu1  ;;  %8182 = vmatmul.mubr.msk.f32.gmra.mrb[210].mxu1 %vm340_vm1, %v335_v45  ;;  %v8751_v59 = vpop.f32.mrb[49].mxu0  ;;  %8909 = vmatmul.mubr.msk.f32.gmra.mrb[154].mxu0 %vm340_vm1, %v2656_v55  ;;  %v4464_v54 = vsel %vm4417_vm2, %v4461_v8, %v4463_v39  ;;  %v2657_v58 = vld [vmem:[%s9777_s21 + $0x2c0] sm:$0xff] }
 0x28d   : > { %5743 = vrot.lane.b32.xlu1 %v5424_v11, %s9728_s25  ;;  %4783 = vrot.lane.b32.xlu0 %v4464_v54, %s9727_s24  ;;  %v5426_v41 = vsel %vm5379_vm3, %v5423_v1, %v5425_v7  ;;  %v337_v54 = vld [vmem:[%s9777_s21 + $0x528] sm:$0xff] }
 0x28e   : > { %8184 = vmatprep.mubr.msk.f32.mxu1 %vm9726_vm0, %v14060_v32  ;;  %8911 = vmatprep.mubr.msk.f32.mxu0 %vm9726_vm0, %v14060_v32  ;;  %v4465_v47 = vrot.slane %v11490_v52, 1  ;;  %v5427_v11 = vrot.slane %v11490_v52, 2 }
 0x28f   : > { %v11506_v61 = vpop.f32.mrb[212].mxu1  ;;  %v3416_v8 = vpop.f32.mrb[50].mxu0 }
 0x290   : > { %14083 = vst [vmem:[#allocation60_spill] sm:$0xff] %v11506_v61  ;;  %v11509_v55 = vadd.f32 %v3416_v8, %v10484_v56  ;;  %v8027_v45 = vpop.f32.mrb[213].mxu1  ;;  %8185 = vmatmul.mubr.msk.f32.gmra.mrb[212].mxu1 %vm340_vm1, %v336_v50  ;;  %v8754_v0 = vpop.f32.mrb[51].mxu0  ;;  %8912 = vmatmul.mubr.msk.f32.gmra.mrb[156].mxu0 %vm340_vm1, %v2657_v58  ;;  %v4466_v59 = vsel %vm4417_vm2, %v4463_v39, %v4465_v47  ;;  %v2658_v61 = vld [vmem:[%s9777_s21 + $0x2c8] sm:$0xff] }
 0x291   : > { %5745 = vrot.lane.b32.xlu0 %v5426_v41, %s9728_s25  ;;  %4785 = vrot.lane.b32.xlu1 %v4466_v59, %s9727_s24  ;;  %v5428_v45 = vsel %vm5379_vm3, %v5425_v7, %v5427_v11 }
 0x292   : > { %8187 = vmatprep.mubr.msk.f32.mxu1 %vm9726_vm0, %v14060_v32  ;;  %8914 = vmatprep.mubr.msk.f32.mxu0 %vm9726_vm0, %v14060_v32  ;;  %v4467_v56 = vrot.slane %v11509_v55, 1  ;;  %v5429_v41 = vrot.slane %v11509_v55, 2 }
 0x293   : > { %v11525_v1 = vpop.f32.mrb[214].mxu1  ;;  %v3421_v39 = vpop.f32.mrb[52].mxu0 }
 0x294   : > { %14084 = vst [vmem:[#allocation61_spill] sm:$0xff] %v11525_v1  ;;  %v11528_v58 = vadd.f32 %v3421_v39, %v10493_v4  ;;  %v8030_v50 = vpop.f32.mrb[215].mxu1  ;;  %8188 = vmatmul.mubr.msk.f32.gmra.mrb[214].mxu1 %vm340_vm1, %v337_v54  ;;  %v8757_v8 = vpop.f32.mrb[53].mxu0  ;;  %8915 = vmatmul.mubr.msk.f32.gmra.mrb[158].mxu0 %vm340_vm1, %v2658_v61  ;;  %v4468_v0 = vsel %vm4417_vm2, %v4465_v47, %v4467_v56  ;;  %v2659_v4 = vld [vmem:[%s9777_s21 + $0x2d0] sm:$0xff]  ;;  %v9632_v47 = vld [vmem:[%s9777_s21 + $0x288] sm:$0xff] }
 0x295   : > { %5747 = vrot.lane.b32.xlu1 %v5428_v45, %s9728_s25  ;;  %4787 = vrot.lane.b32.xlu0 %v4468_v0, %s9727_s24  ;;  %v5430_v39 = vsel %vm5379_vm3, %v5427_v11, %v5429_v41 }
 0x296   : > { %8435 = vmatprep.mubr.msk.f32.mxu1 %vm9726_vm0, %v14060_v32  ;;  %8917 = vmatprep.mubr.msk.f32.mxu0 %vm9726_vm0, %v14060_v32  ;;  %v4469_v61 = vrot.slane %v11528_v58, 1  ;;  %v5431_v8 = vrot.slane %v11528_v58, 2 }
 0x297   : > { %v3426_v59 = vpop.f32.mrb[54].mxu0 }
 0x298   : > { %v11544_v7 = vadd.f32 %v3426_v59, %v10502_v13  ;;  %8436 = vmatmul.mubr.msk.f32.vlgmr.msra.gmra.mrb[0].mxu1 %vm340_vm1, %v9632_v47  ;;  %v8760_v54 = vpop.f32.mrb[55].mxu0  ;;  %8918 = vmatmul.mubr.msk.f32.gmra.mrb[160].mxu0 %vm340_vm1, %v2659_v4  ;;  %v4470_v50 = vsel %vm4417_vm2, %v4467_v56, %v4469_v61  ;;  %v2660_v13 = vld [vmem:[%s9777_s21 + $0x2d8] sm:$0xff]  ;;  %v9633_v56 = vld [vmem:[%s9777_s21 + $0x290] sm:$0xff]  ;;  %v5432_v59 = vsel %vm5379_vm3, %v5429_v41, %v5431_v8 }
 0x299   : > { %5749 = vrot.lane.b32.xlu0 %v5430_v39, %s9728_s25  ;;  %4789 = vrot.lane.b32.xlu1 %v4470_v50, %s9727_s24 }
 0x29a   : > { %8438 = vmatprep.mubr.msk.f32.mxu1 %vm9726_vm0, %v14060_v32  ;;  %8920 = vmatprep.mubr.msk.f32.mxu0 %vm9726_vm0, %v14060_v32  ;;  %v4471_v45 = vrot.slane %v11544_v7, 1  ;;  %v5433_v54 = vrot.slane %v11544_v7, 2 }
 0x29b   : > { %v3431_v0 = vpop.f32.mrb[56].mxu0 }
 0x29c   : > { %v11561_v11 = vadd.f32 %v3431_v0, %v10511_v44  ;;  %8439 = vmatmul.mubr.msk.f32.gmra.mrb[2].mxu1 %vm340_vm1, %v9633_v56  ;;  %v8763_v4 = vpop.f32.mrb[57].mxu0  ;;  %8921 = vmatmul.mubr.msk.f32.gmra.mrb[162].mxu0 %vm340_vm1, %v2660_v13  ;;  %v4472_v47 = vsel %vm4417_vm2, %v4469_v61, %v4471_v45  ;;  %v2661_v44 = vld [vmem:[%s9777_s21 + $0x2e0] sm:$0xff]  ;;  %v9634_v61 = vld [vmem:[%s9777_s21 + $0x298] sm:$0xff]  ;;  %v5434_v0 = vsel %vm5379_vm3, %v5431_v8, %v5433_v54 }
 0x29d   : > { %5751 = vrot.lane.b32.xlu1 %v5432_v59, %s9728_s25  ;;  %4791 = vrot.lane.b32.xlu0 %v4472_v47, %s9727_s24 }
 0x29e   : > { %8441 = vmatprep.mubr.msk.f32.mxu1 %vm9726_vm0, %v14060_v32  ;;  %8923 = vmatprep.mubr.msk.f32.mxu0 %vm9726_vm0, %v14060_v32  ;;  %v4473_v39 = vrot.slane %v11561_v11, 1  ;;  %v5435_v4 = vrot.slane %v11561_v11, 2 }
 0x29f   : > { %v3436_v50 = vpop.f32.mrb[58].mxu0 }
 0x2a0   : > { %v11578_v41 = vadd.f32 %v3436_v50, %v10521_v48  ;;  %8442 = vmatmul.mubr.msk.f32.gmra.mrb[4].mxu1 %vm340_vm1, %v9634_v61  ;;  %v8766_v13 = vpop.f32.mrb[59].mxu0  ;;  %8924 = vmatmul.mubr.msk.f32.gmra.mrb[164].mxu0 %vm340_vm1, %v2661_v44  ;;  %v4474_v56 = vsel %vm4417_vm2, %v4471_v45, %v4473_v39  ;;  %v2662_v48 = vld [vmem:[%s9777_s21 + $0x2e8] sm:$0xff]  ;;  %v9635_v45 = vld [vmem:[%s9777_s21 + $0x2a0] sm:$0xff]  ;;  %v5436_v50 = vsel %vm5379_vm3, %v5433_v54, %v5435_v4 }
 0x2a1   : > { %5753 = vrot.lane.b32.xlu0 %v5434_v0, %s9728_s25  ;;  %4793 = vrot.lane.b32.xlu1 %v4474_v56, %s9727_s24  ;;  %v2663_v0 = vld [vmem:[%s9777_s21 + $0x2f0] sm:$0xff] }
 0x2a2   : > { %8444 = vmatprep.mubr.msk.f32.mxu1 %vm9726_vm0, %v14060_v32  ;;  %8926 = vmatprep.mubr.msk.f32.mxu0 %vm9726_vm0, %v14060_v32  ;;  %v4475_v59 = vrot.slane %v11578_v41, 1  ;;  %v5437_v13 = vrot.slane %v11578_v41, 2 }
 0x2a3   : > { %v3441_v47 = vpop.f32.mrb[60].mxu0 }
 0x2a4   : > { %v11595_v8 = vadd.f32 %v3441_v47, %v10531_v53  ;;  %8445 = vmatmul.mubr.msk.f32.gmra.mrb[6].mxu1 %vm340_vm1, %v9635_v45  ;;  %v8769_v44 = vpop.f32.mrb[61].mxu0  ;;  %8927 = vmatmul.mubr.msk.f32.gmra.mrb[166].mxu0 %vm340_vm1, %v2662_v48  ;;  %v4476_v61 = vsel %vm4417_vm2, %v4473_v39, %v4475_v59  ;;  %v9636_v48 = vld [vmem:[%s9777_s21 + $0x2a8] sm:$0xff]  ;;  %v5438_v45 = vsel %vm5379_vm3, %v5435_v4, %v5437_v13 }
 0x2a5   : > { %5755 = vrot.lane.b32.xlu1 %v5436_v50, %s9728_s25  ;;  %4795 = vrot.lane.b32.xlu0 %v4476_v61, %s9727_s24 }
 0x2a6   : > { %8447 = vmatprep.mubr.msk.f32.mxu1 %vm9726_vm0, %v14060_v32  ;;  %8929 = vmatprep.mubr.msk.f32.mxu0 %vm9726_vm0, %v14060_v32  ;;  %v4477_v53 = vrot.slane %v11595_v8, 1  ;;  %v5439_v50 = vrot.slane %v11595_v8, 2 }
 0x2a7   : > { %v4740_v54 = vpop.permute.xlu0 %4739  ;;  %v3446_v56 = vpop.f32.mrb[62].mxu0 }
 0x2a8   : > { %v11612_v39 = vadd.f32 %v3446_v56, %v10541_v57  ;;  %8448 = vmatmul.mubr.msk.f32.gmra.mrb[8].mxu1 %vm340_vm1, %v9636_v48  ;;  %v8772_v47 = vpop.f32.mrb[63].mxu0  ;;  %8930 = vmatmul.mubr.msk.f32.gmra.mrb[168].mxu0 %vm340_vm1, %v2663_v0  ;;  %v4478_v44 = vsel %vm4417_vm2, %v4475_v59, %v4477_v53  ;;  %v2664_v57 = vld [vmem:[%s9777_s21 + $0x2f8] sm:$0xff]  ;;  %v5219_v61 = vadd.f32 %v11045_v51, %v4740_v54  ;;  %v11633_v59 = vld [vmem:[%s14019_s2] ss:$0 sm:$0xff] }
 0x2a9   : > { %5757 = vrot.lane.b32.xlu0 %v5438_v45, %s9728_s25  ;;  %4797 = vrot.lane.b32.xlu1 %v4478_v44, %s9727_s24  ;;  %v9637_v45 = vld [vmem:[%s9777_s21 + $0x2b0] sm:$0xff]  ;;  %v5440_v51 = vsel %vm5379_vm3, %v5437_v13, %v5439_v50  ;;  %v2665_v13 = vld [vmem:[%s9777_s21 + $0x300] sm:$0xff] }
 0x2aa   : > { %14085 = vst [vmem:[#allocation62_spill] sm:$0xff] %v11612_v39  ;;  %8450 = vmatprep.mubr.msk.f32.mxu1 %vm9726_vm0, %v14060_v32  ;;  %8932 = vmatprep.mubr.msk.f32.mxu0 %vm9726_vm0, %v14060_v32  ;;  %v4479_v4 = vrot.slane %v11612_v39, 1  ;;  %v5441_v44 = vrot.slane %v11612_v39, 2 }
 0x2ab   : > { %v5702_v0 = vpop.permute.xlu0 %5701  ;;  %v5704_v56 = vpop.permute.xlu1 %5703 }
 0x2ac   : > { %v6181_v48 = vadd.f32 %v5702_v0, %v5219_v61  ;;  %v3451_v47 = vpop.f32.mrb[64].mxu0  ;;  %8451 = vmatmul.mubr.msk.f32.gmra.mrb[10].mxu1 %vm340_vm1, %v9637_v45  ;;  %8933 = vmatmul.mubr.msk.f32.gmra.mrb[170].mxu0 %vm340_vm1, %v2664_v57  ;;  %v4480_v54 = vsel %vm4417_vm2, %v4477_v53, %v4479_v4 }
 0x2ad   : > { %v11647_v61 = vadd.f32 %v3451_v47, %v10551_v62  ;;  %v8775_v0 = vpop.f32.mrb[65].mxu0  ;;  %5759 = vrot.lane.b32.xlu1 %v5440_v51, %s9728_s25  ;;  %4799 = vrot.lane.b32.xlu0 %v4480_v54, %s9727_s24  ;;  %v9638_v54 = vld [vmem:[%s9777_s21 + $0x2b8] sm:$0xff] }
 0x2ae   : > { %v6348_v53 = vadd.f32 %v11633_v59, %v6181_v48  ;;  %8453 = vmatprep.mubr.msk.f32.mxu1 %vm9726_vm0, %v14060_v32  ;;  %8935 = vmatprep.mubr.msk.f32.mxu0 %vm9726_vm0, %v14060_v32  ;;  %v5442_v48 = vsel %vm5379_vm3, %v5439_v50, %v5441_v44 }
 0x2af   : > { %v4742_v57 = vpop.permute.xlu0 %4741  ;;  %v4744_v45 = vpop.permute.xlu1 %4743  ;;  %v4481_v62 = vrot.slane %v11647_v61, 1 }
 0x2b0   : > { %6509 = vst.msk [vmem:[%s11644_s4] sm:$0xff] %vm6508_vm4, %v6348_v53  ;;  %v5220_v47 = vadd.f32 %v11058_v42, %v4742_v57  ;;  %v3456_v51 = vpop.f32.mrb[66].mxu0  ;;  %8454 = vmatmul.mubr.msk.f32.gmra.mrb[12].mxu1 %vm340_vm1, %v9638_v54  ;;  %8936 = vmatmul.mubr.msk.f32.gmra.mrb[172].mxu0 %vm340_vm1, %v2665_v13  ;;  %v2666_v42 = vld [vmem:[%s9777_s21 + $0x308] sm:$0xff]  ;;  %v5443_v53 = vrot.slane %v11647_v61, 2  ;;  %v5221_v13 = vadd.f32 %v11073_v37, %v4744_v45 }
 0x2b1   : > { %v11666_v0 = vadd.f32 %v3456_v51, %v10561_v5  ;;  %v8778_v1 = vpop.f32.mrb[67].mxu0  ;;  %5761 = vrot.lane.b32.xlu0 %v5442_v48, %s9728_s25  ;;  %v4482_v39 = vsel %vm4417_vm2, %v4479_v4, %v4481_v62  ;;  %8456 = vmatprep.mubr.msk.f32.mxu1 %vm9726_vm0, %v14060_v32  ;;  %v9639_v48 = vld [vmem:[%s9777_s21 + $0x2c0] sm:$0xff] }
 0x2b2   : > { %v6182_v57 = vadd.f32 %v5704_v56, %v5220_v47  ;;  %4801 = vrot.lane.b32.xlu1 %v4482_v39, %s9727_s24  ;;  %8938 = vmatprep.mubr.msk.f32.mxu0 %vm9726_vm0, %v14060_v32  ;;  %v5444_v45 = vsel %vm5379_vm3, %v5441_v44, %v5443_v53 }
 0x2b3   : > { %v4483_v5 = vrot.slane %v11666_v0, 1  ;;  %v5706_v1 = vpop.permute.xlu0 %5705  ;;  %v4746_v50 = vpop.permute.xlu1 %4745  ;;  %v5445_v37 = vrot.slane %v11666_v0, 2 }
 0x2b4   : > { %v6349_v4 = vadd.f32 %v11633_v59, %v6182_v57  ;;  %v6183_v51 = vadd.f32 %v5706_v1, %v5221_v13  ;;  %v3461_v54 = vpop.f32.mrb[68].mxu0  ;;  %8457 = vmatmul.mubr.msk.f32.gmra.mrb[14].mxu1 %vm340_vm1, %v9639_v48  ;;  %8939 = vmatmul.mubr.msk.f32.gmra.mrb[174].mxu0 %vm340_vm1, %v2666_v42  ;;  %v2667_v57 = vld [vmem:[%s9777_s21 + $0x310] sm:$0xff]  ;;  %v9640_v48 = vld [vmem:[%s9777_s21 + $0x2c8] sm:$0xff] }
 0x2b5   : > { %v11685_v39 = vadd.f32 %v3461_v54, %v10571_v14  ;;  %v8781_v56 = vpop.f32.mrb[69].mxu0  ;;  %v4484_v47 = vsel %vm4417_vm2, %v4481_v62, %v4483_v5  ;;  %8459 = vmatprep.mubr.msk.f32.mxu1 %vm9726_vm0, %v14060_v32  ;;  %8941 = vmatprep.mubr.msk.f32.mxu0 %vm9726_vm0, %v14060_v32  ;;  %v5222_v14 = vadd.f32 %v11091_v2, %v4746_v50 }
 0x2b6   : > { %6510 = vst.msk [vmem:[%s11644_s4 + $0x8] sm:$0xff] %vm6508_vm4, %v6349_v4  ;;  %v6350_v42 = vadd.f32 %v11633_v59, %v6183_v51  ;;  %5763 = vrot.lane.b32.xlu1 %v5444_v45, %s9728_s25  ;;  %4803 = vrot.lane.b32.xlu0 %v4484_v47, %s9727_s24  ;;  %v5446_v51 = vsel %vm5379_vm3, %v5443_v53, %v5445_v37  ;;  %v2668_v45 = vld [vmem:[%s9777_s21 + $0x318] sm:$0xff] }
 0x2b7   : > { %v4485_v44 = vrot.slane %v11685_v39, 1  ;;  %v5708_v62 = vpop.permute.xlu1 %5707  ;;  %v4748_v13 = vpop.permute.xlu0 %4747  ;;  %v5447_v2 = vrot.slane %v11685_v39, 2 }
 0x2b8   : > { %6511 = vst.msk [vmem:[%s11644_s4 + $0x10] sm:$0xff] %vm6508_vm4, %v6350_v42  ;;  %v6184_v1 = vadd.f32 %v5708_v62, %v5222_v14  ;;  %v3466_v54 = vpop.f32.mrb[70].mxu0  ;;  %8460 = vmatmul.mubr.msk.f32.gmra.mrb[16].mxu1 %vm340_vm1, %v9640_v48  ;;  %8942 = vmatmul.mubr.msk.f32.gmra.mrb[176].mxu0 %vm340_vm1, %v2667_v57  ;;  %v5223_v57 = vadd.f32 %v11110_v6, %v4748_v13  ;;  %v9641_v62 = vld [vmem:[%s9777_s21 + $0x2d0] sm:$0xff] }
 0x2b9   : > { %v11708_v50 = vadd.f32 %v3466_v54, %v10581_v15  ;;  %v8784_v4 = vpop.f32.mrb[71].mxu0  ;;  %v4486_v56 = vsel %vm4417_vm2, %v4483_v5, %v4485_v44  ;;  %8462 = vmatprep.mubr.msk.f32.mxu1 %vm9726_vm0, %v14060_v32  ;;  %8944 = vmatprep.mubr.msk.f32.mxu0 %vm9726_vm0, %v14060_v32  ;;  %v5448_v54 = vsel %vm5379_vm3, %v5445_v37, %v5447_v2 }
 0x2ba   : > { %v6351_v47 = vadd.f32 %v11633_v59, %v6184_v1  ;;  %5765 = vrot.lane.b32.xlu0 %v5446_v51, %s9728_s25  ;;  %4805 = vrot.lane.b32.xlu1 %v4486_v56, %s9727_s24  ;;  %v2669_v4 = vld [vmem:[%s9777_s21 + $0x320] sm:$0xff] }
 0x2bb   : > { %v4487_v15 = vrot.slane %v11708_v50, 1  ;;  %v5710_v53 = vpop.permute.xlu0 %5709  ;;  %v4750_v5 = vpop.permute.xlu1 %4749  ;;  %v5449_v6 = vrot.slane %v11708_v50, 2 }
 0x2bc   : > { %6512 = vst.msk [vmem:[%s11644_s4 + $0x18] sm:$0xff] %vm6508_vm4, %v6351_v47  ;;  %v6185_v42 = vadd.f32 %v5710_v53, %v5223_v57  ;;  %v3471_v14 = vpop.f32.mrb[72].mxu0  ;;  %8463 = vmatmul.mubr.msk.f32.gmra.mrb[18].mxu1 %vm340_vm1, %v9641_v62  ;;  %8945 = vmatmul.mubr.msk.f32.gmra.mrb[178].mxu0 %vm340_vm1, %v2668_v45  ;;  %v5224_v56 = vadd.f32 %v11129_v33, %v4750_v5  ;;  %v9642_v57 = vld [vmem:[%s9777_s21 + $0x2d8] sm:$0xff]  ;;  %v2670_v62 = vld [vmem:[%s9777_s21 + $0x328] sm:$0xff] }
 0x2bd   : > { %v11729_v13 = vadd.f32 %v3471_v14, %v10591_v16  ;;  %v8787_v1 = vpop.f32.mrb[73].mxu0  ;;  %v4488_v48 = vsel %vm4417_vm2, %v4485_v44, %v4487_v15  ;;  %8465 = vmatprep.mubr.msk.f32.mxu1 %vm9726_vm0, %v14060_v32  ;;  %8947 = vmatprep.mubr.msk.f32.mxu0 %vm9726_vm0, %v14060_v32 }
 0x2be   : > { %v6352_v51 = vadd.f32 %v11633_v59, %v6185_v42  ;;  %5767 = vrot.lane.b32.xlu1 %v5448_v54, %s9728_s25  ;;  %4807 = vrot.lane.b32.xlu0 %v4488_v48, %s9727_s24  ;;  %v5450_v42 = vsel %vm5379_vm3, %v5447_v2, %v5449_v6 }
 0x2bf   : > { %v4489_v16 = vrot.slane %v11729_v13, 1  ;;  %v5712_v37 = vpop.permute.xlu1 %5711  ;;  %v4752_v44 = vpop.permute.xlu0 %4751  ;;  %v5451_v33 = vrot.slane %v11729_v13, 2 }
 0x2c0   : > { %6513 = vst.msk [vmem:[%s11644_s4 + $0x20] sm:$0xff] %vm6508_vm4, %v6352_v51  ;;  %v6186_v45 = vadd.f32 %v5712_v37, %v5224_v56  ;;  %v3476_v47 = vpop.f32.mrb[74].mxu0  ;;  %8466 = vmatmul.mubr.msk.f32.gmra.mrb[20].mxu1 %vm340_vm1, %v9642_v57  ;;  %8948 = vmatmul.mubr.msk.f32.gmra.mrb[180].mxu0 %vm340_vm1, %v2669_v4  ;;  %v5225_v54 = vadd.f32 %v11148_v31, %v4752_v44  ;;  %v9643_v51 = vld [vmem:[%s9777_s21 + $0x2e0] sm:$0xff] }
 0x2c1   : > { %v11750_v53 = vadd.f32 %v3476_v47, %v10601_v17  ;;  %v8790_v5 = vpop.f32.mrb[75].mxu0  ;;  %v4490_v14 = vsel %vm4417_vm2, %v4487_v15, %v4489_v16  ;;  %8468 = vmatprep.mubr.msk.f32.mxu1 %vm9726_vm0, %v14060_v32  ;;  %8950 = vmatprep.mubr.msk.f32.mxu0 %vm9726_vm0, %v14060_v32  ;;  %v5452_v44 = vsel %vm5379_vm3, %v5449_v6, %v5451_v33  ;;  %v2671_v47 = vld [vmem:[%s9777_s21 + $0x330] sm:$0xff] }
 0x2c2   : > { %v6353_v1 = vadd.f32 %v11633_v59, %v6186_v45  ;;  %5769 = vrot.lane.b32.xlu0 %v5450_v42, %s9728_s25  ;;  %4809 = vrot.lane.b32.xlu1 %v4490_v14, %s9727_s24 }
 0x2c3   : > { %v4491_v17 = vrot.slane %v11750_v53, 1  ;;  %v5714_v2 = vpop.permute.xlu0 %5713  ;;  %v4754_v15 = vpop.permute.xlu1 %4753  ;;  %v5453_v31 = vrot.slane %v11750_v53, 2 }
 0x2c4   : > { %6514 = vst.msk [vmem:[%s11644_s4 + $0x28] sm:$0xff] %vm6508_vm4, %v6353_v1  ;;  %v6187_v48 = vadd.f32 %v5714_v2, %v5225_v54  ;;  %v3481_v4 = vpop.f32.mrb[76].mxu0  ;;  %8469 = vmatmul.mubr.msk.f32.gmra.mrb[22].mxu1 %vm340_vm1, %v9643_v51  ;;  %8951 = vmatmul.mubr.msk.f32.gmra.mrb[182].mxu0 %vm340_vm1, %v2670_v62  ;;  %v5226_v5 = vadd.f32 %v11167_v63, %v4754_v15  ;;  %v9644_v62 = vld [vmem:[%s9777_s21 + $0x2e8] sm:$0xff] }
 0x2c5   : > { %v11771_v56 = vadd.f32 %v3481_v4, %v10611_v18  ;;  %v8793_v37 = vpop.f32.mrb[77].mxu0  ;;  %v4492_v45 = vsel %vm4417_vm2, %v4489_v16, %v4491_v17  ;;  %8471 = vmatprep.mubr.msk.f32.mxu1 %vm9726_vm0, %v14060_v32  ;;  %8953 = vmatprep.mubr.msk.f32.mxu0 %vm9726_vm0, %v14060_v32  ;;  %v5454_v2 = vsel %vm5379_vm3, %v5451_v33, %v5453_v31 }
 0x2c6   : > { %v6354_v57 = vadd.f32 %v11633_v59, %v6187_v48  ;;  %5771 = vrot.lane.b32.xlu1 %v5452_v44, %s9728_s25  ;;  %4811 = vrot.lane.b32.xlu0 %v4492_v45, %s9727_s24  ;;  %v2672_v48 = vld [vmem:[%s9777_s21 + $0x338] sm:$0xff]  ;;  %v9645_v45 = vld [vmem:[%s9777_s21 + $0x2f0] sm:$0xff] }
 0x2c7   : > { %v4493_v18 = vrot.slane %v11771_v56, 1  ;;  %v5716_v6 = vpop.permute.xlu1 %5715  ;;  %v4756_v16 = vpop.permute.xlu0 %4755  ;;  %v5455_v63 = vrot.slane %v11771_v56, 2 }
 0x2c8   : > { %6515 = vst.msk [vmem:[%s11644_s4 + $0x30] sm:$0xff] %vm6508_vm4, %v6354_v57  ;;  %v6188_v42 = vadd.f32 %v5716_v6, %v5226_v5  ;;  %v3486_v14 = vpop.f32.mrb[78].mxu0  ;;  %8472 = vmatmul.mubr.msk.f32.gmra.mrb[24].mxu1 %vm340_vm1, %v9644_v62  ;;  %8954 = vmatmul.mubr.msk.f32.gmra.mrb[184].mxu0 %vm340_vm1, %v2671_v47  ;;  %v5227_v51 = vadd.f32 %v11186_v28, %v4756_v16  ;;  %v2673_v16 = vld [vmem:[%s9777_s21 + $0x340] sm:$0xff] }
 0x2c9   : > { %v11792_v1 = vadd.f32 %v3486_v14, %v10621_v19  ;;  %v8796_v54 = vpop.f32.mrb[79].mxu0  ;;  %v4494_v15 = vsel %vm4417_vm2, %v4491_v17, %v4493_v18  ;;  %8474 = vmatprep.mubr.msk.f32.mxu1 %vm9726_vm0, %v14060_v32  ;;  %8956 = vmatprep.mubr.msk.f32.mxu0 %vm9726_vm0, %v14060_v32  ;;  %v5456_v5 = vsel %vm5379_vm3, %v5453_v31, %v5455_v63 }
 0x2ca   : > { %v6355_v4 = vadd.f32 %v11633_v59, %v6188_v42  ;;  %5773 = vrot.lane.b32.xlu0 %v5454_v2, %s9728_s25  ;;  %4813 = vrot.lane.b32.xlu1 %v4494_v15, %s9727_s24  ;;  %v9646_v2 = vld [vmem:[%s9777_s21 + $0x2f8] sm:$0xff] }
 0x2cb   : > { %v4495_v19 = vrot.slane %v11792_v1, 1  ;;  %v5718_v33 = vpop.permute.xlu0 %5717  ;;  %v4758_v17 = vpop.permute.xlu1 %4757  ;;  %v5457_v28 = vrot.slane %v11792_v1, 2 }
 0x2cc   : > { %6516 = vst.msk [vmem:[%s11644_s4 + $0x38] sm:$0xff] %vm6508_vm4, %v6355_v4  ;;  %v6189_v37 = vadd.f32 %v5718_v33, %v5227_v51  ;;  %v3491_v44 = vpop.f32.mrb[80].mxu0  ;;  %8475 = vmatmul.mubr.msk.f32.gmra.mrb[26].mxu1 %vm340_vm1, %v9645_v45  ;;  %8957 = vmatmul.mubr.msk.f32.gmra.mrb[186].mxu0 %vm340_vm1, %v2672_v48  ;;  %v5228_v14 = vadd.f32 %v11205_v34, %v4758_v17  ;;  %v2674_v33 = vld [vmem:[%s9777_s21 + $0x348] sm:$0xff] }
 0x2cd   : > { %v11813_v47 = vadd.f32 %v3491_v44, %v10631_v20  ;;  %v8799_v57 = vpop.f32.mrb[81].mxu0  ;;  %v4496_v6 = vsel %vm4417_vm2, %v4493_v18, %v4495_v19  ;;  %8477 = vmatprep.mubr.msk.f32.mxu1 %vm9726_vm0, %v14060_v32  ;;  %8959 = vmatprep.mubr.msk.f32.mxu0 %vm9726_vm0, %v14060_v32  ;;  %v5458_v4 = vsel %vm5379_vm3, %v5455_v63, %v5457_v28 }
 0x2ce   : > { %v6356_v42 = vadd.f32 %v11633_v59, %v6189_v37  ;;  %5775 = vrot.lane.b32.xlu1 %v5456_v5, %s9728_s25  ;;  %4815 = vrot.lane.b32.xlu0 %v4496_v6, %s9727_s24  ;;  %v9647_v57 = vld [vmem:[%s9777_s21 + $0x300] sm:$0xff] }
 0x2cf   : > { %v4497_v20 = vrot.slane %v11813_v47, 1  ;;  %v5720_v31 = vpop.permute.xlu1 %5719  ;;  %v4760_v18 = vpop.permute.xlu0 %4759  ;;  %v5459_v34 = vrot.slane %v11813_v47, 2 }
 0x2d0   : > { %6517 = vst.msk [vmem:[%s11644_s4 + $0x40] sm:$0xff] %vm6508_vm4, %v6356_v42  ;;  %v6190_v62 = vadd.f32 %v5720_v31, %v5228_v14  ;;  %v3496_v54 = vpop.f32.mrb[82].mxu0  ;;  %8478 = vmatmul.mubr.msk.f32.gmra.mrb[28].mxu1 %vm340_vm1, %v9646_v2  ;;  %8960 = vmatmul.mubr.msk.f32.gmra.mrb[188].mxu0 %vm340_vm1, %v2673_v16  ;;  %v5229_v37 = vadd.f32 %v11224_v3, %v4760_v18  ;;  %v2675_v14 = vld [vmem:[%s9777_s21 + $0x350] sm:$0xff]  ;;  %v9648_v2 = vld [vmem:[%s9777_s21 + $0x308] sm:$0xff] }
 0x2d1   : > { %v11834_v15 = vadd.f32 %v3496_v54, %v10641_v21  ;;  %v8802_v48 = vpop.f32.mrb[83].mxu0  ;;  %v4498_v51 = vsel %vm4417_vm2, %v4495_v19, %v4497_v20  ;;  %8480 = vmatprep.mubr.msk.f32.mxu1 %vm9726_vm0, %v14060_v32  ;;  %8962 = vmatprep.mubr.msk.f32.mxu0 %vm9726_vm0, %v14060_v32  ;;  %v5460_v16 = vsel %vm5379_vm3, %v5457_v28, %v5459_v34 }
 0x2d2   : > { %v6357_v17 = vadd.f32 %v11633_v59, %v6190_v62  ;;  %5777 = vrot.lane.b32.xlu0 %v5458_v4, %s9728_s25  ;;  %4817 = vrot.lane.b32.xlu1 %v4498_v51, %s9727_s24 }
 0x2d3   : > { %v4499_v21 = vrot.slane %v11834_v15, 1  ;;  %v5722_v63 = vpop.permute.xlu0 %5721  ;;  %v4762_v19 = vpop.permute.xlu1 %4761  ;;  %v5461_v3 = vrot.slane %v11834_v15, 2 }
 0x2d4   : > { %6518 = vst.msk [vmem:[%s11644_s4 + $0x48] sm:$0xff] %vm6508_vm4, %v6357_v17  ;;  %v6191_v44 = vadd.f32 %v5722_v63, %v5229_v37  ;;  %v3501_v45 = vpop.f32.mrb[84].mxu0  ;;  %8481 = vmatmul.mubr.msk.f32.gmra.mrb[30].mxu1 %vm340_vm1, %v9647_v57  ;;  %8963 = vmatmul.mubr.msk.f32.gmra.mrb[190].mxu0 %vm340_vm1, %v2674_v33  ;;  %v5230_v18 = vadd.f32 %v11243_v38, %v4762_v19  ;;  %v2676_v17 = vld [vmem:[%s9777_s21 + $0x358] sm:$0xff] }
 0x2d5   : > { %v11855_v5 = vadd.f32 %v3501_v45, %v10651_v22  ;;  %v8805_v6 = vpop.f32.mrb[85].mxu0  ;;  %v4500_v42 = vsel %vm4417_vm2, %v4497_v20, %v4499_v21  ;;  %8483 = vmatprep.mubr.msk.f32.mxu1 %vm9726_vm0, %v14060_v32  ;;  %8965 = vmatprep.mubr.msk.f32.mxu0 %vm9726_vm0, %v14060_v32  ;;  %v5462_v51 = vsel %vm5379_vm3, %v5459_v34, %v5461_v3  ;;  %v9649_v45 = vld [vmem:[%s9777_s21 + $0x310] sm:$0xff] }
 0x2d6   : > { %v6358_v31 = vadd.f32 %v11633_v59, %v6191_v44  ;;  %5779 = vrot.lane.b32.xlu1 %v5460_v16, %s9728_s25  ;;  %4819 = vrot.lane.b32.xlu0 %v4500_v42, %s9727_s24 }
 0x2d7   : > { %v4501_v22 = vrot.slane %v11855_v5, 1  ;;  %v5724_v28 = vpop.permute.xlu1 %5723  ;;  %v4764_v20 = vpop.permute.xlu0 %4763  ;;  %v5463_v38 = vrot.slane %v11855_v5, 2 }
 0x2d8   : > { %6519 = vst.msk [vmem:[%s11644_s4 + $0x50] sm:$0xff] %vm6508_vm4, %v6358_v31  ;;  %v6192_v62 = vadd.f32 %v5724_v28, %v5230_v18  ;;  %v3506_v54 = vpop.f32.mrb[86].mxu0  ;;  %8484 = vmatmul.mubr.msk.f32.gmra.mrb[32].mxu1 %vm340_vm1, %v9648_v2  ;;  %8966 = vmatmul.mubr.msk.f32.gmra.mrb[192].mxu0 %vm340_vm1, %v2675_v14  ;;  %v5231_v63 = vadd.f32 %v11262_v9, %v4764_v20  ;;  %v2677_v14 = vld [vmem:[%s9777_s21 + $0x360] sm:$0xff] }
 0x2d9   : > { %v11876_v48 = vadd.f32 %v3506_v54, %v10661_v23  ;;  %v8808_v4 = vpop.f32.mrb[87].mxu0  ;;  %v4502_v33 = vsel %vm4417_vm2, %v4499_v21, %v4501_v22  ;;  %8486 = vmatprep.mubr.msk.f32.mxu1 %vm9726_vm0, %v14060_v32  ;;  %8968 = vmatprep.mubr.msk.f32.mxu0 %vm9726_vm0, %v14060_v32  ;;  %v5464_v16 = vsel %vm5379_vm3, %v5461_v3, %v5463_v38 }
 0x2da   : > { %v6359_v37 = vadd.f32 %v11633_v59, %v6192_v62  ;;  %5781 = vrot.lane.b32.xlu0 %v5462_v51, %s9728_s25  ;;  %4821 = vrot.lane.b32.xlu1 %v4502_v33, %s9727_s24  ;;  %v9650_v62 = vld [vmem:[%s9777_s21 + $0x318] sm:$0xff]  ;;  %v2678_v33 = vld [vmem:[%s9777_s21 + $0x368] sm:$0xff] }
 0x2db   : > { %v4503_v23 = vrot.slane %v11876_v48, 1  ;;  %v5726_v34 = vpop.permute.xlu0 %5725  ;;  %v4766_v21 = vpop.permute.xlu1 %4765  ;;  %v5465_v9 = vrot.slane %v11876_v48, 2 }
 0x2dc   : > { %6520 = vst.msk [vmem:[%s11644_s4 + $0x58] sm:$0xff] %vm6508_vm4, %v6359_v37  ;;  %v6193_v19 = vadd.f32 %v5726_v34, %v5231_v63  ;;  %v3511_v44 = vpop.f32.mrb[88].mxu0  ;;  %8487 = vmatmul.mubr.msk.f32.gmra.mrb[34].mxu1 %vm340_vm1, %v9649_v45  ;;  %8969 = vmatmul.mubr.msk.f32.gmra.mrb[194].mxu0 %vm340_vm1, %v2676_v17  ;;  %v5232_v18 = vadd.f32 %v11281_v60, %v4766_v21  ;;  %v9651_v21 = vld [vmem:[%s9777_s21 + $0x320] sm:$0xff] }
 0x2dd   : > { %v11897_v57 = vadd.f32 %v3511_v44, %v10671_v24  ;;  %v8811_v6 = vpop.f32.mrb[89].mxu0  ;;  %v4504_v42 = vsel %vm4417_vm2, %v4501_v22, %v4503_v23  ;;  %8489 = vmatprep.mubr.msk.f32.mxu1 %vm9726_vm0, %v14060_v32  ;;  %8971 = vmatprep.mubr.msk.f32.mxu0 %vm9726_vm0, %v14060_v32  ;;  %v5466_v4 = vsel %vm5379_vm3, %v5463_v38, %v5465_v9 }
 0x2de   : > { %v6360_v31 = vadd.f32 %v11633_v59, %v6193_v19  ;;  %5783 = vrot.lane.b32.xlu1 %v5464_v16, %s9728_s25  ;;  %4823 = vrot.lane.b32.xlu0 %v4504_v42, %s9727_s24  ;;  %v2679_v16 = vld [vmem:[%s9777_s21 + $0x370] sm:$0xff] }
 0x2df   : > { %v4505_v24 = vrot.slane %v11897_v57, 1  ;;  %v5728_v3 = vpop.permute.xlu1 %5727  ;;  %v4768_v22 = vpop.permute.xlu0 %4767  ;;  %v5467_v60 = vrot.slane %v11897_v57, 2 }
 0x2e0   : > { %6521 = vst.msk [vmem:[%s11644_s4 + $0x60] sm:$0xff] %vm6508_vm4, %v6360_v31  ;;  %v6194_v28 = vadd.f32 %v5728_v3, %v5232_v18  ;;  %v3516_v20 = vpop.f32.mrb[90].mxu0  ;;  %8490 = vmatmul.mubr.msk.f32.gmra.mrb[36].mxu1 %vm340_vm1, %v9650_v62  ;;  %8972 = vmatmul.mubr.msk.f32.gmra.mrb[196].mxu0 %vm340_vm1, %v2677_v14  ;;  %v5233_v37 = vadd.f32 %v11300_v10, %v4768_v22  ;;  %v9652_v3 = vld [vmem:[%s9777_s21 + $0x328] sm:$0xff] }
 0x2e1   : > { %v11918_v54 = vadd.f32 %v3516_v20, %v10681_v25  ;;  %v8814_v2 = vpop.f32.mrb[91].mxu0  ;;  %v4506_v51 = vsel %vm4417_vm2, %v4503_v23, %v4505_v24  ;;  %8492 = vmatprep.mubr.msk.f32.mxu1 %vm9726_vm0, %v14060_v32  ;;  %8974 = vmatprep.mubr.msk.f32.mxu0 %vm9726_vm0, %v14060_v32  ;;  %v5468_v45 = vsel %vm5379_vm3, %v5465_v9, %v5467_v60 }
 0x2e2   : > { %v6361_v17 = vadd.f32 %v11633_v59, %v6194_v28  ;;  %5785 = vrot.lane.b32.xlu0 %v5466_v4, %s9728_s25  ;;  %4825 = vrot.lane.b32.xlu1 %v4506_v51, %s9727_s24  ;;  %v2680_v2 = vld [vmem:[%s9777_s21 + $0x378] sm:$0xff] }
 0x2e3   : > { %v4507_v25 = vrot.slane %v11918_v54, 1  ;;  %v5730_v38 = vpop.permute.xlu0 %5729  ;;  %v4770_v63 = vpop.permute.xlu1 %4769  ;;  %v5469_v10 = vrot.slane %v11918_v54, 2 }
 0x2e4   : > { %6522 = vst.msk [vmem:[%s11644_s4 + $0x68] sm:$0xff] %vm6508_vm4, %v6361_v17  ;;  %v6195_v23 = vadd.f32 %v5730_v38, %v5233_v37  ;;  %v3521_v34 = vpop.f32.mrb[92].mxu0  ;;  %8493 = vmatmul.mubr.msk.f32.gmra.mrb[38].mxu1 %vm340_vm1, %v9651_v21  ;;  %8975 = vmatmul.mubr.msk.f32.gmra.mrb[198].mxu0 %vm340_vm1, %v2678_v33  ;;  %v5234_v14 = vadd.f32 %v11319_v30, %v4770_v63  ;;  %v14086_v38 = vld [vmem:[#allocation2_spill] sm:$0xff] }
 0x2e5   : > { %v11939_v19 = vadd.f32 %v3521_v34, %v10691_v26  ;;  %v8817_v44 = vpop.f32.mrb[93].mxu0  ;;  %v4508_v6 = vsel %vm4417_vm2, %v4505_v24, %v4507_v25  ;;  %8495 = vmatprep.mubr.msk.f32.mxu1 %vm9726_vm0, %v14060_v32  ;;  %8977 = vmatprep.mubr.msk.f32.mxu0 %vm9726_vm0, %v14060_v32  ;;  %v5470_v20 = vsel %vm5379_vm3, %v5467_v60, %v5469_v10 }
 0x2e6   : > { %v6362_v42 = vadd.f32 %v11633_v59, %v6195_v23  ;;  %5787 = vrot.lane.b32.xlu1 %v5468_v45, %s9728_s25  ;;  %4827 = vrot.lane.b32.xlu0 %v4508_v6, %s9727_s24  ;;  %v2681_v44 = vld [vmem:[%s9777_s21 + $0x380] sm:$0xff] }
 0x2e7   : > { %v4509_v26 = vrot.slane %v11939_v19, 1  ;;  %v5732_v9 = vpop.permute.xlu1 %5731  ;;  %v4772_v31 = vpop.permute.xlu0 %4771  ;;  %v5471_v30 = vrot.slane %v11939_v19, 2 }
 0x2e8   : > { %6523 = vst.msk [vmem:[%s11644_s4 + $0x70] sm:$0xff] %vm6508_vm4, %v6362_v42  ;;  %v6196_v18 = vadd.f32 %v5732_v9, %v5234_v14  ;;  %v3526_v24 = vpop.f32.mrb[94].mxu0  ;;  %8496 = vmatmul.mubr.msk.f32.gmra.mrb[40].mxu1 %vm340_vm1, %v9652_v3  ;;  %8978 = vmatmul.mubr.msk.f32.gmra.mrb[200].mxu0 %vm340_vm1, %v2679_v16  ;;  %v5235_v51 = vadd.f32 %v11338_v36, %v4772_v31  ;;  %v9654_v9 = vld [vmem:[%s9777_s21 + $0x338] sm:$0xff]  ;;  %v14087_v31 = vld [vmem:[#allocation3_spill] sm:$0xff] }
 0x2e9   : > { %v11960_v22 = vadd.f32 %v3526_v24, %v10701_v27  ;;  %v8820_v28 = vpop.f32.mrb[95].mxu0  ;;  %v4510_v62 = vsel %vm4417_vm2, %v4507_v25, %v4509_v26  ;;  %8498 = vmatprep.mubr.msk.f32.mxu1 %vm9726_vm0, %v14060_v32  ;;  %8980 = vmatprep.mubr.msk.f32.mxu0 %vm9726_vm0, %v14060_v32  ;;  %v9653_v25 = vld [vmem:[%s9777_s21 + $0x330] sm:$0xff]  ;;  %v5472_v34 = vsel %vm5379_vm3, %v5469_v10, %v5471_v30 }
 0x2ea   : > { %v6363_v4 = vadd.f32 %v11633_v59, %v6196_v18  ;;  %5789 = vrot.lane.b32.xlu0 %v5470_v20, %s9728_s25  ;;  %4829 = vrot.lane.b32.xlu1 %v4510_v62, %s9727_s24  ;;  %v2682_v20 = vld [vmem:[%s9777_s21 + $0x388] sm:$0xff] }
 0x2eb   : > { %v4511_v27 = vrot.slane %v11960_v22, 1  ;;  %v5734_v60 = vpop.permute.xlu0 %5733  ;;  %v4774_v33 = vpop.permute.xlu1 %4773  ;;  %v5473_v36 = vrot.slane %v11960_v22, 2 }
 0x2ec   : > { %6524 = vst.msk [vmem:[%s11644_s4 + $0x78] sm:$0xff] %vm6508_vm4, %v6363_v4  ;;  %v6197_v17 = vadd.f32 %v5734_v60, %v5235_v51  ;;  %v3531_v37 = vpop.f32.mrb[96].mxu0  ;;  %8499 = vmatmul.mubr.msk.f32.gmra.mrb[42].mxu1 %vm340_vm1, %v9653_v25  ;;  %8981 = vmatmul.mubr.msk.f32.gmra.mrb[202].mxu0 %vm340_vm1, %v2680_v2  ;;  %v5236_v6 = vadd.f32 %v11357_v29, %v4774_v33  ;;  %v9655_v33 = vld [vmem:[%s9777_s21 + $0x340] sm:$0xff] }
 0x2ed   : > { %v11981_v63 = vadd.f32 %v3531_v37, %v14086_v38  ;;  %v8823_v23 = vpop.f32.mrb[97].mxu0  ;;  %v4512_v21 = vsel %vm4417_vm2, %v4509_v26, %v4511_v27  ;;  %8501 = vmatprep.mubr.msk.f32.mxu1 %vm9726_vm0, %v14060_v32  ;;  %8983 = vmatprep.mubr.msk.f32.mxu0 %vm9726_vm0, %v14060_v32  ;;  %v5474_v3 = vsel %vm5379_vm3, %v5471_v30, %v5473_v36 }
 0x2ee   : > { %v6364_v45 = vadd.f32 %v11633_v59, %v6197_v17  ;;  %5791 = vrot.lane.b32.xlu1 %v5472_v34, %s9728_s25  ;;  %4831 = vrot.lane.b32.xlu0 %v4512_v21, %s9727_s24  ;;  %v14088_v17 = vld [vmem:[#allocation4_spill] sm:$0xff] }
 0x2ef   : > { %v4513_v16 = vrot.slane %v11981_v63, 1  ;;  %v5736_v10 = vpop.permute.xlu1 %5735  ;;  %v4776_v42 = vpop.permute.xlu0 %4775  ;;  %v5475_v29 = vrot.slane %v11981_v63, 2  ;;  %v2683_v34 = vld [vmem:[%s9777_s21 + $0x390] sm:$0xff] }
 0x2f0   : > { %6525 = vst.msk [vmem:[%s11644_s4 + $0x80] sm:$0xff] %vm6508_vm4, %v6364_v45  ;;  %v6198_v14 = vadd.f32 %v5736_v10, %v5236_v6  ;;  %v3536_v26 = vpop.f32.mrb[98].mxu0  ;;  %8502 = vmatmul.mubr.msk.f32.gmra.mrb[44].mxu1 %vm340_vm1, %v9654_v9  ;;  %8984 = vmatmul.mubr.msk.f32.gmra.mrb[204].mxu0 %vm340_vm1, %v2681_v44  ;;  %v5237_v2 = vadd.f32 %v11376_v35, %v4776_v42  ;;  %v9656_v42 = vld [vmem:[%s9777_s21 + $0x348] sm:$0xff] }
 0x2f1   : > { %v12002_v18 = vadd.f32 %v3536_v26, %v14087_v31  ;;  %v8826_v24 = vpop.f32.mrb[99].mxu0  ;;  %v4514_v28 = vsel %vm4417_vm2, %v4511_v27, %v4513_v16  ;;  %8504 = vmatprep.mubr.msk.f32.mxu1 %vm9726_vm0, %v14060_v32  ;;  %8986 = vmatprep.mubr.msk.f32.mxu0 %vm9726_vm0, %v14060_v32  ;;  %v5476_v38 = vsel %vm5379_vm3, %v5473_v36, %v5475_v29 }
 0x2f2   : > { %v6365_v62 = vadd.f32 %v11633_v59, %v6198_v14  ;;  %5793 = vrot.lane.b32.xlu0 %v5474_v3, %s9728_s25  ;;  %4833 = vrot.lane.b32.xlu1 %v4514_v28, %s9727_s24  ;;  %v14089_v14 = vld [vmem:[#allocation5_spill] sm:$0xff] }
 0x2f3   : > { %v4515_v4 = vrot.slane %v12002_v18, 1  ;;  %v5738_v30 = vpop.permute.xlu0 %5737  ;;  %v4778_v51 = vpop.permute.xlu1 %4777  ;;  %v5477_v35 = vrot.slane %v12002_v18, 2  ;;  %v2684_v3 = vld [vmem:[%s9777_s21 + $0x398] sm:$0xff] }
 0x2f4   : > { %6526 = vst.msk [vmem:[%s11644_s4 + $0x88] sm:$0xff] %vm6508_vm4, %v6365_v62  ;;  %v6199_v27 = vadd.f32 %v5738_v30, %v5237_v2  ;;  %v3541_v60 = vpop.f32.mrb[100].mxu0  ;;  %8505 = vmatmul.mubr.msk.f32.gmra.mrb[46].mxu1 %vm340_vm1, %v9655_v33  ;;  %8987 = vmatmul.mubr.msk.f32.gmra.mrb[206].mxu0 %vm340_vm1, %v2682_v20  ;;  %v5238_v44 = vadd.f32 %v11395_v12, %v4778_v51  ;;  %v9657_v51 = vld [vmem:[%s9777_s21 + $0x350] sm:$0xff] }
 0x2f5   : > { %v12023_v37 = vadd.f32 %v3541_v60, %v14088_v17  ;;  %v8829_v25 = vpop.f32.mrb[101].mxu0  ;;  %v4516_v23 = vsel %vm4417_vm2, %v4513_v16, %v4515_v4  ;;  %8507 = vmatprep.mubr.msk.f32.mxu1 %vm9726_vm0, %v14060_v32  ;;  %8989 = vmatprep.mubr.msk.f32.mxu0 %vm9726_vm0, %v14060_v32  ;;  %v5478_v31 = vsel %vm5379_vm3, %v5475_v29, %v5477_v35 }
 0x2f6   : > { %v6366_v21 = vadd.f32 %v11633_v59, %v6199_v27  ;;  %5795 = vrot.lane.b32.xlu1 %v5476_v38, %s9728_s25  ;;  %4835 = vrot.lane.b32.xlu0 %v4516_v23, %s9727_s24  ;;  %v14090_v27 = vld [vmem:[#allocation6_spill] sm:$0xff] }
 0x2f7   : > { %v4517_v45 = vrot.slane %v12023_v37, 1  ;;  %v5740_v36 = vpop.permute.xlu1 %5739  ;;  %v4780_v6 = vpop.permute.xlu0 %4779  ;;  %v5479_v12 = vrot.slane %v12023_v37, 2  ;;  %v2685_v38 = vld [vmem:[%s9777_s21 + $0x3a0] sm:$0xff] }
 0x2f8   : > { %6527 = vst.msk [vmem:[%s11644_s4 + $0x90] sm:$0xff] %vm6508_vm4, %v6366_v21  ;;  %v6200_v16 = vadd.f32 %v5740_v36, %v5238_v44  ;;  %v3546_v10 = vpop.f32.mrb[102].mxu0  ;;  %8508 = vmatmul.mubr.msk.f32.gmra.mrb[48].mxu1 %vm340_vm1, %v9656_v42  ;;  %8990 = vmatmul.mubr.msk.f32.gmra.mrb[208].mxu0 %vm340_vm1, %v2683_v34  ;;  %v5239_v20 = vadd.f32 %v11414_v40, %v4780_v6  ;;  %v9658_v6 = vld [vmem:[%s9777_s21 + $0x358] sm:$0xff] }
 0x2f9   : > { %v12044_v26 = vadd.f32 %v3546_v10, %v14089_v14  ;;  %v8832_v9 = vpop.f32.mrb[103].mxu0  ;;  %v4518_v24 = vsel %vm4417_vm2, %v4515_v4, %v4517_v45  ;;  %8510 = vmatprep.mubr.msk.f32.mxu1 %vm9726_vm0, %v14060_v32  ;;  %8992 = vmatprep.mubr.msk.f32.mxu0 %vm9726_vm0, %v14060_v32  ;;  %v5480_v17 = vsel %vm5379_vm3, %v5477_v35, %v5479_v12 }
 0x2fa   : > { %v6367_v28 = vadd.f32 %v11633_v59, %v6200_v16  ;;  %5797 = vrot.lane.b32.xlu0 %v5478_v31, %s9728_s25  ;;  %4837 = vrot.lane.b32.xlu1 %v4518_v24, %s9727_s24  ;;  %v14091_v16 = vld [vmem:[#allocation7_spill] sm:$0xff] }
 0x2fb   : > { %v4519_v62 = vrot.slane %v12044_v26, 1  ;;  %v5742_v29 = vpop.permute.xlu0 %5741  ;;  %v4782_v2 = vpop.permute.xlu1 %4781  ;;  %v5481_v40 = vrot.slane %v12044_v26, 2  ;;  %v2686_v31 = vld [vmem:[%s9777_s21 + $0x3a8] sm:$0xff] }
 0x2fc   : > { %6528 = vst.msk [vmem:[%s11644_s4 + $0x98] sm:$0xff] %vm6508_vm4, %v6367_v28  ;;  %v6201_v4 = vadd.f32 %v5742_v29, %v5239_v20  ;;  %v3551_v30 = vpop.f32.mrb[104].mxu0  ;;  %8511 = vmatmul.mubr.msk.f32.gmra.mrb[50].mxu1 %vm340_vm1, %v9657_v51  ;;  %8993 = vmatmul.mubr.msk.f32.gmra.mrb[210].mxu0 %vm340_vm1, %v2684_v3  ;;  %v5240_v34 = vadd.f32 %v11433_v43, %v4782_v2  ;;  %v9659_v2 = vld [vmem:[%s9777_s21 + $0x360] sm:$0xff] }
 0x2fd   : > { %v12065_v60 = vadd.f32 %v3551_v30, %v14090_v27  ;;  %v8835_v33 = vpop.f32.mrb[105].mxu0  ;;  %v4520_v25 = vsel %vm4417_vm2, %v4517_v45, %v4519_v62  ;;  %8513 = vmatprep.mubr.msk.f32.mxu1 %vm9726_vm0, %v14060_v32  ;;  %8995 = vmatprep.mubr.msk.f32.mxu0 %vm9726_vm0, %v14060_v32  ;;  %v5482_v14 = vsel %vm5379_vm3, %v5479_v12, %v5481_v40 }
 0x2fe   : > { %v6368_v23 = vadd.f32 %v11633_v59, %v6201_v4  ;;  %5799 = vrot.lane.b32.xlu1 %v5480_v17, %s9728_s25  ;;  %4839 = vrot.lane.b32.xlu0 %v4520_v25, %s9727_s24  ;;  %v14092_v4 = vld [vmem:[#allocation8_spill] sm:$0xff] }
 0x2ff   : > { %v4521_v21 = vrot.slane %v12065_v60, 1  ;;  %v5744_v35 = vpop.permute.xlu1 %5743  ;;  %v4784_v44 = vpop.permute.xlu0 %4783  ;;  %v5483_v43 = vrot.slane %v12065_v60, 2  ;;  %v2687_v17 = vld [vmem:[%s9777_s21 + $0x3b0] sm:$0xff] }
 0x300   : > { %6529 = vst.msk [vmem:[%s11644_s4 + $0xa0] sm:$0xff] %vm6508_vm4, %v6368_v23  ;;  %v6202_v45 = vadd.f32 %v5744_v35, %v5240_v34  ;;  %v3556_v36 = vpop.f32.mrb[106].mxu0  ;;  %8514 = vmatmul.mubr.msk.f32.gmra.mrb[52].mxu1 %vm340_vm1, %v9658_v6  ;;  %8996 = vmatmul.mubr.msk.f32.gmra.mrb[212].mxu0 %vm340_vm1, %v2685_v38  ;;  %v5241_v3 = vadd.f32 %v11452_v46, %v4784_v44  ;;  %v9660_v44 = vld [vmem:[%s9777_s21 + $0x368] sm:$0xff] }
 0x301   : > { %v12086_v10 = vadd.f32 %v3556_v36, %v14091_v16  ;;  %v8838_v42 = vpop.f32.mrb[107].mxu0  ;;  %v4522_v9 = vsel %vm4417_vm2, %v4519_v62, %v4521_v21  ;;  %8516 = vmatprep.mubr.msk.f32.mxu1 %vm9726_vm0, %v14060_v32  ;;  %8998 = vmatprep.mubr.msk.f32.mxu0 %vm9726_vm0, %v14060_v32  ;;  %v5484_v27 = vsel %vm5379_vm3, %v5481_v40, %v5483_v43 }
 0x302   : > { %v6369_v24 = vadd.f32 %v11633_v59, %v6202_v45  ;;  %5801 = vrot.lane.b32.xlu0 %v5482_v14, %s9728_s25  ;;  %4841 = vrot.lane.b32.xlu1 %v4522_v9, %s9727_s24  ;;  %v14093_v45 = vld [vmem:[#allocation9_spill] sm:$0xff] }
 0x303   : > { %v4523_v28 = vrot.slane %v12086_v10, 1  ;;  %v5746_v12 = vpop.permute.xlu0 %5745  ;;  %v4786_v20 = vpop.permute.xlu1 %4785  ;;  %v5485_v46 = vrot.slane %v12086_v10, 2  ;;  %v2688_v14 = vld [vmem:[%s9777_s21 + $0x3b8] sm:$0xff] }
 0x304   : > { %6530 = vst.msk [vmem:[%s11644_s4 + $0xa8] sm:$0xff] %vm6508_vm4, %v6369_v24  ;;  %v6203_v62 = vadd.f32 %v5746_v12, %v5241_v3  ;;  %v3561_v29 = vpop.f32.mrb[108].mxu0  ;;  %8517 = vmatmul.mubr.msk.f32.gmra.mrb[216].mxu1 %vm340_vm1, %v9659_v2  ;;  %8999 = vmatmul.mubr.msk.f32.gmra.mrb[214].mxu0 %vm340_vm1, %v2686_v31  ;;  %v5242_v38 = vadd.f32 %v11471_v49, %v4786_v20  ;;  %v9661_v20 = vld [vmem:[%s9777_s21 + $0x370] sm:$0xff] }
 0x305   : > { %v12107_v30 = vadd.f32 %v3561_v29, %v14092_v4  ;;  %v8841_v51 = vpop.f32.mrb[109].mxu0  ;;  %v4524_v33 = vsel %vm4417_vm2, %v4521_v21, %v4523_v28  ;;  %8519 = vmatprep.mubr.msk.f32.mxu1 %vm9726_vm0, %v14060_v32  ;;  %9001 = vmatprep.mubr.msk.f32.mxu0 %vm9726_vm0, %v14060_v32  ;;  %v5486_v16 = vsel %vm5379_vm3, %v5483_v43, %v5485_v46 }
 0x306   : > { %v6370_v25 = vadd.f32 %v11633_v59, %v6203_v62  ;;  %5803 = vrot.lane.b32.xlu1 %v5484_v27, %s9728_s25  ;;  %4843 = vrot.lane.b32.xlu0 %v4524_v33, %s9727_s24  ;;  %v14094_v62 = vld [vmem:[#allocation10_spill] sm:$0xff] }
 0x307   : > { %v4525_v23 = vrot.slane %v12107_v30, 1  ;;  %v5748_v40 = vpop.permute.xlu1 %5747  ;;  %v4788_v34 = vpop.permute.xlu0 %4787  ;;  %v5487_v49 = vrot.slane %v12107_v30, 2  ;;  %v2689_v27 = vld [vmem:[%s9777_s21 + $0x3c0] sm:$0xff] }
 0x308   : > { %6531 = vst.msk [vmem:[%s11644_s4 + $0xb0] sm:$0xff] %vm6508_vm4, %v6370_v25  ;;  %v6204_v21 = vadd.f32 %v5748_v40, %v5242_v38  ;;  %v3566_v35 = vpop.f32.mrb[110].mxu0  ;;  %8520 = vmatmul.mubr.msk.f32.gmra.mrb[218].mxu1 %vm340_vm1, %v9660_v44  ;;  %9002 = vmatmul.mubr.msk.f32.gmra.mrb[216].mxu0 %vm340_vm1, %v2687_v17  ;;  %v5243_v31 = vadd.f32 %v11490_v52, %v4788_v34  ;;  %v9662_v34 = vld [vmem:[%s9777_s21 + $0x378] sm:$0xff] }
 0x309   : > { %v12128_v36 = vadd.f32 %v3566_v35, %v14093_v45  ;;  %v8844_v6 = vpop.f32.mrb[111].mxu0  ;;  %v4526_v42 = vsel %vm4417_vm2, %v4523_v28, %v4525_v23  ;;  %8522 = vmatprep.mubr.msk.f32.mxu1 %vm9726_vm0, %v14060_v32  ;;  %9004 = vmatprep.mubr.msk.f32.mxu0 %vm9726_vm0, %v14060_v32  ;;  %v5488_v4 = vsel %vm5379_vm3, %v5485_v46, %v5487_v49 }
 0x30a   : > { %v6371_v9 = vadd.f32 %v11633_v59, %v6204_v21  ;;  %5805 = vrot.lane.b32.xlu0 %v5486_v16, %s9728_s25  ;;  %4845 = vrot.lane.b32.xlu1 %v4526_v42, %s9727_s24  ;;  %v2690_v6 = vld [vmem:[%s9777_s21 + $0x3c8] sm:$0xff]  ;;  %v12182_v16 = vld [vmem:[%s14019_s2] ss:$0 sm:$0xff] }
 0x30b   : > { %v4527_v24 = vrot.slane %v12128_v36, 1  ;;  %v5750_v43 = vpop.permute.xlu0 %5749  ;;  %v4790_v3 = vpop.permute.xlu1 %4789  ;;  %v5489_v52 = vrot.slane %v12128_v36, 2 }
 0x30c   : > { %6532 = vst.msk [vmem:[%s11644_s4 + $0xb8] sm:$0xff] %vm6508_vm4, %v6371_v9  ;;  %v6205_v28 = vadd.f32 %v5750_v43, %v5243_v31  ;;  %v3571_v12 = vpop.f32.mrb[112].mxu0  ;;  %8523 = vmatmul.mubr.msk.f32.gmra.mrb[220].mxu1 %vm340_vm1, %v9661_v20  ;;  %9005 = vmatmul.mubr.msk.f32.gmra.mrb[218].mxu0 %vm340_vm1, %v2688_v14  ;;  %v5244_v17 = vadd.f32 %v11509_v55, %v4790_v3  ;;  %v9664_v3 = vld [vmem:[%s9777_s21 + $0x380] sm:$0xff] }
 0x30d   : > { %v12149_v29 = vadd.f32 %v3571_v12, %v14094_v62  ;;  %v8847_v2 = vpop.f32.mrb[113].mxu0  ;;  %v4528_v51 = vsel %vm4417_vm2, %v4525_v23, %v4527_v24  ;;  %8525 = vmatprep.mubr.msk.f32.mxu1 %vm9726_vm0, %v14060_v32  ;;  %9007 = vmatprep.mubr.msk.f32.mxu0 %vm9726_vm0, %v14060_v32  ;;  %v5490_v44 = vsel %vm5379_vm3, %v5487_v49, %v5489_v52 }
 0x30e   : > { %v6372_v33 = vadd.f32 %v11633_v59, %v6205_v28  ;;  %5807 = vrot.lane.b32.xlu1 %v5488_v4, %s9728_s25  ;;  %4847 = vrot.lane.b32.xlu0 %v4528_v51, %s9727_s24  ;;  %v14095_v59 = vld [vmem:[#allocation11_spill] sm:$0xff]  ;;  %v14096_v28 = vld [vmem:[#allocation12_spill] sm:$0xff] }
 0x30f   : > { %v4529_v25 = vrot.slane %v12149_v29, 1  ;;  %v5752_v46 = vpop.permute.xlu1 %5751  ;;  %v4792_v38 = vpop.permute.xlu0 %4791  ;;  %v5491_v55 = vrot.slane %v12149_v29, 2  ;;  %v2691_v4 = vld [vmem:[%s9777_s21 + $0x3d0] sm:$0xff] }
 0x310   : > { %6533 = vst.msk [vmem:[%s11644_s4 + $0xc0] sm:$0xff] %vm6508_vm4, %v6372_v33  ;;  %v6206_v23 = vadd.f32 %v5752_v46, %v5244_v17  ;;  %v3576_v40 = vpop.f32.mrb[114].mxu0  ;;  %8526 = vmatmul.mubr.msk.f32.gmra.mrb[222].mxu1 %vm340_vm1, %v9662_v34  ;;  %9008 = vmatmul.mubr.msk.f32.gmra.mrb[220].mxu0 %vm340_vm1, %v2689_v27  ;;  %v5245_v14 = vadd.f32 %v11528_v58, %v4792_v38  ;;  %v9665_v38 = vld [vmem:[%s9777_s21 + $0x388] sm:$0xff] }
 0x311   : > { %v12170_v21 = vadd.f32 %v3576_v40, %v14095_v59  ;;  %v8850_v35 = vpop.f32.mrb[115].mxu0  ;;  %v4530_v45 = vsel %vm4417_vm2, %v4527_v24, %v4529_v25  ;;  %8528 = vmatprep.mubr.msk.f32.mxu1 %vm9726_vm0, %v14060_v32  ;;  %9010 = vmatprep.mubr.msk.f32.mxu0 %vm9726_vm0, %v14060_v32  ;;  %v5492_v62 = vsel %vm5379_vm3, %v5489_v52, %v5491_v55 }
 0x312   : > { %v6373_v42 = vadd.f32 %v12182_v16, %v6206_v23  ;;  %5809 = vrot.lane.b32.xlu0 %v5490_v44, %s9728_s25  ;;  %4849 = vrot.lane.b32.xlu1 %v4530_v45, %s9727_s24  ;;  %v14097_v23 = vld [vmem:[#allocation13_spill] sm:$0xff] }
 0x313   : > { %v4531_v49 = vrot.slane %v12170_v21, 1  ;;  %v5754_v9 = vpop.permute.xlu0 %5753  ;;  %v4794_v31 = vpop.permute.xlu1 %4793  ;;  %v5493_v58 = vrot.slane %v12170_v21, 2  ;;  %v2692_v44 = vld [vmem:[%s9777_s21 + $0x3d8] sm:$0xff] }
 0x314   : > { %6534 = vst.msk [vmem:[%s11644_s4 + $0xc8] sm:$0xff] %vm6508_vm4, %v6373_v42  ;;  %v6207_v24 = vadd.f32 %v5754_v9, %v5245_v14  ;;  %v3581_v43 = vpop.f32.mrb[116].mxu0  ;;  %8529 = vmatmul.mubr.msk.f32.gmra.mrb[224].mxu1 %vm340_vm1, %v9664_v3  ;;  %9011 = vmatmul.mubr.msk.f32.gmra.mrb[222].mxu0 %vm340_vm1, %v2690_v6  ;;  %v5246_v27 = vadd.f32 %v11544_v7, %v4794_v31  ;;  %v9666_v31 = vld [vmem:[%s9777_s21 + $0x390] sm:$0xff] }
 0x315   : > { %v12196_v12 = vadd.f32 %v3581_v43, %v14096_v28  ;;  %v8853_v20 = vpop.f32.mrb[117].mxu0  ;;  %v4532_v2 = vsel %vm4417_vm2, %v4529_v25, %v4531_v49  ;;  %8531 = vmatprep.mubr.msk.f32.mxu1 %vm9726_vm0, %v14060_v32  ;;  %9013 = vmatprep.mubr.msk.f32.mxu0 %vm9726_vm0, %v14060_v32  ;;  %v5494_v59 = vsel %vm5379_vm3, %v5491_v55, %v5493_v58 }
 0x316   : > { %v6374_v51 = vadd.f32 %v12182_v16, %v6207_v24  ;;  %5811 = vrot.lane.b32.xlu1 %v5492_v62, %s9728_s25  ;;  %4851 = vrot.lane.b32.xlu0 %v4532_v2, %s9727_s24  ;;  %v14098_v24 = vld [vmem:[#allocation14_spill] sm:$0xff] }
 0x317   : > { %v4533_v33 = vrot.slane %v12196_v12, 1  ;;  %v5756_v52 = vpop.permute.xlu1 %5755  ;;  %v4796_v17 = vpop.permute.xlu0 %4795  ;;  %v5495_v7 = vrot.slane %v12196_v12, 2  ;;  %v2693_v62 = vld [vmem:[%s9777_s21 + $0x3e0] sm:$0xff] }
 0x318   : > { %6535 = vst.msk [vmem:[%s11644_s4 + $0xd0] sm:$0xff] %vm6508_vm4, %v6374_v51  ;;  %v6208_v25 = vadd.f32 %v5756_v52, %v5246_v27  ;;  %v3586_v46 = vpop.f32.mrb[118].mxu0  ;;  %8532 = vmatmul.mubr.msk.f32.gmra.mrb[226].mxu1 %vm340_vm1, %v9665_v38  ;;  %9014 = vmatmul.mubr.msk.f32.gmra.mrb[224].mxu0 %vm340_vm1, %v2691_v4  ;;  %v5247_v6 = vadd.f32 %v11561_v11, %v4796_v17  ;;  %v9667_v17 = vld [vmem:[%s9777_s21 + $0x398] sm:$0xff] }
 0x319   : > { %v12217_v40 = vadd.f32 %v3586_v46, %v14097_v23  ;;  %v8856_v34 = vpop.f32.mrb[119].mxu0  ;;  %v4534_v35 = vsel %vm4417_vm2, %v4531_v49, %v4533_v33  ;;  %8534 = vmatprep.mubr.msk.f32.mxu1 %vm9726_vm0, %v14060_v32  ;;  %9016 = vmatprep.mubr.msk.f32.mxu0 %vm9726_vm0, %v14060_v32  ;;  %v5496_v28 = vsel %vm5379_vm3, %v5493_v58, %v5495_v7 }
 0x31a   : > { %v6375_v45 = vadd.f32 %v12182_v16, %v6208_v25  ;;  %5813 = vrot.lane.b32.xlu0 %v5494_v59, %s9728_s25  ;;  %4853 = vrot.lane.b32.xlu1 %v4534_v35, %s9727_s24  ;;  %v14099_v25 = vld [vmem:[#allocation15_spill] sm:$0xff] }
 0x31b   : > { %v4535_v42 = vrot.slane %v12217_v40, 1  ;;  %v5758_v55 = vpop.permute.xlu0 %5757  ;;  %v4798_v14 = vpop.permute.xlu1 %4797  ;;  %v5497_v11 = vrot.slane %v12217_v40, 2  ;;  %v2694_v59 = vld [vmem:[%s9777_s21 + $0x3e8] sm:$0xff] }
 0x31c   : > { %6536 = vst.msk [vmem:[%s11644_s4 + $0xd8] sm:$0xff] %vm6508_vm4, %v6375_v45  ;;  %v6209_v49 = vadd.f32 %v5758_v55, %v5247_v6  ;;  %v3591_v9 = vpop.f32.mrb[120].mxu0  ;;  %8535 = vmatmul.mubr.msk.f32.gmra.mrb[228].mxu1 %vm340_vm1, %v9666_v31  ;;  %9017 = vmatmul.mubr.msk.f32.gmra.mrb[226].mxu0 %vm340_vm1, %v2692_v44  ;;  %v5248_v4 = vadd.f32 %v11578_v41, %v4798_v14  ;;  %v14100_v14 = vld [vmem:[#allocation16_spill] sm:$0xff] }
 0x31d   : > { %v12238_v43 = vadd.f32 %v3591_v9, %v14098_v24  ;;  %v8859_v3 = vpop.f32.mrb[121].mxu0  ;;  %v4536_v20 = vsel %vm4417_vm2, %v4533_v33, %v4535_v42  ;;  %8537 = vmatprep.mubr.msk.f32.mxu1 %vm9726_vm0, %v14060_v32  ;;  %9019 = vmatprep.mubr.msk.f32.mxu0 %vm9726_vm0, %v14060_v32  ;;  %v5498_v23 = vsel %vm5379_vm3, %v5495_v7, %v5497_v11  ;;  %v9668_v9 = vld [vmem:[%s9777_s21 + $0x3a0] sm:$0xff] }
 0x31e   : > { %v6376_v2 = vadd.f32 %v12182_v16, %v6209_v49  ;;  %5815 = vrot.lane.b32.xlu1 %v5496_v28, %s9728_s25  ;;  %4855 = vrot.lane.b32.xlu0 %v4536_v20, %s9727_s24  ;;  %v2695_v28 = vld [vmem:[%s9777_s21 + $0x3f0] sm:$0xff] }
 0x31f   : > { %v4537_v51 = vrot.slane %v12238_v43, 1  ;;  %v5760_v58 = vpop.permute.xlu1 %5759  ;;  %v4800_v27 = vpop.permute.xlu0 %4799  ;;  %v5499_v41 = vrot.slane %v12238_v43, 2 }
 0x320   : > { %6537 = vst.msk [vmem:[%s11644_s4 + $0xe0] sm:$0xff] %vm6508_vm4, %v6376_v2  ;;  %v6210_v33 = vadd.f32 %v5760_v58, %v5248_v4  ;;  %v3596_v52 = vpop.f32.mrb[122].mxu0  ;;  %8538 = vmatmul.mubr.msk.f32.gmra.mrb[230].mxu1 %vm340_vm1, %v9667_v17  ;;  %9020 = vmatmul.mubr.msk.f32.gmra.mrb[228].mxu0 %vm340_vm1, %v2693_v62  ;;  %v5249_v44 = vadd.f32 %v11595_v8, %v4800_v27  ;;  %v14101_v2 = vld [vmem:[#allocation62_spill] sm:$0xff]  ;;  %v14102_v27 = vld [vmem:[#allocation17_spill] sm:$0xff] }
 0x321   : > { %v12259_v46 = vadd.f32 %v3596_v52, %v14099_v25  ;;  %v8862_v38 = vpop.f32.mrb[123].mxu0  ;;  %v4538_v34 = vsel %vm4417_vm2, %v4535_v42, %v4537_v51  ;;  %8540 = vmatprep.mubr.msk.f32.mxu1 %vm9726_vm0, %v14060_v32  ;;  %9022 = vmatprep.mubr.msk.f32.mxu0 %vm9726_vm0, %v14060_v32  ;;  %v5500_v24 = vsel %vm5379_vm3, %v5497_v11, %v5499_v41  ;;  %v9669_v52 = vld [vmem:[%s9777_s21 + $0x3a8] sm:$0xff] }
 0x322   : > { %v6377_v35 = vadd.f32 %v12182_v16, %v6210_v33  ;;  %5817 = vrot.lane.b32.xlu0 %v5498_v23, %s9728_s25  ;;  %4857 = vrot.lane.b32.xlu1 %v4538_v34, %s9727_s24 }
 0x323   : > { %v4539_v7 = vrot.slane %v12259_v46, 1  ;;  %v5762_v45 = vpop.permute.xlu0 %5761  ;;  %v3601_v6 = vpop.f32.mrb[124].mxu0  ;;  %v5501_v31 = vrot.slane %v12259_v46, 2 }
 0x324   : > { %6538 = vst.msk [vmem:[%s11644_s4 + $0xe8] sm:$0xff] %vm6508_vm4, %v6377_v35  ;;  %v6211_v42 = vadd.f32 %v5762_v45, %v5249_v44  ;;  %v4802_v55 = vpop.permute.xlu1 %4801  ;;  %v12276_v49 = vadd.f32 %v3601_v6, %v14100_v14  ;;  %8541 = vmatmul.mubr.msk.f32.gmra.mrb[232].mxu1 %vm340_vm1, %v9668_v9  ;;  %v8865_v8 = vpop.f32.mrb[125].mxu0  ;;  %9023 = vmatmul.mubr.msk.f32.gmra.mrb[230].mxu0 %vm340_vm1, %v2694_v59  ;;  %v2696_v59 = vld [vmem:[%s9777_s21 + $0x3f8] sm:$0xff]  ;;  %v9670_v14 = vld [vmem:[%s9777_s21 + $0x3b0] sm:$0xff] }
 0x325   : > { %v4540_v3 = vsel %vm4417_vm2, %v4537_v51, %v4539_v7  ;;  %8543 = vmatprep.mubr.msk.f32.mxu1 %vm9726_vm0, %v14060_v32  ;;  %9025 = vmatprep.mubr.msk.f32.mxu0 %vm9726_vm0, %v14060_v32  ;;  %v5250_v4 = vadd.f32 %v14101_v2, %v4802_v55  ;;  %v5502_v34 = vsel %vm5379_vm3, %v5499_v41, %v5501_v31 }
 0x326   : > { %v6378_v20 = vadd.f32 %v12182_v16, %v6211_v42  ;;  %v4541_v62 = vrot.slane %v12276_v49, 1  ;;  %5819 = vrot.lane.b32.xlu1 %v5500_v24, %s9728_s25  ;;  %4859 = vrot.lane.b32.xlu0 %v4540_v3, %s9727_s24  ;;  %v5503_v25 = vrot.slane %v12276_v49, 2  ;;  %v14103_v42 = vld [vmem:[#allocation18_spill] sm:$0xff] }
 0x327   : > { %v3606_v11 = vpop.f32.mrb[126].mxu0 }
 0x328   : > { %6539 = vst.msk [vmem:[%s11644_s4 + $0xf0] sm:$0xff] %vm6508_vm4, %v6378_v20  ;;  %v5764_v51 = vpop.permute.xlu1 %5763  ;;  %v4804_v58 = vpop.permute.xlu0 %4803  ;;  %v12297_v33 = vadd.f32 %v3606_v11, %v14102_v27  ;;  %8544 = vmatmul.mubr.msk.f32.gmra.mrb[234].mxu1 %vm340_vm1, %v9669_v52  ;;  %9026 = vmatmul.mubr.msk.f32.gmra.mrb[232].mxu0 %vm340_vm1, %v2695_v28  ;;  %v4542_v17 = vsel %vm4417_vm2, %v4539_v7, %v4541_v62  ;;  %v2697_v28 = vld [vmem:[%s9777_s21 + $0x400] sm:$0xff]  ;;  %v9671_v27 = vld [vmem:[%s9777_s21 + $0x3b8] sm:$0xff] }
 0x329   : > { %v6212_v38 = vadd.f32 %v5764_v51, %v5250_v4  ;;  %v8868_v23 = vpop.f32.mrb[127].mxu0  ;;  %8546 = vmatprep.mubr.msk.f32.mxu1 %vm9726_vm0, %v14060_v32  ;;  %9028 = vmatprep.mubr.msk.f32.mxu0 %vm9726_vm0, %v14060_v32  ;;  %v5251_v7 = vadd.f32 %v11647_v61, %v4804_v58  ;;  %v5504_v3 = vsel %vm5379_vm3, %v5501_v31, %v5503_v25  ;;  %v14104_v51 = vld [vmem:[#allocation19_spill] sm:$0xff] }
 0x32a   : > { %v4543_v35 = vrot.slane %v12297_v33, 1  ;;  %5821 = vrot.lane.b32.xlu0 %v5502_v34, %s9728_s25  ;;  %4861 = vrot.lane.b32.xlu1 %v4542_v17, %s9727_s24  ;;  %v5505_v8 = vrot.slane %v12297_v33, 2  ;;  %v2698_v34 = vld [vmem:[%s9777_s21 + $0x408] sm:$0xff] }
 0x32b   : > { %v6379_v44 = vadd.f32 %v12182_v16, %v6212_v38  ;;  %v3611_v41 = vpop.f32.mrb[128].mxu0 }
 0x32c   : > { %v5766_v45 = vpop.permute.xlu0 %5765  ;;  %v4806_v6 = vpop.permute.xlu1 %4805  ;;  %v12316_v55 = vadd.f32 %v3611_v41, %v14103_v42  ;;  %8547 = vmatmul.mubr.msk.f32.gmra.mrb[236].mxu1 %vm340_vm1, %v9670_v14  ;;  %9029 = vmatmul.mubr.msk.f32.gmra.mrb[234].mxu0 %vm340_vm1, %v2696_v59  ;;  %v4544_v9 = vsel %vm4417_vm2, %v4541_v62, %v4543_v35  ;;  %v5506_v23 = vsel %vm5379_vm3, %v5503_v25, %v5505_v8  ;;  %v9672_v42 = vld [vmem:[%s9777_s21 + $0x3c0] sm:$0xff] }
 0x32d   : > { %6540 = vst.msk [vmem:[%s11644_s4 + $0xf8] sm:$0xff] %vm6508_vm4, %v6379_v44  ;;  %v6213_v61 = vadd.f32 %v5766_v45, %v5251_v7  ;;  %v8871_v24 = vpop.f32.mrb[129].mxu0  ;;  %8549 = vmatprep.mubr.msk.f32.mxu1 %vm9726_vm0, %v14060_v32  ;;  %9031 = vmatprep.mubr.msk.f32.mxu0 %vm9726_vm0, %v14060_v32  ;;  %v5252_v2 = vadd.f32 %v11666_v0, %v4806_v6  ;;  %v14105_v45 = vld [vmem:[#allocation20_spill] sm:$0xff] }
 0x32e   : > { %v4545_v20 = vrot.slane %v12316_v55, 1  ;;  %5823 = vrot.lane.b32.xlu1 %v5504_v3, %s9728_s25  ;;  %4863 = vrot.lane.b32.xlu0 %v4544_v9, %s9727_s24  ;;  %v5507_v17 = vrot.slane %v12316_v55, 2  ;;  %v2699_v3 = vld [vmem:[%s9777_s21 + $0x410] sm:$0xff] }
 0x32f   : > { %v6380_v62 = vadd.f32 %v12182_v16, %v6213_v61  ;;  %v3616_v31 = vpop.f32.mrb[130].mxu0 }
 0x330   : > { %v5768_v4 = vpop.permute.xlu1 %5767  ;;  %v4808_v11 = vpop.permute.xlu0 %4807  ;;  %v12337_v58 = vadd.f32 %v3616_v31, %v14104_v51  ;;  %8550 = vmatmul.mubr.msk.f32.gmra.mrb[238].mxu1 %vm340_vm1, %v9671_v27  ;;  %9032 = vmatmul.mubr.msk.f32.gmra.mrb[236].mxu0 %vm340_vm1, %v2697_v28  ;;  %v4546_v52 = vsel %vm4417_vm2, %v4543_v35, %v4545_v20  ;;  %v5508_v24 = vsel %vm5379_vm3, %v5505_v8, %v5507_v17  ;;  %v9673_v51 = vld [vmem:[%s9777_s21 + $0x3c8] sm:$0xff] }
 0x331   : > { %6541 = vst.msk [vmem:[%s11644_s4 + $0x100] sm:$0xff] %vm6508_vm4, %v6380_v62  ;;  %v6214_v0 = vadd.f32 %v5768_v4, %v5252_v2  ;;  %v8874_v38 = vpop.f32.mrb[131].mxu0  ;;  %8552 = vmatprep.mubr.msk.f32.mxu1 %vm9726_vm0, %v14060_v32  ;;  %9034 = vmatprep.mubr.msk.f32.mxu0 %vm9726_vm0, %v14060_v32  ;;  %v5253_v44 = vadd.f32 %v11685_v39, %v4808_v11  ;;  %v14106_v4 = vld [vmem:[#allocation21_spill] sm:$0xff] }
 0x332   : > { %v4547_v59 = vrot.slane %v12337_v58, 1  ;;  %5825 = vrot.lane.b32.xlu0 %v5506_v23, %s9728_s25  ;;  %4865 = vrot.lane.b32.xlu1 %v4546_v52, %s9727_s24  ;;  %v5509_v9 = vrot.slane %v12337_v58, 2  ;;  %v2700_v23 = vld [vmem:[%s9777_s21 + $0x418] sm:$0xff] }
 0x333   : > { %v6381_v35 = vadd.f32 %v12182_v16, %v6214_v0  ;;  %v3621_v25 = vpop.f32.mrb[132].mxu0 }
 0x334   : > { %v5770_v7 = vpop.permute.xlu0 %5769  ;;  %v4810_v41 = vpop.permute.xlu1 %4809  ;;  %v12358_v6 = vadd.f32 %v3621_v25, %v14105_v45  ;;  %8553 = vmatmul.mubr.msk.f32.gmra.mrb[240].mxu1 %vm340_vm1, %v9672_v42  ;;  %9035 = vmatmul.mubr.msk.f32.gmra.mrb[238].mxu0 %vm340_vm1, %v2698_v34  ;;  %v4548_v14 = vsel %vm4417_vm2, %v4545_v20, %v4547_v59  ;;  %v5510_v38 = vsel %vm5379_vm3, %v5507_v17, %v5509_v9  ;;  %v9674_v45 = vld [vmem:[%s9777_s21 + $0x3d0] sm:$0xff] }
 0x335   : > { %6542 = vst.msk [vmem:[%s11644_s4 + $0x108] sm:$0xff] %vm6508_vm4, %v6381_v35  ;;  %v6215_v39 = vadd.f32 %v5770_v7, %v5253_v44  ;;  %v8877_v61 = vpop.f32.mrb[133].mxu0  ;;  %8555 = vmatprep.mubr.msk.f32.mxu1 %vm9726_vm0, %v14060_v32  ;;  %9037 = vmatprep.mubr.msk.f32.mxu0 %vm9726_vm0, %v14060_v32  ;;  %v5254_v62 = vadd.f32 %v11708_v50, %v4810_v41  ;;  %v14107_v7 = vld [vmem:[#allocation22_spill] sm:$0xff] }
 0x336   : > { %v4549_v28 = vrot.slane %v12358_v6, 1  ;;  %5827 = vrot.lane.b32.xlu1 %v5508_v24, %s9728_s25  ;;  %4867 = vrot.lane.b32.xlu0 %v4548_v14, %s9727_s24  ;;  %v5511_v52 = vrot.slane %v12358_v6, 2  ;;  %v2701_v24 = vld [vmem:[%s9777_s21 + $0x420] sm:$0xff] }
 0x337   : > { %v6382_v20 = vadd.f32 %v12182_v16, %v6215_v39  ;;  %v3626_v8 = vpop.f32.mrb[134].mxu0 }
 0x338   : > { %v5772_v2 = vpop.permute.xlu1 %5771  ;;  %v4812_v31 = vpop.permute.xlu0 %4811  ;;  %v12379_v11 = vadd.f32 %v3626_v8, %v14106_v4  ;;  %8556 = vmatmul.mubr.msk.f32.gmra.mrb[242].mxu1 %vm340_vm1, %v9673_v51  ;;  %9038 = vmatmul.mubr.msk.f32.gmra.mrb[240].mxu0 %vm340_vm1, %v2699_v3  ;;  %v4550_v27 = vsel %vm4417_vm2, %v4547_v59, %v4549_v28  ;;  %v5512_v61 = vsel %vm5379_vm3, %v5509_v9, %v5511_v52  ;;  %v9675_v4 = vld [vmem:[%s9777_s21 + $0x3d8] sm:$0xff] }
 0x339   : > { %6543 = vst.msk [vmem:[%s11644_s4 + $0x110] sm:$0xff] %vm6508_vm4, %v6382_v20  ;;  %v6216_v50 = vadd.f32 %v5772_v2, %v5254_v62  ;;  %v8880_v0 = vpop.f32.mrb[135].mxu0  ;;  %8558 = vmatprep.mubr.msk.f32.mxu1 %vm9726_vm0, %v14060_v32  ;;  %9040 = vmatprep.mubr.msk.f32.mxu0 %vm9726_vm0, %v14060_v32  ;;  %v5255_v35 = vadd.f32 %v11729_v13, %v4812_v31  ;;  %v14108_v2 = vld [vmem:[#allocation23_spill] sm:$0xff] }
 0x33a   : > { %v4551_v34 = vrot.slane %v12379_v11, 1  ;;  %5829 = vrot.lane.b32.xlu0 %v5510_v38, %s9728_s25  ;;  %4869 = vrot.lane.b32.xlu1 %v4550_v27, %s9727_s24  ;;  %v5513_v14 = vrot.slane %v12379_v11, 2  ;;  %v2702_v38 = vld [vmem:[%s9777_s21 + $0x428] sm:$0xff] }
 0x33b   : > { %v6383_v59 = vadd.f32 %v12182_v16, %v6216_v50  ;;  %v3631_v17 = vpop.f32.mrb[136].mxu0 }
 0x33c   : > { %v5774_v44 = vpop.permute.xlu0 %5773  ;;  %v4814_v25 = vpop.permute.xlu1 %4813  ;;  %v12400_v41 = vadd.f32 %v3631_v17, %v14107_v7  ;;  %8559 = vmatmul.mubr.msk.f32.gmra.mrb[244].mxu1 %vm340_vm1, %v9674_v45  ;;  %9041 = vmatmul.mubr.msk.f32.gmra.mrb[242].mxu0 %vm340_vm1, %v2700_v23  ;;  %v4552_v42 = vsel %vm4417_vm2, %v4549_v28, %v4551_v34  ;;  %v5514_v0 = vsel %vm5379_vm3, %v5511_v52, %v5513_v14  ;;  %v9676_v7 = vld [vmem:[%s9777_s21 + $0x3e0] sm:$0xff] }
 0x33d   : > { %6544 = vst.msk [vmem:[%s11644_s4 + $0x118] sm:$0xff] %vm6508_vm4, %v6383_v59  ;;  %v6217_v13 = vadd.f32 %v5774_v44, %v5255_v35  ;;  %v8883_v39 = vpop.f32.mrb[137].mxu0  ;;  %8561 = vmatprep.mubr.msk.f32.mxu1 %vm9726_vm0, %v14060_v32  ;;  %9043 = vmatprep.mubr.msk.f32.mxu0 %vm9726_vm0, %v14060_v32  ;;  %v5256_v20 = vadd.f32 %v11750_v53, %v4814_v25  ;;  %v14109_v44 = vld [vmem:[#allocation24_spill] sm:$0xff] }
 0x33e   : > { %v4553_v3 = vrot.slane %v12400_v41, 1  ;;  %5831 = vrot.lane.b32.xlu1 %v5512_v61, %s9728_s25  ;;  %4871 = vrot.lane.b32.xlu0 %v4552_v42, %s9727_s24  ;;  %v5515_v27 = vrot.slane %v12400_v41, 2  ;;  %v2703_v61 = vld [vmem:[%s9777_s21 + $0x430] sm:$0xff] }
 0x33f   : > { %v6384_v28 = vadd.f32 %v12182_v16, %v6217_v13  ;;  %v3636_v9 = vpop.f32.mrb[138].mxu0 }
 0x340   : > { %v5776_v62 = vpop.permute.xlu1 %5775  ;;  %v4816_v8 = vpop.permute.xlu0 %4815  ;;  %v12421_v31 = vadd.f32 %v3636_v9, %v14108_v2  ;;  %8562 = vmatmul.mubr.msk.f32.gmra.mrb[246].mxu1 %vm340_vm1, %v9675_v4  ;;  %9044 = vmatmul.mubr.msk.f32.gmra.mrb[244].mxu0 %vm340_vm1, %v2701_v24  ;;  %v4554_v51 = vsel %vm4417_vm2, %v4551_v34, %v4553_v3  ;;  %v5516_v39 = vsel %vm5379_vm3, %v5513_v14, %v5515_v27  ;;  %v9677_v2 = vld [vmem:[%s9777_s21 + $0x3e8] sm:$0xff] }
 0x341   : > { %6545 = vst.msk [vmem:[%s11644_s4 + $0x120] sm:$0xff] %vm6508_vm4, %v6384_v28  ;;  %v6218_v53 = vadd.f32 %v5776_v62, %v5256_v20  ;;  %v8886_v50 = vpop.f32.mrb[139].mxu0  ;;  %8564 = vmatprep.mubr.msk.f32.mxu1 %vm9726_vm0, %v14060_v32  ;;  %9046 = vmatprep.mubr.msk.f32.mxu0 %vm9726_vm0, %v14060_v32  ;;  %v5257_v59 = vadd.f32 %v11771_v56, %v4816_v8  ;;  %v14110_v62 = vld [vmem:[#allocation25_spill] sm:$0xff] }
 0x342   : > { %v4555_v23 = vrot.slane %v12421_v31, 1  ;;  %5833 = vrot.lane.b32.xlu0 %v5514_v0, %s9728_s25  ;;  %4873 = vrot.lane.b32.xlu1 %v4554_v51, %s9727_s24  ;;  %v5517_v42 = vrot.slane %v12421_v31, 2  ;;  %v2704_v0 = vld [vmem:[%s9777_s21 + $0x438] sm:$0xff] }
 0x343   : > { %v6385_v34 = vadd.f32 %v12182_v16, %v6218_v53  ;;  %v3641_v52 = vpop.f32.mrb[140].mxu0 }
 0x344   : > { %v5778_v35 = vpop.permute.xlu0 %5777  ;;  %v4818_v17 = vpop.permute.xlu1 %4817  ;;  %v12442_v25 = vadd.f32 %v3641_v52, %v14109_v44  ;;  %8565 = vmatmul.mubr.msk.f32.gmra.mrb[248].mxu1 %vm340_vm1, %v9676_v7  ;;  %9047 = vmatmul.mubr.msk.f32.gmra.mrb[246].mxu0 %vm340_vm1, %v2702_v38  ;;  %v4556_v45 = vsel %vm4417_vm2, %v4553_v3, %v4555_v23  ;;  %v5518_v50 = vsel %vm5379_vm3, %v5515_v27, %v5517_v42  ;;  %v9678_v44 = vld [vmem:[%s9777_s21 + $0x3f0] sm:$0xff] }
 0x345   : > { %6546 = vst.msk [vmem:[%s11644_s4 + $0x128] sm:$0xff] %vm6508_vm4, %v6385_v34  ;;  %v6219_v56 = vadd.f32 %v5778_v35, %v5257_v59  ;;  %v8889_v13 = vpop.f32.mrb[141].mxu0  ;;  %8567 = vmatprep.mubr.msk.f32.mxu1 %vm9726_vm0, %v14060_v32  ;;  %9049 = vmatprep.mubr.msk.f32.mxu0 %vm9726_vm0, %v14060_v32  ;;  %v5258_v28 = vadd.f32 %v11792_v1, %v4818_v17  ;;  %v14111_v35 = vld [vmem:[#allocation26_spill] sm:$0xff] }
 0x346   : > { %v4557_v24 = vrot.slane %v12442_v25, 1  ;;  %5835 = vrot.lane.b32.xlu1 %v5516_v39, %s9728_s25  ;;  %4875 = vrot.lane.b32.xlu0 %v4556_v45, %s9727_s24  ;;  %v5519_v51 = vrot.slane %v12442_v25, 2  ;;  %v2705_v39 = vld [vmem:[%s9777_s21 + $0x440] sm:$0xff] }
 0x347   : > { %v6386_v3 = vadd.f32 %v12182_v16, %v6219_v56  ;;  %v3646_v14 = vpop.f32.mrb[142].mxu0 }
 0x348   : > { %v5780_v20 = vpop.permute.xlu1 %5779  ;;  %v4820_v9 = vpop.permute.xlu0 %4819  ;;  %v12463_v8 = vadd.f32 %v3646_v14, %v14110_v62  ;;  %8568 = vmatmul.mubr.msk.f32.gmra.mrb[250].mxu1 %vm340_vm1, %v9677_v2  ;;  %9050 = vmatmul.mubr.msk.f32.gmra.mrb[248].mxu0 %vm340_vm1, %v2703_v61  ;;  %v4558_v4 = vsel %vm4417_vm2, %v4555_v23, %v4557_v24  ;;  %v5520_v13 = vsel %vm5379_vm3, %v5517_v42, %v5519_v51  ;;  %v9679_v62 = vld [vmem:[%s9777_s21 + $0x3f8] sm:$0xff] }
 0x349   : > { %6547 = vst.msk [vmem:[%s11644_s4 + $0x130] sm:$0xff] %vm6508_vm4, %v6386_v3  ;;  %v6220_v1 = vadd.f32 %v5780_v20, %v5258_v28  ;;  %v8892_v53 = vpop.f32.mrb[143].mxu0  ;;  %8570 = vmatprep.mubr.msk.f32.mxu1 %vm9726_vm0, %v14060_v32  ;;  %9052 = vmatprep.mubr.msk.f32.mxu0 %vm9726_vm0, %v14060_v32  ;;  %v5259_v34 = vadd.f32 %v11813_v47, %v4820_v9  ;;  %v14112_v20 = vld [vmem:[#allocation27_spill] sm:$0xff] }
 0x34a   : > { %v4559_v38 = vrot.slane %v12463_v8, 1  ;;  %5837 = vrot.lane.b32.xlu0 %v5518_v50, %s9728_s25  ;;  %4877 = vrot.lane.b32.xlu1 %v4558_v4, %s9727_s24  ;;  %v5521_v45 = vrot.slane %v12463_v8, 2  ;;  %v2706_v50 = vld [vmem:[%s9777_s21 + $0x448] sm:$0xff] }
 0x34b   : > { %v6387_v23 = vadd.f32 %v12182_v16, %v6220_v1  ;;  %v3651_v27 = vpop.f32.mrb[144].mxu0 }
 0x34c   : > { %v5782_v59 = vpop.permute.xlu0 %5781  ;;  %v4822_v52 = vpop.permute.xlu1 %4821  ;;  %v12484_v17 = vadd.f32 %v3651_v27, %v14111_v35  ;;  %8571 = vmatmul.mubr.msk.f32.gmra.mrb[252].mxu1 %vm340_vm1, %v9678_v44  ;;  %9053 = vmatmul.mubr.msk.f32.gmra.mrb[250].mxu0 %vm340_vm1, %v2704_v0  ;;  %v4560_v7 = vsel %vm4417_vm2, %v4557_v24, %v4559_v38  ;;  %v5522_v53 = vsel %vm5379_vm3, %v5519_v51, %v5521_v45  ;;  %v9680_v35 = vld [vmem:[%s9777_s21 + $0x400] sm:$0xff] }
 0x34d   : > { %6548 = vst.msk [vmem:[%s11644_s4 + $0x138] sm:$0xff] %vm6508_vm4, %v6387_v23  ;;  %v6221_v47 = vadd.f32 %v5782_v59, %v5259_v34  ;;  %v8895_v56 = vpop.f32.mrb[145].mxu0  ;;  %8573 = vmatprep.mubr.msk.f32.mxu1 %vm9726_vm0, %v14060_v32  ;;  %9055 = vmatprep.mubr.msk.f32.mxu0 %vm9726_vm0, %v14060_v32  ;;  %v5260_v3 = vadd.f32 %v11834_v15, %v4822_v52  ;;  %v14113_v59 = vld [vmem:[#allocation28_spill] sm:$0xff] }
 0x34e   : > { %v4561_v61 = vrot.slane %v12484_v17, 1  ;;  %5839 = vrot.lane.b32.xlu1 %v5520_v13, %s9728_s25  ;;  %4879 = vrot.lane.b32.xlu0 %v4560_v7, %s9727_s24  ;;  %v5523_v4 = vrot.slane %v12484_v17, 2  ;;  %v2707_v13 = vld [vmem:[%s9777_s21 + $0x450] sm:$0xff] }
 0x34f   : > { %v6388_v24 = vadd.f32 %v12182_v16, %v6221_v47  ;;  %v3656_v42 = vpop.f32.mrb[146].mxu0 }
 0x350   : > { %v5784_v28 = vpop.permute.xlu1 %5783  ;;  %v4824_v14 = vpop.permute.xlu0 %4823  ;;  %v12505_v9 = vadd.f32 %v3656_v42, %v14112_v20  ;;  %8574 = vmatmul.mubr.msk.f32.gmra.mrb[254].mxu1 %vm340_vm1, %v9679_v62  ;;  %9056 = vmatmul.mubr.msk.f32.gmra.mrb[252].mxu0 %vm340_vm1, %v2705_v39  ;;  %v4562_v2 = vsel %vm4417_vm2, %v4559_v38, %v4561_v61  ;;  %v5524_v56 = vsel %vm5379_vm3, %v5521_v45, %v5523_v4  ;;  %v9681_v20 = vld [vmem:[%s9777_s21 + $0x408] sm:$0xff] }
 0x351   : > { %6549 = vst.msk [vmem:[%s11644_s4 + $0x140] sm:$0xff] %vm6508_vm4, %v6388_v24  ;;  %v6222_v15 = vadd.f32 %v5784_v28, %v5260_v3  ;;  %v8898_v1 = vpop.f32.mrb[147].mxu0  ;;  %8576 = vmatprep.mubr.msk.f32.mxu1 %vm9726_vm0, %v14060_v32  ;;  %9058 = vmatprep.mubr.msk.f32.mxu0 %vm9726_vm0, %v14060_v32  ;;  %v5261_v23 = vadd.f32 %v11855_v5, %v4824_v14  ;;  %v14114_v28 = vld [vmem:[#allocation29_spill] sm:$0xff] }
 0x352   : > { %v4563_v0 = vrot.slane %v12505_v9, 1  ;;  %5841 = vrot.lane.b32.xlu0 %v5522_v53, %s9728_s25  ;;  %4881 = vrot.lane.b32.xlu1 %v4562_v2, %s9727_s24  ;;  %v5525_v7 = vrot.slane %v12505_v9, 2  ;;  %v2708_v53 = vld [vmem:[%s9777_s21 + $0x458] sm:$0xff] }
 0x353   : > { %v6389_v38 = vadd.f32 %v12182_v16, %v6222_v15  ;;  %v3661_v51 = vpop.f32.mrb[148].mxu0 }
 0x354   : > { %v5786_v34 = vpop.permute.xlu0 %5785  ;;  %v4826_v27 = vpop.permute.xlu1 %4825  ;;  %v12526_v52 = vadd.f32 %v3661_v51, %v14113_v59  ;;  %8577 = vmatmul.mubr.msk.f32.gmra.mrb[150].mxu1 %vm340_vm1, %v9680_v35  ;;  %9059 = vmatmul.mubr.msk.f32.gmra.mrb[254].mxu0 %vm340_vm1, %v2706_v50  ;;  %v4564_v44 = vsel %vm4417_vm2, %v4561_v61, %v4563_v0  ;;  %v5526_v1 = vsel %vm5379_vm3, %v5523_v4, %v5525_v7  ;;  %v9682_v59 = vld [vmem:[%s9777_s21 + $0x410] sm:$0xff] }
 0x355   : > { %6550 = vst.msk [vmem:[%s11644_s4 + $0x148] sm:$0xff] %vm6508_vm4, %v6389_v38  ;;  %v6223_v5 = vadd.f32 %v5786_v34, %v5261_v23  ;;  %v8901_v47 = vpop.f32.mrb[149].mxu0  ;;  %8579 = vmatprep.mubr.msk.f32.mxu1 %vm9726_vm0, %v14060_v32  ;;  %9061 = vmatprep.mubr.msk.f32.mxu0 %vm9726_vm0, %v14060_v32  ;;  %v5262_v24 = vadd.f32 %v11876_v48, %v4826_v27  ;;  %v14115_v34 = vld [vmem:[#allocation30_spill] sm:$0xff] }
 0x356   : > { %v4565_v39 = vrot.slane %v12526_v52, 1  ;;  %5843 = vrot.lane.b32.xlu1 %v5524_v56, %s9728_s25  ;;  %4883 = vrot.lane.b32.xlu0 %v4564_v44, %s9727_s24  ;;  %v5527_v2 = vrot.slane %v12526_v52, 2  ;;  %v2709_v56 = vld [vmem:[%s9777_s21 + $0x460] sm:$0xff] }
 0x357   : > { %v6390_v61 = vadd.f32 %v12182_v16, %v6223_v5  ;;  %v3666_v45 = vpop.f32.mrb[150].mxu0 }
 0x358   : > { %v5788_v3 = vpop.permute.xlu1 %5787  ;;  %v4828_v42 = vpop.permute.xlu0 %4827  ;;  %v12547_v14 = vadd.f32 %v3666_v45, %v14114_v28  ;;  %8580 = vmatmul.mubr.msk.f32.gmra.mrb[152].mxu1 %vm340_vm1, %v9681_v20  ;;  %9062 = vmatmul.mubr.msk.f32.gmra.mrb[0].mxu0 %vm340_vm1, %v2707_v13  ;;  %v4566_v62 = vsel %vm4417_vm2, %v4563_v0, %v4565_v39  ;;  %v5528_v47 = vsel %vm5379_vm3, %v5525_v7, %v5527_v2  ;;  %v9683_v28 = vld [vmem:[%s9777_s21 + $0x418] sm:$0xff] }
 0x359   : > { %6551 = vst.msk [vmem:[%s11644_s4 + $0x150] sm:$0xff] %vm6508_vm4, %v6390_v61  ;;  %v6224_v48 = vadd.f32 %v5788_v3, %v5262_v24  ;;  %v8904_v15 = vpop.f32.mrb[151].mxu0  ;;  %8582 = vmatprep.mubr.msk.f32.mxu1 %vm9726_vm0, %v14060_v32  ;;  %9064 = vmatprep.mubr.msk.f32.mxu0 %vm9726_vm0, %v14060_v32  ;;  %v5263_v38 = vadd.f32 %v11897_v57, %v4828_v42  ;;  %v14116_v3 = vld [vmem:[#allocation31_spill] sm:$0xff] }
 0x35a   : > { %v4567_v50 = vrot.slane %v12547_v14, 1  ;;  %5845 = vrot.lane.b32.xlu0 %v5526_v1, %s9728_s25  ;;  %4885 = vrot.lane.b32.xlu1 %v4566_v62, %s9727_s24  ;;  %v5529_v44 = vrot.slane %v12547_v14, 2  ;;  %v2710_v1 = vld [vmem:[%s9777_s21 + $0x468] sm:$0xff] }
 0x35b   : > { %v6391_v0 = vadd.f32 %v12182_v16, %v6224_v48  ;;  %v3671_v4 = vpop.f32.mrb[152].mxu0 }
 0x35c   : > { %v5790_v23 = vpop.permute.xlu0 %5789  ;;  %v4830_v51 = vpop.permute.xlu1 %4829  ;;  %v12568_v27 = vadd.f32 %v3671_v4, %v14115_v34  ;;  %8583 = vmatmul.mubr.msk.f32.gmra.mrb[154].mxu1 %vm340_vm1, %v9682_v59  ;;  %9065 = vmatmul.mubr.msk.f32.gmra.mrb[2].mxu0 %vm340_vm1, %v2708_v53  ;;  %v4568_v35 = vsel %vm4417_vm2, %v4565_v39, %v4567_v50  ;;  %v5530_v15 = vsel %vm5379_vm3, %v5527_v2, %v5529_v44  ;;  %v9684_v34 = vld [vmem:[%s9777_s21 + $0x420] sm:$0xff] }
 0x35d   : > { %6552 = vst.msk [vmem:[%s11644_s4 + $0x158] sm:$0xff] %vm6508_vm4, %v6391_v0  ;;  %v6225_v57 = vadd.f32 %v5790_v23, %v5263_v38  ;;  %v8907_v5 = vpop.f32.mrb[153].mxu0  ;;  %8585 = vmatprep.mubr.msk.f32.mxu1 %vm9726_vm0, %v14060_v32  ;;  %9067 = vmatprep.mubr.msk.f32.mxu0 %vm9726_vm0, %v14060_v32  ;;  %v5264_v61 = vadd.f32 %v11918_v54, %v4830_v51  ;;  %v14117_v23 = vld [vmem:[#allocation32_spill] sm:$0xff] }
 0x35e   : > { %v4569_v13 = vrot.slane %v12568_v27, 1  ;;  %5847 = vrot.lane.b32.xlu1 %v5528_v47, %s9728_s25  ;;  %4887 = vrot.lane.b32.xlu0 %v4568_v35, %s9727_s24  ;;  %v5531_v62 = vrot.slane %v12568_v27, 2  ;;  %v2711_v47 = vld [vmem:[%s9777_s21 + $0x470] sm:$0xff] }
 0x35f   : > { %v6392_v39 = vadd.f32 %v12182_v16, %v6225_v57  ;;  %v3676_v7 = vpop.f32.mrb[154].mxu0 }
 0x360   : > { %v5792_v24 = vpop.permute.xlu1 %5791  ;;  %v4832_v45 = vpop.permute.xlu0 %4831  ;;  %v12589_v42 = vadd.f32 %v3676_v7, %v14116_v3  ;;  %8586 = vmatmul.mubr.msk.f32.gmra.mrb[156].mxu1 %vm340_vm1, %v9683_v28  ;;  %9068 = vmatmul.mubr.msk.f32.gmra.mrb[4].mxu0 %vm340_vm1, %v2709_v56  ;;  %v4570_v20 = vsel %vm4417_vm2, %v4567_v50, %v4569_v13  ;;  %v5532_v5 = vsel %vm5379_vm3, %v5529_v44, %v5531_v62  ;;  %v9685_v3 = vld [vmem:[%s9777_s21 + $0x428] sm:$0xff] }
 0x361   : > { %6553 = vst.msk [vmem:[%s11644_s4 + $0x160] sm:$0xff] %vm6508_vm4, %v6392_v39  ;;  %v6226_v54 = vadd.f32 %v5792_v24, %v5264_v61  ;;  %v8910_v48 = vpop.f32.mrb[155].mxu0  ;;  %8588 = vmatprep.mubr.msk.f32.mxu1 %vm9726_vm0, %v14060_v32  ;;  %9070 = vmatprep.mubr.msk.f32.mxu0 %vm9726_vm0, %v14060_v32  ;;  %v5265_v0 = vadd.f32 %v11939_v19, %v4832_v45  ;;  %v14118_v24 = vld [vmem:[#allocation33_spill] sm:$0xff] }
 0x362   : > { %v4571_v53 = vrot.slane %v12589_v42, 1  ;;  %5849 = vrot.lane.b32.xlu0 %v5530_v15, %s9728_s25  ;;  %4889 = vrot.lane.b32.xlu1 %v4570_v20, %s9727_s24  ;;  %v5533_v35 = vrot.slane %v12589_v42, 2  ;;  %v2712_v15 = vld [vmem:[%s9777_s21 + $0x478] sm:$0xff] }
 0x363   : > { %v6393_v50 = vadd.f32 %v12182_v16, %v6226_v54  ;;  %v3681_v2 = vpop.f32.mrb[156].mxu0 }
 0x364   : > { %v5794_v38 = vpop.permute.xlu0 %5793  ;;  %v4834_v4 = vpop.permute.xlu1 %4833  ;;  %v12610_v51 = vadd.f32 %v3681_v2, %v14117_v23  ;;  %8589 = vmatmul.mubr.msk.f32.gmra.mrb[158].mxu1 %vm340_vm1, %v9684_v34  ;;  %9071 = vmatmul.mubr.msk.f32.gmra.mrb[6].mxu0 %vm340_vm1, %v2710_v1  ;;  %v4572_v59 = vsel %vm4417_vm2, %v4569_v13, %v4571_v53  ;;  %v5534_v48 = vsel %vm5379_vm3, %v5531_v62, %v5533_v35  ;;  %v14119_v2 = vld [vmem:[#allocation35_spill] sm:$0xff]  ;;  %v14120_v34 = vld [vmem:[#allocation34_spill] sm:$0xff] }
 0x365   : > { %6554 = vst.msk [vmem:[%s11644_s4 + $0x168] sm:$0xff] %vm6508_vm4, %v6393_v50  ;;  %v6227_v19 = vadd.f32 %v5794_v38, %v5265_v0  ;;  %v8913_v57 = vpop.f32.mrb[157].mxu0  ;;  %8591 = vmatprep.mubr.msk.f32.mxu1 %vm9726_vm0, %v14060_v32  ;;  %9073 = vmatprep.mubr.msk.f32.mxu0 %vm9726_vm0, %v14060_v32  ;;  %v5266_v39 = vadd.f32 %v11960_v22, %v4834_v4 }
 0x366   : > { %v4573_v56 = vrot.slane %v12610_v51, 1  ;;  %5851 = vrot.lane.b32.xlu1 %v5532_v5, %s9728_s25  ;;  %4891 = vrot.lane.b32.xlu0 %v4572_v59, %s9727_s24  ;;  %v5535_v20 = vrot.slane %v12610_v51, 2 }
 0x367   : > { %v6394_v13 = vadd.f32 %v12182_v16, %v6227_v19  ;;  %v3686_v44 = vpop.f32.mrb[158].mxu0  ;;  %v9686_v19 = vld [vmem:[%s9777_s21 + $0x430] sm:$0xff] }
 0x368   : > { %v5796_v61 = vpop.permute.xlu1 %5795  ;;  %v4836_v7 = vpop.permute.xlu0 %4835  ;;  %v12631_v45 = vadd.f32 %v3686_v44, %v14118_v24  ;;  %8592 = vmatmul.mubr.msk.f32.gmra.mrb[160].mxu1 %vm340_vm1, %v9685_v3  ;;  %9074 = vmatmul.mubr.msk.f32.gmra.mrb[8].mxu0 %vm340_vm1, %v2711_v47  ;;  %v4574_v28 = vsel %vm4417_vm2, %v4571_v53, %v4573_v56  ;;  %v2713_v44 = vld [vmem:[%s9777_s21 + $0x480] sm:$0xff]  ;;  %v14121_v3 = vld [vmem:[#allocation36_spill] sm:$0xff] }
 0x369   : > { %6555 = vst.msk [vmem:[%s11644_s4 + $0x170] sm:$0xff] %vm6508_vm4, %v6394_v13  ;;  %v6228_v54 = vadd.f32 %v5796_v61, %v5266_v39  ;;  %v8916_v22 = vpop.f32.mrb[159].mxu0  ;;  %8594 = vmatprep.mubr.msk.f32.mxu1 %vm9726_vm0, %v14060_v32  ;;  %9076 = vmatprep.mubr.msk.f32.mxu0 %vm9726_vm0, %v14060_v32  ;;  %v5267_v50 = vadd.f32 %v11981_v63, %v4836_v7 }
 0x36a   : > { %v4575_v1 = vrot.slane %v12631_v45, 1  ;;  %5853 = vrot.lane.b32.xlu0 %v5534_v48, %s9728_s25  ;;  %4893 = vrot.lane.b32.xlu1 %v4574_v28, %s9727_s24  ;;  %v5537_v63 = vrot.slane %v12631_v45, 2  ;;  %v5536_v39 = vsel %vm5379_vm3, %v5533_v35, %v5535_v20 }
 0x36b   : > { %v6395_v53 = vadd.f32 %v12182_v16, %v6228_v54  ;;  %v2180_v0 = vpop.f32.mrb[0].mxu1  ;;  %v3691_v62 = vpop.f32.mrb[160].mxu0 }
 0x36c   : > { %v2181_v38 = vadd.f32 %v2180_v0, %v14119_v2  ;;  %v5798_v4 = vpop.permute.xlu0 %5797  ;;  %v4838_v23 = vpop.permute.xlu1 %4837  ;;  %v12653_v59 = vadd.f32 %v3691_v62, %v14120_v34  ;;  %8595 = vmatmul.mubr.msk.f32.gmra.mrb[162].mxu1 %vm340_vm1, %v9686_v19  ;;  %9077 = vmatmul.mubr.msk.f32.gmra.mrb[10].mxu0 %vm340_vm1, %v2712_v15  ;;  %v4576_v57 = vsel %vm4417_vm2, %v4573_v56, %v4575_v1  ;;  %v9687_v15 = vld [vmem:[%s9777_s21 + $0x438] sm:$0xff] }
 0x36d   : > { %6556 = vst.msk [vmem:[%s11644_s4 + $0x178] sm:$0xff] %vm6508_vm4, %v6395_v53  ;;  %v6229_v5 = vadd.f32 %v5798_v4, %v5267_v50  ;;  %v8919_v47 = vpop.f32.mrb[161].mxu0  ;;  %v8437_v13 = vpop.f32.mrb[1].mxu1  ;;  %8597 = vmatprep.mubr.msk.f32.mxu1 %vm9726_vm0, %v14060_v32  ;;  %9079 = vmatprep.mubr.msk.f32.mxu0 %vm9726_vm0, %v14060_v32  ;;  %v5268_v7 = vadd.f32 %v12002_v18, %v4838_v23  ;;  %v14122_v19 = vld [vmem:[#allocation37_spill] sm:$0xff] }
 0x36e   : > { %v4577_v56 = vrot.slane %v12653_v59, 1  ;;  %5855 = vrot.lane.b32.xlu1 %v5536_v39, %s9728_s25  ;;  %4895 = vrot.lane.b32.xlu0 %v4576_v57, %s9727_s24  ;;  %v5539_v18 = vrot.slane %v12653_v59, 2  ;;  %v5538_v2 = vsel %vm5379_vm3, %v5535_v20, %v5537_v63  ;;  %v9688_v39 = vld [vmem:[%s9777_s21 + $0x440] sm:$0xff] }
 0x36f   : > { %v6396_v61 = vadd.f32 %v12182_v16, %v6229_v5  ;;  %v2185_v24 = vpop.f32.mrb[2].mxu1  ;;  %v3696_v35 = vpop.f32.mrb[162].mxu0 }
 0x370   : > { %v2186_v28 = vadd.f32 %v2185_v24, %v14121_v3  ;;  %v5800_v54 = vpop.permute.xlu1 %5799  ;;  %v4840_v22 = vpop.permute.xlu0 %4839  ;;  %v12674_v48 = vadd.f32 %v3696_v35, %v2181_v38  ;;  %8598 = vmatmul.mubr.msk.f32.gmra.mrb[164].mxu1 %vm340_vm1, %v9687_v15  ;;  %9080 = vmatmul.mubr.msk.f32.gmra.mrb[12].mxu0 %vm340_vm1, %v2713_v44  ;;  %v4578_v53 = vsel %vm4417_vm2, %v4575_v1, %v4577_v56  ;;  %v2714_v38 = vld [vmem:[%s9777_s21 + $0x488] sm:$0xff]  ;;  %v2715_v35 = vld [vmem:[%s9777_s21 + $0x490] sm:$0xff]  ;;  %v14123_v15 = vld [vmem:[#allocation38_spill] sm:$0xff] }
 0x371   : > { %6557 = vst.msk [vmem:[%s11644_s4 + $0x180] sm:$0xff] %vm6508_vm4, %v6396_v61  ;;  %v6230_v50 = vadd.f32 %v5800_v54, %v5268_v7  ;;  %v8922_v0 = vpop.f32.mrb[163].mxu0  ;;  %v8440_v62 = vpop.f32.mrb[3].mxu1  ;;  %8600 = vmatprep.mubr.msk.f32.mxu1 %vm9726_vm0, %v14060_v32  ;;  %9082 = vmatprep.mubr.msk.f32.mxu0 %vm9726_vm0, %v14060_v32  ;;  %v5269_v23 = vadd.f32 %v12023_v37, %v4840_v22 }
 0x372   : > { %v4579_v1 = vrot.slane %v12674_v48, 1  ;;  %5857 = vrot.lane.b32.xlu0 %v5538_v2, %s9728_s25  ;;  %4897 = vrot.lane.b32.xlu1 %v4578_v53, %s9727_s24  ;;  %v5541_v37 = vrot.slane %v12674_v48, 2  ;;  %v5540_v24 = vsel %vm5379_vm3, %v5537_v63, %v5539_v18  ;;  %v9690_v2 = vld [vmem:[%s9777_s21 + $0x448] sm:$0xff] }
 0x373   : > { %v6397_v4 = vadd.f32 %v12182_v16, %v6230_v50  ;;  %v2190_v34 = vpop.f32.mrb[4].mxu1  ;;  %v3701_v20 = vpop.f32.mrb[164].mxu0 }
 0x374   : > { %v2191_v57 = vadd.f32 %v2190_v34, %v14122_v19  ;;  %v5802_v5 = vpop.permute.xlu0 %5801  ;;  %v4842_v47 = vpop.permute.xlu1 %4841  ;;  %v12695_v13 = vadd.f32 %v3701_v20, %v2186_v28  ;;  %8601 = vmatmul.mubr.msk.f32.gmra.mrb[166].mxu1 %vm340_vm1, %v9688_v39  ;;  %9083 = vmatmul.mubr.msk.f32.gmra.mrb[14].mxu0 %vm340_vm1, %v2714_v38  ;;  %v4580_v44 = vsel %vm4417_vm2, %v4577_v56, %v4579_v1  ;;  %v12716_v56 = vld [vmem:[%s14019_s2] ss:$0 sm:$0xff]  ;;  %v2716_v19 = vld [vmem:[%s9777_s21 + $0x498] sm:$0xff]  ;;  %v14124_v39 = vld [vmem:[#allocation39_spill] sm:$0xff] }
 0x375   : > { %6558 = vst.msk [vmem:[%s11644_s4 + $0x188] sm:$0xff] %vm6508_vm4, %v6397_v4  ;;  %v6231_v16 = vadd.f32 %v5802_v5, %v5269_v23  ;;  %v8925_v61 = vpop.f32.mrb[165].mxu0  ;;  %v8443_v7 = vpop.f32.mrb[5].mxu1  ;;  %8603 = vmatprep.mubr.msk.f32.mxu1 %vm9726_vm0, %v14060_v32  ;;  %9085 = vmatprep.mubr.msk.f32.mxu0 %vm9726_vm0, %v14060_v32  ;;  %v5270_v28 = vadd.f32 %v12044_v26, %v4842_v47 }
 0x376   : > { %v4581_v3 = vrot.slane %v12695_v13, 1  ;;  %5859 = vrot.lane.b32.xlu1 %v5540_v24, %s9728_s25  ;;  %4899 = vrot.lane.b32.xlu0 %v4580_v44, %s9727_s24  ;;  %v5543_v26 = vrot.slane %v12695_v13, 2  ;;  %v5542_v20 = vsel %vm5379_vm3, %v5539_v18, %v5541_v37  ;;  %v9691_v24 = vld [vmem:[%s9777_s21 + $0x450] sm:$0xff] }
 0x377   : > { %v6398_v63 = vadd.f32 %v12716_v56, %v6231_v16  ;;  %v2195_v54 = vpop.f32.mrb[6].mxu1  ;;  %v3706_v22 = vpop.f32.mrb[166].mxu0 }
 0x378   : > { %v2196_v53 = vadd.f32 %v2195_v54, %v14123_v15  ;;  %v5804_v50 = vpop.permute.xlu1 %5803  ;;  %v4844_v0 = vpop.permute.xlu0 %4843  ;;  %v12721_v62 = vadd.f32 %v3706_v22, %v2191_v57  ;;  %8604 = vmatmul.mubr.msk.f32.gmra.mrb[168].mxu1 %vm340_vm1, %v9690_v2  ;;  %9086 = vmatmul.mubr.msk.f32.gmra.mrb[16].mxu0 %vm340_vm1, %v2715_v35  ;;  %v4582_v38 = vsel %vm4417_vm2, %v4579_v1, %v4581_v3  ;;  %v2717_v15 = vld [vmem:[%s9777_s21 + $0x4a0] sm:$0xff]  ;;  %v14125_v2 = vld [vmem:[#allocation40_spill] sm:$0xff] }
 0x379   : > { %6559 = vst.msk [vmem:[%s11644_s4 + $0x190] sm:$0xff] %vm6508_vm4, %v6398_v63  ;;  %v6232_v4 = vadd.f32 %v5804_v50, %v5270_v28  ;;  %v8928_v23 = vpop.f32.mrb[167].mxu0  ;;  %v8446_v34 = vpop.f32.mrb[7].mxu1  ;;  %8606 = vmatprep.mubr.msk.f32.mxu1 %vm9726_vm0, %v14060_v32  ;;  %9088 = vmatprep.mubr.msk.f32.mxu0 %vm9726_vm0, %v14060_v32  ;;  %v5271_v5 = vadd.f32 %v12065_v60, %v4844_v0 }
 0x37a   : > { %v4583_v1 = vrot.slane %v12721_v62, 1  ;;  %5861 = vrot.lane.b32.xlu0 %v5542_v20, %s9728_s25  ;;  %4901 = vrot.lane.b32.xlu1 %v4582_v38, %s9727_s24  ;;  %v5545_v60 = vrot.slane %v12721_v62, 2  ;;  %v5544_v22 = vsel %vm5379_vm3, %v5541_v37, %v5543_v26  ;;  %v9692_v20 = vld [vmem:[%s9777_s21 + $0x458] sm:$0xff] }
 0x37b   : > { %v6399_v57 = vadd.f32 %v12716_v56, %v6232_v4  ;;  %v2200_v47 = vpop.f32.mrb[8].mxu1  ;;  %v3711_v18 = vpop.f32.mrb[168].mxu0 }
 0x37c   : > { %v2201_v44 = vadd.f32 %v2200_v47, %v14124_v39  ;;  %v5806_v16 = vpop.permute.xlu0 %5805  ;;  %v4846_v61 = vpop.permute.xlu1 %4845  ;;  %v12742_v7 = vadd.f32 %v3711_v18, %v2196_v53  ;;  %8607 = vmatmul.mubr.msk.f32.gmra.mrb[170].mxu1 %vm340_vm1, %v9691_v24  ;;  %9089 = vmatmul.mubr.msk.f32.gmra.mrb[18].mxu0 %vm340_vm1, %v2716_v19  ;;  %v4584_v35 = vsel %vm4417_vm2, %v4581_v3, %v4583_v1  ;;  %v2718_v39 = vld [vmem:[%s9777_s21 + $0x4a8] sm:$0xff]  ;;  %v14126_v24 = vld [vmem:[#allocation41_spill] sm:$0xff] }
 0x37d   : > { %6560 = vst.msk [vmem:[%s11644_s4 + $0x198] sm:$0xff] %vm6508_vm4, %v6399_v57  ;;  %v6233_v63 = vadd.f32 %v5806_v16, %v5271_v5  ;;  %v8931_v28 = vpop.f32.mrb[169].mxu0  ;;  %v8449_v54 = vpop.f32.mrb[9].mxu1  ;;  %8609 = vmatprep.mubr.msk.f32.mxu1 %vm9726_vm0, %v14060_v32  ;;  %9091 = vmatprep.mubr.msk.f32.mxu0 %vm9726_vm0, %v14060_v32  ;;  %v5272_v50 = vadd.f32 %v12086_v10, %v4846_v61 }
 0x37e   : > { %v4585_v3 = vrot.slane %v12742_v7, 1  ;;  %5863 = vrot.lane.b32.xlu1 %v5544_v22, %s9728_s25  ;;  %4903 = vrot.lane.b32.xlu0 %v4584_v35, %s9727_s24  ;;  %v5547_v10 = vrot.slane %v12742_v7, 2  ;;  %v5546_v18 = vsel %vm5379_vm3, %v5543_v26, %v5545_v60  ;;  %v9693_v22 = vld [vmem:[%s9777_s21 + $0x460] sm:$0xff] }
 0x37f   : > { %v6400_v53 = vadd.f32 %v12716_v56, %v6233_v63  ;;  %v2205_v0 = vpop.f32.mrb[10].mxu1  ;;  %v3716_v37 = vpop.f32.mrb[170].mxu0 }
 0x380   : > { %v2206_v38 = vadd.f32 %v2205_v0, %v14125_v2  ;;  %v5808_v4 = vpop.permute.xlu1 %5807  ;;  %v4848_v23 = vpop.permute.xlu0 %4847  ;;  %v12763_v34 = vadd.f32 %v3716_v37, %v2201_v44  ;;  %8610 = vmatmul.mubr.msk.f32.gmra.mrb[172].mxu1 %vm340_vm1, %v9692_v20  ;;  %9092 = vmatmul.mubr.msk.f32.gmra.mrb[20].mxu0 %vm340_vm1, %v2717_v15  ;;  %v4586_v19 = vsel %vm4417_vm2, %v4583_v1, %v4585_v3  ;;  %v2719_v2 = vld [vmem:[%s9777_s21 + $0x4b0] sm:$0xff]  ;;  %v14127_v20 = vld [vmem:[#allocation42_spill] sm:$0xff] }
 0x381   : > { %6561 = vst.msk [vmem:[%s11644_s4 + $0x1a0] sm:$0xff] %vm6508_vm4, %v6400_v53  ;;  %v6234_v57 = vadd.f32 %v5808_v4, %v5272_v50  ;;  %v8934_v5 = vpop.f32.mrb[171].mxu0  ;;  %v8452_v47 = vpop.f32.mrb[11].mxu1  ;;  %8612 = vmatprep.mubr.msk.f32.mxu1 %vm9726_vm0, %v14060_v32  ;;  %9094 = vmatprep.mubr.msk.f32.mxu0 %vm9726_vm0, %v14060_v32  ;;  %v5273_v16 = vadd.f32 %v12107_v30, %v4848_v23 }
 0x382   : > { %v4587_v1 = vrot.slane %v12763_v34, 1  ;;  %5865 = vrot.lane.b32.xlu0 %v5546_v18, %s9728_s25  ;;  %4905 = vrot.lane.b32.xlu1 %v4586_v19, %s9727_s24  ;;  %v5549_v30 = vrot.slane %v12763_v34, 2  ;;  %v5548_v37 = vsel %vm5379_vm3, %v5545_v60, %v5547_v10  ;;  %v9694_v18 = vld [vmem:[%s9777_s21 + $0x468] sm:$0xff] }
 0x383   : > { %v6401_v44 = vadd.f32 %v12716_v56, %v6234_v57  ;;  %v2210_v61 = vpop.f32.mrb[12].mxu1  ;;  %v3721_v26 = vpop.f32.mrb[172].mxu0 }
 0x384   : > { %v2211_v35 = vadd.f32 %v2210_v61, %v14126_v24  ;;  %v5810_v63 = vpop.permute.xlu0 %5809  ;;  %v4850_v28 = vpop.permute.xlu1 %4849  ;;  %v12784_v54 = vadd.f32 %v3721_v26, %v2206_v38  ;;  %8613 = vmatmul.mubr.msk.f32.gmra.mrb[174].mxu1 %vm340_vm1, %v9693_v22  ;;  %9095 = vmatmul.mubr.msk.f32.gmra.mrb[22].mxu0 %vm340_vm1, %v2718_v39  ;;  %v4588_v15 = vsel %vm4417_vm2, %v4585_v3, %v4587_v1  ;;  %v2720_v24 = vld [vmem:[%s9777_s21 + $0x4b8] sm:$0xff]  ;;  %v14128_v22 = vld [vmem:[#allocation43_spill] sm:$0xff] }
 0x385   : > { %6562 = vst.msk [vmem:[%s11644_s4 + $0x1a8] sm:$0xff] %vm6508_vm4, %v6401_v44  ;;  %v6235_v53 = vadd.f32 %v5810_v63, %v5273_v16  ;;  %v8937_v50 = vpop.f32.mrb[173].mxu0  ;;  %v8455_v0 = vpop.f32.mrb[13].mxu1  ;;  %8615 = vmatprep.mubr.msk.f32.mxu1 %vm9726_vm0, %v14060_v32  ;;  %9097 = vmatprep.mubr.msk.f32.mxu0 %vm9726_vm0, %v14060_v32  ;;  %v5274_v4 = vadd.f32 %v12128_v36, %v4850_v28 }
 0x386   : > { %v4589_v3 = vrot.slane %v12784_v54, 1  ;;  %5867 = vrot.lane.b32.xlu1 %v5548_v37, %s9728_s25  ;;  %4907 = vrot.lane.b32.xlu0 %v4588_v15, %s9727_s24  ;;  %v5551_v36 = vrot.slane %v12784_v54, 2  ;;  %v5550_v26 = vsel %vm5379_vm3, %v5547_v10, %v5549_v30  ;;  %v9695_v37 = vld [vmem:[%s9777_s21 + $0x470] sm:$0xff] }
 0x387   : > { %v6402_v38 = vadd.f32 %v12716_v56, %v6235_v53  ;;  %v2215_v23 = vpop.f32.mrb[14].mxu1  ;;  %v3726_v60 = vpop.f32.mrb[174].mxu0 }
 0x388   : > { %v2216_v19 = vadd.f32 %v2215_v23, %v14127_v20  ;;  %v5812_v57 = vpop.permute.xlu1 %5811  ;;  %v4852_v5 = vpop.permute.xlu0 %4851  ;;  %v12805_v47 = vadd.f32 %v3726_v60, %v2211_v35  ;;  %8616 = vmatmul.mubr.msk.f32.gmra.mrb[176].mxu1 %vm340_vm1, %v9694_v18  ;;  %9098 = vmatmul.mubr.msk.f32.gmra.mrb[24].mxu0 %vm340_vm1, %v2719_v2  ;;  %v4590_v39 = vsel %vm4417_vm2, %v4587_v1, %v4589_v3  ;;  %v2721_v20 = vld [vmem:[%s9777_s21 + $0x4c0] sm:$0xff]  ;;  %v14129_v18 = vld [vmem:[#allocation44_spill] sm:$0xff] }
 0x389   : > { %6563 = vst.msk [vmem:[%s11644_s4 + $0x1b0] sm:$0xff] %vm6508_vm4, %v6402_v38  ;;  %v6236_v44 = vadd.f32 %v5812_v57, %v5274_v4  ;;  %v8940_v16 = vpop.f32.mrb[175].mxu0  ;;  %v8458_v61 = vpop.f32.mrb[15].mxu1  ;;  %8618 = vmatprep.mubr.msk.f32.mxu1 %vm9726_vm0, %v14060_v32  ;;  %9100 = vmatprep.mubr.msk.f32.mxu0 %vm9726_vm0, %v14060_v32  ;;  %v5275_v63 = vadd.f32 %v12149_v29, %v4852_v5 }
 0x38a   : > { %v4591_v1 = vrot.slane %v12805_v47, 1  ;;  %5869 = vrot.lane.b32.xlu0 %v5550_v26, %s9728_s25  ;;  %4909 = vrot.lane.b32.xlu1 %v4590_v39, %s9727_s24  ;;  %v5553_v29 = vrot.slane %v12805_v47, 2  ;;  %v5552_v60 = vsel %vm5379_vm3, %v5549_v30, %v5551_v36  ;;  %v9696_v26 = vld [vmem:[%s9777_s21 + $0x478] sm:$0xff] }
 0x38b   : > { %v6403_v35 = vadd.f32 %v12716_v56, %v6236_v44  ;;  %v2220_v28 = vpop.f32.mrb[16].mxu1  ;;  %v3731_v10 = vpop.f32.mrb[176].mxu0 }
 0x38c   : > { %v2221_v15 = vadd.f32 %v2220_v28, %v14128_v22  ;;  %v5814_v53 = vpop.permute.xlu0 %5813  ;;  %v4854_v50 = vpop.permute.xlu1 %4853  ;;  %v12826_v0 = vadd.f32 %v3731_v10, %v2216_v19  ;;  %8619 = vmatmul.mubr.msk.f32.gmra.mrb[178].mxu1 %vm340_vm1, %v9695_v37  ;;  %9101 = vmatmul.mubr.msk.f32.gmra.mrb[26].mxu0 %vm340_vm1, %v2720_v24  ;;  %v4592_v2 = vsel %vm4417_vm2, %v4589_v3, %v4591_v1  ;;  %v2722_v22 = vld [vmem:[%s9777_s21 + $0x4c8] sm:$0xff]  ;;  %v14130_v37 = vld [vmem:[#allocation45_spill] sm:$0xff] }
 0x38d   : > { %6564 = vst.msk [vmem:[%s11644_s4 + $0x1b8] sm:$0xff] %vm6508_vm4, %v6403_v35  ;;  %v6237_v38 = vadd.f32 %v5814_v53, %v5275_v63  ;;  %v8943_v4 = vpop.f32.mrb[177].mxu0  ;;  %v8461_v23 = vpop.f32.mrb[17].mxu1  ;;  %8621 = vmatprep.mubr.msk.f32.mxu1 %vm9726_vm0, %v14060_v32  ;;  %9103 = vmatprep.mubr.msk.f32.mxu0 %vm9726_vm0, %v14060_v32  ;;  %v5276_v57 = vadd.f32 %v12170_v21, %v4854_v50 }
 0x38e   : > { %v4593_v3 = vrot.slane %v12826_v0, 1  ;;  %5871 = vrot.lane.b32.xlu1 %v5552_v60, %s9728_s25  ;;  %4911 = vrot.lane.b32.xlu0 %v4592_v2, %s9727_s24  ;;  %v5555_v21 = vrot.slane %v12826_v0, 2  ;;  %v5554_v10 = vsel %vm5379_vm3, %v5551_v36, %v5553_v29  ;;  %v9697_v60 = vld [vmem:[%s9777_s21 + $0x480] sm:$0xff] }
 0x38f   : > { %v6404_v19 = vadd.f32 %v12716_v56, %v6237_v38  ;;  %v2225_v5 = vpop.f32.mrb[18].mxu1  ;;  %v3736_v30 = vpop.f32.mrb[178].mxu0 }
 0x390   : > { %v2226_v39 = vadd.f32 %v2225_v5, %v14129_v18  ;;  %v5816_v44 = vpop.permute.xlu1 %5815  ;;  %v4856_v16 = vpop.permute.xlu0 %4855  ;;  %v12847_v61 = vadd.f32 %v3736_v30, %v2221_v15  ;;  %8622 = vmatmul.mubr.msk.f32.gmra.mrb[180].mxu1 %vm340_vm1, %v9696_v26  ;;  %9104 = vmatmul.mubr.msk.f32.gmra.mrb[28].mxu0 %vm340_vm1, %v2721_v20  ;;  %v4594_v24 = vsel %vm4417_vm2, %v4591_v1, %v4593_v3  ;;  %v2723_v18 = vld [vmem:[%s9777_s21 + $0x4d0] sm:$0xff]  ;;  %v14131_v26 = vld [vmem:[#allocation46_spill] sm:$0xff] }
 0x391   : > { %6565 = vst.msk [vmem:[%s11644_s4 + $0x1c0] sm:$0xff] %vm6508_vm4, %v6404_v19  ;;  %v6238_v35 = vadd.f32 %v5816_v44, %v5276_v57  ;;  %v8946_v63 = vpop.f32.mrb[179].mxu0  ;;  %v8464_v28 = vpop.f32.mrb[19].mxu1  ;;  %8624 = vmatprep.mubr.msk.f32.mxu1 %vm9726_vm0, %v14060_v32  ;;  %9106 = vmatprep.mubr.msk.f32.mxu0 %vm9726_vm0, %v14060_v32  ;;  %v5277_v53 = vadd.f32 %v12196_v12, %v4856_v16 }
 0x392   : > { %v4595_v1 = vrot.slane %v12847_v61, 1  ;;  %5873 = vrot.lane.b32.xlu0 %v5554_v10, %s9728_s25  ;;  %4913 = vrot.lane.b32.xlu1 %v4594_v24, %s9727_s24  ;;  %v5557_v12 = vrot.slane %v12847_v61, 2  ;;  %v5556_v30 = vsel %vm5379_vm3, %v5553_v29, %v5555_v21  ;;  %v9698_v10 = vld [vmem:[%s9777_s21 + $0x488] sm:$0xff] }
 0x393   : > { %v6405_v15 = vadd.f32 %v12716_v56, %v6238_v35  ;;  %v2230_v50 = vpop.f32.mrb[20].mxu1  ;;  %v3741_v36 = vpop.f32.mrb[180].mxu0 }
 0x394   : > { %v2231_v2 = vadd.f32 %v2230_v50, %v14130_v37  ;;  %v5818_v38 = vpop.permute.xlu0 %5817  ;;  %v4858_v4 = vpop.permute.xlu1 %4857  ;;  %v12868_v23 = vadd.f32 %v3741_v36, %v2226_v39  ;;  %8625 = vmatmul.mubr.msk.f32.gmra.mrb[182].mxu1 %vm340_vm1, %v9697_v60  ;;  %9107 = vmatmul.mubr.msk.f32.gmra.mrb[30].mxu0 %vm340_vm1, %v2722_v22  ;;  %v4596_v20 = vsel %vm4417_vm2, %v4593_v3, %v4595_v1  ;;  %v2724_v37 = vld [vmem:[%s9777_s21 + $0x4d8] sm:$0xff]  ;;  %v14132_v60 = vld [vmem:[#allocation47_spill] sm:$0xff] }
 0x395   : > { %6566 = vst.msk [vmem:[%s11644_s4 + $0x1c8] sm:$0xff] %vm6508_vm4, %v6405_v15  ;;  %v6239_v19 = vadd.f32 %v5818_v38, %v5277_v53  ;;  %v8949_v57 = vpop.f32.mrb[181].mxu0  ;;  %v8467_v5 = vpop.f32.mrb[21].mxu1  ;;  %8627 = vmatprep.mubr.msk.f32.mxu1 %vm9726_vm0, %v14060_v32  ;;  %9109 = vmatprep.mubr.msk.f32.mxu0 %vm9726_vm0, %v14060_v32  ;;  %v5278_v44 = vadd.f32 %v12217_v40, %v4858_v4 }
 0x396   : > { %v4597_v3 = vrot.slane %v12868_v23, 1  ;;  %5875 = vrot.lane.b32.xlu1 %v5556_v30, %s9728_s25  ;;  %4915 = vrot.lane.b32.xlu0 %v4596_v20, %s9727_s24  ;;  %v5559_v40 = vrot.slane %v12868_v23, 2  ;;  %v5558_v36 = vsel %vm5379_vm3, %v5555_v21, %v5557_v12  ;;  %v9699_v30 = vld [vmem:[%s9777_s21 + $0x490] sm:$0xff] }
 0x397   : > { %v6406_v39 = vadd.f32 %v12716_v56, %v6239_v19  ;;  %v2235_v16 = vpop.f32.mrb[22].mxu1  ;;  %v3746_v29 = vpop.f32.mrb[182].mxu0 }
 0x398   : > { %v2236_v24 = vadd.f32 %v2235_v16, %v14131_v26  ;;  %v5820_v35 = vpop.permute.xlu1 %5819  ;;  %v4860_v63 = vpop.permute.xlu0 %4859  ;;  %v12889_v28 = vadd.f32 %v3746_v29, %v2231_v2  ;;  %8628 = vmatmul.mubr.msk.f32.gmra.mrb[184].mxu1 %vm340_vm1, %v9698_v10  ;;  %9110 = vmatmul.mubr.msk.f32.gmra.mrb[32].mxu0 %vm340_vm1, %v2723_v18  ;;  %v4598_v22 = vsel %vm4417_vm2, %v4595_v1, %v4597_v3  ;;  %v2725_v26 = vld [vmem:[%s9777_s21 + $0x4e0] sm:$0xff]  ;;  %v14133_v10 = vld [vmem:[#allocation48_spill] sm:$0xff] }
 0x399   : > { %6567 = vst.msk [vmem:[%s11644_s4 + $0x1d0] sm:$0xff] %vm6508_vm4, %v6406_v39  ;;  %v6240_v15 = vadd.f32 %v5820_v35, %v5278_v44  ;;  %v8952_v53 = vpop.f32.mrb[183].mxu0  ;;  %v8470_v50 = vpop.f32.mrb[23].mxu1  ;;  %8630 = vmatprep.mubr.msk.f32.mxu1 %vm9726_vm0, %v14060_v32  ;;  %9112 = vmatprep.mubr.msk.f32.mxu0 %vm9726_vm0, %v14060_v32  ;;  %v5279_v38 = vadd.f32 %v12238_v43, %v4860_v63 }
 0x39a   : > { %v4599_v1 = vrot.slane %v12889_v28, 1  ;;  %5877 = vrot.lane.b32.xlu0 %v5558_v36, %s9728_s25  ;;  %4917 = vrot.lane.b32.xlu1 %v4598_v22, %s9727_s24  ;;  %v5561_v43 = vrot.slane %v12889_v28, 2  ;;  %v5560_v29 = vsel %vm5379_vm3, %v5557_v12, %v5559_v40  ;;  %v9700_v36 = vld [vmem:[%s9777_s21 + $0x498] sm:$0xff] }
 0x39b   : > { %v6407_v2 = vadd.f32 %v12716_v56, %v6240_v15  ;;  %v2240_v4 = vpop.f32.mrb[24].mxu1  ;;  %v3751_v21 = vpop.f32.mrb[184].mxu0 }
 0x39c   : > { %v2241_v20 = vadd.f32 %v2240_v4, %v14132_v60  ;;  %v5822_v19 = vpop.permute.xlu0 %5821  ;;  %v4862_v57 = vpop.permute.xlu1 %4861  ;;  %v12910_v5 = vadd.f32 %v3751_v21, %v2236_v24  ;;  %8631 = vmatmul.mubr.msk.f32.gmra.mrb[186].mxu1 %vm340_vm1, %v9699_v30  ;;  %9113 = vmatmul.mubr.msk.f32.gmra.mrb[34].mxu0 %vm340_vm1, %v2724_v37  ;;  %v4600_v18 = vsel %vm4417_vm2, %v4597_v3, %v4599_v1  ;;  %v2726_v60 = vld [vmem:[%s9777_s21 + $0x4e8] sm:$0xff]  ;;  %v14134_v30 = vld [vmem:[#allocation49_spill] sm:$0xff] }
 0x39d   : > { %6568 = vst.msk [vmem:[%s11644_s4 + $0x1d8] sm:$0xff] %vm6508_vm4, %v6407_v2  ;;  %v6241_v39 = vadd.f32 %v5822_v19, %v5279_v38  ;;  %v8955_v44 = vpop.f32.mrb[185].mxu0  ;;  %v8473_v16 = vpop.f32.mrb[25].mxu1  ;;  %8633 = vmatprep.mubr.msk.f32.mxu1 %vm9726_vm0, %v14060_v32  ;;  %9115 = vmatprep.mubr.msk.f32.mxu0 %vm9726_vm0, %v14060_v32  ;;  %v5280_v35 = vadd.f32 %v12259_v46, %v4862_v57 }
 0x39e   : > { %v4601_v3 = vrot.slane %v12910_v5, 1  ;;  %5879 = vrot.lane.b32.xlu1 %v5560_v29, %s9728_s25  ;;  %4919 = vrot.lane.b32.xlu0 %v4600_v18, %s9727_s24  ;;  %v5563_v46 = vrot.slane %v12910_v5, 2  ;;  %v5562_v21 = vsel %vm5379_vm3, %v5559_v40, %v5561_v43  ;;  %v9701_v29 = vld [vmem:[%s9777_s21 + $0x4a0] sm:$0xff] }
 0x39f   : > { %v6408_v24 = vadd.f32 %v12716_v56, %v6241_v39  ;;  %v2245_v63 = vpop.f32.mrb[26].mxu1  ;;  %v3756_v12 = vpop.f32.mrb[186].mxu0 }
 0x3a0   : > { %v2246_v22 = vadd.f32 %v2245_v63, %v14133_v10  ;;  %v5824_v15 = vpop.permute.xlu1 %5823  ;;  %v4864_v53 = vpop.permute.xlu0 %4863  ;;  %v12931_v50 = vadd.f32 %v3756_v12, %v2241_v20  ;;  %8634 = vmatmul.mubr.msk.f32.gmra.mrb[188].mxu1 %vm340_vm1, %v9700_v36  ;;  %9116 = vmatmul.mubr.msk.f32.gmra.mrb[36].mxu0 %vm340_vm1, %v2725_v26  ;;  %v4602_v37 = vsel %vm4417_vm2, %v4599_v1, %v4601_v3  ;;  %v2727_v10 = vld [vmem:[%s9777_s21 + $0x4f0] sm:$0xff]  ;;  %v14135_v36 = vld [vmem:[#allocation50_spill] sm:$0xff] }
 0x3a1   : > { %6569 = vst.msk [vmem:[%s11644_s4 + $0x1e0] sm:$0xff] %vm6508_vm4, %v6408_v24  ;;  %v6242_v2 = vadd.f32 %v5824_v15, %v5280_v35  ;;  %v8958_v38 = vpop.f32.mrb[187].mxu0  ;;  %v8476_v4 = vpop.f32.mrb[27].mxu1  ;;  %8636 = vmatprep.mubr.msk.f32.mxu1 %vm9726_vm0, %v14060_v32  ;;  %9118 = vmatprep.mubr.msk.f32.mxu0 %vm9726_vm0, %v14060_v32  ;;  %v5281_v19 = vadd.f32 %v12276_v49, %v4864_v53 }
 0x3a2   : > { %v4603_v1 = vrot.slane %v12931_v50, 1  ;;  %5881 = vrot.lane.b32.xlu0 %v5562_v21, %s9728_s25  ;;  %4921 = vrot.lane.b32.xlu1 %v4602_v37, %s9727_s24  ;;  %v5565_v49 = vrot.slane %v12931_v50, 2  ;;  %v5564_v12 = vsel %vm5379_vm3, %v5561_v43, %v5563_v46  ;;  %v9702_v21 = vld [vmem:[%s9777_s21 + $0x4a8] sm:$0xff] }
 0x3a3   : > { %v6409_v20 = vadd.f32 %v12716_v56, %v6242_v2  ;;  %v2250_v57 = vpop.f32.mrb[28].mxu1  ;;  %v3761_v40 = vpop.f32.mrb[188].mxu0 }
 0x3a4   : > { %v2251_v18 = vadd.f32 %v2250_v57, %v14134_v30  ;;  %v5826_v39 = vpop.permute.xlu0 %5825  ;;  %v4866_v44 = vpop.permute.xlu1 %4865  ;;  %v12952_v16 = vadd.f32 %v3761_v40, %v2246_v22  ;;  %8637 = vmatmul.mubr.msk.f32.gmra.mrb[190].mxu1 %vm340_vm1, %v9701_v29  ;;  %9119 = vmatmul.mubr.msk.f32.gmra.mrb[38].mxu0 %vm340_vm1, %v2726_v60  ;;  %v4604_v26 = vsel %vm4417_vm2, %v4601_v3, %v4603_v1  ;;  %v2728_v30 = vld [vmem:[%s9777_s21 + $0x4f8] sm:$0xff]  ;;  %v14136_v29 = vld [vmem:[#allocation51_spill] sm:$0xff] }
 0x3a5   : > { %6570 = vst.msk [vmem:[%s11644_s4 + $0x1e8] sm:$0xff] %vm6508_vm4, %v6409_v20  ;;  %v6243_v24 = vadd.f32 %v5826_v39, %v5281_v19  ;;  %v8961_v35 = vpop.f32.mrb[189].mxu0  ;;  %v8479_v63 = vpop.f32.mrb[29].mxu1  ;;  %8639 = vmatprep.mubr.msk.f32.mxu1 %vm9726_vm0, %v14060_v32  ;;  %9121 = vmatprep.mubr.msk.f32.mxu0 %vm9726_vm0, %v14060_v32  ;;  %v5282_v15 = vadd.f32 %v12297_v33, %v4866_v44 }
 0x3a6   : > { %v4605_v3 = vrot.slane %v12952_v16, 1  ;;  %5883 = vrot.lane.b32.xlu1 %v5564_v12, %s9728_s25  ;;  %4923 = vrot.lane.b32.xlu0 %v4604_v26, %s9727_s24  ;;  %v5567_v33 = vrot.slane %v12952_v16, 2  ;;  %v5566_v40 = vsel %vm5379_vm3, %v5563_v46, %v5565_v49  ;;  %v9703_v12 = vld [vmem:[%s9777_s21 + $0x4b0] sm:$0xff] }
 0x3a7   : > { %v6410_v22 = vadd.f32 %v12716_v56, %v6243_v24  ;;  %v2255_v53 = vpop.f32.mrb[30].mxu1  ;;  %v3766_v43 = vpop.f32.mrb[190].mxu0 }
 0x3a8   : > { %v2256_v37 = vadd.f32 %v2255_v53, %v14135_v36  ;;  %v5828_v2 = vpop.permute.xlu1 %5827  ;;  %v4868_v38 = vpop.permute.xlu0 %4867  ;;  %v12973_v4 = vadd.f32 %v3766_v43, %v2251_v18  ;;  %8640 = vmatmul.mubr.msk.f32.gmra.mrb[192].mxu1 %vm340_vm1, %v9702_v21  ;;  %9122 = vmatmul.mubr.msk.f32.gmra.mrb[40].mxu0 %vm340_vm1, %v2727_v10  ;;  %v4606_v60 = vsel %vm4417_vm2, %v4603_v1, %v4605_v3  ;;  %v2729_v36 = vld [vmem:[%s9777_s21 + $0x500] sm:$0xff]  ;;  %v14137_v21 = vld [vmem:[#allocation52_spill] sm:$0xff] }
 0x3a9   : > { %6571 = vst.msk [vmem:[%s11644_s4 + $0x1f0] sm:$0xff] %vm6508_vm4, %v6410_v22  ;;  %v6244_v20 = vadd.f32 %v5828_v2, %v5282_v15  ;;  %v8964_v19 = vpop.f32.mrb[191].mxu0  ;;  %v8482_v57 = vpop.f32.mrb[31].mxu1  ;;  %8642 = vmatprep.mubr.msk.f32.mxu1 %vm9726_vm0, %v14060_v32  ;;  %9124 = vmatprep.mubr.msk.f32.mxu0 %vm9726_vm0, %v14060_v32  ;;  %v5283_v39 = vadd.f32 %v12316_v55, %v4868_v38 }
 0x3aa   : > { %v4607_v1 = vrot.slane %v12973_v4, 1  ;;  %5885 = vrot.lane.b32.xlu0 %v5566_v40, %s9728_s25  ;;  %4925 = vrot.lane.b32.xlu1 %v4606_v60, %s9727_s24  ;;  %v5569_v55 = vrot.slane %v12973_v4, 2  ;;  %v5568_v43 = vsel %vm5379_vm3, %v5565_v49, %v5567_v33  ;;  %v9704_v40 = vld [vmem:[%s9777_s21 + $0x4b8] sm:$0xff] }
 0x3ab   : > { %v6411_v18 = vadd.f32 %v12716_v56, %v6244_v20  ;;  %v2260_v44 = vpop.f32.mrb[32].mxu1  ;;  %v3771_v46 = vpop.f32.mrb[192].mxu0 }
 0x3ac   : > { %v2261_v26 = vadd.f32 %v2260_v44, %v14136_v29  ;;  %v5830_v24 = vpop.permute.xlu0 %5829  ;;  %v4870_v35 = vpop.permute.xlu1 %4869  ;;  %v12994_v63 = vadd.f32 %v3771_v46, %v2256_v37  ;;  %8643 = vmatmul.mubr.msk.f32.gmra.mrb[194].mxu1 %vm340_vm1, %v9703_v12  ;;  %9125 = vmatmul.mubr.msk.f32.gmra.mrb[42].mxu0 %vm340_vm1, %v2728_v30  ;;  %v4608_v10 = vsel %vm4417_vm2, %v4605_v3, %v4607_v1  ;;  %v2730_v29 = vld [vmem:[%s9777_s21 + $0x508] sm:$0xff]  ;;  %v14138_v12 = vld [vmem:[#allocation53_spill] sm:$0xff] }
 0x3ad   : > { %6572 = vst.msk [vmem:[%s11644_s4 + $0x1f8] sm:$0xff] %vm6508_vm4, %v6411_v18  ;;  %v6245_v22 = vadd.f32 %v5830_v24, %v5283_v39  ;;  %v8967_v15 = vpop.f32.mrb[193].mxu0  ;;  %v8485_v53 = vpop.f32.mrb[33].mxu1  ;;  %8645 = vmatprep.mubr.msk.f32.mxu1 %vm9726_vm0, %v14060_v32  ;;  %9127 = vmatprep.mubr.msk.f32.mxu0 %vm9726_vm0, %v14060_v32  ;;  %v5284_v2 = vadd.f32 %v12337_v58, %v4870_v35 }
 0x3ae   : > { %v4609_v3 = vrot.slane %v12994_v63, 1  ;;  %5887 = vrot.lane.b32.xlu1 %v5568_v43, %s9728_s25  ;;  %4927 = vrot.lane.b32.xlu0 %v4608_v10, %s9727_s24  ;;  %v5571_v58 = vrot.slane %v12994_v63, 2  ;;  %v5570_v46 = vsel %vm5379_vm3, %v5567_v33, %v5569_v55  ;;  %v9705_v43 = vld [vmem:[%s9777_s21 + $0x4c0] sm:$0xff] }
 0x3af   : > { %v6412_v37 = vadd.f32 %v12716_v56, %v6245_v22  ;;  %v2265_v38 = vpop.f32.mrb[34].mxu1  ;;  %v3776_v49 = vpop.f32.mrb[194].mxu0 }
 0x3b0   : > { %v2266_v60 = vadd.f32 %v2265_v38, %v14137_v21  ;;  %v5832_v20 = vpop.permute.xlu1 %5831  ;;  %v4872_v19 = vpop.permute.xlu0 %4871  ;;  %v13015_v57 = vadd.f32 %v3776_v49, %v2261_v26  ;;  %8646 = vmatmul.mubr.msk.f32.gmra.mrb[196].mxu1 %vm340_vm1, %v9704_v40  ;;  %9128 = vmatmul.mubr.msk.f32.gmra.mrb[44].mxu0 %vm340_vm1, %v2729_v36  ;;  %v4610_v30 = vsel %vm4417_vm2, %v4607_v1, %v4609_v3  ;;  %v2731_v21 = vld [vmem:[%s9777_s21 + $0x510] sm:$0xff]  ;;  %v14139_v40 = vld [vmem:[#allocation54_spill] sm:$0xff] }
 0x3b1   : > { %6573 = vst.msk [vmem:[%s11644_s4 + $0x200] sm:$0xff] %vm6508_vm4, %v6412_v37  ;;  %v6246_v18 = vadd.f32 %v5832_v20, %v5284_v2  ;;  %v8970_v39 = vpop.f32.mrb[195].mxu0  ;;  %v8488_v44 = vpop.f32.mrb[35].mxu1  ;;  %8648 = vmatprep.mubr.msk.f32.mxu1 %vm9726_vm0, %v14060_v32  ;;  %9130 = vmatprep.mubr.msk.f32.mxu0 %vm9726_vm0, %v14060_v32  ;;  %v5285_v24 = vadd.f32 %v12358_v6, %v4872_v19 }
 0x3b2   : > { %v4611_v1 = vrot.slane %v13015_v57, 1  ;;  %5889 = vrot.lane.b32.xlu0 %v5570_v46, %s9728_s25  ;;  %4929 = vrot.lane.b32.xlu1 %v4610_v30, %s9727_s24  ;;  %v5573_v6 = vrot.slane %v13015_v57, 2  ;;  %v5572_v49 = vsel %vm5379_vm3, %v5569_v55, %v5571_v58  ;;  %v9706_v46 = vld [vmem:[%s9777_s21 + $0x4c8] sm:$0xff] }
 0x3b3   : > { %v6413_v26 = vadd.f32 %v12716_v56, %v6246_v18  ;;  %v2270_v35 = vpop.f32.mrb[36].mxu1  ;;  %v3781_v33 = vpop.f32.mrb[196].mxu0 }
 0x3b4   : > { %v2271_v10 = vadd.f32 %v2270_v35, %v14138_v12  ;;  %v5834_v22 = vpop.permute.xlu0 %5833  ;;  %v4874_v15 = vpop.permute.xlu1 %4873  ;;  %v13036_v53 = vadd.f32 %v3781_v33, %v2266_v60  ;;  %8649 = vmatmul.mubr.msk.f32.gmra.mrb[198].mxu1 %vm340_vm1, %v9705_v43  ;;  %9131 = vmatmul.mubr.msk.f32.gmra.mrb[46].mxu0 %vm340_vm1, %v2730_v29  ;;  %v4612_v36 = vsel %vm4417_vm2, %v4609_v3, %v4611_v1  ;;  %v2732_v12 = vld [vmem:[%s9777_s21 + $0x518] sm:$0xff]  ;;  %v14140_v43 = vld [vmem:[#allocation55_spill] sm:$0xff] }
 0x3b5   : > { %6574 = vst.msk [vmem:[%s11644_s4 + $0x208] sm:$0xff] %vm6508_vm4, %v6413_v26  ;;  %v6247_v37 = vadd.f32 %v5834_v22, %v5285_v24  ;;  %v8973_v2 = vpop.f32.mrb[197].mxu0  ;;  %v8491_v38 = vpop.f32.mrb[37].mxu1  ;;  %8651 = vmatprep.mubr.msk.f32.mxu1 %vm9726_vm0, %v14060_v32  ;;  %9133 = vmatprep.mubr.msk.f32.mxu0 %vm9726_vm0, %v14060_v32  ;;  %v5286_v20 = vadd.f32 %v12379_v11, %v4874_v15 }
 0x3b6   : > { %v4613_v3 = vrot.slane %v13036_v53, 1  ;;  %5891 = vrot.lane.b32.xlu1 %v5572_v49, %s9728_s25  ;;  %4931 = vrot.lane.b32.xlu0 %v4612_v36, %s9727_s24  ;;  %v5575_v11 = vrot.slane %v13036_v53, 2  ;;  %v5574_v33 = vsel %vm5379_vm3, %v5571_v58, %v5573_v6  ;;  %v9707_v49 = vld [vmem:[%s9777_s21 + $0x4d0] sm:$0xff] }
 0x3b7   : > { %v6414_v60 = vadd.f32 %v12716_v56, %v6247_v37  ;;  %v2275_v19 = vpop.f32.mrb[38].mxu1  ;;  %v3786_v55 = vpop.f32.mrb[198].mxu0 }
 0x3b8   : > { %v2276_v30 = vadd.f32 %v2275_v19, %v14139_v40  ;;  %v5836_v18 = vpop.permute.xlu1 %5835  ;;  %v4876_v39 = vpop.permute.xlu0 %4875  ;;  %v13057_v44 = vadd.f32 %v3786_v55, %v2271_v10  ;;  %8652 = vmatmul.mubr.msk.f32.gmra.mrb[200].mxu1 %vm340_vm1, %v9706_v46  ;;  %9134 = vmatmul.mubr.msk.f32.gmra.mrb[48].mxu0 %vm340_vm1, %v2731_v21  ;;  %v4614_v29 = vsel %vm4417_vm2, %v4611_v1, %v4613_v3  ;;  %v2733_v40 = vld [vmem:[%s9777_s21 + $0x520] sm:$0xff]  ;;  %v14141_v46 = vld [vmem:[#allocation56_spill] sm:$0xff] }
 0x3b9   : > { %6575 = vst.msk [vmem:[%s11644_s4 + $0x210] sm:$0xff] %vm6508_vm4, %v6414_v60  ;;  %v6248_v26 = vadd.f32 %v5836_v18, %v5286_v20  ;;  %v8976_v24 = vpop.f32.mrb[199].mxu0  ;;  %v8494_v35 = vpop.f32.mrb[39].mxu1  ;;  %8654 = vmatprep.mubr.msk.f32.mxu1 %vm9726_vm0, %v14060_v32  ;;  %9136 = vmatprep.mubr.msk.f32.mxu0 %vm9726_vm0, %v14060_v32  ;;  %v5287_v22 = vadd.f32 %v12400_v41, %v4876_v39 }
 0x3ba   : > { %v4615_v1 = vrot.slane %v13057_v44, 1  ;;  %5893 = vrot.lane.b32.xlu0 %v5574_v33, %s9728_s25  ;;  %4933 = vrot.lane.b32.xlu1 %v4614_v29, %s9727_s24  ;;  %v5577_v41 = vrot.slane %v13057_v44, 2  ;;  %v5576_v55 = vsel %vm5379_vm3, %v5573_v6, %v5575_v11  ;;  %v9708_v33 = vld [vmem:[%s9777_s21 + $0x4d8] sm:$0xff] }
 0x3bb   : > { %v6415_v10 = vadd.f32 %v12716_v56, %v6248_v26  ;;  %v2280_v15 = vpop.f32.mrb[40].mxu1  ;;  %v3791_v58 = vpop.f32.mrb[200].mxu0 }
 0x3bc   : > { %v2281_v36 = vadd.f32 %v2280_v15, %v14140_v43  ;;  %v5838_v37 = vpop.permute.xlu0 %5837  ;;  %v4878_v2 = vpop.permute.xlu1 %4877  ;;  %v13078_v38 = vadd.f32 %v3791_v58, %v2276_v30  ;;  %8655 = vmatmul.mubr.msk.f32.gmra.mrb[202].mxu1 %vm340_vm1, %v9707_v49  ;;  %9137 = vmatmul.mubr.msk.f32.gmra.mrb[50].mxu0 %vm340_vm1, %v2732_v12  ;;  %v4616_v21 = vsel %vm4417_vm2, %v4613_v3, %v4615_v1  ;;  %v2734_v43 = vld [vmem:[%s9777_s21 + $0x528] sm:$0xff]  ;;  %v14142_v49 = vld [vmem:[#allocation57_spill] sm:$0xff] }
 0x3bd   : > { %6576 = vst.msk [vmem:[%s11644_s4 + $0x218] sm:$0xff] %vm6508_vm4, %v6415_v10  ;;  %v6249_v60 = vadd.f32 %v5838_v37, %v5287_v22  ;;  %v8979_v20 = vpop.f32.mrb[201].mxu0  ;;  %v8497_v19 = vpop.f32.mrb[41].mxu1  ;;  %8657 = vmatprep.mubr.msk.f32.mxu1 %vm9726_vm0, %v14060_v32  ;;  %9139 = vmatprep.mubr.msk.f32.mxu0 %vm9726_vm0, %v14060_v32  ;;  %v5288_v18 = vadd.f32 %v12421_v31, %v4878_v2 }
 0x3be   : > { %v4617_v3 = vrot.slane %v13078_v38, 1  ;;  %5895 = vrot.lane.b32.xlu1 %v5576_v55, %s9728_s25  ;;  %4935 = vrot.lane.b32.xlu0 %v4616_v21, %s9727_s24  ;;  %v5579_v31 = vrot.slane %v13078_v38, 2  ;;  %v5578_v58 = vsel %vm5379_vm3, %v5575_v11, %v5577_v41  ;;  %v9709_v55 = vld [vmem:[%s9777_s21 + $0x4e0] sm:$0xff] }
 0x3bf   : > { %v6416_v30 = vadd.f32 %v12716_v56, %v6249_v60  ;;  %v2285_v39 = vpop.f32.mrb[42].mxu1  ;;  %v3796_v6 = vpop.f32.mrb[202].mxu0 }
 0x3c0   : > { %v2286_v29 = vadd.f32 %v2285_v39, %v14141_v46  ;;  %v5840_v26 = vpop.permute.xlu1 %5839  ;;  %v4880_v24 = vpop.permute.xlu0 %4879  ;;  %v13099_v35 = vadd.f32 %v3796_v6, %v2281_v36  ;;  %8658 = vmatmul.mubr.msk.f32.gmra.mrb[204].mxu1 %vm340_vm1, %v9708_v33  ;;  %9140 = vmatmul.mubr.msk.f32.gmra.mrb[52].mxu0 %vm340_vm1, %v2733_v40  ;;  %v4618_v12 = vsel %vm4417_vm2, %v4615_v1, %v4617_v3  ;;  %v2735_v46 = vld [vmem:[%s9777_s21 + $0x530] sm:$0xff]  ;;  %v14143_v33 = vld [vmem:[#allocation58_spill] sm:$0xff] }
 0x3c1   : > { %6577 = vst.msk [vmem:[%s11644_s4 + $0x220] sm:$0xff] %vm6508_vm4, %v6416_v30  ;;  %v6250_v10 = vadd.f32 %v5840_v26, %v5288_v18  ;;  %v8982_v22 = vpop.f32.mrb[203].mxu0  ;;  %v8500_v15 = vpop.f32.mrb[43].mxu1  ;;  %8660 = vmatprep.mubr.msk.f32.mxu1 %vm9726_vm0, %v14060_v32  ;;  %9142 = vmatprep.mubr.msk.f32.mxu0 %vm9726_vm0, %v14060_v32  ;;  %v5289_v37 = vadd.f32 %v12442_v25, %v4880_v24 }
 0x3c2   : > { %v4619_v1 = vrot.slane %v13099_v35, 1  ;;  %5897 = vrot.lane.b32.xlu0 %v5578_v58, %s9728_s25  ;;  %4937 = vrot.lane.b32.xlu1 %v4618_v12, %s9727_s24  ;;  %v5581_v25 = vrot.slane %v13099_v35, 2  ;;  %v5580_v6 = vsel %vm5379_vm3, %v5577_v41, %v5579_v31  ;;  %v9710_v58 = vld [vmem:[%s9777_s21 + $0x4e8] sm:$0xff] }
 0x3c3   : > { %v6417_v36 = vadd.f32 %v12716_v56, %v6250_v10  ;;  %v2290_v2 = vpop.f32.mrb[44].mxu1  ;;  %v3801_v11 = vpop.f32.mrb[204].mxu0 }
 0x3c4   : > { %v2291_v21 = vadd.f32 %v2290_v2, %v14142_v49  ;;  %v5842_v60 = vpop.permute.xlu0 %5841  ;;  %v4882_v20 = vpop.permute.xlu1 %4881  ;;  %v13120_v19 = vadd.f32 %v3801_v11, %v2286_v29  ;;  %8661 = vmatmul.mubr.msk.f32.gmra.mrb[206].mxu1 %vm340_vm1, %v9709_v55  ;;  %9143 = vmatmul.mubr.msk.f32.gmra.mrb[54].mxu0 %vm340_vm1, %v2734_v43  ;;  %v4620_v40 = vsel %vm4417_vm2, %v4617_v3, %v4619_v1  ;;  %v2736_v49 = vld [vmem:[%s9777_s21 + $0x538] sm:$0xff]  ;;  %v14144_v55 = vld [vmem:[#allocation59_spill] sm:$0xff] }
 0x3c5   : > { %6578 = vst.msk [vmem:[%s11644_s4 + $0x228] sm:$0xff] %vm6508_vm4, %v6417_v36  ;;  %v6251_v30 = vadd.f32 %v5842_v60, %v5289_v37  ;;  %v8985_v18 = vpop.f32.mrb[205].mxu0  ;;  %v8503_v39 = vpop.f32.mrb[45].mxu1  ;;  %8663 = vmatprep.mubr.msk.f32.mxu1 %vm9726_vm0, %v14060_v32  ;;  %9145 = vmatprep.mubr.msk.f32.mxu0 %vm9726_vm0, %v14060_v32  ;;  %v5290_v26 = vadd.f32 %v12463_v8, %v4882_v20 }
 0x3c6   : > { %v4621_v3 = vrot.slane %v13120_v19, 1  ;;  %5899 = vrot.lane.b32.xlu1 %v5580_v6, %s9728_s25  ;;  %4939 = vrot.lane.b32.xlu0 %v4620_v40, %s9727_s24  ;;  %v5583_v8 = vrot.slane %v13120_v19, 2  ;;  %v5582_v11 = vsel %vm5379_vm3, %v5579_v31, %v5581_v25  ;;  %v9711_v6 = vld [vmem:[%s9777_s21 + $0x4f0] sm:$0xff] }
 0x3c7   : > { %v6418_v29 = vadd.f32 %v12716_v56, %v6251_v30  ;;  %v2295_v24 = vpop.f32.mrb[46].mxu1  ;;  %v3806_v41 = vpop.f32.mrb[206].mxu0 }
 0x3c8   : > { %v2296_v12 = vadd.f32 %v2295_v24, %v14143_v33  ;;  %v5844_v10 = vpop.permute.xlu1 %5843  ;;  %v4884_v22 = vpop.permute.xlu0 %4883  ;;  %v13141_v15 = vadd.f32 %v3806_v41, %v2291_v21  ;;  %8664 = vmatmul.mubr.msk.f32.gmra.mrb[208].mxu1 %vm340_vm1, %v9710_v58  ;;  %9146 = vmatmul.mubr.msk.f32.gmra.mrb[56].mxu0 %vm340_vm1, %v2735_v46  ;;  %v4622_v43 = vsel %vm4417_vm2, %v4619_v1, %v4621_v3  ;;  %v2737_v33 = vld [vmem:[%s9777_s21 + $0x540] sm:$0xff]  ;;  %v14145_v58 = vld [vmem:[#allocation60_spill] sm:$0xff] }
 0x3c9   : > { %6579 = vst.msk [vmem:[%s11644_s4 + $0x230] sm:$0xff] %vm6508_vm4, %v6418_v29  ;;  %v6252_v36 = vadd.f32 %v5844_v10, %v5290_v26  ;;  %v8988_v37 = vpop.f32.mrb[207].mxu0  ;;  %v8506_v2 = vpop.f32.mrb[47].mxu1  ;;  %8666 = vmatprep.mubr.msk.f32.mxu1 %vm9726_vm0, %v14060_v32  ;;  %9148 = vmatprep.mubr.msk.f32.mxu0 %vm9726_vm0, %v14060_v32  ;;  %v5291_v60 = vadd.f32 %v12484_v17, %v4884_v22 }
 0x3ca   : > { %v4623_v1 = vrot.slane %v13141_v15, 1  ;;  %5901 = vrot.lane.b32.xlu0 %v5582_v11, %s9728_s25  ;;  %4941 = vrot.lane.b32.xlu1 %v4622_v43, %s9727_s24  ;;  %v5585_v17 = vrot.slane %v13141_v15, 2  ;;  %v5584_v41 = vsel %vm5379_vm3, %v5581_v25, %v5583_v8  ;;  %v9712_v11 = vld [vmem:[%s9777_s21 + $0x4f8] sm:$0xff] }
 0x3cb   : > { %v6419_v21 = vadd.f32 %v12716_v56, %v6252_v36  ;;  %v2300_v20 = vpop.f32.mrb[48].mxu1  ;;  %v3811_v31 = vpop.f32.mrb[208].mxu0 }
 0x3cc   : > { %v2301_v40 = vadd.f32 %v2300_v20, %v14144_v55  ;;  %v5846_v30 = vpop.permute.xlu0 %5845  ;;  %v4886_v18 = vpop.permute.xlu1 %4885  ;;  %v13162_v39 = vadd.f32 %v3811_v31, %v2296_v12  ;;  %8667 = vmatmul.mubr.msk.f32.gmra.mrb[210].mxu1 %vm340_vm1, %v9711_v6  ;;  %9149 = vmatmul.mubr.msk.f32.gmra.mrb[58].mxu0 %vm340_vm1, %v2736_v49  ;;  %v4624_v46 = vsel %vm4417_vm2, %v4621_v3, %v4623_v1  ;;  %v2738_v31 = vld [vmem:[%s9777_s21 + $0x548] sm:$0xff]  ;;  %v14146_v6 = vld [vmem:[#allocation61_spill] sm:$0xff] }
 0x3cd   : > { %6580 = vst.msk [vmem:[%s11644_s4 + $0x238] sm:$0xff] %vm6508_vm4, %v6419_v21  ;;  %v6253_v29 = vadd.f32 %v5846_v30, %v5291_v60  ;;  %v8991_v26 = vpop.f32.mrb[209].mxu0  ;;  %v8509_v24 = vpop.f32.mrb[49].mxu1  ;;  %8669 = vmatprep.mubr.msk.f32.mxu1 %vm9726_vm0, %v14060_v32  ;;  %9151 = vmatprep.mubr.msk.f32.mxu0 %vm9726_vm0, %v14060_v32  ;;  %v5292_v10 = vadd.f32 %v12505_v9, %v4886_v18 }
 0x3ce   : > { %v4625_v3 = vrot.slane %v13162_v39, 1  ;;  %5903 = vrot.lane.b32.xlu1 %v5584_v41, %s9728_s25  ;;  %4943 = vrot.lane.b32.xlu0 %v4624_v46, %s9727_s24  ;;  %v5587_v9 = vrot.slane %v13162_v39, 2  ;;  %v5586_v20 = vsel %vm5379_vm3, %v5583_v8, %v5585_v17  ;;  %v9714_v41 = vld [vmem:[%s9777_s21 + $0x500] sm:$0xff] }
 0x3cf   : > { %v6420_v12 = vadd.f32 %v12716_v56, %v6253_v29  ;;  %v2305_v22 = vpop.f32.mrb[50].mxu1  ;;  %v3816_v25 = vpop.f32.mrb[210].mxu0 }
 0x3d0   : > { %v2306_v43 = vadd.f32 %v2305_v22, %v14145_v58  ;;  %v5848_v36 = vpop.permute.xlu1 %5847  ;;  %v4888_v37 = vpop.permute.xlu0 %4887  ;;  %v13183_v2 = vadd.f32 %v3816_v25, %v2301_v40  ;;  %8670 = vmatmul.mubr.msk.f32.gmra.mrb[212].mxu1 %vm340_vm1, %v9712_v11  ;;  %9152 = vmatmul.mubr.msk.f32.gmra.mrb[60].mxu0 %vm340_vm1, %v2737_v33  ;;  %v4626_v49 = vsel %vm4417_vm2, %v4623_v1, %v4625_v3  ;;  %v13204_v1 = vld [vmem:[%s14019_s2] ss:$0 sm:$0xff]  ;;  %v2739_v58 = vld [vmem:[%s9777_s21 + $0x550] sm:$0xff] }
 0x3d1   : > { %6581 = vst.msk [vmem:[%s11644_s4 + $0x240] sm:$0xff] %vm6508_vm4, %v6420_v12  ;;  %v6254_v56 = vadd.f32 %v5848_v36, %v5292_v10  ;;  %v8994_v21 = vpop.f32.mrb[211].mxu0  ;;  %v8512_v60 = vpop.f32.mrb[51].mxu1  ;;  %8672 = vmatprep.mubr.msk.f32.mxu1 %vm9726_vm0, %v14060_v32  ;;  %9154 = vmatprep.mubr.msk.f32.mxu0 %vm9726_vm0, %v14060_v32  ;;  %v5293_v40 = vadd.f32 %v12526_v52, %v4888_v37 }
 0x3d2   : > { %v4627_v55 = vrot.slane %v13183_v2, 1  ;;  %5905 = vrot.lane.b32.xlu0 %v5586_v20, %s9728_s25  ;;  %4945 = vrot.lane.b32.xlu1 %v4626_v49, %s9727_s24  ;;  %v5589_v52 = vrot.slane %v13183_v2, 2  ;;  %v5588_v22 = vsel %vm5379_vm3, %v5585_v17, %v5587_v9 }
 0x3d3   : > { %v6421_v8 = vadd.f32 %v13204_v1, %v6254_v56  ;;  %v2310_v30 = vpop.f32.mrb[52].mxu1  ;;  %v3821_v18 = vpop.f32.mrb[212].mxu0 }
 0x3d4   : > { %v2311_v46 = vadd.f32 %v2310_v30, %v14146_v6  ;;  %v5850_v29 = vpop.permute.xlu0 %5849  ;;  %v4890_v26 = vpop.permute.xlu1 %4889  ;;  %v13209_v24 = vadd.f32 %v3821_v18, %v2306_v43  ;;  %8673 = vmatmul.mubr.msk.f32.gmra.mrb[214].mxu1 %vm340_vm1, %v9714_v41  ;;  %9155 = vmatmul.mubr.msk.f32.gmra.mrb[62].mxu0 %vm340_vm1, %v2738_v31  ;;  %v4628_v33 = vsel %vm4417_vm2, %v4625_v3, %v4627_v55 }
 0x3d5   : > { %6582 = vst.msk [vmem:[%s11644_s4 + $0x248] sm:$0xff] %vm6508_vm4, %v6421_v8  ;;  %v6255_v12 = vadd.f32 %v5850_v29, %v5293_v40  ;;  %v8997_v10 = vpop.f32.mrb[213].mxu0  ;;  %v8515_v25 = vpop.f32.mrb[53].mxu1  ;;  %9157 = vmatprep.mubr.msk.f32.mxu0 %vm9726_vm0, %v14060_v32  ;;  %v5294_v36 = vadd.f32 %v12547_v14, %v4890_v26  ;;  %v5590_v14 = vsel %vm5379_vm3, %v5587_v9, %v5589_v52 }
 0x3d6   : > { %v4629_v43 = vrot.slane %v13209_v24, 1  ;;  %5907 = vrot.lane.b32.xlu1 %v5588_v22, %s9728_s25  ;;  %4947 = vrot.lane.b32.xlu0 %v4628_v33, %s9727_s24  ;;  %v5591_v21 = vrot.slane %v13209_v24, 2 }
 0x3d7   : > { %v6422_v3 = vadd.f32 %v13204_v1, %v6255_v12  ;;  %v2315_v37 = vpop.f32.mrb[216].mxu1  ;;  %v3826_v11 = vpop.f32.mrb[214].mxu0 }
 0x3d8   : > { %v5852_v49 = vpop.permute.xlu1 %5851  ;;  %v4892_v17 = vpop.permute.xlu0 %4891  ;;  %v13227_v56 = vadd.f32 %v3826_v11, %v2311_v46  ;;  %9158 = vmatmul.mubr.msk.f32.gmra.mrb[64].mxu0 %vm340_vm1, %v2739_v58  ;;  %v4630_v32 = vsel %vm4417_vm2, %v4627_v55, %v4629_v43  ;;  %v5592_v10 = vsel %vm5379_vm3, %v5589_v52, %v5591_v21 }
 0x3d9   : > { %6583 = vst.msk [vmem:[%s11644_s4 + $0x250] sm:$0xff] %vm6508_vm4, %v6422_v3  ;;  %v6256_v60 = vadd.f32 %v5852_v49, %v5294_v36  ;;  %v8518_v20 = vpop.f32.mrb[217].mxu1  ;;  %v9000_v31 = vpop.f32.mrb[215].mxu0  ;;  %v5295_v55 = vadd.f32 %v12568_v27, %v4892_v17 }
 0x3da   : > { %v4631_v8 = vrot.slane %v13227_v56, 1  ;;  %5909 = vrot.lane.b32.xlu0 %v5590_v14, %s9728_s25  ;;  %4949 = vrot.lane.b32.xlu1 %v4630_v32, %s9727_s24  ;;  %v5593_v9 = vrot.slane %v13227_v56, 2 }
 0x3db   : > { %v6423_v40 = vadd.f32 %v13204_v1, %v6256_v60  ;;  %v2320_v30 = vpop.f32.mrb[218].mxu1  ;;  %v3831_v18 = vpop.f32.mrb[216].mxu0 }
 0x3dc   : > { %v5854_v6 = vpop.permute.xlu0 %5853  ;;  %v4894_v46 = vpop.permute.xlu1 %4893  ;;  %v13240_v29 = vadd.f32 %v3831_v18, %v2315_v37  ;;  %v4632_v26 = vsel %vm4417_vm2, %v4629_v43, %v4631_v8  ;;  %v5594_v60 = vsel %vm5379_vm3, %v5591_v21, %v5593_v9 }
 0x3dd   : > { %6584 = vst.msk [vmem:[%s11644_s4 + $0x258] sm:$0xff] %vm6508_vm4, %v6423_v40  ;;  %v6257_v41 = vadd.f32 %v5854_v6, %v5295_v55  ;;  %v8521_v33 = vpop.f32.mrb[219].mxu1  ;;  %v9003_v12 = vpop.f32.mrb[217].mxu0  ;;  %v5296_v25 = vadd.f32 %v12589_v42, %v4894_v46 }
 0x3de   : > { %v4633_v27 = vrot.slane %v13240_v29, 1  ;;  %5911 = vrot.lane.b32.xlu1 %v5592_v10, %s9728_s25  ;;  %4951 = vrot.lane.b32.xlu0 %v4632_v26, %s9727_s24  ;;  %v5595_v52 = vrot.slane %v13240_v29, 2 }
 0x3df   : > { %v6424_v22 = vadd.f32 %v13204_v1, %v6257_v41  ;;  %v2325_v58 = vpop.f32.mrb[220].mxu1  ;;  %v3836_v43 = vpop.f32.mrb[218].mxu0 }
 0x3e0   : > { %v5856_v3 = vpop.permute.xlu1 %5855  ;;  %v4896_v36 = vpop.permute.xlu0 %4895  ;;  %v13252_v37 = vadd.f32 %v3836_v43, %v2320_v30  ;;  %v4634_v11 = vsel %vm4417_vm2, %v4631_v8, %v4633_v27  ;;  %v5596_v41 = vsel %vm5379_vm3, %v5593_v9, %v5595_v52 }
 0x3e1   : > { %6585 = vst.msk [vmem:[%s11644_s4 + $0x260] sm:$0xff] %vm6508_vm4, %v6424_v22  ;;  %v6258_v49 = vadd.f32 %v5856_v3, %v5296_v25  ;;  %v8524_v17 = vpop.f32.mrb[221].mxu1  ;;  %v9006_v32 = vpop.f32.mrb[219].mxu0  ;;  %v5297_v31 = vadd.f32 %v12610_v51, %v4896_v36 }
 0x3e2   : > { %v4635_v42 = vrot.slane %v13252_v37, 1  ;;  %5913 = vrot.lane.b32.xlu0 %v5594_v60, %s9728_s25  ;;  %4953 = vrot.lane.b32.xlu1 %v4634_v11, %s9727_s24  ;;  %v5597_v21 = vrot.slane %v13252_v37, 2 }
 0x3e3   : > { %v6425_v20 = vadd.f32 %v13204_v1, %v6258_v49  ;;  %v2330_v14 = vpop.f32.mrb[222].mxu1  ;;  %v3841_v8 = vpop.f32.mrb[220].mxu0 }
 0x3e4   : > { %v5858_v40 = vpop.permute.xlu0 %5857  ;;  %v4898_v55 = vpop.permute.xlu1 %4897  ;;  %v13264_v30 = vadd.f32 %v3841_v8, %v2325_v58  ;;  %v4636_v18 = vsel %vm4417_vm2, %v4633_v27, %v4635_v42  ;;  %v5598_v49 = vsel %vm5379_vm3, %v5595_v52, %v5597_v21 }
 0x3e5   : > { %6586 = vst.msk [vmem:[%s11644_s4 + $0x268] sm:$0xff] %vm6508_vm4, %v6425_v20  ;;  %v6259_v6 = vadd.f32 %v5858_v40, %v5297_v31  ;;  %v8527_v46 = vpop.f32.mrb[223].mxu1  ;;  %v9009_v26 = vpop.f32.mrb[221].mxu0  ;;  %v5298_v12 = vadd.f32 %v12631_v45, %v4898_v55 }
 0x3e6   : > { %v4637_v51 = vrot.slane %v13264_v30, 1  ;;  %5915 = vrot.lane.b32.xlu1 %v5596_v41, %s9728_s25  ;;  %4955 = vrot.lane.b32.xlu0 %v4636_v18, %s9727_s24  ;;  %v5599_v9 = vrot.slane %v13264_v30, 2 }
 0x3e7   : > { %v6426_v33 = vadd.f32 %v13204_v1, %v6259_v6  ;;  %v2335_v10 = vpop.f32.mrb[224].mxu1  ;;  %v3846_v27 = vpop.f32.mrb[222].mxu0 }
 0x3e8   : > { %v5860_v22 = vpop.permute.xlu1 %5859  ;;  %v4900_v25 = vpop.permute.xlu0 %4899  ;;  %v13276_v58 = vadd.f32 %v3846_v27, %v2330_v14  ;;  %v4638_v43 = vsel %vm4417_vm2, %v4635_v42, %v4637_v51  ;;  %v5600_v6 = vsel %vm5379_vm3, %v5597_v21, %v5599_v9 }
 0x3e9   : > { %6587 = vst.msk [vmem:[%s11644_s4 + $0x270] sm:$0xff] %vm6508_vm4, %v6426_v33  ;;  %v6260_v3 = vadd.f32 %v5860_v22, %v5298_v12  ;;  %v8530_v36 = vpop.f32.mrb[225].mxu1  ;;  %v9012_v11 = vpop.f32.mrb[223].mxu0  ;;  %v5299_v32 = vadd.f32 %v12653_v59, %v4900_v25 }
 0x3ea   : > { %v4639_v45 = vrot.slane %v13276_v58, 1  ;;  %5917 = vrot.lane.b32.xlu0 %v5598_v49, %s9728_s25  ;;  %4957 = vrot.lane.b32.xlu1 %v4638_v43, %s9727_s24  ;;  %v5601_v52 = vrot.slane %v13276_v58, 2 }
 0x3eb   : > { %v6427_v17 = vadd.f32 %v13204_v1, %v6260_v3  ;;  %v2340_v60 = vpop.f32.mrb[226].mxu1  ;;  %v3851_v42 = vpop.f32.mrb[224].mxu0 }
 0x3ec   : > { %v5862_v20 = vpop.permute.xlu0 %5861  ;;  %v4902_v31 = vpop.permute.xlu1 %4901  ;;  %v13288_v14 = vadd.f32 %v3851_v42, %v2335_v10  ;;  %v4640_v8 = vsel %vm4417_vm2, %v4637_v51, %v4639_v45  ;;  %v5602_v3 = vsel %vm5379_vm3, %v5599_v9, %v5601_v52 }
 0x3ed   : > { %6588 = vst.msk [vmem:[%s11644_s4 + $0x278] sm:$0xff] %vm6508_vm4, %v6427_v17  ;;  %v6261_v40 = vadd.f32 %v5862_v20, %v5299_v32  ;;  %v8533_v55 = vpop.f32.mrb[227].mxu1  ;;  %v9015_v18 = vpop.f32.mrb[225].mxu0  ;;  %v5300_v26 = vadd.f32 %v4902_v31, %v12674_v48 }
 0x3ee   : > { %v4641_v59 = vrot.slane %v13288_v14, 1  ;;  %5919 = vrot.lane.b32.xlu1 %v5600_v6, %s9728_s25  ;;  %4959 = vrot.lane.b32.xlu0 %v4640_v8, %s9727_s24  ;;  %v5603_v21 = vrot.slane %v13288_v14, 2 }
 0x3ef   : > { %v6428_v46 = vadd.f32 %v13204_v1, %v6261_v40  ;;  %v2345_v41 = vpop.f32.mrb[228].mxu1  ;;  %v3856_v51 = vpop.f32.mrb[226].mxu0 }
 0x3f0   : > { %v5864_v33 = vpop.permute.xlu1 %5863  ;;  %v4904_v12 = vpop.permute.xlu0 %4903  ;;  %v13300_v10 = vadd.f32 %v3856_v51, %v2340_v60  ;;  %v4642_v27 = vsel %vm4417_vm2, %v4639_v45, %v4641_v59  ;;  %v5604_v40 = vsel %vm5379_vm3, %v5601_v52, %v5603_v21 }
 0x3f1   : > { %6589 = vst.msk [vmem:[%s11644_s4 + $0x280] sm:$0xff] %vm6508_vm4, %v6428_v46  ;;  %v6262_v22 = vadd.f32 %v5864_v33, %v5300_v26  ;;  %v8536_v25 = vpop.f32.mrb[229].mxu1  ;;  %v9018_v43 = vpop.f32.mrb[227].mxu0  ;;  %v5301_v11 = vadd.f32 %v4904_v12, %v12695_v13 }
 0x3f2   : > { %v4643_v48 = vrot.slane %v13300_v10, 1  ;;  %5921 = vrot.lane.b32.xlu0 %v5602_v3, %s9728_s25  ;;  %4961 = vrot.lane.b32.xlu1 %v4642_v27, %s9727_s24  ;;  %v5605_v9 = vrot.slane %v13300_v10, 2 }
 0x3f3   : > { %v6429_v36 = vadd.f32 %v13204_v1, %v6262_v22  ;;  %v2350_v49 = vpop.f32.mrb[230].mxu1  ;;  %v3861_v45 = vpop.f32.mrb[228].mxu0 }
 0x3f4   : > { %v5866_v17 = vpop.permute.xlu0 %5865  ;;  %v4906_v32 = vpop.permute.xlu1 %4905  ;;  %v13312_v60 = vadd.f32 %v3861_v45, %v2345_v41  ;;  %v4644_v42 = vsel %vm4417_vm2, %v4641_v59, %v4643_v48  ;;  %v5606_v22 = vsel %vm5379_vm3, %v5603_v21, %v5605_v9 }
 0x3f5   : > { %6590 = vst.msk [vmem:[%s11644_s4 + $0x288] sm:$0xff] %vm6508_vm4, %v6429_v36  ;;  %v6263_v20 = vadd.f32 %v5866_v17, %v5301_v11  ;;  %v8539_v31 = vpop.f32.mrb[231].mxu1  ;;  %v9021_v8 = vpop.f32.mrb[229].mxu0  ;;  %v5302_v18 = vadd.f32 %v4906_v32, %v12721_v62 }
 0x3f6   : > { %v4645_v13 = vrot.slane %v13312_v60, 1  ;;  %5923 = vrot.lane.b32.xlu1 %v5604_v40, %s9728_s25  ;;  %4963 = vrot.lane.b32.xlu0 %v4644_v42, %s9727_s24  ;;  %v5607_v52 = vrot.slane %v13312_v60, 2 }
 0x3f7   : > { %v6430_v55 = vadd.f32 %v13204_v1, %v6263_v20  ;;  %v2355_v6 = vpop.f32.mrb[232].mxu1  ;;  %v3866_v59 = vpop.f32.mrb[230].mxu0 }
 0x3f8   : > { %v5868_v46 = vpop.permute.xlu1 %5867  ;;  %v4908_v26 = vpop.permute.xlu0 %4907  ;;  %v13324_v41 = vadd.f32 %v3866_v59, %v2350_v49  ;;  %v4646_v51 = vsel %vm4417_vm2, %v4643_v48, %v4645_v13  ;;  %v5608_v20 = vsel %vm5379_vm3, %v5605_v9, %v5607_v52 }
 0x3f9   : > { %6591 = vst.msk [vmem:[%s11644_s4 + $0x290] sm:$0xff] %vm6508_vm4, %v6430_v55  ;;  %v6264_v33 = vadd.f32 %v5868_v46, %v5302_v18  ;;  %v8542_v12 = vpop.f32.mrb[233].mxu1  ;;  %v9024_v27 = vpop.f32.mrb[231].mxu0  ;;  %v5303_v43 = vadd.f32 %v4908_v26, %v12742_v7 }
 0x3fa   : > { %v4647_v62 = vrot.slane %v13324_v41, 1  ;;  %5925 = vrot.lane.b32.xlu0 %v5606_v22, %s9728_s25  ;;  %4965 = vrot.lane.b32.xlu1 %v4646_v51, %s9727_s24  ;;  %v5609_v21 = vrot.slane %v13324_v41, 2 }
 0x3fb   : > { %v6431_v25 = vadd.f32 %v13204_v1, %v6264_v33  ;;  %v2360_v3 = vpop.f32.mrb[234].mxu1  ;;  %v3871_v48 = vpop.f32.mrb[232].mxu0 }
 0x3fc   : > { %v5870_v36 = vpop.permute.xlu0 %5869  ;;  %v4910_v11 = vpop.permute.xlu1 %4909  ;;  %v13336_v49 = vadd.f32 %v3871_v48, %v2355_v6  ;;  %v4648_v45 = vsel %vm4417_vm2, %v4645_v13, %v4647_v62  ;;  %v5610_v33 = vsel %vm5379_vm3, %v5607_v52, %v5609_v21 }
 0x3fd   : > { %6592 = vst.msk [vmem:[%s11644_s4 + $0x298] sm:$0xff] %vm6508_vm4, %v6431_v25  ;;  %v6265_v17 = vadd.f32 %v5870_v36, %v5303_v43  ;;  %v8545_v32 = vpop.f32.mrb[235].mxu1  ;;  %v9027_v42 = vpop.f32.mrb[233].mxu0  ;;  %v5304_v8 = vadd.f32 %v4910_v11, %v12763_v34 }
 0x3fe   : > { %v4649_v7 = vrot.slane %v13336_v49, 1  ;;  %5927 = vrot.lane.b32.xlu1 %v5608_v20, %s9728_s25  ;;  %4967 = vrot.lane.b32.xlu0 %v4648_v45, %s9727_s24  ;;  %v5611_v9 = vrot.slane %v13336_v49, 2 }
 0x3ff   : > { %v6432_v31 = vadd.f32 %v13204_v1, %v6265_v17  ;;  %v2365_v40 = vpop.f32.mrb[236].mxu1  ;;  %v3876_v13 = vpop.f32.mrb[234].mxu0 }
 0x400   : > { %v5872_v55 = vpop.permute.xlu1 %5871  ;;  %v4912_v18 = vpop.permute.xlu0 %4911  ;;  %v13348_v6 = vadd.f32 %v3876_v13, %v2360_v3  ;;  %v4650_v59 = vsel %vm4417_vm2, %v4647_v62, %v4649_v7  ;;  %v5612_v17 = vsel %vm5379_vm3, %v5609_v21, %v5611_v9 }
 0x401   : > { %6593 = vst.msk [vmem:[%s11644_s4 + $0x2a0] sm:$0xff] %vm6508_vm4, %v6432_v31  ;;  %v6266_v46 = vadd.f32 %v5872_v55, %v5304_v8  ;;  %v8548_v26 = vpop.f32.mrb[237].mxu1  ;;  %v9030_v51 = vpop.f32.mrb[235].mxu0  ;;  %v5305_v27 = vadd.f32 %v4912_v18, %v12784_v54 }
 0x402   : > { %v4651_v34 = vrot.slane %v13348_v6, 1  ;;  %5929 = vrot.lane.b32.xlu0 %v5610_v33, %s9728_s25  ;;  %4969 = vrot.lane.b32.xlu1 %v4650_v59, %s9727_s24  ;;  %v5613_v52 = vrot.slane %v13348_v6, 2 }
 0x403   : > { %v6433_v12 = vadd.f32 %v13204_v1, %v6266_v46  ;;  %v2370_v22 = vpop.f32.mrb[238].mxu1  ;;  %v3881_v62 = vpop.f32.mrb[236].mxu0 }
 0x404   : > { %v5874_v25 = vpop.permute.xlu0 %5873  ;;  %v4914_v43 = vpop.permute.xlu1 %4913  ;;  %v13360_v3 = vadd.f32 %v3881_v62, %v2365_v40  ;;  %v4652_v48 = vsel %vm4417_vm2, %v4649_v7, %v4651_v34  ;;  %v5614_v46 = vsel %vm5379_vm3, %v5611_v9, %v5613_v52 }
 0x405   : > { %6594 = vst.msk [vmem:[%s11644_s4 + $0x2a8] sm:$0xff] %vm6508_vm4, %v6433_v12  ;;  %v6267_v36 = vadd.f32 %v5874_v25, %v5305_v27  ;;  %v8551_v11 = vpop.f32.mrb[239].mxu1  ;;  %v9033_v45 = vpop.f32.mrb[237].mxu0  ;;  %v5306_v42 = vadd.f32 %v4914_v43, %v12805_v47 }
 0x406   : > { %v4653_v54 = vrot.slane %v13360_v3, 1  ;;  %5931 = vrot.lane.b32.xlu1 %v5612_v17, %s9728_s25  ;;  %4971 = vrot.lane.b32.xlu0 %v4652_v48, %s9727_s24  ;;  %v5615_v21 = vrot.slane %v13360_v3, 2 }
 0x407   : > { %v6434_v32 = vadd.f32 %v13204_v1, %v6267_v36  ;;  %v2375_v20 = vpop.f32.mrb[240].mxu1  ;;  %v3886_v7 = vpop.f32.mrb[238].mxu0 }
 0x408   : > { %v5876_v31 = vpop.permute.xlu1 %5875  ;;  %v4916_v8 = vpop.permute.xlu0 %4915  ;;  %v13372_v40 = vadd.f32 %v3886_v7, %v2370_v22  ;;  %v4654_v13 = vsel %vm4417_vm2, %v4651_v34, %v4653_v54  ;;  %v5616_v36 = vsel %vm5379_vm3, %v5613_v52, %v5615_v21 }
 0x409   : > { %6595 = vst.msk [vmem:[%s11644_s4 + $0x2b0] sm:$0xff] %vm6508_vm4, %v6434_v32  ;;  %v6268_v55 = vadd.f32 %v5876_v31, %v5306_v42  ;;  %v8554_v18 = vpop.f32.mrb[241].mxu1  ;;  %v9036_v59 = vpop.f32.mrb[239].mxu0  ;;  %v5307_v51 = vadd.f32 %v4916_v8, %v12826_v0 }
 0x40a   : > { %v4655_v47 = vrot.slane %v13372_v40, 1  ;;  %5933 = vrot.lane.b32.xlu0 %v5614_v46, %s9728_s25  ;;  %4973 = vrot.lane.b32.xlu1 %v4654_v13, %s9727_s24  ;;  %v5617_v9 = vrot.slane %v13372_v40, 2 }
 0x40b   : > { %v6435_v26 = vadd.f32 %v13204_v1, %v6268_v55  ;;  %v2380_v33 = vpop.f32.mrb[242].mxu1  ;;  %v3891_v34 = vpop.f32.mrb[240].mxu0 }
 0x40c   : > { %v5878_v12 = vpop.permute.xlu0 %5877  ;;  %v4918_v27 = vpop.permute.xlu1 %4917  ;;  %v13384_v22 = vadd.f32 %v3891_v34, %v2375_v20  ;;  %v4656_v62 = vsel %vm4417_vm2, %v4653_v54, %v4655_v47  ;;  %v5618_v55 = vsel %vm5379_vm3, %v5615_v21, %v5617_v9 }
 0x40d   : > { %6596 = vst.msk [vmem:[%s11644_s4 + $0x2b8] sm:$0xff] %vm6508_vm4, %v6435_v26  ;;  %v6269_v25 = vadd.f32 %v5878_v12, %v5307_v51  ;;  %v8557_v43 = vpop.f32.mrb[243].mxu1  ;;  %v9039_v48 = vpop.f32.mrb[241].mxu0  ;;  %v5308_v45 = vadd.f32 %v4918_v27, %v12847_v61 }
 0x40e   : > { %v4657_v0 = vrot.slane %v13384_v22, 1  ;;  %5935 = vrot.lane.b32.xlu1 %v5616_v36, %s9728_s25  ;;  %4975 = vrot.lane.b32.xlu0 %v4656_v62, %s9727_s24  ;;  %v5619_v52 = vrot.slane %v13384_v22, 2 }
 0x40f   : > { %v6436_v11 = vadd.f32 %v13204_v1, %v6269_v25  ;;  %v2385_v17 = vpop.f32.mrb[244].mxu1  ;;  %v3896_v54 = vpop.f32.mrb[242].mxu0 }
 0x410   : > { %v5880_v32 = vpop.permute.xlu1 %5879  ;;  %v4920_v42 = vpop.permute.xlu0 %4919  ;;  %v13396_v20 = vadd.f32 %v3896_v54, %v2380_v33  ;;  %v4658_v7 = vsel %vm4417_vm2, %v4655_v47, %v4657_v0  ;;  %v5620_v25 = vsel %vm5379_vm3, %v5617_v9, %v5619_v52 }
 0x411   : > { %6597 = vst.msk [vmem:[%s11644_s4 + $0x2c0] sm:$0xff] %vm6508_vm4, %v6436_v11  ;;  %v6270_v31 = vadd.f32 %v5880_v32, %v5308_v45  ;;  %v8560_v8 = vpop.f32.mrb[245].mxu1  ;;  %v9042_v13 = vpop.f32.mrb[243].mxu0  ;;  %v5309_v59 = vadd.f32 %v4920_v42, %v12868_v23 }
 0x412   : > { %v4659_v61 = vrot.slane %v13396_v20, 1  ;;  %5937 = vrot.lane.b32.xlu0 %v5618_v55, %s9728_s25  ;;  %4977 = vrot.lane.b32.xlu1 %v4658_v7, %s9727_s24  ;;  %v5621_v21 = vrot.slane %v13396_v20, 2 }
 0x413   : > { %v6437_v18 = vadd.f32 %v13204_v1, %v6270_v31  ;;  %v2390_v46 = vpop.f32.mrb[246].mxu1  ;;  %v3901_v47 = vpop.f32.mrb[244].mxu0 }
 0x414   : > { %v5882_v26 = vpop.permute.xlu0 %5881  ;;  %v4922_v51 = vpop.permute.xlu1 %4921  ;;  %v13408_v33 = vadd.f32 %v3901_v47, %v2385_v17  ;;  %v4660_v34 = vsel %vm4417_vm2, %v4657_v0, %v4659_v61  ;;  %v5622_v31 = vsel %vm5379_vm3, %v5619_v52, %v5621_v21 }
 0x415   : > { %6598 = vst.msk [vmem:[%s11644_s4 + $0x2c8] sm:$0xff] %vm6508_vm4, %v6437_v18  ;;  %v6271_v12 = vadd.f32 %v5882_v26, %v5309_v59  ;;  %v8563_v27 = vpop.f32.mrb[247].mxu1  ;;  %v9045_v62 = vpop.f32.mrb[245].mxu0  ;;  %v5310_v48 = vadd.f32 %v4922_v51, %v12889_v28 }
 0x416   : > { %v4661_v23 = vrot.slane %v13408_v33, 1  ;;  %5939 = vrot.lane.b32.xlu1 %v5620_v25, %s9728_s25  ;;  %4979 = vrot.lane.b32.xlu0 %v4660_v34, %s9727_s24  ;;  %v5623_v9 = vrot.slane %v13408_v33, 2 }
 0x417   : > { %v6438_v43 = vadd.f32 %v13204_v1, %v6271_v12  ;;  %v2395_v36 = vpop.f32.mrb[248].mxu1  ;;  %v3906_v0 = vpop.f32.mrb[246].mxu0 }
 0x418   : > { %v5884_v11 = vpop.permute.xlu1 %5883  ;;  %v4924_v45 = vpop.permute.xlu0 %4923  ;;  %v13420_v17 = vadd.f32 %v3906_v0, %v2390_v46  ;;  %v4662_v54 = vsel %vm4417_vm2, %v4659_v61, %v4661_v23  ;;  %v5624_v12 = vsel %vm5379_vm3, %v5621_v21, %v5623_v9 }
 0x419   : > { %6599 = vst.msk [vmem:[%s11644_s4 + $0x2d0] sm:$0xff] %vm6508_vm4, %v6438_v43  ;;  %v6272_v32 = vadd.f32 %v5884_v11, %v5310_v48  ;;  %v8566_v42 = vpop.f32.mrb[249].mxu1  ;;  %v9048_v7 = vpop.f32.mrb[247].mxu0  ;;  %v5311_v13 = vadd.f32 %v4924_v45, %v12910_v5 }
 0x41a   : > { %v4663_v28 = vrot.slane %v13420_v17, 1  ;;  %5941 = vrot.lane.b32.xlu0 %v5622_v31, %s9728_s25  ;;  %4981 = vrot.lane.b32.xlu1 %v4662_v54, %s9727_s24  ;;  %v5625_v52 = vrot.slane %v13420_v17, 2 }
 0x41b   : > { %v6439_v8 = vadd.f32 %v13204_v1, %v6272_v32  ;;  %v2400_v55 = vpop.f32.mrb[250].mxu1  ;;  %v3911_v61 = vpop.f32.mrb[248].mxu0 }
 0x41c   : > { %v5886_v18 = vpop.permute.xlu0 %5885  ;;  %v4926_v59 = vpop.permute.xlu1 %4925  ;;  %v13432_v46 = vadd.f32 %v3911_v61, %v2395_v36  ;;  %v4664_v47 = vsel %vm4417_vm2, %v4661_v23, %v4663_v28  ;;  %v5626_v32 = vsel %vm5379_vm3, %v5623_v9, %v5625_v52 }
 0x41d   : > { %6600 = vst.msk [vmem:[%s11644_s4 + $0x2d8] sm:$0xff] %vm6508_vm4, %v6439_v8  ;;  %v6273_v26 = vadd.f32 %v5886_v18, %v5311_v13  ;;  %v8569_v51 = vpop.f32.mrb[251].mxu1  ;;  %v9051_v34 = vpop.f32.mrb[249].mxu0  ;;  %v5312_v62 = vadd.f32 %v4926_v59, %v12931_v50 }
 0x41e   : > { %v4665_v5 = vrot.slane %v13432_v46, 1  ;;  %5943 = vrot.lane.b32.xlu1 %v5624_v12, %s9728_s25  ;;  %4983 = vrot.lane.b32.xlu0 %v4664_v47, %s9727_s24  ;;  %v5627_v21 = vrot.slane %v13432_v46, 2 }
 0x41f   : > { %v6440_v27 = vadd.f32 %v13204_v1, %v6273_v26  ;;  %v2405_v25 = vpop.f32.mrb[252].mxu1  ;;  %v3916_v23 = vpop.f32.mrb[250].mxu0 }
 0x420   : > { %v5888_v43 = vpop.permute.xlu1 %5887  ;;  %v4928_v48 = vpop.permute.xlu0 %4927  ;;  %v13444_v36 = vadd.f32 %v3916_v23, %v2400_v55  ;;  %v4666_v0 = vsel %vm4417_vm2, %v4663_v28, %v4665_v5  ;;  %v5628_v26 = vsel %vm5379_vm3, %v5625_v52, %v5627_v21 }
 0x421   : > { %6601 = vst.msk [vmem:[%s11644_s4 + $0x2e0] sm:$0xff] %vm6508_vm4, %v6440_v27  ;;  %v6274_v11 = vadd.f32 %v5888_v43, %v5312_v62  ;;  %v8572_v45 = vpop.f32.mrb[253].mxu1  ;;  %v9054_v54 = vpop.f32.mrb[251].mxu0  ;;  %v5313_v7 = vadd.f32 %v4928_v48, %v12952_v16 }
 0x422   : > { %v4667_v50 = vrot.slane %v13444_v36, 1  ;;  %5945 = vrot.lane.b32.xlu0 %v5626_v32, %s9728_s25  ;;  %4985 = vrot.lane.b32.xlu1 %v4666_v0, %s9727_s24  ;;  %v5629_v9 = vrot.slane %v13444_v36, 2 }
 0x423   : > { %v6441_v42 = vadd.f32 %v13204_v1, %v6274_v11  ;;  %v2410_v31 = vpop.f32.mrb[254].mxu1  ;;  %v3921_v28 = vpop.f32.mrb[252].mxu0 }
 0x424   : > { %v5890_v8 = vpop.permute.xlu0 %5889  ;;  %v4930_v13 = vpop.permute.xlu1 %4929  ;;  %v13456_v55 = vadd.f32 %v3921_v28, %v2405_v25  ;;  %v4668_v61 = vsel %vm4417_vm2, %v4665_v5, %v4667_v50  ;;  %v5630_v11 = vsel %vm5379_vm3, %v5627_v21, %v5629_v9 }
 0x425   : > { %6602 = vst.msk [vmem:[%s11644_s4 + $0x2e8] sm:$0xff] %vm6508_vm4, %v6441_v42  ;;  %v6275_v18 = vadd.f32 %v5890_v8, %v5313_v7  ;;  %v8575_v59 = vpop.f32.mrb[255].mxu1  ;;  %v9057_v47 = vpop.f32.mrb[253].mxu0  ;;  %v5314_v34 = vadd.f32 %v4930_v13, %v12973_v4 }
 0x426   : > { %v4669_v16 = vrot.slane %v13456_v55, 1  ;;  %5947 = vrot.lane.b32.xlu1 %v5628_v26, %s9728_s25  ;;  %4987 = vrot.lane.b32.xlu0 %v4668_v61, %s9727_s24  ;;  %v5631_v52 = vrot.slane %v13456_v55, 2 }
 0x427   : > { %v6442_v51 = vadd.f32 %v13204_v1, %v6275_v18  ;;  %v2415_v12 = vpop.f32.mrb[150].mxu1  ;;  %v3926_v5 = vpop.f32.mrb[254].mxu0 }
 0x428   : > { %v5892_v27 = vpop.permute.xlu1 %5891  ;;  %v4932_v62 = vpop.permute.xlu0 %4931  ;;  %v13468_v25 = vadd.f32 %v3926_v5, %v2410_v31  ;;  %v4670_v23 = vsel %vm4417_vm2, %v4667_v50, %v4669_v16  ;;  %v5632_v18 = vsel %vm5379_vm3, %v5629_v9, %v5631_v52 }
 0x429   : > { %6603 = vst.msk [vmem:[%s11644_s4 + $0x2f0] sm:$0xff] %vm6508_vm4, %v6442_v51  ;;  %v6276_v43 = vadd.f32 %v5892_v27, %v5314_v34  ;;  %v8578_v48 = vpop.f32.mrb[151].mxu1  ;;  %v9060_v0 = vpop.f32.mrb[255].mxu0  ;;  %v5315_v54 = vadd.f32 %v4932_v62, %v12994_v63 }
 0x42a   : > { %v4671_v4 = vrot.slane %v13468_v25, 1  ;;  %5949 = vrot.lane.b32.xlu0 %v5630_v11, %s9728_s25  ;;  %4989 = vrot.lane.b32.xlu1 %v4670_v23, %s9727_s24  ;;  %v5633_v21 = vrot.slane %v13468_v25, 2 }
 0x42b   : > { %v6443_v45 = vadd.f32 %v13204_v1, %v6276_v43  ;;  %v2420_v32 = vpop.f32.mrb[152].mxu1  ;;  %v3931_v50 = vpop.f32.mrb[0].mxu0 }
 0x42c   : > { %v5894_v42 = vpop.permute.xlu0 %5893  ;;  %v4934_v7 = vpop.permute.xlu1 %4933  ;;  %v13480_v31 = vadd.f32 %v3931_v50, %v2415_v12  ;;  %v4672_v28 = vsel %vm4417_vm2, %v4669_v16, %v4671_v4  ;;  %v5634_v43 = vsel %vm5379_vm3, %v5631_v52, %v5633_v21 }
 0x42d   : > { %6604 = vst.msk [vmem:[%s11644_s4 + $0x2f8] sm:$0xff] %vm6508_vm4, %v6443_v45  ;;  %v6277_v8 = vadd.f32 %v5894_v42, %v5315_v54  ;;  %v8581_v13 = vpop.f32.mrb[153].mxu1  ;;  %v9063_v61 = vpop.f32.mrb[1].mxu0  ;;  %v5316_v47 = vadd.f32 %v4934_v7, %v13015_v57 }
 0x42e   : > { %v4673_v63 = vrot.slane %v13480_v31, 1  ;;  %5951 = vrot.lane.b32.xlu1 %v5632_v18, %s9728_s25  ;;  %4991 = vrot.lane.b32.xlu0 %v4672_v28, %s9727_s24  ;;  %v5635_v9 = vrot.slane %v13480_v31, 2 }
 0x42f   : > { %v6444_v59 = vadd.f32 %v13204_v1, %v6277_v8  ;;  %v2425_v26 = vpop.f32.mrb[154].mxu1  ;;  %v3936_v16 = vpop.f32.mrb[2].mxu0 }
 0x430   : > { %v5896_v51 = vpop.permute.xlu1 %5895  ;;  %v4936_v34 = vpop.permute.xlu0 %4935  ;;  %v13492_v12 = vadd.f32 %v3936_v16, %v2420_v32  ;;  %v4674_v5 = vsel %vm4417_vm2, %v4671_v4, %v4673_v63  ;;  %v5636_v8 = vsel %vm5379_vm3, %v5633_v21, %v5635_v9 }
 0x431   : > { %6605 = vst.msk [vmem:[%s11644_s4 + $0x300] sm:$0xff] %vm6508_vm4, %v6444_v59  ;;  %v6278_v27 = vadd.f32 %v5896_v51, %v5316_v47  ;;  %v8584_v62 = vpop.f32.mrb[155].mxu1  ;;  %v9066_v23 = vpop.f32.mrb[3].mxu0  ;;  %v5317_v0 = vadd.f32 %v4936_v34, %v13036_v53 }
 0x432   : > { %v4675_v57 = vrot.slane %v13492_v12, 1  ;;  %5953 = vrot.lane.b32.xlu0 %v5634_v43, %s9728_s25  ;;  %4993 = vrot.lane.b32.xlu1 %v4674_v5, %s9727_s24  ;;  %v5637_v52 = vrot.slane %v13492_v12, 2 }
 0x433   : > { %v6445_v48 = vadd.f32 %v13204_v1, %v6278_v27  ;;  %v2430_v11 = vpop.f32.mrb[156].mxu1  ;;  %v3941_v4 = vpop.f32.mrb[4].mxu0 }
 0x434   : > { %v5898_v45 = vpop.permute.xlu0 %5897  ;;  %v4938_v54 = vpop.permute.xlu1 %4937  ;;  %v13504_v32 = vadd.f32 %v3941_v4, %v2425_v26  ;;  %v4676_v50 = vsel %vm4417_vm2, %v4673_v63, %v4675_v57  ;;  %v5638_v27 = vsel %vm5379_vm3, %v5635_v9, %v5637_v52 }
 0x435   : > { %6606 = vst.msk [vmem:[%s11644_s4 + $0x308] sm:$0xff] %vm6508_vm4, %v6445_v48  ;;  %v6279_v42 = vadd.f32 %v5898_v45, %v5317_v0  ;;  %v8587_v7 = vpop.f32.mrb[157].mxu1  ;;  %v9069_v28 = vpop.f32.mrb[5].mxu0  ;;  %v5318_v61 = vadd.f32 %v4938_v54, %v13057_v44 }
 0x436   : > { %v4677_v53 = vrot.slane %v13504_v32, 1  ;;  %5955 = vrot.lane.b32.xlu1 %v5636_v8, %s9728_s25  ;;  %4995 = vrot.lane.b32.xlu0 %v4676_v50, %s9727_s24  ;;  %v5639_v21 = vrot.slane %v13504_v32, 2 }
 0x437   : > { %v6446_v13 = vadd.f32 %v13204_v1, %v6279_v42  ;;  %v2435_v18 = vpop.f32.mrb[158].mxu1  ;;  %v3946_v63 = vpop.f32.mrb[6].mxu0 }
 0x438   : > { %v5900_v59 = vpop.permute.xlu1 %5899  ;;  %v4940_v47 = vpop.permute.xlu0 %4939  ;;  %v13516_v26 = vadd.f32 %v3946_v63, %v2430_v11  ;;  %v4678_v16 = vsel %vm4417_vm2, %v4675_v57, %v4677_v53  ;;  %v5640_v42 = vsel %vm5379_vm3, %v5637_v52, %v5639_v21 }
 0x439   : > { %6607 = vst.msk [vmem:[%s11644_s4 + $0x310] sm:$0xff] %vm6508_vm4, %v6446_v13  ;;  %v6280_v51 = vadd.f32 %v5900_v59, %v5318_v61  ;;  %v8590_v34 = vpop.f32.mrb[159].mxu1  ;;  %v9072_v5 = vpop.f32.mrb[7].mxu0  ;;  %v5319_v23 = vadd.f32 %v4940_v47, %v13078_v38 }
 0x43a   : > { %v4679_v44 = vrot.slane %v13516_v26, 1  ;;  %5957 = vrot.lane.b32.xlu0 %v5638_v27, %s9728_s25  ;;  %4997 = vrot.lane.b32.xlu1 %v4678_v16, %s9727_s24  ;;  %v5641_v9 = vrot.slane %v13516_v26, 2 }
 0x43b   : > { %v6447_v62 = vadd.f32 %v13204_v1, %v6280_v51  ;;  %v2440_v43 = vpop.f32.mrb[160].mxu1  ;;  %v3951_v57 = vpop.f32.mrb[8].mxu0 }
 0x43c   : > { %v5902_v48 = vpop.permute.xlu0 %5901  ;;  %v4942_v0 = vpop.permute.xlu1 %4941  ;;  %v13528_v11 = vadd.f32 %v3951_v57, %v2435_v18  ;;  %v4680_v4 = vsel %vm4417_vm2, %v4677_v53, %v4679_v44  ;;  %v5642_v51 = vsel %vm5379_vm3, %v5639_v21, %v5641_v9 }
 0x43d   : > { %6608 = vst.msk [vmem:[%s11644_s4 + $0x318] sm:$0xff] %vm6508_vm4, %v6447_v62  ;;  %v6281_v45 = vadd.f32 %v5902_v48, %v5319_v23  ;;  %v8593_v54 = vpop.f32.mrb[161].mxu1  ;;  %v9075_v50 = vpop.f32.mrb[9].mxu0  ;;  %v5320_v28 = vadd.f32 %v4942_v0, %v13099_v35 }
 0x43e   : > { %v4681_v38 = vrot.slane %v13528_v11, 1  ;;  %5959 = vrot.lane.b32.xlu1 %v5640_v42, %s9728_s25  ;;  %4999 = vrot.lane.b32.xlu0 %v4680_v4, %s9727_s24  ;;  %v5643_v52 = vrot.slane %v13528_v11, 2 }
 0x43f   : > { %v6448_v7 = vadd.f32 %v13204_v1, %v6281_v45  ;;  %v2445_v8 = vpop.f32.mrb[162].mxu1  ;;  %v3956_v53 = vpop.f32.mrb[10].mxu0 }
 0x440   : > { %v5904_v13 = vpop.permute.xlu1 %5903  ;;  %v4944_v61 = vpop.permute.xlu0 %4943  ;;  %v13540_v18 = vadd.f32 %v3956_v53, %v2440_v43  ;;  %v4682_v63 = vsel %vm4417_vm2, %v4679_v44, %v4681_v38  ;;  %v5644_v45 = vsel %vm5379_vm3, %v5641_v9, %v5643_v52 }
 0x441   : > { %6609 = vst.msk [vmem:[%s11644_s4 + $0x320] sm:$0xff] %vm6508_vm4, %v6448_v7  ;;  %v6282_v59 = vadd.f32 %v5904_v13, %v5320_v28  ;;  %v8596_v47 = vpop.f32.mrb[163].mxu1  ;;  %v9078_v16 = vpop.f32.mrb[11].mxu0  ;;  %v5321_v5 = vadd.f32 %v4944_v61, %v13120_v19 }
 0x442   : > { %v4683_v35 = vrot.slane %v13540_v18, 1  ;;  %5961 = vrot.lane.b32.xlu0 %v5642_v51, %s9728_s25  ;;  %5001 = vrot.lane.b32.xlu1 %v4682_v63, %s9727_s24  ;;  %v5645_v21 = vrot.slane %v13540_v18, 2 }
 0x443   : > { %v6449_v34 = vadd.f32 %v13204_v1, %v6282_v59  ;;  %v2450_v27 = vpop.f32.mrb[164].mxu1  ;;  %v3961_v44 = vpop.f32.mrb[12].mxu0  ;;  %v13577_v59 = vld [vmem:[%s14019_s2] ss:$0 sm:$0xff] }
 0x444   : > { %v5906_v62 = vpop.permute.xlu0 %5905  ;;  %v4946_v23 = vpop.permute.xlu1 %4945  ;;  %v13552_v43 = vadd.f32 %v3961_v44, %v2445_v8  ;;  %v4684_v57 = vsel %vm4417_vm2, %v4681_v38, %v4683_v35 }
 0x445   : > { %6610 = vst.msk [vmem:[%s11644_s4 + $0x328] sm:$0xff] %vm6508_vm4, %v6449_v34  ;;  %v6283_v48 = vadd.f32 %v5906_v62, %v5321_v5  ;;  %v8599_v0 = vpop.f32.mrb[165].mxu1  ;;  %v9081_v4 = vpop.f32.mrb[13].mxu0  ;;  %v5322_v50 = vadd.f32 %v4946_v23, %v13141_v15 }
 0x446   : > { %v4685_v19 = vrot.slane %v13552_v43, 1  ;;  %5963 = vrot.lane.b32.xlu1 %v5644_v45, %s9728_s25  ;;  %5003 = vrot.lane.b32.xlu0 %v4684_v57, %s9727_s24  ;;  %v5647_v9 = vrot.slane %v13552_v43, 2 }
 0x447   : > { %v6450_v54 = vadd.f32 %v13204_v1, %v6283_v48  ;;  %v2455_v42 = vpop.f32.mrb[166].mxu1  ;;  %v3966_v38 = vpop.f32.mrb[14].mxu0  ;;  %v5646_v1 = vsel %vm5379_vm3, %v5643_v52, %v5645_v21 }
 0x448   : > { %v5908_v7 = vpop.permute.xlu1 %5907  ;;  %v4948_v28 = vpop.permute.xlu0 %4947  ;;  %v13564_v8 = vadd.f32 %v3966_v38, %v2450_v27  ;;  %v4686_v53 = vsel %vm4417_vm2, %v4683_v35, %v4685_v19  ;;  %v5648_v48 = vsel %vm5379_vm3, %v5645_v21, %v5647_v9 }
 0x449   : > { %6611 = vst.msk [vmem:[%s11644_s4 + $0x330] sm:$0xff] %vm6508_vm4, %v6450_v54  ;;  %v6284_v13 = vadd.f32 %v5908_v7, %v5322_v50  ;;  %v8602_v61 = vpop.f32.mrb[167].mxu1  ;;  %v9084_v63 = vpop.f32.mrb[15].mxu0  ;;  %v5323_v16 = vadd.f32 %v4948_v28, %v13162_v39 }
 0x44a   : > { %v4687_v15 = vrot.slane %v13564_v8, 1  ;;  %5965 = vrot.lane.b32.xlu0 %v5646_v1, %s9728_s25  ;;  %5005 = vrot.lane.b32.xlu1 %v4686_v53, %s9727_s24  ;;  %v5649_v44 = vrot.slane %v13564_v8, 2 }
 0x44b   : > { %v6451_v47 = vadd.f32 %v13577_v59, %v6284_v13  ;;  %v2460_v51 = vpop.f32.mrb[168].mxu1  ;;  %v3971_v35 = vpop.f32.mrb[16].mxu0 }
 0x44c   : > { %v5910_v34 = vpop.permute.xlu0 %5909  ;;  %v4950_v5 = vpop.permute.xlu1 %4949  ;;  %v13581_v52 = vadd.f32 %v3971_v35, %v2455_v42  ;;  %v4688_v27 = vsel %vm4417_vm2, %v4685_v19, %v4687_v15  ;;  %v5650_v13 = vsel %vm5379_vm3, %v5647_v9, %v5649_v44 }
 0x44d   : > { %6612 = vst.msk [vmem:[%s11644_s4 + $0x338] sm:$0xff] %vm6508_vm4, %v6451_v47  ;;  %v6285_v62 = vadd.f32 %v5910_v34, %v5323_v16  ;;  %v8605_v23 = vpop.f32.mrb[169].mxu1  ;;  %v9087_v57 = vpop.f32.mrb[17].mxu0  ;;  %v5324_v4 = vadd.f32 %v4950_v5, %v13183_v2 }
 0x44e   : > { %v4689_v39 = vrot.slane %v13581_v52, 1  ;;  %5967 = vrot.lane.b32.xlu1 %v5648_v48, %s9728_s25  ;;  %5007 = vrot.lane.b32.xlu0 %v4688_v27, %s9727_s24  ;;  %v5651_v21 = vrot.slane %v13581_v52, 2 }
 0x44f   : > { %v6452_v0 = vadd.f32 %v13577_v59, %v6285_v62  ;;  %v2465_v45 = vpop.f32.mrb[170].mxu1  ;;  %v3976_v19 = vpop.f32.mrb[18].mxu0 }
 0x450   : > { %v5912_v54 = vpop.permute.xlu1 %5911  ;;  %v4952_v50 = vpop.permute.xlu0 %4951  ;;  %v13593_v42 = vadd.f32 %v3976_v19, %v2460_v51  ;;  %v4690_v38 = vsel %vm4417_vm2, %v4687_v15, %v4689_v39  ;;  %v5652_v62 = vsel %vm5379_vm3, %v5649_v44, %v5651_v21 }
 0x451   : > { %6613 = vst.msk [vmem:[%s11644_s4 + $0x340] sm:$0xff] %vm6508_vm4, %v6452_v0  ;;  %v6286_v7 = vadd.f32 %v5912_v54, %v5324_v4  ;;  %v8608_v28 = vpop.f32.mrb[171].mxu1  ;;  %v9090_v53 = vpop.f32.mrb[19].mxu0  ;;  %v5325_v63 = vadd.f32 %v4952_v50, %v13209_v24 }
 0x452   : > { %v4691_v2 = vrot.slane %v13593_v42, 1  ;;  %5969 = vrot.lane.b32.xlu0 %v5650_v13, %s9728_s25  ;;  %5009 = vrot.lane.b32.xlu1 %v4690_v38, %s9727_s24  ;;  %v5653_v9 = vrot.slane %v13593_v42, 2 }
 0x453   : > { %v6453_v61 = vadd.f32 %v13577_v59, %v6286_v7  ;;  %v2470_v1 = vpop.f32.mrb[172].mxu1  ;;  %v3981_v15 = vpop.f32.mrb[20].mxu0 }
 0x454   : > { %v5914_v47 = vpop.permute.xlu0 %5913  ;;  %v4954_v16 = vpop.permute.xlu1 %4953  ;;  %v13605_v51 = vadd.f32 %v3981_v15, %v2465_v45  ;;  %v4692_v35 = vsel %vm4417_vm2, %v4689_v39, %v4691_v2  ;;  %v5654_v7 = vsel %vm5379_vm3, %v5651_v21, %v5653_v9 }
 0x455   : > { %6614 = vst.msk [vmem:[%s11644_s4 + $0x348] sm:$0xff] %vm6508_vm4, %v6453_v61  ;;  %v6287_v34 = vadd.f32 %v5914_v47, %v5325_v63  ;;  %v8611_v5 = vpop.f32.mrb[173].mxu1  ;;  %v9093_v27 = vpop.f32.mrb[21].mxu0  ;;  %v5326_v57 = vadd.f32 %v4954_v16, %v13227_v56 }
 0x456   : > { %v4693_v24 = vrot.slane %v13605_v51, 1  ;;  %5971 = vrot.lane.b32.xlu1 %v5652_v62, %s9728_s25  ;;  %5011 = vrot.lane.b32.xlu0 %v4692_v35, %s9727_s24  ;;  %v5655_v44 = vrot.slane %v13605_v51, 2 }
 0x457   : > { %v6454_v23 = vadd.f32 %v13577_v59, %v6287_v34  ;;  %v2475_v48 = vpop.f32.mrb[174].mxu1  ;;  %v3986_v39 = vpop.f32.mrb[22].mxu0 }
 0x458   : > { %v5916_v0 = vpop.permute.xlu1 %5915  ;;  %v4956_v4 = vpop.permute.xlu0 %4955  ;;  %v13617_v45 = vadd.f32 %v3986_v39, %v2470_v1  ;;  %v4694_v19 = vsel %vm4417_vm2, %v4691_v2, %v4693_v24  ;;  %v5656_v34 = vsel %vm5379_vm3, %v5653_v9, %v5655_v44 }
 0x459   : > { %6615 = vst.msk [vmem:[%s11644_s4 + $0x350] sm:$0xff] %vm6508_vm4, %v6454_v23  ;;  %v6288_v54 = vadd.f32 %v5916_v0, %v5326_v57  ;;  %v8614_v50 = vpop.f32.mrb[175].mxu1  ;;  %v9096_v38 = vpop.f32.mrb[23].mxu0  ;;  %v5327_v53 = vadd.f32 %v13240_v29, %v4956_v4 }
 0x45a   : > { %v4695_v56 = vrot.slane %v13617_v45, 1  ;;  %5973 = vrot.lane.b32.xlu0 %v5654_v7, %s9728_s25  ;;  %5013 = vrot.lane.b32.xlu1 %v4694_v19, %s9727_s24  ;;  %v5657_v21 = vrot.slane %v13617_v45, 2 }
 0x45b   : > { %v6455_v28 = vadd.f32 %v13577_v59, %v6288_v54  ;;  %v2480_v13 = vpop.f32.mrb[176].mxu1  ;;  %v3991_v2 = vpop.f32.mrb[24].mxu0 }
 0x45c   : > { %v5918_v61 = vpop.permute.xlu0 %5917  ;;  %v4958_v63 = vpop.permute.xlu1 %4957  ;;  %v13629_v1 = vadd.f32 %v3991_v2, %v2475_v48  ;;  %v4696_v15 = vsel %vm4417_vm2, %v4693_v24, %v4695_v56  ;;  %v5658_v54 = vsel %vm5379_vm3, %v5655_v44, %v5657_v21 }
 0x45d   : > { %6616 = vst.msk [vmem:[%s11644_s4 + $0x358] sm:$0xff] %vm6508_vm4, %v6455_v28  ;;  %v6289_v47 = vadd.f32 %v5918_v61, %v5327_v53  ;;  %v8617_v16 = vpop.f32.mrb[177].mxu1  ;;  %v9099_v35 = vpop.f32.mrb[25].mxu0  ;;  %v5328_v27 = vadd.f32 %v13252_v37, %v4958_v63 }
 0x45e   : > { %v4697_v29 = vrot.slane %v13629_v1, 1  ;;  %5975 = vrot.lane.b32.xlu1 %v5656_v34, %s9728_s25  ;;  %5015 = vrot.lane.b32.xlu0 %v4696_v15, %s9727_s24  ;;  %v5659_v9 = vrot.slane %v13629_v1, 2 }
 0x45f   : > { %v6456_v5 = vadd.f32 %v13577_v59, %v6289_v47  ;;  %v2485_v62 = vpop.f32.mrb[178].mxu1  ;;  %v3996_v24 = vpop.f32.mrb[26].mxu0 }
 0x460   : > { %v5920_v23 = vpop.permute.xlu1 %5919  ;;  %v4960_v57 = vpop.permute.xlu0 %4959  ;;  %v13641_v48 = vadd.f32 %v3996_v24, %v2480_v13  ;;  %v4698_v39 = vsel %vm4417_vm2, %v4695_v56, %v4697_v29  ;;  %v5660_v47 = vsel %vm5379_vm3, %v5657_v21, %v5659_v9 }
 0x461   : > { %6617 = vst.msk [vmem:[%s11644_s4 + $0x360] sm:$0xff] %vm6508_vm4, %v6456_v5  ;;  %v6290_v0 = vadd.f32 %v5920_v23, %v5328_v27  ;;  %v8620_v4 = vpop.f32.mrb[179].mxu1  ;;  %v9102_v19 = vpop.f32.mrb[27].mxu0  ;;  %v5329_v38 = vadd.f32 %v13264_v30, %v4960_v57 }
 0x462   : > { %v4699_v37 = vrot.slane %v13641_v48, 1  ;;  %5977 = vrot.lane.b32.xlu0 %v5658_v54, %s9728_s25  ;;  %5017 = vrot.lane.b32.xlu1 %v4698_v39, %s9727_s24  ;;  %v5661_v44 = vrot.slane %v13641_v48, 2 }
 0x463   : > { %v6457_v50 = vadd.f32 %v13577_v59, %v6290_v0  ;;  %v2490_v7 = vpop.f32.mrb[180].mxu1  ;;  %v4001_v56 = vpop.f32.mrb[28].mxu0 }
 0x464   : > { %v5922_v28 = vpop.permute.xlu0 %5921  ;;  %v4962_v53 = vpop.permute.xlu1 %4961  ;;  %v13653_v13 = vadd.f32 %v4001_v56, %v2485_v62  ;;  %v4700_v2 = vsel %vm4417_vm2, %v4697_v29, %v4699_v37  ;;  %v5662_v0 = vsel %vm5379_vm3, %v5659_v9, %v5661_v44 }
 0x465   : > { %6618 = vst.msk [vmem:[%s11644_s4 + $0x368] sm:$0xff] %vm6508_vm4, %v6457_v50  ;;  %v6291_v61 = vadd.f32 %v5922_v28, %v5329_v38  ;;  %v8623_v63 = vpop.f32.mrb[181].mxu1  ;;  %v9105_v15 = vpop.f32.mrb[29].mxu0  ;;  %v5330_v35 = vadd.f32 %v13276_v58, %v4962_v53 }
 0x466   : > { %v4701_v30 = vrot.slane %v13653_v13, 1  ;;  %5979 = vrot.lane.b32.xlu1 %v5660_v47, %s9728_s25  ;;  %5019 = vrot.lane.b32.xlu0 %v4700_v2, %s9727_s24  ;;  %v5663_v21 = vrot.slane %v13653_v13, 2 }
 0x467   : > { %v6458_v16 = vadd.f32 %v13577_v59, %v6291_v61  ;;  %v2495_v34 = vpop.f32.mrb[182].mxu1  ;;  %v4006_v29 = vpop.f32.mrb[30].mxu0 }
 0x468   : > { %v5924_v5 = vpop.permute.xlu1 %5923  ;;  %v4964_v27 = vpop.permute.xlu0 %4963  ;;  %v13665_v62 = vadd.f32 %v4006_v29, %v2490_v7  ;;  %v4702_v24 = vsel %vm4417_vm2, %v4699_v37, %v4701_v30  ;;  %v5664_v61 = vsel %vm5379_vm3, %v5661_v44, %v5663_v21 }
 0x469   : > { %6619 = vst.msk [vmem:[%s11644_s4 + $0x370] sm:$0xff] %vm6508_vm4, %v6458_v16  ;;  %v6292_v23 = vadd.f32 %v5924_v5, %v5330_v35  ;;  %v8626_v57 = vpop.f32.mrb[183].mxu1  ;;  %v9108_v39 = vpop.f32.mrb[31].mxu0  ;;  %v5331_v19 = vadd.f32 %v13288_v14, %v4964_v27 }
 0x46a   : > { %v4703_v58 = vrot.slane %v13665_v62, 1  ;;  %5981 = vrot.lane.b32.xlu0 %v5662_v0, %s9728_s25  ;;  %5021 = vrot.lane.b32.xlu1 %v4702_v24, %s9727_s24  ;;  %v5665_v9 = vrot.slane %v13665_v62, 2 }
 0x46b   : > { %v6459_v4 = vadd.f32 %v13577_v59, %v6292_v23  ;;  %v2500_v54 = vpop.f32.mrb[184].mxu1  ;;  %v4011_v37 = vpop.f32.mrb[32].mxu0 }
 0x46c   : > { %v5926_v50 = vpop.permute.xlu0 %5925  ;;  %v4966_v38 = vpop.permute.xlu1 %4965  ;;  %v13677_v7 = vadd.f32 %v4011_v37, %v2495_v34  ;;  %v4704_v56 = vsel %vm4417_vm2, %v4701_v30, %v4703_v58  ;;  %v5666_v23 = vsel %vm5379_vm3, %v5663_v21, %v5665_v9 }
 0x46d   : > { %6620 = vst.msk [vmem:[%s11644_s4 + $0x378] sm:$0xff] %vm6508_vm4, %v6459_v4  ;;  %v6293_v28 = vadd.f32 %v5926_v50, %v5331_v19  ;;  %v8629_v53 = vpop.f32.mrb[185].mxu1  ;;  %v9111_v2 = vpop.f32.mrb[33].mxu0  ;;  %v5332_v15 = vadd.f32 %v13300_v10, %v4966_v38 }
 0x46e   : > { %v4705_v14 = vrot.slane %v13677_v7, 1  ;;  %5983 = vrot.lane.b32.xlu1 %v5664_v61, %s9728_s25  ;;  %5023 = vrot.lane.b32.xlu0 %v4704_v56, %s9727_s24  ;;  %v5667_v44 = vrot.slane %v13677_v7, 2 }
 0x46f   : > { %v6460_v63 = vadd.f32 %v13577_v59, %v6293_v28  ;;  %v2505_v47 = vpop.f32.mrb[186].mxu1  ;;  %v4016_v30 = vpop.f32.mrb[34].mxu0 }
 0x470   : > { %v5928_v16 = vpop.permute.xlu1 %5927  ;;  %v4968_v35 = vpop.permute.xlu0 %4967  ;;  %v13689_v34 = vadd.f32 %v4016_v30, %v2500_v54  ;;  %v4706_v29 = vsel %vm4417_vm2, %v4703_v58, %v4705_v14  ;;  %v5668_v28 = vsel %vm5379_vm3, %v5665_v9, %v5667_v44 }
 0x471   : > { %6621 = vst.msk [vmem:[%s11644_s4 + $0x380] sm:$0xff] %vm6508_vm4, %v6460_v63  ;;  %v6294_v5 = vadd.f32 %v5928_v16, %v5332_v15  ;;  %v8632_v27 = vpop.f32.mrb[187].mxu1  ;;  %v9114_v24 = vpop.f32.mrb[35].mxu0  ;;  %v5333_v39 = vadd.f32 %v13312_v60, %v4968_v35 }
 0x472   : > { %v4707_v10 = vrot.slane %v13689_v34, 1  ;;  %5985 = vrot.lane.b32.xlu0 %v5666_v23, %s9728_s25  ;;  %5025 = vrot.lane.b32.xlu1 %v4706_v29, %s9727_s24  ;;  %v5669_v21 = vrot.slane %v13689_v34, 2 }
 0x473   : > { %v6461_v57 = vadd.f32 %v13577_v59, %v6294_v5  ;;  %v2510_v0 = vpop.f32.mrb[188].mxu1  ;;  %v4021_v58 = vpop.f32.mrb[36].mxu0 }
 0x474   : > { %v5930_v4 = vpop.permute.xlu0 %5929  ;;  %v4970_v19 = vpop.permute.xlu1 %4969  ;;  %v13701_v54 = vadd.f32 %v4021_v58, %v2505_v47  ;;  %v4708_v37 = vsel %vm4417_vm2, %v4705_v14, %v4707_v10  ;;  %v5670_v5 = vsel %vm5379_vm3, %v5667_v44, %v5669_v21 }
 0x475   : > { %6622 = vst.msk [vmem:[%s11644_s4 + $0x388] sm:$0xff] %vm6508_vm4, %v6461_v57  ;;  %v6295_v50 = vadd.f32 %v5930_v4, %v5333_v39  ;;  %v8635_v38 = vpop.f32.mrb[189].mxu1  ;;  %v9117_v56 = vpop.f32.mrb[37].mxu0  ;;  %v5334_v2 = vadd.f32 %v13324_v41, %v4970_v19 }
 0x476   : > { %v4709_v60 = vrot.slane %v13701_v54, 1  ;;  %5987 = vrot.lane.b32.xlu1 %v5668_v28, %s9728_s25  ;;  %5027 = vrot.lane.b32.xlu0 %v4708_v37, %s9727_s24  ;;  %v5671_v9 = vrot.slane %v13701_v54, 2 }
 0x477   : > { %v6462_v53 = vadd.f32 %v13577_v59, %v6295_v50  ;;  %v2515_v61 = vpop.f32.mrb[190].mxu1  ;;  %v4026_v14 = vpop.f32.mrb[38].mxu0 }
 0x478   : > { %v5932_v63 = vpop.permute.xlu1 %5931  ;;  %v4972_v15 = vpop.permute.xlu0 %4971  ;;  %v13713_v47 = vadd.f32 %v4026_v14, %v2510_v0  ;;  %v4710_v30 = vsel %vm4417_vm2, %v4707_v10, %v4709_v60  ;;  %v5672_v50 = vsel %vm5379_vm3, %v5669_v21, %v5671_v9 }
 0x479   : > { %6623 = vst.msk [vmem:[%s11644_s4 + $0x390] sm:$0xff] %vm6508_vm4, %v6462_v53  ;;  %v6296_v16 = vadd.f32 %v5932_v63, %v5334_v2  ;;  %v8638_v35 = vpop.f32.mrb[191].mxu1  ;;  %v9120_v29 = vpop.f32.mrb[39].mxu0  ;;  %v5335_v24 = vadd.f32 %v13336_v49, %v4972_v15 }
 0x47a   : > { %v4711_v41 = vrot.slane %v13713_v47, 1  ;;  %5989 = vrot.lane.b32.xlu0 %v5670_v5, %s9728_s25  ;;  %5029 = vrot.lane.b32.xlu1 %v4710_v30, %s9727_s24  ;;  %v5673_v44 = vrot.slane %v13713_v47, 2 }
 0x47b   : > { %v6463_v27 = vadd.f32 %v13577_v59, %v6296_v16  ;;  %v2520_v23 = vpop.f32.mrb[192].mxu1  ;;  %v4031_v10 = vpop.f32.mrb[40].mxu0 }
 0x47c   : > { %v5934_v57 = vpop.permute.xlu0 %5933  ;;  %v4974_v39 = vpop.permute.xlu1 %4973  ;;  %v13725_v0 = vadd.f32 %v4031_v10, %v2515_v61  ;;  %v4712_v58 = vsel %vm4417_vm2, %v4709_v60, %v4711_v41  ;;  %v5674_v16 = vsel %vm5379_vm3, %v5671_v9, %v5673_v44 }
 0x47d   : > { %6624 = vst.msk [vmem:[%s11644_s4 + $0x398] sm:$0xff] %vm6508_vm4, %v6463_v27  ;;  %v6297_v4 = vadd.f32 %v5934_v57, %v5335_v24  ;;  %v8641_v19 = vpop.f32.mrb[193].mxu1  ;;  %v9123_v37 = vpop.f32.mrb[41].mxu0  ;;  %v5336_v56 = vadd.f32 %v13348_v6, %v4974_v39 }
 0x47e   : > { %v4713_v49 = vrot.slane %v13725_v0, 1  ;;  %5991 = vrot.lane.b32.xlu1 %v5672_v50, %s9728_s25  ;;  %5031 = vrot.lane.b32.xlu0 %v4712_v58, %s9727_s24  ;;  %v5675_v21 = vrot.slane %v13725_v0, 2 }
 0x47f   : > { %v6464_v38 = vadd.f32 %v13577_v59, %v6297_v4  ;;  %v2525_v28 = vpop.f32.mrb[194].mxu1  ;;  %v4036_v60 = vpop.f32.mrb[42].mxu0 }
 0x480   : > { %v5936_v53 = vpop.permute.xlu1 %5935  ;;  %v4976_v2 = vpop.permute.xlu0 %4975  ;;  %v13737_v61 = vadd.f32 %v4036_v60, %v2520_v23  ;;  %v4714_v14 = vsel %vm4417_vm2, %v4711_v41, %v4713_v49  ;;  %v5676_v4 = vsel %vm5379_vm3, %v5673_v44, %v5675_v21 }
 0x481   : > { %6625 = vst.msk [vmem:[%s11644_s4 + $0x3a0] sm:$0xff] %vm6508_vm4, %v6464_v38  ;;  %v6298_v63 = vadd.f32 %v5936_v53, %v5336_v56  ;;  %v8644_v15 = vpop.f32.mrb[195].mxu1  ;;  %v9126_v30 = vpop.f32.mrb[43].mxu0  ;;  %v5337_v29 = vadd.f32 %v13360_v3, %v4976_v2 }
 0x482   : > { %v4715_v6 = vrot.slane %v13737_v61, 1  ;;  %5993 = vrot.lane.b32.xlu0 %v5674_v16, %s9728_s25  ;;  %5033 = vrot.lane.b32.xlu1 %v4714_v14, %s9727_s24  ;;  %v5677_v9 = vrot.slane %v13737_v61, 2 }
 0x483   : > { %v6465_v35 = vadd.f32 %v13577_v59, %v6298_v63  ;;  %v2530_v5 = vpop.f32.mrb[196].mxu1  ;;  %v4041_v41 = vpop.f32.mrb[44].mxu0 }
 0x484   : > { %v5938_v27 = vpop.permute.xlu0 %5937  ;;  %v4978_v24 = vpop.permute.xlu1 %4977  ;;  %v13749_v23 = vadd.f32 %v4041_v41, %v2525_v28  ;;  %v4716_v10 = vsel %vm4417_vm2, %v4713_v49, %v4715_v6  ;;  %v5678_v63 = vsel %vm5379_vm3, %v5675_v21, %v5677_v9 }
 0x485   : > { %6626 = vst.msk [vmem:[%s11644_s4 + $0x3a8] sm:$0xff] %vm6508_vm4, %v6465_v35  ;;  %v6299_v57 = vadd.f32 %v5938_v27, %v5337_v29  ;;  %v8647_v39 = vpop.f32.mrb[197].mxu1  ;;  %v9129_v58 = vpop.f32.mrb[45].mxu0  ;;  %v5338_v37 = vadd.f32 %v13372_v40, %v4978_v24 }
 0x486   : > { %v4717_v3 = vrot.slane %v13749_v23, 1  ;;  %5995 = vrot.lane.b32.xlu1 %v5676_v4, %s9728_s25  ;;  %5035 = vrot.lane.b32.xlu0 %v4716_v10, %s9727_s24  ;;  %v5679_v44 = vrot.slane %v13749_v23, 2 }
 0x487   : > { %v6466_v19 = vadd.f32 %v13577_v59, %v6299_v57  ;;  %v2535_v50 = vpop.f32.mrb[198].mxu1  ;;  %v4046_v49 = vpop.f32.mrb[46].mxu0 }
 0x488   : > { %v5940_v38 = vpop.permute.xlu1 %5939  ;;  %v4980_v56 = vpop.permute.xlu0 %4979  ;;  %v13761_v28 = vadd.f32 %v4046_v49, %v2530_v5  ;;  %v4718_v60 = vsel %vm4417_vm2, %v4715_v6, %v4717_v3  ;;  %v5680_v57 = vsel %vm5379_vm3, %v5677_v9, %v5679_v44 }
 0x489   : > { %6627 = vst.msk [vmem:[%s11644_s4 + $0x3b0] sm:$0xff] %vm6508_vm4, %v6466_v19  ;;  %v6300_v53 = vadd.f32 %v5940_v38, %v5338_v37  ;;  %v8650_v2 = vpop.f32.mrb[199].mxu1  ;;  %v9132_v14 = vpop.f32.mrb[47].mxu0  ;;  %v5339_v30 = vadd.f32 %v13384_v22, %v4980_v56 }
 0x48a   : > { %v4719_v40 = vrot.slane %v13761_v28, 1  ;;  %5997 = vrot.lane.b32.xlu0 %v5678_v63, %s9728_s25  ;;  %5037 = vrot.lane.b32.xlu1 %v4718_v60, %s9727_s24  ;;  %v5681_v21 = vrot.slane %v13761_v28, 2 }
 0x48b   : > { %v6467_v15 = vadd.f32 %v13577_v59, %v6300_v53  ;;  %v2540_v16 = vpop.f32.mrb[200].mxu1  ;;  %v4051_v6 = vpop.f32.mrb[48].mxu0 }
 0x48c   : > { %v5942_v35 = vpop.permute.xlu0 %5941  ;;  %v4982_v29 = vpop.permute.xlu1 %4981  ;;  %v13773_v5 = vadd.f32 %v4051_v6, %v2535_v50  ;;  %v4720_v41 = vsel %vm4417_vm2, %v4717_v3, %v4719_v40  ;;  %v5682_v53 = vsel %vm5379_vm3, %v5679_v44, %v5681_v21 }
 0x48d   : > { %6628 = vst.msk [vmem:[%s11644_s4 + $0x3b8] sm:$0xff] %vm6508_vm4, %v6467_v15  ;;  %v6301_v27 = vadd.f32 %v5942_v35, %v5339_v30  ;;  %v8653_v24 = vpop.f32.mrb[201].mxu1  ;;  %v9135_v10 = vpop.f32.mrb[49].mxu0  ;;  %v5340_v58 = vadd.f32 %v13396_v20, %v4982_v29 }
 0x48e   : > { %v4721_v22 = vrot.slane %v13773_v5, 1  ;;  %5999 = vrot.lane.b32.xlu1 %v5680_v57, %s9728_s25  ;;  %5039 = vrot.lane.b32.xlu0 %v4720_v41, %s9727_s24  ;;  %v5683_v9 = vrot.slane %v13773_v5, 2 }
 0x48f   : > { %v6468_v39 = vadd.f32 %v13577_v59, %v6301_v27  ;;  %v2545_v4 = vpop.f32.mrb[202].mxu1  ;;  %v4056_v3 = vpop.f32.mrb[50].mxu0 }
 0x490   : > { %v5944_v19 = vpop.permute.xlu1 %5943  ;;  %v4984_v37 = vpop.permute.xlu0 %4983  ;;  %v13785_v50 = vadd.f32 %v4056_v3, %v2540_v16  ;;  %v4722_v49 = vsel %vm4417_vm2, %v4719_v40, %v4721_v22  ;;  %v5684_v27 = vsel %vm5379_vm3, %v5681_v21, %v5683_v9 }
 0x491   : > { %6629 = vst.msk [vmem:[%s11644_s4 + $0x3c0] sm:$0xff] %vm6508_vm4, %v6468_v39  ;;  %v6302_v38 = vadd.f32 %v5944_v19, %v5340_v58  ;;  %v8656_v56 = vpop.f32.mrb[203].mxu1  ;;  %v9138_v60 = vpop.f32.mrb[51].mxu0  ;;  %v5341_v14 = vadd.f32 %v13408_v33, %v4984_v37 }
 0x492   : > { %v4723_v20 = vrot.slane %v13785_v50, 1  ;;  %6001 = vrot.lane.b32.xlu0 %v5682_v53, %s9728_s25  ;;  %5041 = vrot.lane.b32.xlu1 %v4722_v49, %s9727_s24  ;;  %v5685_v44 = vrot.slane %v13785_v50, 2 }
 0x493   : > { %v6469_v2 = vadd.f32 %v13577_v59, %v6302_v38  ;;  %v2550_v63 = vpop.f32.mrb[204].mxu1  ;;  %v4061_v40 = vpop.f32.mrb[52].mxu0 }
 0x494   : > { %v5946_v15 = vpop.permute.xlu0 %5945  ;;  %v4986_v30 = vpop.permute.xlu1 %4985  ;;  %v13797_v16 = vadd.f32 %v4061_v40, %v2545_v4  ;;  %v4724_v6 = vsel %vm4417_vm2, %v4721_v22, %v4723_v20  ;;  %v5686_v38 = vsel %vm5379_vm3, %v5683_v9, %v5685_v44 }
 0x495   : > { %6630 = vst.msk [vmem:[%s11644_s4 + $0x3c8] sm:$0xff] %vm6508_vm4, %v6469_v2  ;;  %v6303_v35 = vadd.f32 %v5946_v15, %v5341_v14  ;;  %v8659_v29 = vpop.f32.mrb[205].mxu1  ;;  %v9141_v41 = vpop.f32.mrb[53].mxu0  ;;  %v5342_v10 = vadd.f32 %v13420_v17, %v4986_v30 }
 0x496   : > { %v4725_v33 = vrot.slane %v13797_v16, 1  ;;  %6003 = vrot.lane.b32.xlu1 %v5684_v27, %s9728_s25  ;;  %5043 = vrot.lane.b32.xlu0 %v4724_v6, %s9727_s24  ;;  %v5687_v21 = vrot.slane %v13797_v16, 2 }
 0x497   : > { %v6470_v24 = vadd.f32 %v13577_v59, %v6303_v35  ;;  %v2555_v57 = vpop.f32.mrb[206].mxu1  ;;  %v4066_v22 = vpop.f32.mrb[54].mxu0 }
 0x498   : > { %v5948_v39 = vpop.permute.xlu1 %5947  ;;  %v4988_v58 = vpop.permute.xlu0 %4987  ;;  %v13809_v4 = vadd.f32 %v4066_v22, %v2550_v63  ;;  %v4726_v3 = vsel %vm4417_vm2, %v4723_v20, %v4725_v33  ;;  %v5688_v35 = vsel %vm5379_vm3, %v5685_v44, %v5687_v21 }
 0x499   : > { %6631 = vst.msk [vmem:[%s11644_s4 + $0x3d0] sm:$0xff] %vm6508_vm4, %v6470_v24  ;;  %v6304_v19 = vadd.f32 %v5948_v39, %v5342_v10  ;;  %v8662_v37 = vpop.f32.mrb[207].mxu1  ;;  %v9144_v49 = vpop.f32.mrb[55].mxu0  ;;  %v5343_v60 = vadd.f32 %v13432_v46, %v4988_v58 }
 0x49a   : > { %v4727_v17 = vrot.slane %v13809_v4, 1  ;;  %6005 = vrot.lane.b32.xlu0 %v5686_v38, %s9728_s25  ;;  %5045 = vrot.lane.b32.xlu1 %v4726_v3, %s9727_s24  ;;  %v5689_v9 = vrot.slane %v13809_v4, 2 }
 0x49b   : > { %v6471_v56 = vadd.f32 %v13577_v59, %v6304_v19  ;;  %v2560_v53 = vpop.f32.mrb[208].mxu1  ;;  %v4071_v20 = vpop.f32.mrb[56].mxu0 }
 0x49c   : > { %v5950_v2 = vpop.permute.xlu0 %5949  ;;  %v4990_v14 = vpop.permute.xlu1 %4989  ;;  %v13821_v63 = vadd.f32 %v4071_v20, %v2555_v57  ;;  %v4728_v40 = vsel %vm4417_vm2, %v4725_v33, %v4727_v17  ;;  %v5690_v19 = vsel %vm5379_vm3, %v5687_v21, %v5689_v9 }
 0x49d   : > { %6632 = vst.msk [vmem:[%s11644_s4 + $0x3d8] sm:$0xff] %vm6508_vm4, %v6471_v56  ;;  %v6305_v15 = vadd.f32 %v5950_v2, %v5343_v60  ;;  %v8665_v30 = vpop.f32.mrb[209].mxu1  ;;  %v9147_v6 = vpop.f32.mrb[57].mxu0  ;;  %v5344_v41 = vadd.f32 %v13444_v36, %v4990_v14 }
 0x49e   : > { %v4729_v46 = vrot.slane %v13821_v63, 1  ;;  %6007 = vrot.lane.b32.xlu1 %v5688_v35, %s9728_s25  ;;  %5047 = vrot.lane.b32.xlu0 %v4728_v40, %s9727_s24  ;;  %v5691_v44 = vrot.slane %v13821_v63, 2 }
 0x49f   : > { %v6472_v29 = vadd.f32 %v13577_v59, %v6305_v15  ;;  %v2565_v27 = vpop.f32.mrb[210].mxu1  ;;  %v4076_v33 = vpop.f32.mrb[58].mxu0 }
 0x4a0   : > { %v5952_v24 = vpop.permute.xlu1 %5951  ;;  %v4992_v10 = vpop.permute.xlu0 %4991  ;;  %v13833_v57 = vadd.f32 %v4076_v33, %v2560_v53  ;;  %v4730_v22 = vsel %vm4417_vm2, %v4727_v17, %v4729_v46  ;;  %v5692_v15 = vsel %vm5379_vm3, %v5689_v9, %v5691_v44 }
 0x4a1   : > { %6633 = vst.msk [vmem:[%s11644_s4 + $0x3e0] sm:$0xff] %vm6508_vm4, %v6472_v29  ;;  %v6306_v39 = vadd.f32 %v5952_v24, %v5344_v41  ;;  %v8668_v58 = vpop.f32.mrb[211].mxu1  ;;  %v9150_v3 = vpop.f32.mrb[59].mxu0  ;;  %v5345_v49 = vadd.f32 %v13456_v55, %v4992_v10 }
 0x4a2   : > { %v4731_v36 = vrot.slane %v13833_v57, 1  ;;  %6009 = vrot.lane.b32.xlu0 %v5690_v19, %s9728_s25  ;;  %5049 = vrot.lane.b32.xlu1 %v4730_v22, %s9727_s24  ;;  %v5693_v21 = vrot.slane %v13833_v57, 2 }
 0x4a3   : > { %v6473_v37 = vadd.f32 %v13577_v59, %v6306_v39  ;;  %v2570_v38 = vpop.f32.mrb[212].mxu1  ;;  %v4081_v17 = vpop.f32.mrb[60].mxu0 }
 0x4a4   : > { %v5954_v56 = vpop.permute.xlu0 %5953  ;;  %v4994_v60 = vpop.permute.xlu1 %4993  ;;  %v13845_v53 = vadd.f32 %v4081_v17, %v2565_v27  ;;  %v4732_v20 = vsel %vm4417_vm2, %v4729_v46, %v4731_v36  ;;  %v5694_v39 = vsel %vm5379_vm3, %v5691_v44, %v5693_v21 }
 0x4a5   : > { %6634 = vst.msk [vmem:[%s11644_s4 + $0x3e8] sm:$0xff] %vm6508_vm4, %v6473_v37  ;;  %v6307_v2 = vadd.f32 %v5954_v56, %v5345_v49  ;;  %v8671_v14 = vpop.f32.mrb[213].mxu1  ;;  %v9153_v40 = vpop.f32.mrb[61].mxu0  ;;  %v5346_v6 = vadd.f32 %v13468_v25, %v4994_v60 }
 0x4a6   : > { %v4733_v55 = vrot.slane %v13845_v53, 1  ;;  %6011 = vrot.lane.b32.xlu1 %v5692_v15, %s9728_s25  ;;  %5051 = vrot.lane.b32.xlu0 %v4732_v20, %s9727_s24  ;;  %v5695_v9 = vrot.slane %v13845_v53, 2 }
 0x4a7   : > { %v6474_v30 = vadd.f32 %v13577_v59, %v6307_v2  ;;  %v2575_v35 = vpop.f32.mrb[214].mxu1  ;;  %v4086_v46 = vpop.f32.mrb[62].mxu0 }
 0x4a8   : > { %v5956_v29 = vpop.permute.xlu1 %5955  ;;  %v4996_v41 = vpop.permute.xlu0 %4995  ;;  %v13857_v27 = vadd.f32 %v4086_v46, %v2570_v38  ;;  %v4734_v33 = vsel %vm4417_vm2, %v4731_v36, %v4733_v55  ;;  %v5696_v60 = vsel %vm5379_vm3, %v5693_v21, %v5695_v9 }
 0x4a9   : > { %6635 = vst.msk [vmem:[%s11644_s4 + $0x3f0] sm:$0xff] %vm6508_vm4, %v6474_v30  ;;  %v6308_v24 = vadd.f32 %v5956_v29, %v5346_v6  ;;  %v8674_v10 = vpop.f32.mrb[215].mxu1  ;;  %v9156_v22 = vpop.f32.mrb[63].mxu0  ;;  %v5347_v3 = vadd.f32 %v13480_v31, %v4996_v41 }
 0x4aa   : > { %v4735_v25 = vrot.slane %v13857_v27, 1  ;;  %6013 = vrot.lane.b32.xlu0 %v5694_v39, %s9728_s25  ;;  %5053 = vrot.lane.b32.xlu1 %v4734_v33, %s9727_s24  ;;  %v5697_v44 = vrot.slane %v13857_v27, 2 }
 0x4ab   : > { %v6475_v58 = vadd.f32 %v13577_v59, %v6308_v24  ;;  %v4091_v19 = vpop.f32.mrb[64].mxu0 }
 0x4ac   : > { %v5958_v36 = vpop.permute.xlu0 %5957  ;;  %v4998_v37 = vpop.permute.xlu1 %4997  ;;  %v9349_v49 = vadd.f32 %v4091_v19, %v2575_v35  ;;  %v4736_v38 = vsel %vm4417_vm2, %v4733_v55, %v4735_v25  ;;  %v5698_v21 = vsel %vm5379_vm3, %v5695_v9, %v5697_v44 }
 0x4ad   : > { %6636 = vst.msk [vmem:[%s11644_s4 + $0x3f8] sm:$0xff] %vm6508_vm4, %v6475_v58  ;;  %v6309_v17 = vadd.f32 %v5958_v36, %v5347_v3  ;;  %v9159_v56 = vpop.f32.mrb[65].mxu0  ;;  %v5348_v2 = vadd.f32 %v13492_v12, %v4998_v37 }
 0x4ae   : > { %v4737_v20 = vrot.slane %v9349_v49, 1  ;;  %6015 = vrot.lane.b32.xlu1 %v5696_v60, %s9728_s25  ;;  %5055 = vrot.lane.b32.xlu0 %v4736_v38, %s9727_s24  ;;  %v5699_v55 = vrot.slane %v9349_v49, 2 }
 0x4af   : > { %v6476_v31 = vadd.f32 %v13577_v59, %v6309_v17 }
 0x4b0   : > { %v5960_v14 = vpop.permute.xlu1 %5959  ;;  %v5000_v40 = vpop.permute.xlu0 %4999  ;;  %v4738_v15 = vsel %vm4417_vm2, %v4735_v25, %v4737_v20  ;;  %v5700_v41 = vsel %vm5379_vm3, %v5697_v44, %v5699_v55 }
 0x4b1   : > { %6637 = vst.msk [vmem:[%s11644_s4 + $0x400] sm:$0xff] %vm6508_vm4, %v6476_v31  ;;  %v6310_v30 = vadd.f32 %v5960_v14, %v5348_v2  ;;  %v5349_v35 = vadd.f32 %v13504_v32, %v5000_v40 }
 0x4b2   : > { %6017 = vrot.lane.b32.xlu0 %v5698_v21, %s9728_s25  ;;  %5057 = vrot.lane.b32.xlu1 %v4738_v15, %s9727_s24 }
 0x4b3   : > { %v6477_v6 = vadd.f32 %v13577_v59, %v6310_v30 }
 0x4b4   : > { %v5962_v12 = vpop.permute.xlu0 %5961  ;;  %v5002_v46 = vpop.permute.xlu1 %5001 }
 0x4b5   : > { %6638 = vst.msk [vmem:[%s11644_s4 + $0x408] sm:$0xff] %vm6508_vm4, %v6477_v6  ;;  %v6311_v29 = vadd.f32 %v5962_v12, %v5349_v35  ;;  %v5350_v9 = vadd.f32 %v13516_v26, %v5002_v46 }
 0x4b6   : > { %6019 = vrot.lane.b32.xlu1 %v5700_v41, %s9728_s25 }
 0x4b7   : > { %v6478_v33 = vadd.f32 %v13577_v59, %v6311_v29 }
 0x4b8   : > { %v5964_v24 = vpop.permute.xlu1 %5963  ;;  %v5004_v10 = vpop.permute.xlu0 %5003 }
 0x4b9   : > { %6639 = vst.msk [vmem:[%s11644_s4 + $0x410] sm:$0xff] %vm6508_vm4, %v6478_v33  ;;  %v6312_v32 = vadd.f32 %v5964_v24, %v5350_v9  ;;  %v5351_v39 = vadd.f32 %v13528_v11, %v5004_v10 }
 0x4bb   : > { %v6479_v22 = vadd.f32 %v13577_v59, %v6312_v32 }
 0x4bc   : > { %v5966_v25 = vpop.permute.xlu0 %5965  ;;  %v5006_v58 = vpop.permute.xlu1 %5005 }
 0x4bd   : > { %6640 = vst.msk [vmem:[%s11644_s4 + $0x418] sm:$0xff] %vm6508_vm4, %v6479_v22  ;;  %v6313_v3 = vadd.f32 %v5966_v25, %v5351_v39  ;;  %v5352_v26 = vadd.f32 %v13540_v18, %v5006_v58 }
 0x4bf   : > { %v6480_v19 = vadd.f32 %v13577_v59, %v6313_v3 }
 0x4c0   : > { %v5968_v36 = vpop.permute.xlu1 %5967  ;;  %v5008_v37 = vpop.permute.xlu0 %5007 }
 0x4c1   : > { %6641 = vst.msk [vmem:[%s11644_s4 + $0x420] sm:$0xff] %vm6508_vm4, %v6480_v19  ;;  %v6314_v49 = vadd.f32 %v5968_v36, %v5352_v26  ;;  %v5353_v11 = vadd.f32 %v13552_v43, %v5008_v37 }
 0x4c3   : > { %v6481_v38 = vadd.f32 %v13577_v59, %v6314_v49 }
 0x4c4   : > { %v5970_v44 = vpop.permute.xlu0 %5969  ;;  %v5010_v17 = vpop.permute.xlu1 %5009 }
 0x4c5   : > { %6642 = vst.msk [vmem:[%s11644_s4 + $0x428] sm:$0xff] %vm6508_vm4, %v6481_v38  ;;  %v6315_v56 = vadd.f32 %v5970_v44, %v5353_v11  ;;  %v5354_v18 = vadd.f32 %v13564_v8, %v5010_v17 }
 0x4c7   : > { %v6482_v60 = vadd.f32 %v13577_v59, %v6315_v56 }
 0x4c8   : > { %v5972_v20 = vpop.permute.xlu1 %5971  ;;  %v5012_v31 = vpop.permute.xlu0 %5011 }
 0x4c9   : > { %6643 = vst.msk [vmem:[%s11644_s4 + $0x430] sm:$0xff] %vm6508_vm4, %v6482_v60  ;;  %v6316_v2 = vadd.f32 %v5972_v20, %v5354_v18  ;;  %v5355_v43 = vadd.f32 %v13581_v52, %v5012_v31 }
 0x4cb   : > { %v6483_v14 = vadd.f32 %v13577_v59, %v6316_v2 }
 0x4cc   : > { %v5974_v40 = vpop.permute.xlu0 %5973  ;;  %v5014_v15 = vpop.permute.xlu1 %5013 }
 0x4cd   : > { %6644 = vst.msk [vmem:[%s11644_s4 + $0x438] sm:$0xff] %vm6508_vm4, %v6483_v14  ;;  %v6317_v55 = vadd.f32 %v5974_v40, %v5355_v43  ;;  %v5356_v8 = vadd.f32 %v13593_v42, %v5014_v15 }
 0x4cf   : > { %v6484_v30 = vadd.f32 %v13577_v59, %v6317_v55 }
 0x4d0   : > { %v5976_v21 = vpop.permute.xlu1 %5975  ;;  %v5016_v6 = vpop.permute.xlu0 %5015 }
 0x4d1   : > { %6645 = vst.msk [vmem:[%s11644_s4 + $0x440] sm:$0xff] %vm6508_vm4, %v6484_v30  ;;  %v6318_v35 = vadd.f32 %v5976_v21, %v5356_v8  ;;  %v5357_v52 = vadd.f32 %v13605_v51, %v5016_v6 }
 0x4d3   : > { %v6485_v12 = vadd.f32 %v13577_v59, %v6318_v35 }
 0x4d4   : > { %v5978_v46 = vpop.permute.xlu0 %5977  ;;  %v5018_v29 = vpop.permute.xlu1 %5017 }
 0x4d5   : > { %6646 = vst.msk [vmem:[%s11644_s4 + $0x448] sm:$0xff] %vm6508_vm4, %v6485_v12  ;;  %v6319_v41 = vadd.f32 %v5978_v46, %v5357_v52  ;;  %v5358_v42 = vadd.f32 %v13617_v45, %v5018_v29 }
 0x4d7   : > { %v6486_v33 = vadd.f32 %v13577_v59, %v6319_v41 }
 0x4d8   : > { %v5980_v9 = vpop.permute.xlu1 %5979  ;;  %v5020_v24 = vpop.permute.xlu0 %5019 }
 0x4d9   : > { %6647 = vst.msk [vmem:[%s11644_s4 + $0x450] sm:$0xff] %vm6508_vm4, %v6486_v33  ;;  %v6320_v10 = vadd.f32 %v5980_v9, %v5358_v42  ;;  %v5359_v51 = vadd.f32 %v13629_v1, %v5020_v24 }
 0x4db   : > { %v6487_v32 = vadd.f32 %v13577_v59, %v6320_v10 }
 0x4dc   : > { %v5982_v22 = vpop.permute.xlu0 %5981  ;;  %v5022_v39 = vpop.permute.xlu1 %5021 }
 0x4dd   : > { %6648 = vst.msk [vmem:[%s11644_s4 + $0x458] sm:$0xff] %vm6508_vm4, %v6487_v32  ;;  %v6321_v25 = vadd.f32 %v5982_v22, %v5359_v51  ;;  %v5360_v3 = vadd.f32 %v13641_v48, %v5022_v39  ;;  %v13941_v48 = vld [vmem:[%s14019_s2] ss:$0 sm:$0xff] }
 0x4df   : > { %v6488_v58 = vadd.f32 %v13577_v59, %v6321_v25 }
 0x4e0   : > { %v5984_v45 = vpop.permute.xlu1 %5983  ;;  %v5024_v19 = vpop.permute.xlu0 %5023 }
 0x4e1   : > { %6649 = vst.msk [vmem:[%s11644_s4 + $0x460] sm:$0xff] %vm6508_vm4, %v6488_v58  ;;  %v6322_v26 = vadd.f32 %v5984_v45, %v5360_v3  ;;  %v5361_v37 = vadd.f32 %v13653_v13, %v5024_v19 }
 0x4e3   : > { %v6489_v36 = vadd.f32 %v13577_v59, %v6322_v26 }
 0x4e4   : > { %v5986_v1 = vpop.permute.xlu0 %5985  ;;  %v5026_v49 = vpop.permute.xlu1 %5025 }
 0x4e5   : > { %6650 = vst.msk [vmem:[%s11644_s4 + $0x468] sm:$0xff] %vm6508_vm4, %v6489_v36  ;;  %v6323_v38 = vadd.f32 %v5986_v1, %v5361_v37  ;;  %v5362_v44 = vadd.f32 %v13665_v62, %v5026_v49 }
 0x4e7   : > { %v6490_v11 = vadd.f32 %v13941_v48, %v6323_v38 }
 0x4e8   : > { %v5988_v17 = vpop.permute.xlu1 %5987  ;;  %v5028_v59 = vpop.permute.xlu0 %5027 }
 0x4e9   : > { %6651 = vst.msk [vmem:[%s11644_s4 + $0x470] sm:$0xff] %vm6508_vm4, %v6490_v11  ;;  %v6324_v13 = vadd.f32 %v5988_v17, %v5362_v44  ;;  %v5363_v60 = vadd.f32 %v13677_v7, %v5028_v59 }
 0x4eb   : > { %v6491_v56 = vadd.f32 %v13941_v48, %v6324_v13 }
 0x4ec   : > { %v5990_v18 = vpop.permute.xlu0 %5989  ;;  %v5030_v20 = vpop.permute.xlu1 %5029 }
 0x4ed   : > { %6652 = vst.msk [vmem:[%s11644_s4 + $0x478] sm:$0xff] %vm6508_vm4, %v6491_v56  ;;  %v6325_v31 = vadd.f32 %v5990_v18, %v5363_v60  ;;  %v5364_v62 = vadd.f32 %v13689_v34, %v5030_v20 }
 0x4ef   : > { %v6492_v2 = vadd.f32 %v13941_v48, %v6325_v31 }
 0x4f0   : > { %v5992_v14 = vpop.permute.xlu1 %5991  ;;  %v5032_v43 = vpop.permute.xlu0 %5031 }
 0x4f1   : > { %6653 = vst.msk [vmem:[%s11644_s4 + $0x480] sm:$0xff] %vm6508_vm4, %v6492_v2  ;;  %v6326_v40 = vadd.f32 %v5992_v14, %v5364_v62  ;;  %v5365_v7 = vadd.f32 %v13701_v54, %v5032_v43 }
 0x4f3   : > { %v6493_v15 = vadd.f32 %v13941_v48, %v6326_v40 }
 0x4f4   : > { %v5994_v55 = vpop.permute.xlu0 %5993  ;;  %v5034_v30 = vpop.permute.xlu1 %5033 }
 0x4f5   : > { %6654 = vst.msk [vmem:[%s11644_s4 + $0x488] sm:$0xff] %vm6508_vm4, %v6493_v15  ;;  %v6327_v8 = vadd.f32 %v5994_v55, %v5365_v7  ;;  %v5366_v34 = vadd.f32 %v13713_v47, %v5034_v30 }
 0x4f7   : > { %v6494_v21 = vadd.f32 %v13941_v48, %v6327_v8 }
 0x4f8   : > { %v5996_v6 = vpop.permute.xlu1 %5995  ;;  %v5036_v35 = vpop.permute.xlu0 %5035 }
 0x4f9   : > { %6655 = vst.msk [vmem:[%s11644_s4 + $0x490] sm:$0xff] %vm6508_vm4, %v6494_v21  ;;  %v6328_v12 = vadd.f32 %v5996_v6, %v5366_v34  ;;  %v5367_v54 = vadd.f32 %v13725_v0, %v5036_v35 }
 0x4fb   : > { %v6495_v52 = vadd.f32 %v13941_v48, %v6328_v12 }
 0x4fc   : > { %v5998_v46 = vpop.permute.xlu0 %5997  ;;  %v5038_v29 = vpop.permute.xlu1 %5037 }
 0x4fd   : > { %6656 = vst.msk [vmem:[%s11644_s4 + $0x498] sm:$0xff] %vm6508_vm4, %v6495_v52  ;;  %v6329_v41 = vadd.f32 %v5998_v46, %v5367_v54  ;;  %v5368_v47 = vadd.f32 %v13737_v61, %v5038_v29 }
 0x4ff   : > { %v6496_v33 = vadd.f32 %v13941_v48, %v6329_v41 }
 0x500   : > { %v6000_v42 = vpop.permute.xlu1 %5999  ;;  %v5040_v9 = vpop.permute.xlu0 %5039 }
 0x501   : > { %6657 = vst.msk [vmem:[%s11644_s4 + $0x4a0] sm:$0xff] %vm6508_vm4, %v6496_v33  ;;  %v6330_v24 = vadd.f32 %v6000_v42, %v5368_v47  ;;  %v5369_v0 = vadd.f32 %v13749_v23, %v5040_v9 }
 0x503   : > { %v6497_v10 = vadd.f32 %v13941_v48, %v6330_v24 }
 0x504   : > { %v6002_v32 = vpop.permute.xlu0 %6001  ;;  %v5042_v51 = vpop.permute.xlu1 %5041 }
 0x505   : > { %6658 = vst.msk [vmem:[%s11644_s4 + $0x4a8] sm:$0xff] %vm6508_vm4, %v6497_v10  ;;  %v6331_v22 = vadd.f32 %v6002_v32, %v5369_v0  ;;  %v5370_v61 = vadd.f32 %v13761_v28, %v5042_v51 }
 0x507   : > { %v6498_v39 = vadd.f32 %v13941_v48, %v6331_v22 }
 0x508   : > { %v6004_v25 = vpop.permute.xlu1 %6003  ;;  %v5044_v58 = vpop.permute.xlu0 %5043 }
 0x509   : > { %6659 = vst.msk [vmem:[%s11644_s4 + $0x4b0] sm:$0xff] %vm6508_vm4, %v6498_v39  ;;  %v6332_v3 = vadd.f32 %v6004_v25, %v5370_v61  ;;  %v5371_v23 = vadd.f32 %v13773_v5, %v5044_v58 }
 0x50b   : > { %v6499_v45 = vadd.f32 %v13941_v48, %v6332_v3 }
 0x50c   : > { %v6006_v19 = vpop.permute.xlu0 %6005  ;;  %v5046_v26 = vpop.permute.xlu1 %5045 }
 0x50d   : > { %6660 = vst.msk [vmem:[%s11644_s4 + $0x4b8] sm:$0xff] %vm6508_vm4, %v6499_v45  ;;  %v6333_v36 = vadd.f32 %v6006_v19, %v5371_v23  ;;  %v5372_v28 = vadd.f32 %v13785_v50, %v5046_v26 }
 0x50f   : > { %v6500_v37 = vadd.f32 %v13941_v48, %v6333_v36 }
 0x510   : > { %v6008_v1 = vpop.permute.xlu1 %6007  ;;  %v5048_v49 = vpop.permute.xlu0 %5047 }
 0x511   : > { %6661 = vst.msk [vmem:[%s11644_s4 + $0x4c0] sm:$0xff] %vm6508_vm4, %v6500_v37  ;;  %v6334_v38 = vadd.f32 %v6008_v1, %v5372_v28  ;;  %v5373_v5 = vadd.f32 %v13797_v16, %v5048_v49 }
 0x513   : > { %v6501_v11 = vadd.f32 %v13941_v48, %v6334_v38 }
 0x514   : > { %v6010_v44 = vpop.permute.xlu0 %6009  ;;  %v5050_v17 = vpop.permute.xlu1 %5049 }
 0x515   : > { %6662 = vst.msk [vmem:[%s11644_s4 + $0x4c8] sm:$0xff] %vm6508_vm4, %v6501_v11  ;;  %v6335_v59 = vadd.f32 %v6010_v44, %v5373_v5  ;;  %v5374_v50 = vadd.f32 %v13809_v4, %v5050_v17 }
 0x517   : > { %v6502_v13 = vadd.f32 %v13941_v48, %v6335_v59 }
 0x518   : > { %v6012_v56 = vpop.permute.xlu1 %6011  ;;  %v5052_v60 = vpop.permute.xlu0 %5051 }
 0x519   : > { %6663 = vst.msk [vmem:[%s11644_s4 + $0x4d0] sm:$0xff] %vm6508_vm4, %v6502_v13  ;;  %v6336_v18 = vadd.f32 %v6012_v56, %v5374_v50  ;;  %v5375_v16 = vadd.f32 %v13821_v63, %v5052_v60 }
 0x51b   : > { %v6503_v20 = vadd.f32 %v13941_v48, %v6336_v18 }
 0x51c   : > { %v6014_v31 = vpop.permute.xlu0 %6013  ;;  %v5054_v2 = vpop.permute.xlu1 %5053 }
 0x51d   : > { %6664 = vst.msk [vmem:[%s11644_s4 + $0x4d8] sm:$0xff] %vm6508_vm4, %v6503_v20  ;;  %v6337_v62 = vadd.f32 %v6014_v31, %v5375_v16  ;;  %v5376_v4 = vadd.f32 %v13833_v57, %v5054_v2 }
 0x51f   : > { %v6504_v14 = vadd.f32 %v13941_v48, %v6337_v62 }
 0x520   : > { %v6016_v43 = vpop.permute.xlu1 %6015  ;;  %v5056_v40 = vpop.permute.xlu0 %5055 }
 0x521   : > { %6665 = vst.msk [vmem:[%s11644_s4 + $0x4e0] sm:$0xff] %vm6508_vm4, %v6504_v14  ;;  %v6338_v15 = vadd.f32 %v6016_v43, %v5376_v4  ;;  %v5377_v63 = vadd.f32 %v13845_v53, %v5056_v40 }
 0x523   : > { %v6505_v7 = vadd.f32 %v13941_v48, %v6338_v15 }
 0x524   : > { %v6018_v55 = vpop.permute.xlu0 %6017  ;;  %v5058_v30 = vpop.permute.xlu1 %5057 }
 0x525   : > { %6666 = vst.msk [vmem:[%s11644_s4 + $0x4e8] sm:$0xff] %vm6508_vm4, %v6505_v7  ;;  %v6339_v8 = vadd.f32 %v6018_v55, %v5377_v63  ;;  %v5378_v34 = vadd.f32 %v13857_v27, %v5058_v30 }
 0x527   : > { %v6506_v21 = vadd.f32 %v13941_v48, %v6339_v8 }
 0x528   : > { %v6020_v57 = vpop.permute.xlu1 %6019 }
 0x529   : > { %6667 = vst.msk [vmem:[%s11644_s4 + $0x4f0] sm:$0xff] %vm6508_vm4, %v6506_v21  ;;  %v6340_v6 = vadd.f32 %v6020_v57, %v5378_v34 }
 0x52b   : > { %v6507_v35 = vadd.f32 %v13941_v48, %v6340_v6 }
 0x52d   : > { %6668 = vst.msk [vmem:[%s11644_s4 + $0x4f8] sm:$0xff] %vm6508_vm4, %v6507_v35 }
 0x52e PF: > { %s13_s12 = sadd.s32 1, %s9723_s12  }
 0x52f   : > { %p10_p4 = scmp.ge.s32.totalorder %s13_s12, 4  }
 0x531   :  { %12 = sbr.rel (!%p10_p4) target bundleno = 1 (0x1), region = 64 }

</bundles_post_ra>
